<compile_context>
chip_gen: v6e
topology: v6e:2x2x1
jax: 0.10.0
libtpu: 0.0.40
codegen_flags: <defaults>
</compile_context>

<pallas_src>
import math
import functools

import jax
import jax.numpy as jnp
from jax.experimental import pallas as pl
from jax.experimental.pallas import tpu as pltpu


# ----------------------------------------------------------------------------- helpers

def _round_up(x, m):
    return ((x + m - 1) // m) * m


# ----------------------------------------------------------------------------- fused kernel

def _transformer_kernel(src_ref, tgt_ref, *rest, treedef, nheads, emb_scale):
    """Entire TransformerModel.forward for ONE batch element (grid axis = batch).

    rest = (*flattened_param_refs, logits_out_ref, attn_scratch_ref).
    All parameter refs are full-extent VMEM blocks (weights bf16, biases/LN f32).
    """
    o_ref = rest[-2]                 # (1, S_tgt, Vp) f32
    attn_buf = rest[-1]              # (max(S_src,S_tgt), D) f32 VMEM scratch
    p = jax.tree_util.tree_unflatten(treedef, rest[:-2])

    table_ref = p["embedding"]       # (Vp_rows, D) bf16, rows padded past vocab with zeros
    pe_ref = p["pos_enc"]            # (max_len, D) f32
    D = table_ref.shape[1]
    dh = D // nheads
    S_src = src_ref.shape[1]
    S_tgt = tgt_ref.shape[1]
    scale = 1.0 / math.sqrt(dh)

    # ---------- building blocks (values in/out; weights read from VMEM refs) ----------

    def embed(tok_ref, s_len):
        ids = tok_ref[0]                                           # (S, 1) int32
        vp = table_ref.shape[0]
        iota = jax.lax.broadcasted_iota(jnp.int32, (s_len, vp), 1)
        onehot = jnp.where(iota == ids, 1.0, 0.0).astype(jnp.bfloat16)
        emb = jnp.dot(onehot, table_ref[...], preferred_element_type=jnp.float32)
        return emb * emb_scale + pe_ref[0:s_len, :]

    def linear(x, w_ref, b_ref, relu=False):
        y = jnp.dot(x.astype(jnp.bfloat16), w_ref[...],
                    preferred_element_type=jnp.float32) + b_ref[...]
        if relu:
            y = jnp.maximum(y, 0.0)
        return y

    def add_ln(x, y, g_ref, b_ref):
        z = x + y
        mu = jnp.mean(z, axis=-1, keepdims=True)
        var = jnp.mean(jnp.square(z - mu), axis=-1, keepdims=True)
        return (z - mu) * jax.lax.rsqrt(var + 1e-5) * g_ref[...] + b_ref[...]

    def mha(q, k, v, causal):
        """All heads for one batch element; q:(Sq,D), k/v:(Skv,D) -> (Sq,D)."""
        sq, skv = q.shape[0], k.shape[0]
        for h in range(nheads):                                    # static unroll
            lo, hi = h * dh, (h + 1) * dh
            qh = q[:, lo:hi].astype(jnp.bfloat16)
            kh = k[:, lo:hi].astype(jnp.bfloat16)
            vh = v[:, lo:hi].astype(jnp.bfloat16)
            # q @ k^T without an in-kernel transpose: contract both on the head dim.
            s = jax.lax.dot_general(qh, kh, (((1,), (1,)), ((), ())),
                                    preferred_element_type=jnp.float32) * scale
            if causal:
                row = jax.lax.broadcasted_iota(jnp.int32, (sq, skv), 0)
                col = jax.lax.broadcasted_iota(jnp.int32, (sq, skv), 1)
                s = jnp.where(col <= row, s, -1e30)                # mask applied in f32
            s = s - jnp.max(s, axis=-1, keepdims=True)
            e = jnp.exp(s)
            pr = e / jnp.sum(e, axis=-1, keepdims=True)            # exact softmax
            attn_buf[0:sq, lo:hi] = jnp.dot(pr.astype(jnp.bfloat16), vh,
                                            preferred_element_type=jnp.float32)
        return attn_buf[0:sq, :]

    def encoder_layer(x, lp):
        sa = lp["self_attn"]
        qkv = linear(x, sa["w_qkv"], sa["b_qkv"])                  # fused QKV projection
        a = mha(qkv[:, 0:D], qkv[:, D:2 * D], qkv[:, 2 * D:3 * D], causal=False)
        a = linear(a, sa["wo"], sa["bo"])
        x = add_ln(x, a, lp["ln1"]["g"], lp["ln1"]["b"])
        f = linear(linear(x, lp["ffn"]["w1"], lp["ffn"]["b1"], relu=True),
                   lp["ffn"]["w2"], lp["ffn"]["b2"])
        return add_ln(x, f, lp["ln2"]["g"], lp["ln2"]["b"])

    def decoder_layer(t, mem, lp):
        sa, ca = lp["self_attn"], lp["cross_attn"]
        # masked (causal) self-attention — mask generated inside the kernel
        qkv = linear(t, sa["w_qkv"], sa["b_qkv"])
        a = mha(qkv[:, 0:D], qkv[:, D:2 * D], qkv[:, 2 * D:3 * D], causal=True)
        a = linear(a, sa["wo"], sa["bo"])
        t = add_ln(t, a, lp["ln1"]["g"], lp["ln1"]["b"])
        # cross attention over encoder memory (no mask); fused K/V projection
        q = linear(t, ca["wq"], ca["bq"])
        kv = linear(mem, ca["w_kv"], ca["b_kv"])
        c = mha(q, kv[:, 0:D], kv[:, D:2 * D], causal=False)
        c = linear(c, ca["wo"], ca["bo"])
        t = add_ln(t, c, lp["ln2"]["g"], lp["ln2"]["b"])
        f = linear(linear(t, lp["ffn"]["w1"], lp["ffn"]["b1"], relu=True),
                   lp["ffn"]["w2"], lp["ffn"]["b2"])
        return add_ln(t, f, lp["ln3"]["g"], lp["ln3"]["b"])

    # ------------------------------- forward -------------------------------
    # TODO(synk): dropout layers are treated as identity (inference mode).
    mem = embed(src_ref, S_src)
    for lp in p["encoder_layers"]:
        mem = encoder_layer(mem, lp)

    out = embed(tgt_ref, S_tgt)
    for lp in p["decoder_layers"]:
        out = decoder_layer(out, mem, lp)

    logits = linear(out, p["token_decoder"]["w"], p["token_decoder"]["b"])
    o_ref[0] = logits.astype(o_ref.dtype)          # lane-dense (S_tgt, 128) unmasked store


# ----------------------------------------------------------------------------- wrapper

def transformer_forward(params, src, target, *, vocab, nheads):
    B, S_src = src.shape
    _, S_tgt = target.shape
    D = params["pos_enc"].shape[1]
    Vp = params["token_decoder"]["w"].shape[1]     # lane-padded vocab (multiple of 128)

    flat, treedef = jax.tree_util.tree_flatten(params)   # all leaves are 2-D arrays

    src3 = src.reshape(B, S_src, 1).astype(jnp.int32)
    tgt3 = target.reshape(B, S_tgt, 1).astype(jnp.int32)

    tok_specs = [pl.BlockSpec((1, S_src, 1), lambda b: (b, 0, 0)),
                 pl.BlockSpec((1, S_tgt, 1), lambda b: (b, 0, 0))]
    # Weights: full-extent blocks (no 8/128 padding needed), same block for every batch
    # grid step (re-DMA'd per step, ~100 KB total — negligible).
    param_specs = [pl.BlockSpec(w.shape, lambda b: (0, 0)) for w in flat]

    logits = pl.pallas_call(
        functools.partial(_transformer_kernel, treedef=treedef, nheads=nheads,
                          emb_scale=math.sqrt(D)),
        out_shape=jax.ShapeDtypeStruct((B, S_tgt, Vp), jnp.float32),
        grid=(B,),
        in_specs=tok_specs + param_specs,
        out_specs=pl.BlockSpec((1, S_tgt, Vp), lambda b: (b, 0, 0)),
        scratch_shapes=[pltpu.VMEM((max(S_src, S_tgt), D), jnp.float32)],
        compiler_params=pltpu.CompilerParams(
            dimension_semantics=("parallel",),        # v7x: one batch element per TC
            vmem_limit_bytes=32 * 1024 * 1024),
    )(src3, tgt3, *flat)
    return logits[:, :, :vocab]


# ----------------------------------------------------------------------------- init
# All weights are stored kernel-ready: matmul weights bf16 (K, N); biases f32 (1, N);
# LayerNorm params f32 (1, D); embedding table bf16 row-padded; vocab head lane-padded.

def _w(key, fan_in, fan_out):
    return (jax.random.normal(key, (fan_in, fan_out), jnp.float32) * 0.02)


def _b(n):
    return jnp.zeros((1, n), jnp.float32)


def _ln(d):
    return {"g": jnp.ones((1, d), jnp.float32), "b": jnp.zeros((1, d), jnp.float32)}


def _self_attn(key, d):
    ks = jax.random.split(key, 4)
    w_qkv = jnp.concatenate([_w(ks[i], d, d) for i in range(3)], axis=1).astype(jnp.bfloat16)
    return {"w_qkv": w_qkv, "b_qkv": _b(3 * d),
            "wo": _w(ks[3], d, d).astype(jnp.bfloat16), "bo": _b(d)}


def _cross_attn(key, d):
    ks = jax.random.split(key, 4)
    w_kv = jnp.concatenate([_w(ks[1], d, d), _w(ks[2], d, d)], axis=1).astype(jnp.bfloat16)
    return {"wq": _w(ks[0], d, d).astype(jnp.bfloat16), "bq": _b(d),
            "w_kv": w_kv, "b_kv": _b(2 * d),
            "wo": _w(ks[3], d, d).astype(jnp.bfloat16), "bo": _b(d)}


def _ffn(key, d, ff):
    k1, k2 = jax.random.split(key)
    return {"w1": _w(k1, d, ff).astype(jnp.bfloat16), "b1": _b(ff),
            "w2": _w(k2, ff, d).astype(jnp.bfloat16), "b2": _b(d)}


def _sinusoidal_pe(max_len, d_model):
    pos = jnp.arange(max_len, dtype=jnp.float32)[:, None]
    div = jnp.exp(jnp.arange(0, d_model, 2, dtype=jnp.float32) * (-math.log(10000.0) / d_model))
    pe = jnp.zeros((max_len, d_model), jnp.float32)
    pe = pe.at[:, 0::2].set(jnp.sin(pos * div))
    pe = pe.at[:, 1::2].set(jnp.cos(pos * div))
    return pe


def init_params(key, nenc, ndec, d_model, vocab, nheads, dim_ff, max_len=64):
    keys = jax.random.split(key, 2 + nenc + ndec)
    vp = _round_up(vocab, 128)                       # lane/row padding for vocab
    emb = jax.random.uniform(keys[0], (vocab, d_model), jnp.float32, -0.1, 0.1)
    emb_bf16 = jnp.pad(emb, ((0, vp - vocab), (0, 0))).astype(jnp.bfloat16)
    dec_w = jnp.pad(_w(keys[1], d_model, vocab), ((0, 0), (0, vp - vocab))).astype(jnp.bfloat16)

    params = {
        "embedding": emb_bf16,
        "pos_enc": _sinusoidal_pe(max_len, d_model),
        "token_decoder": {"w": dec_w, "b": _b(vp)},
        "encoder_layers": [],
        "decoder_layers": [],
    }
    for li in range(nenc):
        k1, k2 = jax.random.split(keys[2 + li])
        params["encoder_layers"].append({
            "self_attn": _self_attn(k1, d_model),
            "ffn": _ffn(k2, d_model, dim_ff),
            "ln1": _ln(d_model), "ln2": _ln(d_model),
        })
    for li in range(ndec):
        k1, k2, k3 = jax.random.split(keys[2 + nenc + li], 3)
        params["decoder_layers"].append({
            "self_attn": _self_attn(k1, d_model),
            "cross_attn": _cross_attn(k2, d_model),
            "ffn": _ffn(k3, d_model, dim_ff),
            "ln1": _ln(d_model), "ln2": _ln(d_model), "ln3": _ln(d_model),
        })
    return params


# ----------------------------------------------------------------------------- main

if __name__ == "__main__":
    # small config consistent with the module's __init__ signature
    NENC, NDEC = 2, 2
    D_MODEL, VOCAB, NHEADS, DIM_FF = 32, 50, 4, 64
    B, S = 2, 8

    key = jax.random.PRNGKey(0)
    kp, ksrc, ktgt = jax.random.split(key, 3)

    params = init_params(kp, NENC, NDEC, D_MODEL, VOCAB, NHEADS, DIM_FF)
    src = jax.random.randint(ksrc, (B, S), 0, VOCAB, dtype=jnp.int32)
    target = jax.random.randint(ktgt, (B, S), 0, VOCAB, dtype=jnp.int32)

    fwd = jax.jit(functools.partial(transformer_forward, vocab=VOCAB, nheads=NHEADS))
    logits = jax.block_until_ready(fwd(params, src, target))

    assert logits.shape == (B, S, VOCAB)
    assert bool(jnp.all(jnp.isfinite(logits)))
    print("KERNEL_OK")
</pallas_src>

<mosaic_0001>
module attributes {stable_mosaic.version = 11 : i64} {
  func.func @_transformer_kernel(%arg0: i32, %arg1: memref<1x8x1xi32, #tpu.memory_space<vmem>>, %arg2: memref<1x8x1xi32, #tpu.memory_space<vmem>>, %arg3: memref<1x64xf32, #tpu.memory_space<vmem>>, %arg4: memref<1x32xf32, #tpu.memory_space<vmem>>, %arg5: memref<1x32xf32, #tpu.memory_space<vmem>>, %arg6: memref<32x64xbf16, #tpu.memory_space<vmem>>, %arg7: memref<32x32xbf16, #tpu.memory_space<vmem>>, %arg8: memref<32x32xbf16, #tpu.memory_space<vmem>>, %arg9: memref<1x64xf32, #tpu.memory_space<vmem>>, %arg10: memref<1x32xf32, #tpu.memory_space<vmem>>, %arg11: memref<32x64xbf16, #tpu.memory_space<vmem>>, %arg12: memref<64x32xbf16, #tpu.memory_space<vmem>>, %arg13: memref<1x32xf32, #tpu.memory_space<vmem>>, %arg14: memref<1x32xf32, #tpu.memory_space<vmem>>, %arg15: memref<1x32xf32, #tpu.memory_space<vmem>>, %arg16: memref<1x32xf32, #tpu.memory_space<vmem>>, %arg17: memref<1x32xf32, #tpu.memory_space<vmem>>, %arg18: memref<1x32xf32, #tpu.memory_space<vmem>>, %arg19: memref<1x96xf32, #tpu.memory_space<vmem>>, %arg20: memref<1x32xf32, #tpu.memory_space<vmem>>, %arg21: memref<32x96xbf16, #tpu.memory_space<vmem>>, %arg22: memref<32x32xbf16, #tpu.memory_space<vmem>>, %arg23: memref<1x64xf32, #tpu.memory_space<vmem>>, %arg24: memref<1x32xf32, #tpu.memory_space<vmem>>, %arg25: memref<1x32xf32, #tpu.memory_space<vmem>>, %arg26: memref<32x64xbf16, #tpu.memory_space<vmem>>, %arg27: memref<32x32xbf16, #tpu.memory_space<vmem>>, %arg28: memref<32x32xbf16, #tpu.memory_space<vmem>>, %arg29: memref<1x64xf32, #tpu.memory_space<vmem>>, %arg30: memref<1x32xf32, #tpu.memory_space<vmem>>, %arg31: memref<32x64xbf16, #tpu.memory_space<vmem>>, %arg32: memref<64x32xbf16, #tpu.memory_space<vmem>>, %arg33: memref<1x32xf32, #tpu.memory_space<vmem>>, %arg34: memref<1x32xf32, #tpu.memory_space<vmem>>, %arg35: memref<1x32xf32, #tpu.memory_space<vmem>>, %arg36: memref<1x32xf32, #tpu.memory_space<vmem>>, %arg37: memref<1x32xf32, #tpu.memory_space<vmem>>, %arg38: memref<1x32xf32, #tpu.memory_space<vmem>>, %arg39: memref<1x96xf32, #tpu.memory_space<vmem>>, %arg40: memref<1x32xf32, #tpu.memory_space<vmem>>, %arg41: memref<32x96xbf16, #tpu.memory_space<vmem>>, %arg42: memref<32x32xbf16, #tpu.memory_space<vmem>>, %arg43: memref<128x32xbf16, #tpu.memory_space<vmem>>, %arg44: memref<1x64xf32, #tpu.memory_space<vmem>>, %arg45: memref<1x32xf32, #tpu.memory_space<vmem>>, %arg46: memref<32x64xbf16, #tpu.memory_space<vmem>>, %arg47: memref<64x32xbf16, #tpu.memory_space<vmem>>, %arg48: memref<1x32xf32, #tpu.memory_space<vmem>>, %arg49: memref<1x32xf32, #tpu.memory_space<vmem>>, %arg50: memref<1x32xf32, #tpu.memory_space<vmem>>, %arg51: memref<1x32xf32, #tpu.memory_space<vmem>>, %arg52: memref<1x96xf32, #tpu.memory_space<vmem>>, %arg53: memref<1x32xf32, #tpu.memory_space<vmem>>, %arg54: memref<32x96xbf16, #tpu.memory_space<vmem>>, %arg55: memref<32x32xbf16, #tpu.memory_space<vmem>>, %arg56: memref<1x64xf32, #tpu.memory_space<vmem>>, %arg57: memref<1x32xf32, #tpu.memory_space<vmem>>, %arg58: memref<32x64xbf16, #tpu.memory_space<vmem>>, %arg59: memref<64x32xbf16, #tpu.memory_space<vmem>>, %arg60: memref<1x32xf32, #tpu.memory_space<vmem>>, %arg61: memref<1x32xf32, #tpu.memory_space<vmem>>, %arg62: memref<1x32xf32, #tpu.memory_space<vmem>>, %arg63: memref<1x32xf32, #tpu.memory_space<vmem>>, %arg64: memref<1x96xf32, #tpu.memory_space<vmem>>, %arg65: memref<1x32xf32, #tpu.memory_space<vmem>>, %arg66: memref<32x96xbf16, #tpu.memory_space<vmem>>, %arg67: memref<32x32xbf16, #tpu.memory_space<vmem>>, %arg68: memref<64x32xf32, #tpu.memory_space<vmem>>, %arg69: memref<1x128xf32, #tpu.memory_space<vmem>>, %arg70: memref<32x128xbf16, #tpu.memory_space<vmem>>, %arg71: memref<1x8x128xf32, #tpu.memory_space<vmem>>, %arg72: memref<8x32xf32, #tpu.memory_space<vmem>>) attributes {dimension_semantics = [#tpu.dimension_semantics<parallel>], iteration_bounds = array<i64: 2>, scalar_prefetch = 0 : i64, scratch_operands = 1 : i64, tpu.core_type = #tpu.core_type<tc>, window_params = [{transform_indices = @transform_0, window_bounds = array<i64: 1, 8, 1>}, {transform_indices = @transform_1, window_bounds = array<i64: 1, 8, 1>}, {pipeline_mode = #tpu.pipeline_mode<synchronous>, transform_indices = @transform_2, window_bounds = array<i64: 1, 64>}, {pipeline_mode = #tpu.pipeline_mode<synchronous>, transform_indices = @transform_3, window_bounds = array<i64: 1, 32>}, {pipeline_mode = #tpu.pipeline_mode<synchronous>, transform_indices = @transform_4, window_bounds = array<i64: 1, 32>}, {pipeline_mode = #tpu.pipeline_mode<synchronous>, transform_indices = @transform_5, window_bounds = array<i64: 32, 64>}, {pipeline_mode = #tpu.pipeline_mode<synchronous>, transform_indices = @transform_6, window_bounds = array<i64: 32, 32>}, {pipeline_mode = #tpu.pipeline_mode<synchronous>, transform_indices = @transform_7, window_bounds = array<i64: 32, 32>}, {pipeline_mode = #tpu.pipeline_mode<synchronous>, transform_indices = @transform_8, window_bounds = array<i64: 1, 64>}, {pipeline_mode = #tpu.pipeline_mode<synchronous>, transform_indices = @transform_9, window_bounds = array<i64: 1, 32>}, {pipeline_mode = #tpu.pipeline_mode<synchronous>, transform_indices = @transform_10, window_bounds = array<i64: 32, 64>}, {pipeline_mode = #tpu.pipeline_mode<synchronous>, transform_indices = @transform_11, window_bounds = array<i64: 64, 32>}, {pipeline_mode = #tpu.pipeline_mode<synchronous>, transform_indices = @transform_12, window_bounds = array<i64: 1, 32>}, {pipeline_mode = #tpu.pipeline_mode<synchronous>, transform_indices = @transform_13, window_bounds = array<i64: 1, 32>}, {pipeline_mode = #tpu.pipeline_mode<synchronous>, transform_indices = @transform_14, window_bounds = array<i64: 1, 32>}, {pipeline_mode = #tpu.pipeline_mode<synchronous>, transform_indices = @transform_15, window_bounds = array<i64: 1, 32>}, {pipeline_mode = #tpu.pipeline_mode<synchronous>, transform_indices = @transform_16, window_bounds = array<i64: 1, 32>}, {pipeline_mode = #tpu.pipeline_mode<synchronous>, transform_indices = @transform_17, window_bounds = array<i64: 1, 32>}, {pipeline_mode = #tpu.pipeline_mode<synchronous>, transform_indices = @transform_18, window_bounds = array<i64: 1, 96>}, {pipeline_mode = #tpu.pipeline_mode<synchronous>, transform_indices = @transform_19, window_bounds = array<i64: 1, 32>}, {pipeline_mode = #tpu.pipeline_mode<synchronous>, transform_indices = @transform_20, window_bounds = array<i64: 32, 96>}, {pipeline_mode = #tpu.pipeline_mode<synchronous>, transform_indices = @transform_21, window_bounds = array<i64: 32, 32>}, {pipeline_mode = #tpu.pipeline_mode<synchronous>, transform_indices = @transform_22, window_bounds = array<i64: 1, 64>}, {pipeline_mode = #tpu.pipeline_mode<synchronous>, transform_indices = @transform_23, window_bounds = array<i64: 1, 32>}, {pipeline_mode = #tpu.pipeline_mode<synchronous>, transform_indices = @transform_24, window_bounds = array<i64: 1, 32>}, {pipeline_mode = #tpu.pipeline_mode<synchronous>, transform_indices = @transform_25, window_bounds = array<i64: 32, 64>}, {pipeline_mode = #tpu.pipeline_mode<synchronous>, transform_indices = @transform_26, window_bounds = array<i64: 32, 32>}, {pipeline_mode = #tpu.pipeline_mode<synchronous>, transform_indices = @transform_27, window_bounds = array<i64: 32, 32>}, {pipeline_mode = #tpu.pipeline_mode<synchronous>, transform_indices = @transform_28, window_bounds = array<i64: 1, 64>}, {pipeline_mode = #tpu.pipeline_mode<synchronous>, transform_indices = @transform_29, window_bounds = array<i64: 1, 32>}, {pipeline_mode = #tpu.pipeline_mode<synchronous>, transform_indices = @transform_30, window_bounds = array<i64: 32, 64>}, {pipeline_mode = #tpu.pipeline_mode<synchronous>, transform_indices = @transform_31, window_bounds = array<i64: 64, 32>}, {pipeline_mode = #tpu.pipeline_mode<synchronous>, transform_indices = @transform_32, window_bounds = array<i64: 1, 32>}, {pipeline_mode = #tpu.pipeline_mode<synchronous>, transform_indices = @transform_33, window_bounds = array<i64: 1, 32>}, {pipeline_mode = #tpu.pipeline_mode<synchronous>, transform_indices = @transform_34, window_bounds = array<i64: 1, 32>}, {pipeline_mode = #tpu.pipeline_mode<synchronous>, transform_indices = @transform_35, window_bounds = array<i64: 1, 32>}, {pipeline_mode = #tpu.pipeline_mode<synchronous>, transform_indices = @transform_36, window_bounds = array<i64: 1, 32>}, {pipeline_mode = #tpu.pipeline_mode<synchronous>, transform_indices = @transform_37, window_bounds = array<i64: 1, 32>}, {pipeline_mode = #tpu.pipeline_mode<synchronous>, transform_indices = @transform_38, window_bounds = array<i64: 1, 96>}, {pipeline_mode = #tpu.pipeline_mode<synchronous>, transform_indices = @transform_39, window_bounds = array<i64: 1, 32>}, {pipeline_mode = #tpu.pipeline_mode<synchronous>, transform_indices = @transform_40, window_bounds = array<i64: 32, 96>}, {pipeline_mode = #tpu.pipeline_mode<synchronous>, transform_indices = @transform_41, window_bounds = array<i64: 32, 32>}, {pipeline_mode = #tpu.pipeline_mode<synchronous>, transform_indices = @transform_42, window_bounds = array<i64: 128, 32>}, {pipeline_mode = #tpu.pipeline_mode<synchronous>, transform_indices = @transform_43, window_bounds = array<i64: 1, 64>}, {pipeline_mode = #tpu.pipeline_mode<synchronous>, transform_indices = @transform_44, window_bounds = array<i64: 1, 32>}, {pipeline_mode = #tpu.pipeline_mode<synchronous>, transform_indices = @transform_45, window_bounds = array<i64: 32, 64>}, {pipeline_mode = #tpu.pipeline_mode<synchronous>, transform_indices = @transform_46, window_bounds = array<i64: 64, 32>}, {pipeline_mode = #tpu.pipeline_mode<synchronous>, transform_indices = @transform_47, window_bounds = array<i64: 1, 32>}, {pipeline_mode = #tpu.pipeline_mode<synchronous>, transform_indices = @transform_48, window_bounds = array<i64: 1, 32>}, {pipeline_mode = #tpu.pipeline_mode<synchronous>, transform_indices = @transform_49, window_bounds = array<i64: 1, 32>}, {pipeline_mode = #tpu.pipeline_mode<synchronous>, transform_indices = @transform_50, window_bounds = array<i64: 1, 32>}, {pipeline_mode = #tpu.pipeline_mode<synchronous>, transform_indices = @transform_51, window_bounds = array<i64: 1, 96>}, {pipeline_mode = #tpu.pipeline_mode<synchronous>, transform_indices = @transform_52, window_bounds = array<i64: 1, 32>}, {pipeline_mode = #tpu.pipeline_mode<synchronous>, transform_indices = @transform_53, window_bounds = array<i64: 32, 96>}, {pipeline_mode = #tpu.pipeline_mode<synchronous>, transform_indices = @transform_54, window_bounds = array<i64: 32, 32>}, {pipeline_mode = #tpu.pipeline_mode<synchronous>, transform_indices = @transform_55, window_bounds = array<i64: 1, 64>}, {pipeline_mode = #tpu.pipeline_mode<synchronous>, transform_indices = @transform_56, window_bounds = array<i64: 1, 32>}, {pipeline_mode = #tpu.pipeline_mode<synchronous>, transform_indices = @transform_57, window_bounds = array<i64: 32, 64>}, {pipeline_mode = #tpu.pipeline_mode<synchronous>, transform_indices = @transform_58, window_bounds = array<i64: 64, 32>}, {pipeline_mode = #tpu.pipeline_mode<synchronous>, transform_indices = @transform_59, window_bounds = array<i64: 1, 32>}, {pipeline_mode = #tpu.pipeline_mode<synchronous>, transform_indices = @transform_60, window_bounds = array<i64: 1, 32>}, {pipeline_mode = #tpu.pipeline_mode<synchronous>, transform_indices = @transform_61, window_bounds = array<i64: 1, 32>}, {pipeline_mode = #tpu.pipeline_mode<synchronous>, transform_indices = @transform_62, window_bounds = array<i64: 1, 32>}, {pipeline_mode = #tpu.pipeline_mode<synchronous>, transform_indices = @transform_63, window_bounds = array<i64: 1, 96>}, {pipeline_mode = #tpu.pipeline_mode<synchronous>, transform_indices = @transform_64, window_bounds = array<i64: 1, 32>}, {pipeline_mode = #tpu.pipeline_mode<synchronous>, transform_indices = @transform_65, window_bounds = array<i64: 32, 96>}, {pipeline_mode = #tpu.pipeline_mode<synchronous>, transform_indices = @transform_66, window_bounds = array<i64: 32, 32>}, {pipeline_mode = #tpu.pipeline_mode<synchronous>, transform_indices = @transform_67, window_bounds = array<i64: 64, 32>}, {pipeline_mode = #tpu.pipeline_mode<synchronous>, transform_indices = @transform_68, window_bounds = array<i64: 1, 128>}, {pipeline_mode = #tpu.pipeline_mode<synchronous>, transform_indices = @transform_69, window_bounds = array<i64: 32, 128>}, {transform_indices = @transform_70, window_bounds = array<i64: 1, 8, 128>}]} {
    %c0 = arith.constant 0 : index
    %c0_0 = arith.constant 0 : index
    %c0_1 = arith.constant 0 : index
    %0 = vector.load %arg1[%c0, %c0_0, %c0_1] : memref<1x8x1xi32, #tpu.memory_space<vmem>>, vector<1x8x1xi32>
    %1 = vector.shape_cast %0 : vector<1x8x1xi32> to vector<8x1xi32>
    %2 = tpu.iota {dimensions = array<i32: 1>} : vector<8x128xi32>
    %3 = vector.broadcast %1 : vector<8x1xi32> to vector<8x128xi32>
    %4 = arith.cmpi eq, %2, %3 : vector<8x128xi32>
    %cst = arith.constant 1.000000e+00 : f32
    %cst_2 = arith.constant 0.000000e+00 : f32
    %5 = vector.broadcast %cst : f32 to vector<8x128xf32>
    %6 = vector.broadcast %cst_2 : f32 to vector<8x128xf32>
    %7 = arith.select %4, %5, %6 : vector<8x128xi1>, vector<8x128xf32>
    %8 = arith.truncf %7 : vector<8x128xf32> to vector<8x128xbf16>
    %c0_3 = arith.constant 0 : index
    %c0_4 = arith.constant 0 : index
    %9 = vector.load %arg43[%c0_3, %c0_4] : memref<128x32xbf16, #tpu.memory_space<vmem>>, vector<128x32xbf16>
    %cst_5 = arith.constant dense<0.000000e+00> : vector<8x32xf32>
    %10 = tpu.matmul %8, %9, %cst_5 {dimension_numbers = #tpu.dot_dimension_numbers<[1], [0], [0], [1], [0, 0, 1, 1], [], []>} : vector<8x128xbf16>, vector<128x32xbf16>, vector<8x32xf32> -> vector<8x32xf32>
    %cst_6 = arith.constant 5.65685415 : f32
    %11 = vector.broadcast %cst_6 : f32 to vector<8x32xf32>
    %12 = arith.mulf %10, %11 : vector<8x32xf32>
    %c0_7 = arith.constant 0 : index
    %c0_8 = arith.constant 0 : index
    %13 = vector.load %arg68[%c0_7, %c0_8] : memref<64x32xf32, #tpu.memory_space<vmem>>, vector<8x32xf32>
    %14 = arith.addf %12, %13 : vector<8x32xf32>
    %15 = arith.truncf %14 : vector<8x32xf32> to vector<8x32xbf16>
    %c0_9 = arith.constant 0 : index
    %c0_10 = arith.constant 0 : index
    %16 = vector.load %arg54[%c0_9, %c0_10] : memref<32x96xbf16, #tpu.memory_space<vmem>>, vector<32x96xbf16>
    %cst_11 = arith.constant dense<0.000000e+00> : vector<8x96xf32>
    %17 = tpu.matmul %15, %16, %cst_11 {dimension_numbers = #tpu.dot_dimension_numbers<[1], [0], [0], [1], [0, 0, 1, 1], [], []>} : vector<8x32xbf16>, vector<32x96xbf16>, vector<8x96xf32> -> vector<8x96xf32>
    %c0_12 = arith.constant 0 : index
    %c0_13 = arith.constant 0 : index
    %18 = vector.load %arg52[%c0_12, %c0_13] : memref<1x96xf32, #tpu.memory_space<vmem>>, vector<1x96xf32>
    %19 = vector.broadcast %18 : vector<1x96xf32> to vector<8x96xf32>
    %20 = arith.addf %17, %19 : vector<8x96xf32>
    %21 = vector.extract_strided_slice %20 {offsets = [0, 0], sizes = [8, 32], strides = [1, 1]} : vector<8x96xf32> to vector<8x32xf32>
    %22 = vector.extract_strided_slice %20 {offsets = [0, 32], sizes = [8, 32], strides = [1, 1]} : vector<8x96xf32> to vector<8x32xf32>
    %23 = vector.extract_strided_slice %20 {offsets = [0, 64], sizes = [8, 32], strides = [1, 1]} : vector<8x96xf32> to vector<8x32xf32>
    %24 = vector.extract_strided_slice %21 {offsets = [0, 0], sizes = [8, 8], strides = [1, 1]} : vector<8x32xf32> to vector<8x8xf32>
    %25 = arith.truncf %24 : vector<8x8xf32> to vector<8x8xbf16>
    %26 = vector.extract_strided_slice %22 {offsets = [0, 0], sizes = [8, 8], strides = [1, 1]} : vector<8x32xf32> to vector<8x8xf32>
    %27 = arith.truncf %26 : vector<8x8xf32> to vector<8x8xbf16>
    %28 = vector.extract_strided_slice %23 {offsets = [0, 0], sizes = [8, 8], strides = [1, 1]} : vector<8x32xf32> to vector<8x8xf32>
    %29 = arith.truncf %28 : vector<8x8xf32> to vector<8x8xbf16>
    %cst_14 = arith.constant dense<0.000000e+00> : vector<8x8xf32>
    %30 = tpu.matmul %25, %27, %cst_14 {dimension_numbers = #tpu.dot_dimension_numbers<[1], [1], [0], [0], [0, 0, 1, 0], [], []>} : vector<8x8xbf16>, vector<8x8xbf16>, vector<8x8xf32> -> vector<8x8xf32>
    %cst_15 = arith.constant 0.353553385 : f32
    %31 = vector.broadcast %cst_15 : f32 to vector<8x8xf32>
    %32 = arith.mulf %30, %31 : vector<8x8xf32>
    %cst_16 = arith.constant dense<0xFF800000> : vector<8xf32>
    %33 = vector.multi_reduction <maximumf>, %32, %cst_16 [1] : vector<8x8xf32> to vector<8xf32>
    %34 = vector.shape_cast %33 : vector<8xf32> to vector<8x1xf32>
    %35 = vector.broadcast %34 : vector<8x1xf32> to vector<8x8xf32>
    %36 = arith.subf %32, %35 : vector<8x8xf32>
    %37 = math.exp %36 : vector<8x8xf32>
    %cst_17 = arith.constant dense<0.000000e+00> : vector<8xf32>
    %38 = vector.multi_reduction <add>, %37, %cst_17 [1] : vector<8x8xf32> to vector<8xf32>
    %39 = vector.shape_cast %38 : vector<8xf32> to vector<8x1xf32>
    %40 = vector.broadcast %39 : vector<8x1xf32> to vector<8x8xf32>
    %41 = arith.divf %37, %40 : vector<8x8xf32>
    %42 = arith.truncf %41 : vector<8x8xf32> to vector<8x8xbf16>
    %cst_18 = arith.constant dense<0.000000e+00> : vector<8x8xf32>
    %43 = tpu.matmul %42, %29, %cst_18 {dimension_numbers = #tpu.dot_dimension_numbers<[1], [0], [0], [1], [0, 0, 1, 1], [], []>} : vector<8x8xbf16>, vector<8x8xbf16>, vector<8x8xf32> -> vector<8x8xf32>
    %c0_19 = arith.constant 0 : index
    %c0_20 = arith.constant 0 : index
    %44 = vector.load %arg72[%c0_19, %c0_20] : memref<8x32xf32, #tpu.memory_space<vmem>>, vector<8x8xf32>
    tpu.vector_store %arg72[%c0_19, %c0_20], %43 {strides = array<i32>} : memref<8x32xf32, #tpu.memory_space<vmem>>, vector<8x8xf32>,
    %45 = vector.extract_strided_slice %21 {offsets = [0, 8], sizes = [8, 8], strides = [1, 1]} : vector<8x32xf32> to vector<8x8xf32>
    %46 = arith.truncf %45 : vector<8x8xf32> to vector<8x8xbf16>
    %47 = vector.extract_strided_slice %22 {offsets = [0, 8], sizes = [8, 8], strides = [1, 1]} : vector<8x32xf32> to vector<8x8xf32>
    %48 = arith.truncf %47 : vector<8x8xf32> to vector<8x8xbf16>
    %49 = vector.extract_strided_slice %23 {offsets = [0, 8], sizes = [8, 8], strides = [1, 1]} : vector<8x32xf32> to vector<8x8xf32>
    %50 = arith.truncf %49 : vector<8x8xf32> to vector<8x8xbf16>
    %cst_21 = arith.constant dense<0.000000e+00> : vector<8x8xf32>
    %51 = tpu.matmul %46, %48, %cst_21 {dimension_numbers = #tpu.dot_dimension_numbers<[1], [1], [0], [0], [0, 0, 1, 0], [], []>} : vector<8x8xbf16>, vector<8x8xbf16>, vector<8x8xf32> -> vector<8x8xf32>
    %cst_22 = arith.constant 0.353553385 : f32
    %52 = vector.broadcast %cst_22 : f32 to vector<8x8xf32>
    %53 = arith.mulf %51, %52 : vector<8x8xf32>
    %cst_23 = arith.constant dense<0xFF800000> : vector<8xf32>
    %54 = vector.multi_reduction <maximumf>, %53, %cst_23 [1] : vector<8x8xf32> to vector<8xf32>
    %55 = vector.shape_cast %54 : vector<8xf32> to vector<8x1xf32>
    %56 = vector.broadcast %55 : vector<8x1xf32> to vector<8x8xf32>
    %57 = arith.subf %53, %56 : vector<8x8xf32>
    %58 = math.exp %57 : vector<8x8xf32>
    %cst_24 = arith.constant dense<0.000000e+00> : vector<8xf32>
    %59 = vector.multi_reduction <add>, %58, %cst_24 [1] : vector<8x8xf32> to vector<8xf32>
    %60 = vector.shape_cast %59 : vector<8xf32> to vector<8x1xf32>
    %61 = vector.broadcast %60 : vector<8x1xf32> to vector<8x8xf32>
    %62 = arith.divf %58, %61 : vector<8x8xf32>
    %63 = arith.truncf %62 : vector<8x8xf32> to vector<8x8xbf16>
    %cst_25 = arith.constant dense<0.000000e+00> : vector<8x8xf32>
    %64 = tpu.matmul %63, %50, %cst_25 {dimension_numbers = #tpu.dot_dimension_numbers<[1], [0], [0], [1], [0, 0, 1, 1], [], []>} : vector<8x8xbf16>, vector<8x8xbf16>, vector<8x8xf32> -> vector<8x8xf32>
    %c0_26 = arith.constant 0 : index
    %c8 = arith.constant 8 : index
    %65 = vector.load %arg72[%c0_26, %c8] : memref<8x32xf32, #tpu.memory_space<vmem>>, vector<8x8xf32>
    tpu.vector_store %arg72[%c0_26, %c8], %64 {strides = array<i32>} : memref<8x32xf32, #tpu.memory_space<vmem>>, vector<8x8xf32>,
    %66 = vector.extract_strided_slice %21 {offsets = [0, 16], sizes = [8, 8], strides = [1, 1]} : vector<8x32xf32> to vector<8x8xf32>
    %67 = arith.truncf %66 : vector<8x8xf32> to vector<8x8xbf16>
    %68 = vector.extract_strided_slice %22 {offsets = [0, 16], sizes = [8, 8], strides = [1, 1]} : vector<8x32xf32> to vector<8x8xf32>
    %69 = arith.truncf %68 : vector<8x8xf32> to vector<8x8xbf16>
    %70 = vector.extract_strided_slice %23 {offsets = [0, 16], sizes = [8, 8], strides = [1, 1]} : vector<8x32xf32> to vector<8x8xf32>
    %71 = arith.truncf %70 : vector<8x8xf32> to vector<8x8xbf16>
    %cst_27 = arith.constant dense<0.000000e+00> : vector<8x8xf32>
    %72 = tpu.matmul %67, %69, %cst_27 {dimension_numbers = #tpu.dot_dimension_numbers<[1], [1], [0], [0], [0, 0, 1, 0], [], []>} : vector<8x8xbf16>, vector<8x8xbf16>, vector<8x8xf32> -> vector<8x8xf32>
    %cst_28 = arith.constant 0.353553385 : f32
    %73 = vector.broadcast %cst_28 : f32 to vector<8x8xf32>
    %74 = arith.mulf %72, %73 : vector<8x8xf32>
    %cst_29 = arith.constant dense<0xFF800000> : vector<8xf32>
    %75 = vector.multi_reduction <maximumf>, %74, %cst_29 [1] : vector<8x8xf32> to vector<8xf32>
    %76 = vector.shape_cast %75 : vector<8xf32> to vector<8x1xf32>
    %77 = vector.broadcast %76 : vector<8x1xf32> to vector<8x8xf32>
    %78 = arith.subf %74, %77 : vector<8x8xf32>
    %79 = math.exp %78 : vector<8x8xf32>
    %cst_30 = arith.constant dense<0.000000e+00> : vector<8xf32>
    %80 = vector.multi_reduction <add>, %79, %cst_30 [1] : vector<8x8xf32> to vector<8xf32>
    %81 = vector.shape_cast %80 : vector<8xf32> to vector<8x1xf32>
    %82 = vector.broadcast %81 : vector<8x1xf32> to vector<8x8xf32>
    %83 = arith.divf %79, %82 : vector<8x8xf32>
    %84 = arith.truncf %83 : vector<8x8xf32> to vector<8x8xbf16>
    %cst_31 = arith.constant dense<0.000000e+00> : vector<8x8xf32>
    %85 = tpu.matmul %84, %71, %cst_31 {dimension_numbers = #tpu.dot_dimension_numbers<[1], [0], [0], [1], [0, 0, 1, 1], [], []>} : vector<8x8xbf16>, vector<8x8xbf16>, vector<8x8xf32> -> vector<8x8xf32>
    %c0_32 = arith.constant 0 : index
    %c16 = arith.constant 16 : index
    %86 = vector.load %arg72[%c0_32, %c16] : memref<8x32xf32, #tpu.memory_space<vmem>>, vector<8x8xf32>
    tpu.vector_store %arg72[%c0_32, %c16], %85 {strides = array<i32>} : memref<8x32xf32, #tpu.memory_space<vmem>>, vector<8x8xf32>,
    %87 = vector.extract_strided_slice %21 {offsets = [0, 24], sizes = [8, 8], strides = [1, 1]} : vector<8x32xf32> to vector<8x8xf32>
    %88 = arith.truncf %87 : vector<8x8xf32> to vector<8x8xbf16>
    %89 = vector.extract_strided_slice %22 {offsets = [0, 24], sizes = [8, 8], strides = [1, 1]} : vector<8x32xf32> to vector<8x8xf32>
    %90 = arith.truncf %89 : vector<8x8xf32> to vector<8x8xbf16>
    %91 = vector.extract_strided_slice %23 {offsets = [0, 24], sizes = [8, 8], strides = [1, 1]} : vector<8x32xf32> to vector<8x8xf32>
    %92 = arith.truncf %91 : vector<8x8xf32> to vector<8x8xbf16>
    %cst_33 = arith.constant dense<0.000000e+00> : vector<8x8xf32>
    %93 = tpu.matmul %88, %90, %cst_33 {dimension_numbers = #tpu.dot_dimension_numbers<[1], [1], [0], [0], [0, 0, 1, 0], [], []>} : vector<8x8xbf16>, vector<8x8xbf16>, vector<8x8xf32> -> vector<8x8xf32>
    %cst_34 = arith.constant 0.353553385 : f32
    %94 = vector.broadcast %cst_34 : f32 to vector<8x8xf32>
    %95 = arith.mulf %93, %94 : vector<8x8xf32>
    %cst_35 = arith.constant dense<0xFF800000> : vector<8xf32>
    %96 = vector.multi_reduction <maximumf>, %95, %cst_35 [1] : vector<8x8xf32> to vector<8xf32>
    %97 = vector.shape_cast %96 : vector<8xf32> to vector<8x1xf32>
    %98 = vector.broadcast %97 : vector<8x1xf32> to vector<8x8xf32>
    %99 = arith.subf %95, %98 : vector<8x8xf32>
    %100 = math.exp %99 : vector<8x8xf32>
    %cst_36 = arith.constant dense<0.000000e+00> : vector<8xf32>
    %101 = vector.multi_reduction <add>, %100, %cst_36 [1] : vector<8x8xf32> to vector<8xf32>
    %102 = vector.shape_cast %101 : vector<8xf32> to vector<8x1xf32>
    %103 = vector.broadcast %102 : vector<8x1xf32> to vector<8x8xf32>
    %104 = arith.divf %100, %103 : vector<8x8xf32>
    %105 = arith.truncf %104 : vector<8x8xf32> to vector<8x8xbf16>
    %cst_37 = arith.constant dense<0.000000e+00> : vector<8x8xf32>
    %106 = tpu.matmul %105, %92, %cst_37 {dimension_numbers = #tpu.dot_dimension_numbers<[1], [0], [0], [1], [0, 0, 1, 1], [], []>} : vector<8x8xbf16>, vector<8x8xbf16>, vector<8x8xf32> -> vector<8x8xf32>
    %c0_38 = arith.constant 0 : index
    %c24 = arith.constant 24 : index
    %107 = vector.load %arg72[%c0_38, %c24] : memref<8x32xf32, #tpu.memory_space<vmem>>, vector<8x8xf32>
    tpu.vector_store %arg72[%c0_38, %c24], %106 {strides = array<i32>} : memref<8x32xf32, #tpu.memory_space<vmem>>, vector<8x8xf32>,
    %c0_39 = arith.constant 0 : index
    %c0_40 = arith.constant 0 : index
    %108 = vector.load %arg72[%c0_39, %c0_40] : memref<8x32xf32, #tpu.memory_space<vmem>>, vector<8x32xf32>
    %109 = arith.truncf %108 : vector<8x32xf32> to vector<8x32xbf16>
    %c0_41 = arith.constant 0 : index
    %c0_42 = arith.constant 0 : index
    %110 = vector.load %arg55[%c0_41, %c0_42] : memref<32x32xbf16, #tpu.memory_space<vmem>>, vector<32x32xbf16>
    %cst_43 = arith.constant dense<0.000000e+00> : vector<8x32xf32>
    %111 = tpu.matmul %109, %110, %cst_43 {dimension_numbers = #tpu.dot_dimension_numbers<[1], [0], [0], [1], [0, 0, 1, 1], [], []>} : vector<8x32xbf16>, vector<32x32xbf16>, vector<8x32xf32> -> vector<8x32xf32>
    %c0_44 = arith.constant 0 : index
    %c0_45 = arith.constant 0 : index
    %112 = vector.load %arg53[%c0_44, %c0_45] : memref<1x32xf32, #tpu.memory_space<vmem>>, vector<1x32xf32>
    %113 = vector.broadcast %112 : vector<1x32xf32> to vector<8x32xf32>
    %114 = arith.addf %111, %113 : vector<8x32xf32>
    %115 = arith.addf %14, %114 : vector<8x32xf32>
    %cst_46 = arith.constant dense<0.000000e+00> : vector<8xf32>
    %116 = vector.multi_reduction <add>, %115, %cst_46 [1] : vector<8x32xf32> to vector<8xf32>
    %117 = vector.shape_cast %116 : vector<8xf32> to vector<8x1xf32>
    %cst_47 = arith.constant 3.200000e+01 : f32
    %118 = vector.broadcast %cst_47 : f32 to vector<8x1xf32>
    %119 = arith.divf %117, %118 : vector<8x1xf32>
    %120 = vector.broadcast %119 : vector<8x1xf32> to vector<8x32xf32>
    %121 = arith.subf %115, %120 : vector<8x32xf32>
    %122 = arith.mulf %121, %121 : vector<8x32xf32>
    %cst_48 = arith.constant dense<0.000000e+00> : vector<8xf32>
    %123 = vector.multi_reduction <add>, %122, %cst_48 [1] : vector<8x32xf32> to vector<8xf32>
    %124 = vector.shape_cast %123 : vector<8xf32> to vector<8x1xf32>
    %cst_49 = arith.constant 3.200000e+01 : f32
    %125 = vector.broadcast %cst_49 : f32 to vector<8x1xf32>
    %126 = arith.divf %124, %125 : vector<8x1xf32>
    %127 = vector.broadcast %119 : vector<8x1xf32> to vector<8x32xf32>
    %128 = arith.subf %115, %127 : vector<8x32xf32>
    %cst_50 = arith.constant 9.99999974E-6 : f32
    %129 = vector.broadcast %cst_50 : f32 to vector<8x1xf32>
    %130 = arith.addf %126, %129 : vector<8x1xf32>
    %131 = math.rsqrt %130 : vector<8x1xf32>
    %132 = vector.broadcast %131 : vector<8x1xf32> to vector<8x32xf32>
    %133 = arith.mulf %128, %132 : vector<8x32xf32>
    %c0_51 = arith.constant 0 : index
    %c0_52 = arith.constant 0 : index
    %134 = vector.load %arg49[%c0_51, %c0_52] : memref<1x32xf32, #tpu.memory_space<vmem>>, vector<1x32xf32>
    %135 = vector.broadcast %134 : vector<1x32xf32> to vector<8x32xf32>
    %136 = arith.mulf %133, %135 : vector<8x32xf32>
    %c0_53 = arith.constant 0 : index
    %c0_54 = arith.constant 0 : index
    %137 = vector.load %arg48[%c0_53, %c0_54] : memref<1x32xf32, #tpu.memory_space<vmem>>, vector<1x32xf32>
    %138 = vector.broadcast %137 : vector<1x32xf32> to vector<8x32xf32>
    %139 = arith.addf %136, %138 : vector<8x32xf32>
    %140 = arith.truncf %139 : vector<8x32xf32> to vector<8x32xbf16>
    %c0_55 = arith.constant 0 : index
    %c0_56 = arith.constant 0 : index
    %141 = vector.load %arg46[%c0_55, %c0_56] : memref<32x64xbf16, #tpu.memory_space<vmem>>, vector<32x64xbf16>
    %cst_57 = arith.constant dense<0.000000e+00> : vector<8x64xf32>
    %142 = tpu.matmul %140, %141, %cst_57 {dimension_numbers = #tpu.dot_dimension_numbers<[1], [0], [0], [1], [0, 0, 1, 1], [], []>} : vector<8x32xbf16>, vector<32x64xbf16>, vector<8x64xf32> -> vector<8x64xf32>
    %c0_58 = arith.constant 0 : index
    %c0_59 = arith.constant 0 : index
    %143 = vector.load %arg44[%c0_58, %c0_59] : memref<1x64xf32, #tpu.memory_space<vmem>>, vector<1x64xf32>
    %144 = vector.broadcast %143 : vector<1x64xf32> to vector<8x64xf32>
    %145 = arith.addf %142, %144 : vector<8x64xf32>
    %cst_60 = arith.constant 0.000000e+00 : f32
    %146 = vector.broadcast %cst_60 : f32 to vector<8x64xf32>
    %147 = arith.maximumf %145, %146 : vector<8x64xf32>
    %148 = arith.truncf %147 : vector<8x64xf32> to vector<8x64xbf16>
    %c0_61 = arith.constant 0 : index
    %c0_62 = arith.constant 0 : index
    %149 = vector.load %arg47[%c0_61, %c0_62] : memref<64x32xbf16, #tpu.memory_space<vmem>>, vector<64x32xbf16>
    %cst_63 = arith.constant dense<0.000000e+00> : vector<8x32xf32>
    %150 = tpu.matmul %148, %149, %cst_63 {dimension_numbers = #tpu.dot_dimension_numbers<[1], [0], [0], [1], [0, 0, 1, 1], [], []>} : vector<8x64xbf16>, vector<64x32xbf16>, vector<8x32xf32> -> vector<8x32xf32>
    %c0_64 = arith.constant 0 : index
    %c0_65 = arith.constant 0 : index
    %151 = vector.load %arg45[%c0_64, %c0_65] : memref<1x32xf32, #tpu.memory_space<vmem>>, vector<1x32xf32>
    %152 = vector.broadcast %151 : vector<1x32xf32> to vector<8x32xf32>
    %153 = arith.addf %150, %152 : vector<8x32xf32>
    %154 = arith.addf %139, %153 : vector<8x32xf32>
    %cst_66 = arith.constant dense<0.000000e+00> : vector<8xf32>
    %155 = vector.multi_reduction <add>, %154, %cst_66 [1] : vector<8x32xf32> to vector<8xf32>
    %156 = vector.shape_cast %155 : vector<8xf32> to vector<8x1xf32>
    %cst_67 = arith.constant 3.200000e+01 : f32
    %157 = vector.broadcast %cst_67 : f32 to vector<8x1xf32>
    %158 = arith.divf %156, %157 : vector<8x1xf32>
    %159 = vector.broadcast %158 : vector<8x1xf32> to vector<8x32xf32>
    %160 = arith.subf %154, %159 : vector<8x32xf32>
    %161 = arith.mulf %160, %160 : vector<8x32xf32>
    %cst_68 = arith.constant dense<0.000000e+00> : vector<8xf32>
    %162 = vector.multi_reduction <add>, %161, %cst_68 [1] : vector<8x32xf32> to vector<8xf32>
    %163 = vector.shape_cast %162 : vector<8xf32> to vector<8x1xf32>
    %cst_69 = arith.constant 3.200000e+01 : f32
    %164 = vector.broadcast %cst_69 : f32 to vector<8x1xf32>
    %165 = arith.divf %163, %164 : vector<8x1xf32>
    %166 = vector.broadcast %158 : vector<8x1xf32> to vector<8x32xf32>
    %167 = arith.subf %154, %166 : vector<8x32xf32>
    %cst_70 = arith.constant 9.99999974E-6 : f32
    %168 = vector.broadcast %cst_70 : f32 to vector<8x1xf32>
    %169 = arith.addf %165, %168 : vector<8x1xf32>
    %170 = math.rsqrt %169 : vector<8x1xf32>
    %171 = vector.broadcast %170 : vector<8x1xf32> to vector<8x32xf32>
    %172 = arith.mulf %167, %171 : vector<8x32xf32>
    %c0_71 = arith.constant 0 : index
    %c0_72 = arith.constant 0 : index
    %173 = vector.load %arg51[%c0_71, %c0_72] : memref<1x32xf32, #tpu.memory_space<vmem>>, vector<1x32xf32>
    %174 = vector.broadcast %173 : vector<1x32xf32> to vector<8x32xf32>
    %175 = arith.mulf %172, %174 : vector<8x32xf32>
    %c0_73 = arith.constant 0 : index
    %c0_74 = arith.constant 0 : index
    %176 = vector.load %arg50[%c0_73, %c0_74] : memref<1x32xf32, #tpu.memory_space<vmem>>, vector<1x32xf32>
    %177 = vector.broadcast %176 : vector<1x32xf32> to vector<8x32xf32>
    %178 = arith.addf %175, %177 : vector<8x32xf32>
    %179 = arith.truncf %178 : vector<8x32xf32> to vector<8x32xbf16>
    %c0_75 = arith.constant 0 : index
    %c0_76 = arith.constant 0 : index
    %180 = vector.load %arg66[%c0_75, %c0_76] : memref<32x96xbf16, #tpu.memory_space<vmem>>, vector<32x96xbf16>
    %cst_77 = arith.constant dense<0.000000e+00> : vector<8x96xf32>
    %181 = tpu.matmul %179, %180, %cst_77 {dimension_numbers = #tpu.dot_dimension_numbers<[1], [0], [0], [1], [0, 0, 1, 1], [], []>} : vector<8x32xbf16>, vector<32x96xbf16>, vector<8x96xf32> -> vector<8x96xf32>
    %c0_78 = arith.constant 0 : index
    %c0_79 = arith.constant 0 : index
    %182 = vector.load %arg64[%c0_78, %c0_79] : memref<1x96xf32, #tpu.memory_space<vmem>>, vector<1x96xf32>
    %183 = vector.broadcast %182 : vector<1x96xf32> to vector<8x96xf32>
    %184 = arith.addf %181, %183 : vector<8x96xf32>
    %185 = vector.extract_strided_slice %184 {offsets = [0, 0], sizes = [8, 32], strides = [1, 1]} : vector<8x96xf32> to vector<8x32xf32>
    %186 = vector.extract_strided_slice %184 {offsets = [0, 32], sizes = [8, 32], strides = [1, 1]} : vector<8x96xf32> to vector<8x32xf32>
    %187 = vector.extract_strided_slice %184 {offsets = [0, 64], sizes = [8, 32], strides = [1, 1]} : vector<8x96xf32> to vector<8x32xf32>
    %188 = vector.extract_strided_slice %185 {offsets = [0, 0], sizes = [8, 8], strides = [1, 1]} : vector<8x32xf32> to vector<8x8xf32>
    %189 = arith.truncf %188 : vector<8x8xf32> to vector<8x8xbf16>
    %190 = vector.extract_strided_slice %186 {offsets = [0, 0], sizes = [8, 8], strides = [1, 1]} : vector<8x32xf32> to vector<8x8xf32>
    %191 = arith.truncf %190 : vector<8x8xf32> to vector<8x8xbf16>
    %192 = vector.extract_strided_slice %187 {offsets = [0, 0], sizes = [8, 8], strides = [1, 1]} : vector<8x32xf32> to vector<8x8xf32>
    %193 = arith.truncf %192 : vector<8x8xf32> to vector<8x8xbf16>
    %cst_80 = arith.constant dense<0.000000e+00> : vector<8x8xf32>
    %194 = tpu.matmul %189, %191, %cst_80 {dimension_numbers = #tpu.dot_dimension_numbers<[1], [1], [0], [0], [0, 0, 1, 0], [], []>} : vector<8x8xbf16>, vector<8x8xbf16>, vector<8x8xf32> -> vector<8x8xf32>
    %cst_81 = arith.constant 0.353553385 : f32
    %195 = vector.broadcast %cst_81 : f32 to vector<8x8xf32>
    %196 = arith.mulf %194, %195 : vector<8x8xf32>
    %cst_82 = arith.constant dense<0xFF800000> : vector<8xf32>
    %197 = vector.multi_reduction <maximumf>, %196, %cst_82 [1] : vector<8x8xf32> to vector<8xf32>
    %198 = vector.shape_cast %197 : vector<8xf32> to vector<8x1xf32>
    %199 = vector.broadcast %198 : vector<8x1xf32> to vector<8x8xf32>
    %200 = arith.subf %196, %199 : vector<8x8xf32>
    %201 = math.exp %200 : vector<8x8xf32>
    %cst_83 = arith.constant dense<0.000000e+00> : vector<8xf32>
    %202 = vector.multi_reduction <add>, %201, %cst_83 [1] : vector<8x8xf32> to vector<8xf32>
    %203 = vector.shape_cast %202 : vector<8xf32> to vector<8x1xf32>
    %204 = vector.broadcast %203 : vector<8x1xf32> to vector<8x8xf32>
    %205 = arith.divf %201, %204 : vector<8x8xf32>
    %206 = arith.truncf %205 : vector<8x8xf32> to vector<8x8xbf16>
    %cst_84 = arith.constant dense<0.000000e+00> : vector<8x8xf32>
    %207 = tpu.matmul %206, %193, %cst_84 {dimension_numbers = #tpu.dot_dimension_numbers<[1], [0], [0], [1], [0, 0, 1, 1], [], []>} : vector<8x8xbf16>, vector<8x8xbf16>, vector<8x8xf32> -> vector<8x8xf32>
    %c0_85 = arith.constant 0 : index
    %c0_86 = arith.constant 0 : index
    %208 = vector.load %arg72[%c0_85, %c0_86] : memref<8x32xf32, #tpu.memory_space<vmem>>, vector<8x8xf32>
    tpu.vector_store %arg72[%c0_85, %c0_86], %207 {strides = array<i32>} : memref<8x32xf32, #tpu.memory_space<vmem>>, vector<8x8xf32>,
    %209 = vector.extract_strided_slice %185 {offsets = [0, 8], sizes = [8, 8], strides = [1, 1]} : vector<8x32xf32> to vector<8x8xf32>
    %210 = arith.truncf %209 : vector<8x8xf32> to vector<8x8xbf16>
    %211 = vector.extract_strided_slice %186 {offsets = [0, 8], sizes = [8, 8], strides = [1, 1]} : vector<8x32xf32> to vector<8x8xf32>
    %212 = arith.truncf %211 : vector<8x8xf32> to vector<8x8xbf16>
    %213 = vector.extract_strided_slice %187 {offsets = [0, 8], sizes = [8, 8], strides = [1, 1]} : vector<8x32xf32> to vector<8x8xf32>
    %214 = arith.truncf %213 : vector<8x8xf32> to vector<8x8xbf16>
    %cst_87 = arith.constant dense<0.000000e+00> : vector<8x8xf32>
    %215 = tpu.matmul %210, %212, %cst_87 {dimension_numbers = #tpu.dot_dimension_numbers<[1], [1], [0], [0], [0, 0, 1, 0], [], []>} : vector<8x8xbf16>, vector<8x8xbf16>, vector<8x8xf32> -> vector<8x8xf32>
    %cst_88 = arith.constant 0.353553385 : f32
    %216 = vector.broadcast %cst_88 : f32 to vector<8x8xf32>
    %217 = arith.mulf %215, %216 : vector<8x8xf32>
    %cst_89 = arith.constant dense<0xFF800000> : vector<8xf32>
    %218 = vector.multi_reduction <maximumf>, %217, %cst_89 [1] : vector<8x8xf32> to vector<8xf32>
    %219 = vector.shape_cast %218 : vector<8xf32> to vector<8x1xf32>
    %220 = vector.broadcast %219 : vector<8x1xf32> to vector<8x8xf32>
    %221 = arith.subf %217, %220 : vector<8x8xf32>
    %222 = math.exp %221 : vector<8x8xf32>
    %cst_90 = arith.constant dense<0.000000e+00> : vector<8xf32>
    %223 = vector.multi_reduction <add>, %222, %cst_90 [1] : vector<8x8xf32> to vector<8xf32>
    %224 = vector.shape_cast %223 : vector<8xf32> to vector<8x1xf32>
    %225 = vector.broadcast %224 : vector<8x1xf32> to vector<8x8xf32>
    %226 = arith.divf %222, %225 : vector<8x8xf32>
    %227 = arith.truncf %226 : vector<8x8xf32> to vector<8x8xbf16>
    %cst_91 = arith.constant dense<0.000000e+00> : vector<8x8xf32>
    %228 = tpu.matmul %227, %214, %cst_91 {dimension_numbers = #tpu.dot_dimension_numbers<[1], [0], [0], [1], [0, 0, 1, 1], [], []>} : vector<8x8xbf16>, vector<8x8xbf16>, vector<8x8xf32> -> vector<8x8xf32>
    %c0_92 = arith.constant 0 : index
    %c8_93 = arith.constant 8 : index
    %229 = vector.load %arg72[%c0_92, %c8_93] : memref<8x32xf32, #tpu.memory_space<vmem>>, vector<8x8xf32>
    tpu.vector_store %arg72[%c0_92, %c8_93], %228 {strides = array<i32>} : memref<8x32xf32, #tpu.memory_space<vmem>>, vector<8x8xf32>,
    %230 = vector.extract_strided_slice %185 {offsets = [0, 16], sizes = [8, 8], strides = [1, 1]} : vector<8x32xf32> to vector<8x8xf32>
    %231 = arith.truncf %230 : vector<8x8xf32> to vector<8x8xbf16>
    %232 = vector.extract_strided_slice %186 {offsets = [0, 16], sizes = [8, 8], strides = [1, 1]} : vector<8x32xf32> to vector<8x8xf32>
    %233 = arith.truncf %232 : vector<8x8xf32> to vector<8x8xbf16>
    %234 = vector.extract_strided_slice %187 {offsets = [0, 16], sizes = [8, 8], strides = [1, 1]} : vector<8x32xf32> to vector<8x8xf32>
    %235 = arith.truncf %234 : vector<8x8xf32> to vector<8x8xbf16>
    %cst_94 = arith.constant dense<0.000000e+00> : vector<8x8xf32>
    %236 = tpu.matmul %231, %233, %cst_94 {dimension_numbers = #tpu.dot_dimension_numbers<[1], [1], [0], [0], [0, 0, 1, 0], [], []>} : vector<8x8xbf16>, vector<8x8xbf16>, vector<8x8xf32> -> vector<8x8xf32>
    %cst_95 = arith.constant 0.353553385 : f32
    %237 = vector.broadcast %cst_95 : f32 to vector<8x8xf32>
    %238 = arith.mulf %236, %237 : vector<8x8xf32>
    %cst_96 = arith.constant dense<0xFF800000> : vector<8xf32>
    %239 = vector.multi_reduction <maximumf>, %238, %cst_96 [1] : vector<8x8xf32> to vector<8xf32>
    %240 = vector.shape_cast %239 : vector<8xf32> to vector<8x1xf32>
    %241 = vector.broadcast %240 : vector<8x1xf32> to vector<8x8xf32>
    %242 = arith.subf %238, %241 : vector<8x8xf32>
    %243 = math.exp %242 : vector<8x8xf32>
    %cst_97 = arith.constant dense<0.000000e+00> : vector<8xf32>
    %244 = vector.multi_reduction <add>, %243, %cst_97 [1] : vector<8x8xf32> to vector<8xf32>
    %245 = vector.shape_cast %244 : vector<8xf32> to vector<8x1xf32>
    %246 = vector.broadcast %245 : vector<8x1xf32> to vector<8x8xf32>
    %247 = arith.divf %243, %246 : vector<8x8xf32>
    %248 = arith.truncf %247 : vector<8x8xf32> to vector<8x8xbf16>
    %cst_98 = arith.constant dense<0.000000e+00> : vector<8x8xf32>
    %249 = tpu.matmul %248, %235, %cst_98 {dimension_numbers = #tpu.dot_dimension_numbers<[1], [0], [0], [1], [0, 0, 1, 1], [], []>} : vector<8x8xbf16>, vector<8x8xbf16>, vector<8x8xf32> -> vector<8x8xf32>
    %c0_99 = arith.constant 0 : index
    %c16_100 = arith.constant 16 : index
    %250 = vector.load %arg72[%c0_99, %c16_100] : memref<8x32xf32, #tpu.memory_space<vmem>>, vector<8x8xf32>
    tpu.vector_store %arg72[%c0_99, %c16_100], %249 {strides = array<i32>} : memref<8x32xf32, #tpu.memory_space<vmem>>, vector<8x8xf32>,
    %251 = vector.extract_strided_slice %185 {offsets = [0, 24], sizes = [8, 8], strides = [1, 1]} : vector<8x32xf32> to vector<8x8xf32>
    %252 = arith.truncf %251 : vector<8x8xf32> to vector<8x8xbf16>
    %253 = vector.extract_strided_slice %186 {offsets = [0, 24], sizes = [8, 8], strides = [1, 1]} : vector<8x32xf32> to vector<8x8xf32>
    %254 = arith.truncf %253 : vector<8x8xf32> to vector<8x8xbf16>
    %255 = vector.extract_strided_slice %187 {offsets = [0, 24], sizes = [8, 8], strides = [1, 1]} : vector<8x32xf32> to vector<8x8xf32>
    %256 = arith.truncf %255 : vector<8x8xf32> to vector<8x8xbf16>
    %cst_101 = arith.constant dense<0.000000e+00> : vector<8x8xf32>
    %257 = tpu.matmul %252, %254, %cst_101 {dimension_numbers = #tpu.dot_dimension_numbers<[1], [1], [0], [0], [0, 0, 1, 0], [], []>} : vector<8x8xbf16>, vector<8x8xbf16>, vector<8x8xf32> -> vector<8x8xf32>
    %cst_102 = arith.constant 0.353553385 : f32
    %258 = vector.broadcast %cst_102 : f32 to vector<8x8xf32>
    %259 = arith.mulf %257, %258 : vector<8x8xf32>
    %cst_103 = arith.constant dense<0xFF800000> : vector<8xf32>
    %260 = vector.multi_reduction <maximumf>, %259, %cst_103 [1] : vector<8x8xf32> to vector<8xf32>
    %261 = vector.shape_cast %260 : vector<8xf32> to vector<8x1xf32>
    %262 = vector.broadcast %261 : vector<8x1xf32> to vector<8x8xf32>
    %263 = arith.subf %259, %262 : vector<8x8xf32>
    %264 = math.exp %263 : vector<8x8xf32>
    %cst_104 = arith.constant dense<0.000000e+00> : vector<8xf32>
    %265 = vector.multi_reduction <add>, %264, %cst_104 [1] : vector<8x8xf32> to vector<8xf32>
    %266 = vector.shape_cast %265 : vector<8xf32> to vector<8x1xf32>
    %267 = vector.broadcast %266 : vector<8x1xf32> to vector<8x8xf32>
    %268 = arith.divf %264, %267 : vector<8x8xf32>
    %269 = arith.truncf %268 : vector<8x8xf32> to vector<8x8xbf16>
    %cst_105 = arith.constant dense<0.000000e+00> : vector<8x8xf32>
    %270 = tpu.matmul %269, %256, %cst_105 {dimension_numbers = #tpu.dot_dimension_numbers<[1], [0], [0], [1], [0, 0, 1, 1], [], []>} : vector<8x8xbf16>, vector<8x8xbf16>, vector<8x8xf32> -> vector<8x8xf32>
    %c0_106 = arith.constant 0 : index
    %c24_107 = arith.constant 24 : index
    %271 = vector.load %arg72[%c0_106, %c24_107] : memref<8x32xf32, #tpu.memory_space<vmem>>, vector<8x8xf32>
    tpu.vector_store %arg72[%c0_106, %c24_107], %270 {strides = array<i32>} : memref<8x32xf32, #tpu.memory_space<vmem>>, vector<8x8xf32>,
    %c0_108 = arith.constant 0 : index
    %c0_109 = arith.constant 0 : index
    %272 = vector.load %arg72[%c0_108, %c0_109] : memref<8x32xf32, #tpu.memory_space<vmem>>, vector<8x32xf32>
    %273 = arith.truncf %272 : vector<8x32xf32> to vector<8x32xbf16>
    %c0_110 = arith.constant 0 : index
    %c0_111 = arith.constant 0 : index
    %274 = vector.load %arg67[%c0_110, %c0_111] : memref<32x32xbf16, #tpu.memory_space<vmem>>, vector<32x32xbf16>
    %cst_112 = arith.constant dense<0.000000e+00> : vector<8x32xf32>
    %275 = tpu.matmul %273, %274, %cst_112 {dimension_numbers = #tpu.dot_dimension_numbers<[1], [0], [0], [1], [0, 0, 1, 1], [], []>} : vector<8x32xbf16>, vector<32x32xbf16>, vector<8x32xf32> -> vector<8x32xf32>
    %c0_113 = arith.constant 0 : index
    %c0_114 = arith.constant 0 : index
    %276 = vector.load %arg65[%c0_113, %c0_114] : memref<1x32xf32, #tpu.memory_space<vmem>>, vector<1x32xf32>
    %277 = vector.broadcast %276 : vector<1x32xf32> to vector<8x32xf32>
    %278 = arith.addf %275, %277 : vector<8x32xf32>
    %279 = arith.addf %178, %278 : vector<8x32xf32>
    %cst_115 = arith.constant dense<0.000000e+00> : vector<8xf32>
    %280 = vector.multi_reduction <add>, %279, %cst_115 [1] : vector<8x32xf32> to vector<8xf32>
    %281 = vector.shape_cast %280 : vector<8xf32> to vector<8x1xf32>
    %cst_116 = arith.constant 3.200000e+01 : f32
    %282 = vector.broadcast %cst_116 : f32 to vector<8x1xf32>
    %283 = arith.divf %281, %282 : vector<8x1xf32>
    %284 = vector.broadcast %283 : vector<8x1xf32> to vector<8x32xf32>
    %285 = arith.subf %279, %284 : vector<8x32xf32>
    %286 = arith.mulf %285, %285 : vector<8x32xf32>
    %cst_117 = arith.constant dense<0.000000e+00> : vector<8xf32>
    %287 = vector.multi_reduction <add>, %286, %cst_117 [1] : vector<8x32xf32> to vector<8xf32>
    %288 = vector.shape_cast %287 : vector<8xf32> to vector<8x1xf32>
    %cst_118 = arith.constant 3.200000e+01 : f32
    %289 = vector.broadcast %cst_118 : f32 to vector<8x1xf32>
    %290 = arith.divf %288, %289 : vector<8x1xf32>
    %291 = vector.broadcast %283 : vector<8x1xf32> to vector<8x32xf32>
    %292 = arith.subf %279, %291 : vector<8x32xf32>
    %cst_119 = arith.constant 9.99999974E-6 : f32
    %293 = vector.broadcast %cst_119 : f32 to vector<8x1xf32>
    %294 = arith.addf %290, %293 : vector<8x1xf32>
    %295 = math.rsqrt %294 : vector<8x1xf32>
    %296 = vector.broadcast %295 : vector<8x1xf32> to vector<8x32xf32>
    %297 = arith.mulf %292, %296 : vector<8x32xf32>
    %c0_120 = arith.constant 0 : index
    %c0_121 = arith.constant 0 : index
    %298 = vector.load %arg61[%c0_120, %c0_121] : memref<1x32xf32, #tpu.memory_space<vmem>>, vector<1x32xf32>
    %299 = vector.broadcast %298 : vector<1x32xf32> to vector<8x32xf32>
    %300 = arith.mulf %297, %299 : vector<8x32xf32>
    %c0_122 = arith.constant 0 : index
    %c0_123 = arith.constant 0 : index
    %301 = vector.load %arg60[%c0_122, %c0_123] : memref<1x32xf32, #tpu.memory_space<vmem>>, vector<1x32xf32>
    %302 = vector.broadcast %301 : vector<1x32xf32> to vector<8x32xf32>
    %303 = arith.addf %300, %302 : vector<8x32xf32>
    %304 = arith.truncf %303 : vector<8x32xf32> to vector<8x32xbf16>
    %c0_124 = arith.constant 0 : index
    %c0_125 = arith.constant 0 : index
    %305 = vector.load %arg58[%c0_124, %c0_125] : memref<32x64xbf16, #tpu.memory_space<vmem>>, vector<32x64xbf16>
    %cst_126 = arith.constant dense<0.000000e+00> : vector<8x64xf32>
    %306 = tpu.matmul %304, %305, %cst_126 {dimension_numbers = #tpu.dot_dimension_numbers<[1], [0], [0], [1], [0, 0, 1, 1], [], []>} : vector<8x32xbf16>, vector<32x64xbf16>, vector<8x64xf32> -> vector<8x64xf32>
    %c0_127 = arith.constant 0 : index
    %c0_128 = arith.constant 0 : index
    %307 = vector.load %arg56[%c0_127, %c0_128] : memref<1x64xf32, #tpu.memory_space<vmem>>, vector<1x64xf32>
    %308 = vector.broadcast %307 : vector<1x64xf32> to vector<8x64xf32>
    %309 = arith.addf %306, %308 : vector<8x64xf32>
    %cst_129 = arith.constant 0.000000e+00 : f32
    %310 = vector.broadcast %cst_129 : f32 to vector<8x64xf32>
    %311 = arith.maximumf %309, %310 : vector<8x64xf32>
    %312 = arith.truncf %311 : vector<8x64xf32> to vector<8x64xbf16>
    %c0_130 = arith.constant 0 : index
    %c0_131 = arith.constant 0 : index
    %313 = vector.load %arg59[%c0_130, %c0_131] : memref<64x32xbf16, #tpu.memory_space<vmem>>, vector<64x32xbf16>
    %cst_132 = arith.constant dense<0.000000e+00> : vector<8x32xf32>
    %314 = tpu.matmul %312, %313, %cst_132 {dimension_numbers = #tpu.dot_dimension_numbers<[1], [0], [0], [1], [0, 0, 1, 1], [], []>} : vector<8x64xbf16>, vector<64x32xbf16>, vector<8x32xf32> -> vector<8x32xf32>
    %c0_133 = arith.constant 0 : index
    %c0_134 = arith.constant 0 : index
    %315 = vector.load %arg57[%c0_133, %c0_134] : memref<1x32xf32, #tpu.memory_space<vmem>>, vector<1x32xf32>
    %316 = vector.broadcast %315 : vector<1x32xf32> to vector<8x32xf32>
    %317 = arith.addf %314, %316 : vector<8x32xf32>
    %318 = arith.addf %303, %317 : vector<8x32xf32>
    %cst_135 = arith.constant dense<0.000000e+00> : vector<8xf32>
    %319 = vector.multi_reduction <add>, %318, %cst_135 [1] : vector<8x32xf32> to vector<8xf32>
    %320 = vector.shape_cast %319 : vector<8xf32> to vector<8x1xf32>
    %cst_136 = arith.constant 3.200000e+01 : f32
    %321 = vector.broadcast %cst_136 : f32 to vector<8x1xf32>
    %322 = arith.divf %320, %321 : vector<8x1xf32>
    %323 = vector.broadcast %322 : vector<8x1xf32> to vector<8x32xf32>
    %324 = arith.subf %318, %323 : vector<8x32xf32>
    %325 = arith.mulf %324, %324 : vector<8x32xf32>
    %cst_137 = arith.constant dense<0.000000e+00> : vector<8xf32>
    %326 = vector.multi_reduction <add>, %325, %cst_137 [1] : vector<8x32xf32> to vector<8xf32>
    %327 = vector.shape_cast %326 : vector<8xf32> to vector<8x1xf32>
    %cst_138 = arith.constant 3.200000e+01 : f32
    %328 = vector.broadcast %cst_138 : f32 to vector<8x1xf32>
    %329 = arith.divf %327, %328 : vector<8x1xf32>
    %330 = vector.broadcast %322 : vector<8x1xf32> to vector<8x32xf32>
    %331 = arith.subf %318, %330 : vector<8x32xf32>
    %cst_139 = arith.constant 9.99999974E-6 : f32
    %332 = vector.broadcast %cst_139 : f32 to vector<8x1xf32>
    %333 = arith.addf %329, %332 : vector<8x1xf32>
    %334 = math.rsqrt %333 : vector<8x1xf32>
    %335 = vector.broadcast %334 : vector<8x1xf32> to vector<8x32xf32>
    %336 = arith.mulf %331, %335 : vector<8x32xf32>
    %c0_140 = arith.constant 0 : index
    %c0_141 = arith.constant 0 : index
    %337 = vector.load %arg63[%c0_140, %c0_141] : memref<1x32xf32, #tpu.memory_space<vmem>>, vector<1x32xf32>
    %338 = vector.broadcast %337 : vector<1x32xf32> to vector<8x32xf32>
    %339 = arith.mulf %336, %338 : vector<8x32xf32>
    %c0_142 = arith.constant 0 : index
    %c0_143 = arith.constant 0 : index
    %340 = vector.load %arg62[%c0_142, %c0_143] : memref<1x32xf32, #tpu.memory_space<vmem>>, vector<1x32xf32>
    %341 = vector.broadcast %340 : vector<1x32xf32> to vector<8x32xf32>
    %342 = arith.addf %339, %341 : vector<8x32xf32>
    %c0_144 = arith.constant 0 : index
    %c0_145 = arith.constant 0 : index
    %c0_146 = arith.constant 0 : index
    %343 = vector.load %arg2[%c0_144, %c0_145, %c0_146] : memref<1x8x1xi32, #tpu.memory_space<vmem>>, vector<1x8x1xi32>
    %344 = vector.shape_cast %343 : vector<1x8x1xi32> to vector<8x1xi32>
    %345 = tpu.iota {dimensions = array<i32: 1>} : vector<8x128xi32>
    %346 = vector.broadcast %344 : vector<8x1xi32> to vector<8x128xi32>
    %347 = arith.cmpi eq, %345, %346 : vector<8x128xi32>
    %cst_147 = arith.constant 1.000000e+00 : f32
    %cst_148 = arith.constant 0.000000e+00 : f32
    %348 = vector.broadcast %cst_147 : f32 to vector<8x128xf32>
    %349 = vector.broadcast %cst_148 : f32 to vector<8x128xf32>
    %350 = arith.select %347, %348, %349 : vector<8x128xi1>, vector<8x128xf32>
    %351 = arith.truncf %350 : vector<8x128xf32> to vector<8x128xbf16>
    %c0_149 = arith.constant 0 : index
    %c0_150 = arith.constant 0 : index
    %352 = vector.load %arg43[%c0_149, %c0_150] : memref<128x32xbf16, #tpu.memory_space<vmem>>, vector<128x32xbf16>
    %cst_151 = arith.constant dense<0.000000e+00> : vector<8x32xf32>
    %353 = tpu.matmul %351, %352, %cst_151 {dimension_numbers = #tpu.dot_dimension_numbers<[1], [0], [0], [1], [0, 0, 1, 1], [], []>} : vector<8x128xbf16>, vector<128x32xbf16>, vector<8x32xf32> -> vector<8x32xf32>
    %cst_152 = arith.constant 5.65685415 : f32
    %354 = vector.broadcast %cst_152 : f32 to vector<8x32xf32>
    %355 = arith.mulf %353, %354 : vector<8x32xf32>
    %c0_153 = arith.constant 0 : index
    %c0_154 = arith.constant 0 : index
    %356 = vector.load %arg68[%c0_153, %c0_154] : memref<64x32xf32, #tpu.memory_space<vmem>>, vector<8x32xf32>
    %357 = arith.addf %355, %356 : vector<8x32xf32>
    %358 = arith.truncf %357 : vector<8x32xf32> to vector<8x32xbf16>
    %c0_155 = arith.constant 0 : index
    %c0_156 = arith.constant 0 : index
    %359 = vector.load %arg21[%c0_155, %c0_156] : memref<32x96xbf16, #tpu.memory_space<vmem>>, vector<32x96xbf16>
    %cst_157 = arith.constant dense<0.000000e+00> : vector<8x96xf32>
    %360 = tpu.matmul %358, %359, %cst_157 {dimension_numbers = #tpu.dot_dimension_numbers<[1], [0], [0], [1], [0, 0, 1, 1], [], []>} : vector<8x32xbf16>, vector<32x96xbf16>, vector<8x96xf32> -> vector<8x96xf32>
    %c0_158 = arith.constant 0 : index
    %c0_159 = arith.constant 0 : index
    %361 = vector.load %arg19[%c0_158, %c0_159] : memref<1x96xf32, #tpu.memory_space<vmem>>, vector<1x96xf32>
    %362 = vector.broadcast %361 : vector<1x96xf32> to vector<8x96xf32>
    %363 = arith.addf %360, %362 : vector<8x96xf32>
    %364 = vector.extract_strided_slice %363 {offsets = [0, 0], sizes = [8, 32], strides = [1, 1]} : vector<8x96xf32> to vector<8x32xf32>
    %365 = vector.extract_strided_slice %363 {offsets = [0, 32], sizes = [8, 32], strides = [1, 1]} : vector<8x96xf32> to vector<8x32xf32>
    %366 = vector.extract_strided_slice %363 {offsets = [0, 64], sizes = [8, 32], strides = [1, 1]} : vector<8x96xf32> to vector<8x32xf32>
    %367 = vector.extract_strided_slice %364 {offsets = [0, 0], sizes = [8, 8], strides = [1, 1]} : vector<8x32xf32> to vector<8x8xf32>
    %368 = arith.truncf %367 : vector<8x8xf32> to vector<8x8xbf16>
    %369 = vector.extract_strided_slice %365 {offsets = [0, 0], sizes = [8, 8], strides = [1, 1]} : vector<8x32xf32> to vector<8x8xf32>
    %370 = arith.truncf %369 : vector<8x8xf32> to vector<8x8xbf16>
    %371 = vector.extract_strided_slice %366 {offsets = [0, 0], sizes = [8, 8], strides = [1, 1]} : vector<8x32xf32> to vector<8x8xf32>
    %372 = arith.truncf %371 : vector<8x8xf32> to vector<8x8xbf16>
    %cst_160 = arith.constant dense<0.000000e+00> : vector<8x8xf32>
    %373 = tpu.matmul %368, %370, %cst_160 {dimension_numbers = #tpu.dot_dimension_numbers<[1], [1], [0], [0], [0, 0, 1, 0], [], []>} : vector<8x8xbf16>, vector<8x8xbf16>, vector<8x8xf32> -> vector<8x8xf32>
    %cst_161 = arith.constant 0.353553385 : f32
    %374 = vector.broadcast %cst_161 : f32 to vector<8x8xf32>
    %375 = arith.mulf %373, %374 : vector<8x8xf32>
    %376 = tpu.iota {dimensions = array<i32: 0>} : vector<8x8xi32>
    %377 = tpu.iota {dimensions = array<i32: 1>} : vector<8x8xi32>
    %378 = arith.cmpi sle, %377, %376 : vector<8x8xi32>
    %cst_162 = arith.constant -1.000000e+30 : f32
    %379 = vector.broadcast %cst_162 : f32 to vector<8x8xf32>
    %380 = arith.select %378, %375, %379 : vector<8x8xi1>, vector<8x8xf32>
    %cst_163 = arith.constant dense<0xFF800000> : vector<8xf32>
    %381 = vector.multi_reduction <maximumf>, %380, %cst_163 [1] : vector<8x8xf32> to vector<8xf32>
    %382 = vector.shape_cast %381 : vector<8xf32> to vector<8x1xf32>
    %383 = vector.broadcast %382 : vector<8x1xf32> to vector<8x8xf32>
    %384 = arith.subf %380, %383 : vector<8x8xf32>
    %385 = math.exp %384 : vector<8x8xf32>
    %cst_164 = arith.constant dense<0.000000e+00> : vector<8xf32>
    %386 = vector.multi_reduction <add>, %385, %cst_164 [1] : vector<8x8xf32> to vector<8xf32>
    %387 = vector.shape_cast %386 : vector<8xf32> to vector<8x1xf32>
    %388 = vector.broadcast %387 : vector<8x1xf32> to vector<8x8xf32>
    %389 = arith.divf %385, %388 : vector<8x8xf32>
    %390 = arith.truncf %389 : vector<8x8xf32> to vector<8x8xbf16>
    %cst_165 = arith.constant dense<0.000000e+00> : vector<8x8xf32>
    %391 = tpu.matmul %390, %372, %cst_165 {dimension_numbers = #tpu.dot_dimension_numbers<[1], [0], [0], [1], [0, 0, 1, 1], [], []>} : vector<8x8xbf16>, vector<8x8xbf16>, vector<8x8xf32> -> vector<8x8xf32>
    %c0_166 = arith.constant 0 : index
    %c0_167 = arith.constant 0 : index
    %392 = vector.load %arg72[%c0_166, %c0_167] : memref<8x32xf32, #tpu.memory_space<vmem>>, vector<8x8xf32>
    tpu.vector_store %arg72[%c0_166, %c0_167], %391 {strides = array<i32>} : memref<8x32xf32, #tpu.memory_space<vmem>>, vector<8x8xf32>,
    %393 = vector.extract_strided_slice %364 {offsets = [0, 8], sizes = [8, 8], strides = [1, 1]} : vector<8x32xf32> to vector<8x8xf32>
    %394 = arith.truncf %393 : vector<8x8xf32> to vector<8x8xbf16>
    %395 = vector.extract_strided_slice %365 {offsets = [0, 8], sizes = [8, 8], strides = [1, 1]} : vector<8x32xf32> to vector<8x8xf32>
    %396 = arith.truncf %395 : vector<8x8xf32> to vector<8x8xbf16>
    %397 = vector.extract_strided_slice %366 {offsets = [0, 8], sizes = [8, 8], strides = [1, 1]} : vector<8x32xf32> to vector<8x8xf32>
    %398 = arith.truncf %397 : vector<8x8xf32> to vector<8x8xbf16>
    %cst_168 = arith.constant dense<0.000000e+00> : vector<8x8xf32>
    %399 = tpu.matmul %394, %396, %cst_168 {dimension_numbers = #tpu.dot_dimension_numbers<[1], [1], [0], [0], [0, 0, 1, 0], [], []>} : vector<8x8xbf16>, vector<8x8xbf16>, vector<8x8xf32> -> vector<8x8xf32>
    %cst_169 = arith.constant 0.353553385 : f32
    %400 = vector.broadcast %cst_169 : f32 to vector<8x8xf32>
    %401 = arith.mulf %399, %400 : vector<8x8xf32>
    %402 = tpu.iota {dimensions = array<i32: 0>} : vector<8x8xi32>
    %403 = tpu.iota {dimensions = array<i32: 1>} : vector<8x8xi32>
    %404 = arith.cmpi sle, %403, %402 : vector<8x8xi32>
    %cst_170 = arith.constant -1.000000e+30 : f32
    %405 = vector.broadcast %cst_170 : f32 to vector<8x8xf32>
    %406 = arith.select %404, %401, %405 : vector<8x8xi1>, vector<8x8xf32>
    %cst_171 = arith.constant dense<0xFF800000> : vector<8xf32>
    %407 = vector.multi_reduction <maximumf>, %406, %cst_171 [1] : vector<8x8xf32> to vector<8xf32>
    %408 = vector.shape_cast %407 : vector<8xf32> to vector<8x1xf32>
    %409 = vector.broadcast %408 : vector<8x1xf32> to vector<8x8xf32>
    %410 = arith.subf %406, %409 : vector<8x8xf32>
    %411 = math.exp %410 : vector<8x8xf32>
    %cst_172 = arith.constant dense<0.000000e+00> : vector<8xf32>
    %412 = vector.multi_reduction <add>, %411, %cst_172 [1] : vector<8x8xf32> to vector<8xf32>
    %413 = vector.shape_cast %412 : vector<8xf32> to vector<8x1xf32>
    %414 = vector.broadcast %413 : vector<8x1xf32> to vector<8x8xf32>
    %415 = arith.divf %411, %414 : vector<8x8xf32>
    %416 = arith.truncf %415 : vector<8x8xf32> to vector<8x8xbf16>
    %cst_173 = arith.constant dense<0.000000e+00> : vector<8x8xf32>
    %417 = tpu.matmul %416, %398, %cst_173 {dimension_numbers = #tpu.dot_dimension_numbers<[1], [0], [0], [1], [0, 0, 1, 1], [], []>} : vector<8x8xbf16>, vector<8x8xbf16>, vector<8x8xf32> -> vector<8x8xf32>
    %c0_174 = arith.constant 0 : index
    %c8_175 = arith.constant 8 : index
    %418 = vector.load %arg72[%c0_174, %c8_175] : memref<8x32xf32, #tpu.memory_space<vmem>>, vector<8x8xf32>
    tpu.vector_store %arg72[%c0_174, %c8_175], %417 {strides = array<i32>} : memref<8x32xf32, #tpu.memory_space<vmem>>, vector<8x8xf32>,
    %419 = vector.extract_strided_slice %364 {offsets = [0, 16], sizes = [8, 8], strides = [1, 1]} : vector<8x32xf32> to vector<8x8xf32>
    %420 = arith.truncf %419 : vector<8x8xf32> to vector<8x8xbf16>
    %421 = vector.extract_strided_slice %365 {offsets = [0, 16], sizes = [8, 8], strides = [1, 1]} : vector<8x32xf32> to vector<8x8xf32>
    %422 = arith.truncf %421 : vector<8x8xf32> to vector<8x8xbf16>
    %423 = vector.extract_strided_slice %366 {offsets = [0, 16], sizes = [8, 8], strides = [1, 1]} : vector<8x32xf32> to vector<8x8xf32>
    %424 = arith.truncf %423 : vector<8x8xf32> to vector<8x8xbf16>
    %cst_176 = arith.constant dense<0.000000e+00> : vector<8x8xf32>
    %425 = tpu.matmul %420, %422, %cst_176 {dimension_numbers = #tpu.dot_dimension_numbers<[1], [1], [0], [0], [0, 0, 1, 0], [], []>} : vector<8x8xbf16>, vector<8x8xbf16>, vector<8x8xf32> -> vector<8x8xf32>
    %cst_177 = arith.constant 0.353553385 : f32
    %426 = vector.broadcast %cst_177 : f32 to vector<8x8xf32>
    %427 = arith.mulf %425, %426 : vector<8x8xf32>
    %428 = tpu.iota {dimensions = array<i32: 0>} : vector<8x8xi32>
    %429 = tpu.iota {dimensions = array<i32: 1>} : vector<8x8xi32>
    %430 = arith.cmpi sle, %429, %428 : vector<8x8xi32>
    %cst_178 = arith.constant -1.000000e+30 : f32
    %431 = vector.broadcast %cst_178 : f32 to vector<8x8xf32>
    %432 = arith.select %430, %427, %431 : vector<8x8xi1>, vector<8x8xf32>
    %cst_179 = arith.constant dense<0xFF800000> : vector<8xf32>
    %433 = vector.multi_reduction <maximumf>, %432, %cst_179 [1] : vector<8x8xf32> to vector<8xf32>
    %434 = vector.shape_cast %433 : vector<8xf32> to vector<8x1xf32>
    %435 = vector.broadcast %434 : vector<8x1xf32> to vector<8x8xf32>
    %436 = arith.subf %432, %435 : vector<8x8xf32>
    %437 = math.exp %436 : vector<8x8xf32>
    %cst_180 = arith.constant dense<0.000000e+00> : vector<8xf32>
    %438 = vector.multi_reduction <add>, %437, %cst_180 [1] : vector<8x8xf32> to vector<8xf32>
    %439 = vector.shape_cast %438 : vector<8xf32> to vector<8x1xf32>
    %440 = vector.broadcast %439 : vector<8x1xf32> to vector<8x8xf32>
    %441 = arith.divf %437, %440 : vector<8x8xf32>
    %442 = arith.truncf %441 : vector<8x8xf32> to vector<8x8xbf16>
    %cst_181 = arith.constant dense<0.000000e+00> : vector<8x8xf32>
    %443 = tpu.matmul %442, %424, %cst_181 {dimension_numbers = #tpu.dot_dimension_numbers<[1], [0], [0], [1], [0, 0, 1, 1], [], []>} : vector<8x8xbf16>, vector<8x8xbf16>, vector<8x8xf32> -> vector<8x8xf32>
    %c0_182 = arith.constant 0 : index
    %c16_183 = arith.constant 16 : index
    %444 = vector.load %arg72[%c0_182, %c16_183] : memref<8x32xf32, #tpu.memory_space<vmem>>, vector<8x8xf32>
    tpu.vector_store %arg72[%c0_182, %c16_183], %443 {strides = array<i32>} : memref<8x32xf32, #tpu.memory_space<vmem>>, vector<8x8xf32>,
    %445 = vector.extract_strided_slice %364 {offsets = [0, 24], sizes = [8, 8], strides = [1, 1]} : vector<8x32xf32> to vector<8x8xf32>
    %446 = arith.truncf %445 : vector<8x8xf32> to vector<8x8xbf16>
    %447 = vector.extract_strided_slice %365 {offsets = [0, 24], sizes = [8, 8], strides = [1, 1]} : vector<8x32xf32> to vector<8x8xf32>
    %448 = arith.truncf %447 : vector<8x8xf32> to vector<8x8xbf16>
    %449 = vector.extract_strided_slice %366 {offsets = [0, 24], sizes = [8, 8], strides = [1, 1]} : vector<8x32xf32> to vector<8x8xf32>
    %450 = arith.truncf %449 : vector<8x8xf32> to vector<8x8xbf16>
    %cst_184 = arith.constant dense<0.000000e+00> : vector<8x8xf32>
    %451 = tpu.matmul %446, %448, %cst_184 {dimension_numbers = #tpu.dot_dimension_numbers<[1], [1], [0], [0], [0, 0, 1, 0], [], []>} : vector<8x8xbf16>, vector<8x8xbf16>, vector<8x8xf32> -> vector<8x8xf32>
    %cst_185 = arith.constant 0.353553385 : f32
    %452 = vector.broadcast %cst_185 : f32 to vector<8x8xf32>
    %453 = arith.mulf %451, %452 : vector<8x8xf32>
    %454 = tpu.iota {dimensions = array<i32: 0>} : vector<8x8xi32>
    %455 = tpu.iota {dimensions = array<i32: 1>} : vector<8x8xi32>
    %456 = arith.cmpi sle, %455, %454 : vector<8x8xi32>
    %cst_186 = arith.constant -1.000000e+30 : f32
    %457 = vector.broadcast %cst_186 : f32 to vector<8x8xf32>
    %458 = arith.select %456, %453, %457 : vector<8x8xi1>, vector<8x8xf32>
    %cst_187 = arith.constant dense<0xFF800000> : vector<8xf32>
    %459 = vector.multi_reduction <maximumf>, %458, %cst_187 [1] : vector<8x8xf32> to vector<8xf32>
    %460 = vector.shape_cast %459 : vector<8xf32> to vector<8x1xf32>
    %461 = vector.broadcast %460 : vector<8x1xf32> to vector<8x8xf32>
    %462 = arith.subf %458, %461 : vector<8x8xf32>
    %463 = math.exp %462 : vector<8x8xf32>
    %cst_188 = arith.constant dense<0.000000e+00> : vector<8xf32>
    %464 = vector.multi_reduction <add>, %463, %cst_188 [1] : vector<8x8xf32> to vector<8xf32>
    %465 = vector.shape_cast %464 : vector<8xf32> to vector<8x1xf32>
    %466 = vector.broadcast %465 : vector<8x1xf32> to vector<8x8xf32>
    %467 = arith.divf %463, %466 : vector<8x8xf32>
    %468 = arith.truncf %467 : vector<8x8xf32> to vector<8x8xbf16>
    %cst_189 = arith.constant dense<0.000000e+00> : vector<8x8xf32>
    %469 = tpu.matmul %468, %450, %cst_189 {dimension_numbers = #tpu.dot_dimension_numbers<[1], [0], [0], [1], [0, 0, 1, 1], [], []>} : vector<8x8xbf16>, vector<8x8xbf16>, vector<8x8xf32> -> vector<8x8xf32>
    %c0_190 = arith.constant 0 : index
    %c24_191 = arith.constant 24 : index
    %470 = vector.load %arg72[%c0_190, %c24_191] : memref<8x32xf32, #tpu.memory_space<vmem>>, vector<8x8xf32>
    tpu.vector_store %arg72[%c0_190, %c24_191], %469 {strides = array<i32>} : memref<8x32xf32, #tpu.memory_space<vmem>>, vector<8x8xf32>,
    %c0_192 = arith.constant 0 : index
    %c0_193 = arith.constant 0 : index
    %471 = vector.load %arg72[%c0_192, %c0_193] : memref<8x32xf32, #tpu.memory_space<vmem>>, vector<8x32xf32>
    %472 = arith.truncf %471 : vector<8x32xf32> to vector<8x32xbf16>
    %c0_194 = arith.constant 0 : index
    %c0_195 = arith.constant 0 : index
    %473 = vector.load %arg22[%c0_194, %c0_195] : memref<32x32xbf16, #tpu.memory_space<vmem>>, vector<32x32xbf16>
    %cst_196 = arith.constant dense<0.000000e+00> : vector<8x32xf32>
    %474 = tpu.matmul %472, %473, %cst_196 {dimension_numbers = #tpu.dot_dimension_numbers<[1], [0], [0], [1], [0, 0, 1, 1], [], []>} : vector<8x32xbf16>, vector<32x32xbf16>, vector<8x32xf32> -> vector<8x32xf32>
    %c0_197 = arith.constant 0 : index
    %c0_198 = arith.constant 0 : index
    %475 = vector.load %arg20[%c0_197, %c0_198] : memref<1x32xf32, #tpu.memory_space<vmem>>, vector<1x32xf32>
    %476 = vector.broadcast %475 : vector<1x32xf32> to vector<8x32xf32>
    %477 = arith.addf %474, %476 : vector<8x32xf32>
    %478 = arith.addf %357, %477 : vector<8x32xf32>
    %cst_199 = arith.constant dense<0.000000e+00> : vector<8xf32>
    %479 = vector.multi_reduction <add>, %478, %cst_199 [1] : vector<8x32xf32> to vector<8xf32>
    %480 = vector.shape_cast %479 : vector<8xf32> to vector<8x1xf32>
    %cst_200 = arith.constant 3.200000e+01 : f32
    %481 = vector.broadcast %cst_200 : f32 to vector<8x1xf32>
    %482 = arith.divf %480, %481 : vector<8x1xf32>
    %483 = vector.broadcast %482 : vector<8x1xf32> to vector<8x32xf32>
    %484 = arith.subf %478, %483 : vector<8x32xf32>
    %485 = arith.mulf %484, %484 : vector<8x32xf32>
    %cst_201 = arith.constant dense<0.000000e+00> : vector<8xf32>
    %486 = vector.multi_reduction <add>, %485, %cst_201 [1] : vector<8x32xf32> to vector<8xf32>
    %487 = vector.shape_cast %486 : vector<8xf32> to vector<8x1xf32>
    %cst_202 = arith.constant 3.200000e+01 : f32
    %488 = vector.broadcast %cst_202 : f32 to vector<8x1xf32>
    %489 = arith.divf %487, %488 : vector<8x1xf32>
    %490 = vector.broadcast %482 : vector<8x1xf32> to vector<8x32xf32>
    %491 = arith.subf %478, %490 : vector<8x32xf32>
    %cst_203 = arith.constant 9.99999974E-6 : f32
    %492 = vector.broadcast %cst_203 : f32 to vector<8x1xf32>
    %493 = arith.addf %489, %492 : vector<8x1xf32>
    %494 = math.rsqrt %493 : vector<8x1xf32>
    %495 = vector.broadcast %494 : vector<8x1xf32> to vector<8x32xf32>
    %496 = arith.mulf %491, %495 : vector<8x32xf32>
    %c0_204 = arith.constant 0 : index
    %c0_205 = arith.constant 0 : index
    %497 = vector.load %arg14[%c0_204, %c0_205] : memref<1x32xf32, #tpu.memory_space<vmem>>, vector<1x32xf32>
    %498 = vector.broadcast %497 : vector<1x32xf32> to vector<8x32xf32>
    %499 = arith.mulf %496, %498 : vector<8x32xf32>
    %c0_206 = arith.constant 0 : index
    %c0_207 = arith.constant 0 : index
    %500 = vector.load %arg13[%c0_206, %c0_207] : memref<1x32xf32, #tpu.memory_space<vmem>>, vector<1x32xf32>
    %501 = vector.broadcast %500 : vector<1x32xf32> to vector<8x32xf32>
    %502 = arith.addf %499, %501 : vector<8x32xf32>
    %503 = arith.truncf %502 : vector<8x32xf32> to vector<8x32xbf16>
    %c0_208 = arith.constant 0 : index
    %c0_209 = arith.constant 0 : index
    %504 = vector.load %arg8[%c0_208, %c0_209] : memref<32x32xbf16, #tpu.memory_space<vmem>>, vector<32x32xbf16>
    %cst_210 = arith.constant dense<0.000000e+00> : vector<8x32xf32>
    %505 = tpu.matmul %503, %504, %cst_210 {dimension_numbers = #tpu.dot_dimension_numbers<[1], [0], [0], [1], [0, 0, 1, 1], [], []>} : vector<8x32xbf16>, vector<32x32xbf16>, vector<8x32xf32> -> vector<8x32xf32>
    %c0_211 = arith.constant 0 : index
    %c0_212 = arith.constant 0 : index
    %506 = vector.load %arg5[%c0_211, %c0_212] : memref<1x32xf32, #tpu.memory_space<vmem>>, vector<1x32xf32>
    %507 = vector.broadcast %506 : vector<1x32xf32> to vector<8x32xf32>
    %508 = arith.addf %505, %507 : vector<8x32xf32>
    %509 = arith.truncf %342 : vector<8x32xf32> to vector<8x32xbf16>
    %c0_213 = arith.constant 0 : index
    %c0_214 = arith.constant 0 : index
    %510 = vector.load %arg6[%c0_213, %c0_214] : memref<32x64xbf16, #tpu.memory_space<vmem>>, vector<32x64xbf16>
    %cst_215 = arith.constant dense<0.000000e+00> : vector<8x64xf32>
    %511 = tpu.matmul %509, %510, %cst_215 {dimension_numbers = #tpu.dot_dimension_numbers<[1], [0], [0], [1], [0, 0, 1, 1], [], []>} : vector<8x32xbf16>, vector<32x64xbf16>, vector<8x64xf32> -> vector<8x64xf32>
    %c0_216 = arith.constant 0 : index
    %c0_217 = arith.constant 0 : index
    %512 = vector.load %arg3[%c0_216, %c0_217] : memref<1x64xf32, #tpu.memory_space<vmem>>, vector<1x64xf32>
    %513 = vector.broadcast %512 : vector<1x64xf32> to vector<8x64xf32>
    %514 = arith.addf %511, %513 : vector<8x64xf32>
    %515 = vector.extract_strided_slice %514 {offsets = [0, 0], sizes = [8, 32], strides = [1, 1]} : vector<8x64xf32> to vector<8x32xf32>
    %516 = vector.extract_strided_slice %514 {offsets = [0, 32], sizes = [8, 32], strides = [1, 1]} : vector<8x64xf32> to vector<8x32xf32>
    %517 = vector.extract_strided_slice %508 {offsets = [0, 0], sizes = [8, 8], strides = [1, 1]} : vector<8x32xf32> to vector<8x8xf32>
    %518 = arith.truncf %517 : vector<8x8xf32> to vector<8x8xbf16>
    %519 = vector.extract_strided_slice %515 {offsets = [0, 0], sizes = [8, 8], strides = [1, 1]} : vector<8x32xf32> to vector<8x8xf32>
    %520 = arith.truncf %519 : vector<8x8xf32> to vector<8x8xbf16>
    %521 = vector.extract_strided_slice %516 {offsets = [0, 0], sizes = [8, 8], strides = [1, 1]} : vector<8x32xf32> to vector<8x8xf32>
    %522 = arith.truncf %521 : vector<8x8xf32> to vector<8x8xbf16>
    %cst_218 = arith.constant dense<0.000000e+00> : vector<8x8xf32>
    %523 = tpu.matmul %518, %520, %cst_218 {dimension_numbers = #tpu.dot_dimension_numbers<[1], [1], [0], [0], [0, 0, 1, 0], [], []>} : vector<8x8xbf16>, vector<8x8xbf16>, vector<8x8xf32> -> vector<8x8xf32>
    %cst_219 = arith.constant 0.353553385 : f32
    %524 = vector.broadcast %cst_219 : f32 to vector<8x8xf32>
    %525 = arith.mulf %523, %524 : vector<8x8xf32>
    %cst_220 = arith.constant dense<0xFF800000> : vector<8xf32>
    %526 = vector.multi_reduction <maximumf>, %525, %cst_220 [1] : vector<8x8xf32> to vector<8xf32>
    %527 = vector.shape_cast %526 : vector<8xf32> to vector<8x1xf32>
    %528 = vector.broadcast %527 : vector<8x1xf32> to vector<8x8xf32>
    %529 = arith.subf %525, %528 : vector<8x8xf32>
    %530 = math.exp %529 : vector<8x8xf32>
    %cst_221 = arith.constant dense<0.000000e+00> : vector<8xf32>
    %531 = vector.multi_reduction <add>, %530, %cst_221 [1] : vector<8x8xf32> to vector<8xf32>
    %532 = vector.shape_cast %531 : vector<8xf32> to vector<8x1xf32>
    %533 = vector.broadcast %532 : vector<8x1xf32> to vector<8x8xf32>
    %534 = arith.divf %530, %533 : vector<8x8xf32>
    %535 = arith.truncf %534 : vector<8x8xf32> to vector<8x8xbf16>
    %cst_222 = arith.constant dense<0.000000e+00> : vector<8x8xf32>
    %536 = tpu.matmul %535, %522, %cst_222 {dimension_numbers = #tpu.dot_dimension_numbers<[1], [0], [0], [1], [0, 0, 1, 1], [], []>} : vector<8x8xbf16>, vector<8x8xbf16>, vector<8x8xf32> -> vector<8x8xf32>
    %c0_223 = arith.constant 0 : index
    %c0_224 = arith.constant 0 : index
    %537 = vector.load %arg72[%c0_223, %c0_224] : memref<8x32xf32, #tpu.memory_space<vmem>>, vector<8x8xf32>
    tpu.vector_store %arg72[%c0_223, %c0_224], %536 {strides = array<i32>} : memref<8x32xf32, #tpu.memory_space<vmem>>, vector<8x8xf32>,
    %538 = vector.extract_strided_slice %508 {offsets = [0, 8], sizes = [8, 8], strides = [1, 1]} : vector<8x32xf32> to vector<8x8xf32>
    %539 = arith.truncf %538 : vector<8x8xf32> to vector<8x8xbf16>
    %540 = vector.extract_strided_slice %515 {offsets = [0, 8], sizes = [8, 8], strides = [1, 1]} : vector<8x32xf32> to vector<8x8xf32>
    %541 = arith.truncf %540 : vector<8x8xf32> to vector<8x8xbf16>
    %542 = vector.extract_strided_slice %516 {offsets = [0, 8], sizes = [8, 8], strides = [1, 1]} : vector<8x32xf32> to vector<8x8xf32>
    %543 = arith.truncf %542 : vector<8x8xf32> to vector<8x8xbf16>
    %cst_225 = arith.constant dense<0.000000e+00> : vector<8x8xf32>
    %544 = tpu.matmul %539, %541, %cst_225 {dimension_numbers = #tpu.dot_dimension_numbers<[1], [1], [0], [0], [0, 0, 1, 0], [], []>} : vector<8x8xbf16>, vector<8x8xbf16>, vector<8x8xf32> -> vector<8x8xf32>
    %cst_226 = arith.constant 0.353553385 : f32
    %545 = vector.broadcast %cst_226 : f32 to vector<8x8xf32>
    %546 = arith.mulf %544, %545 : vector<8x8xf32>
    %cst_227 = arith.constant dense<0xFF800000> : vector<8xf32>
    %547 = vector.multi_reduction <maximumf>, %546, %cst_227 [1] : vector<8x8xf32> to vector<8xf32>
    %548 = vector.shape_cast %547 : vector<8xf32> to vector<8x1xf32>
    %549 = vector.broadcast %548 : vector<8x1xf32> to vector<8x8xf32>
    %550 = arith.subf %546, %549 : vector<8x8xf32>
    %551 = math.exp %550 : vector<8x8xf32>
    %cst_228 = arith.constant dense<0.000000e+00> : vector<8xf32>
    %552 = vector.multi_reduction <add>, %551, %cst_228 [1] : vector<8x8xf32> to vector<8xf32>
    %553 = vector.shape_cast %552 : vector<8xf32> to vector<8x1xf32>
    %554 = vector.broadcast %553 : vector<8x1xf32> to vector<8x8xf32>
    %555 = arith.divf %551, %554 : vector<8x8xf32>
    %556 = arith.truncf %555 : vector<8x8xf32> to vector<8x8xbf16>
    %cst_229 = arith.constant dense<0.000000e+00> : vector<8x8xf32>
    %557 = tpu.matmul %556, %543, %cst_229 {dimension_numbers = #tpu.dot_dimension_numbers<[1], [0], [0], [1], [0, 0, 1, 1], [], []>} : vector<8x8xbf16>, vector<8x8xbf16>, vector<8x8xf32> -> vector<8x8xf32>
    %c0_230 = arith.constant 0 : index
    %c8_231 = arith.constant 8 : index
    %558 = vector.load %arg72[%c0_230, %c8_231] : memref<8x32xf32, #tpu.memory_space<vmem>>, vector<8x8xf32>
    tpu.vector_store %arg72[%c0_230, %c8_231], %557 {strides = array<i32>} : memref<8x32xf32, #tpu.memory_space<vmem>>, vector<8x8xf32>,
    %559 = vector.extract_strided_slice %508 {offsets = [0, 16], sizes = [8, 8], strides = [1, 1]} : vector<8x32xf32> to vector<8x8xf32>
    %560 = arith.truncf %559 : vector<8x8xf32> to vector<8x8xbf16>
    %561 = vector.extract_strided_slice %515 {offsets = [0, 16], sizes = [8, 8], strides = [1, 1]} : vector<8x32xf32> to vector<8x8xf32>
    %562 = arith.truncf %561 : vector<8x8xf32> to vector<8x8xbf16>
    %563 = vector.extract_strided_slice %516 {offsets = [0, 16], sizes = [8, 8], strides = [1, 1]} : vector<8x32xf32> to vector<8x8xf32>
    %564 = arith.truncf %563 : vector<8x8xf32> to vector<8x8xbf16>
    %cst_232 = arith.constant dense<0.000000e+00> : vector<8x8xf32>
    %565 = tpu.matmul %560, %562, %cst_232 {dimension_numbers = #tpu.dot_dimension_numbers<[1], [1], [0], [0], [0, 0, 1, 0], [], []>} : vector<8x8xbf16>, vector<8x8xbf16>, vector<8x8xf32> -> vector<8x8xf32>
    %cst_233 = arith.constant 0.353553385 : f32
    %566 = vector.broadcast %cst_233 : f32 to vector<8x8xf32>
    %567 = arith.mulf %565, %566 : vector<8x8xf32>
    %cst_234 = arith.constant dense<0xFF800000> : vector<8xf32>
    %568 = vector.multi_reduction <maximumf>, %567, %cst_234 [1] : vector<8x8xf32> to vector<8xf32>
    %569 = vector.shape_cast %568 : vector<8xf32> to vector<8x1xf32>
    %570 = vector.broadcast %569 : vector<8x1xf32> to vector<8x8xf32>
    %571 = arith.subf %567, %570 : vector<8x8xf32>
    %572 = math.exp %571 : vector<8x8xf32>
    %cst_235 = arith.constant dense<0.000000e+00> : vector<8xf32>
    %573 = vector.multi_reduction <add>, %572, %cst_235 [1] : vector<8x8xf32> to vector<8xf32>
    %574 = vector.shape_cast %573 : vector<8xf32> to vector<8x1xf32>
    %575 = vector.broadcast %574 : vector<8x1xf32> to vector<8x8xf32>
    %576 = arith.divf %572, %575 : vector<8x8xf32>
    %577 = arith.truncf %576 : vector<8x8xf32> to vector<8x8xbf16>
    %cst_236 = arith.constant dense<0.000000e+00> : vector<8x8xf32>
    %578 = tpu.matmul %577, %564, %cst_236 {dimension_numbers = #tpu.dot_dimension_numbers<[1], [0], [0], [1], [0, 0, 1, 1], [], []>} : vector<8x8xbf16>, vector<8x8xbf16>, vector<8x8xf32> -> vector<8x8xf32>
    %c0_237 = arith.constant 0 : index
    %c16_238 = arith.constant 16 : index
    %579 = vector.load %arg72[%c0_237, %c16_238] : memref<8x32xf32, #tpu.memory_space<vmem>>, vector<8x8xf32>
    tpu.vector_store %arg72[%c0_237, %c16_238], %578 {strides = array<i32>} : memref<8x32xf32, #tpu.memory_space<vmem>>, vector<8x8xf32>,
    %580 = vector.extract_strided_slice %508 {offsets = [0, 24], sizes = [8, 8], strides = [1, 1]} : vector<8x32xf32> to vector<8x8xf32>
    %581 = arith.truncf %580 : vector<8x8xf32> to vector<8x8xbf16>
    %582 = vector.extract_strided_slice %515 {offsets = [0, 24], sizes = [8, 8], strides = [1, 1]} : vector<8x32xf32> to vector<8x8xf32>
    %583 = arith.truncf %582 : vector<8x8xf32> to vector<8x8xbf16>
    %584 = vector.extract_strided_slice %516 {offsets = [0, 24], sizes = [8, 8], strides = [1, 1]} : vector<8x32xf32> to vector<8x8xf32>
    %585 = arith.truncf %584 : vector<8x8xf32> to vector<8x8xbf16>
    %cst_239 = arith.constant dense<0.000000e+00> : vector<8x8xf32>
    %586 = tpu.matmul %581, %583, %cst_239 {dimension_numbers = #tpu.dot_dimension_numbers<[1], [1], [0], [0], [0, 0, 1, 0], [], []>} : vector<8x8xbf16>, vector<8x8xbf16>, vector<8x8xf32> -> vector<8x8xf32>
    %cst_240 = arith.constant 0.353553385 : f32
    %587 = vector.broadcast %cst_240 : f32 to vector<8x8xf32>
    %588 = arith.mulf %586, %587 : vector<8x8xf32>
    %cst_241 = arith.constant dense<0xFF800000> : vector<8xf32>
    %589 = vector.multi_reduction <maximumf>, %588, %cst_241 [1] : vector<8x8xf32> to vector<8xf32>
    %590 = vector.shape_cast %589 : vector<8xf32> to vector<8x1xf32>
    %591 = vector.broadcast %590 : vector<8x1xf32> to vector<8x8xf32>
    %592 = arith.subf %588, %591 : vector<8x8xf32>
    %593 = math.exp %592 : vector<8x8xf32>
    %cst_242 = arith.constant dense<0.000000e+00> : vector<8xf32>
    %594 = vector.multi_reduction <add>, %593, %cst_242 [1] : vector<8x8xf32> to vector<8xf32>
    %595 = vector.shape_cast %594 : vector<8xf32> to vector<8x1xf32>
    %596 = vector.broadcast %595 : vector<8x1xf32> to vector<8x8xf32>
    %597 = arith.divf %593, %596 : vector<8x8xf32>
    %598 = arith.truncf %597 : vector<8x8xf32> to vector<8x8xbf16>
    %cst_243 = arith.constant dense<0.000000e+00> : vector<8x8xf32>
    %599 = tpu.matmul %598, %585, %cst_243 {dimension_numbers = #tpu.dot_dimension_numbers<[1], [0], [0], [1], [0, 0, 1, 1], [], []>} : vector<8x8xbf16>, vector<8x8xbf16>, vector<8x8xf32> -> vector<8x8xf32>
    %c0_244 = arith.constant 0 : index
    %c24_245 = arith.constant 24 : index
    %600 = vector.load %arg72[%c0_244, %c24_245] : memref<8x32xf32, #tpu.memory_space<vmem>>, vector<8x8xf32>
    tpu.vector_store %arg72[%c0_244, %c24_245], %599 {strides = array<i32>} : memref<8x32xf32, #tpu.memory_space<vmem>>, vector<8x8xf32>,
    %c0_246 = arith.constant 0 : index
    %c0_247 = arith.constant 0 : index
    %601 = vector.load %arg72[%c0_246, %c0_247] : memref<8x32xf32, #tpu.memory_space<vmem>>, vector<8x32xf32>
    %602 = arith.truncf %601 : vector<8x32xf32> to vector<8x32xbf16>
    %c0_248 = arith.constant 0 : index
    %c0_249 = arith.constant 0 : index
    %603 = vector.load %arg7[%c0_248, %c0_249] : memref<32x32xbf16, #tpu.memory_space<vmem>>, vector<32x32xbf16>
    %cst_250 = arith.constant dense<0.000000e+00> : vector<8x32xf32>
    %604 = tpu.matmul %602, %603, %cst_250 {dimension_numbers = #tpu.dot_dimension_numbers<[1], [0], [0], [1], [0, 0, 1, 1], [], []>} : vector<8x32xbf16>, vector<32x32xbf16>, vector<8x32xf32> -> vector<8x32xf32>
    %c0_251 = arith.constant 0 : index
    %c0_252 = arith.constant 0 : index
    %605 = vector.load %arg4[%c0_251, %c0_252] : memref<1x32xf32, #tpu.memory_space<vmem>>, vector<1x32xf32>
    %606 = vector.broadcast %605 : vector<1x32xf32> to vector<8x32xf32>
    %607 = arith.addf %604, %606 : vector<8x32xf32>
    %608 = arith.addf %502, %607 : vector<8x32xf32>
    %cst_253 = arith.constant dense<0.000000e+00> : vector<8xf32>
    %609 = vector.multi_reduction <add>, %608, %cst_253 [1] : vector<8x32xf32> to vector<8xf32>
    %610 = vector.shape_cast %609 : vector<8xf32> to vector<8x1xf32>
    %cst_254 = arith.constant 3.200000e+01 : f32
    %611 = vector.broadcast %cst_254 : f32 to vector<8x1xf32>
    %612 = arith.divf %610, %611 : vector<8x1xf32>
    %613 = vector.broadcast %612 : vector<8x1xf32> to vector<8x32xf32>
    %614 = arith.subf %608, %613 : vector<8x32xf32>
    %615 = arith.mulf %614, %614 : vector<8x32xf32>
    %cst_255 = arith.constant dense<0.000000e+00> : vector<8xf32>
    %616 = vector.multi_reduction <add>, %615, %cst_255 [1] : vector<8x32xf32> to vector<8xf32>
    %617 = vector.shape_cast %616 : vector<8xf32> to vector<8x1xf32>
    %cst_256 = arith.constant 3.200000e+01 : f32
    %618 = vector.broadcast %cst_256 : f32 to vector<8x1xf32>
    %619 = arith.divf %617, %618 : vector<8x1xf32>
    %620 = vector.broadcast %612 : vector<8x1xf32> to vector<8x32xf32>
    %621 = arith.subf %608, %620 : vector<8x32xf32>
    %cst_257 = arith.constant 9.99999974E-6 : f32
    %622 = vector.broadcast %cst_257 : f32 to vector<8x1xf32>
    %623 = arith.addf %619, %622 : vector<8x1xf32>
    %624 = math.rsqrt %623 : vector<8x1xf32>
    %625 = vector.broadcast %624 : vector<8x1xf32> to vector<8x32xf32>
    %626 = arith.mulf %621, %625 : vector<8x32xf32>
    %c0_258 = arith.constant 0 : index
    %c0_259 = arith.constant 0 : index
    %627 = vector.load %arg16[%c0_258, %c0_259] : memref<1x32xf32, #tpu.memory_space<vmem>>, vector<1x32xf32>
    %628 = vector.broadcast %627 : vector<1x32xf32> to vector<8x32xf32>
    %629 = arith.mulf %626, %628 : vector<8x32xf32>
    %c0_260 = arith.constant 0 : index
    %c0_261 = arith.constant 0 : index
    %630 = vector.load %arg15[%c0_260, %c0_261] : memref<1x32xf32, #tpu.memory_space<vmem>>, vector<1x32xf32>
    %631 = vector.broadcast %630 : vector<1x32xf32> to vector<8x32xf32>
    %632 = arith.addf %629, %631 : vector<8x32xf32>
    %633 = arith.truncf %632 : vector<8x32xf32> to vector<8x32xbf16>
    %c0_262 = arith.constant 0 : index
    %c0_263 = arith.constant 0 : index
    %634 = vector.load %arg11[%c0_262, %c0_263] : memref<32x64xbf16, #tpu.memory_space<vmem>>, vector<32x64xbf16>
    %cst_264 = arith.constant dense<0.000000e+00> : vector<8x64xf32>
    %635 = tpu.matmul %633, %634, %cst_264 {dimension_numbers = #tpu.dot_dimension_numbers<[1], [0], [0], [1], [0, 0, 1, 1], [], []>} : vector<8x32xbf16>, vector<32x64xbf16>, vector<8x64xf32> -> vector<8x64xf32>
    %c0_265 = arith.constant 0 : index
    %c0_266 = arith.constant 0 : index
    %636 = vector.load %arg9[%c0_265, %c0_266] : memref<1x64xf32, #tpu.memory_space<vmem>>, vector<1x64xf32>
    %637 = vector.broadcast %636 : vector<1x64xf32> to vector<8x64xf32>
    %638 = arith.addf %635, %637 : vector<8x64xf32>
    %cst_267 = arith.constant 0.000000e+00 : f32
    %639 = vector.broadcast %cst_267 : f32 to vector<8x64xf32>
    %640 = arith.maximumf %638, %639 : vector<8x64xf32>
    %641 = arith.truncf %640 : vector<8x64xf32> to vector<8x64xbf16>
    %c0_268 = arith.constant 0 : index
    %c0_269 = arith.constant 0 : index
    %642 = vector.load %arg12[%c0_268, %c0_269] : memref<64x32xbf16, #tpu.memory_space<vmem>>, vector<64x32xbf16>
    %cst_270 = arith.constant dense<0.000000e+00> : vector<8x32xf32>
    %643 = tpu.matmul %641, %642, %cst_270 {dimension_numbers = #tpu.dot_dimension_numbers<[1], [0], [0], [1], [0, 0, 1, 1], [], []>} : vector<8x64xbf16>, vector<64x32xbf16>, vector<8x32xf32> -> vector<8x32xf32>
    %c0_271 = arith.constant 0 : index
    %c0_272 = arith.constant 0 : index
    %644 = vector.load %arg10[%c0_271, %c0_272] : memref<1x32xf32, #tpu.memory_space<vmem>>, vector<1x32xf32>
    %645 = vector.broadcast %644 : vector<1x32xf32> to vector<8x32xf32>
    %646 = arith.addf %643, %645 : vector<8x32xf32>
    %647 = arith.addf %632, %646 : vector<8x32xf32>
    %cst_273 = arith.constant dense<0.000000e+00> : vector<8xf32>
    %648 = vector.multi_reduction <add>, %647, %cst_273 [1] : vector<8x32xf32> to vector<8xf32>
    %649 = vector.shape_cast %648 : vector<8xf32> to vector<8x1xf32>
    %cst_274 = arith.constant 3.200000e+01 : f32
    %650 = vector.broadcast %cst_274 : f32 to vector<8x1xf32>
    %651 = arith.divf %649, %650 : vector<8x1xf32>
    %652 = vector.broadcast %651 : vector<8x1xf32> to vector<8x32xf32>
    %653 = arith.subf %647, %652 : vector<8x32xf32>
    %654 = arith.mulf %653, %653 : vector<8x32xf32>
    %cst_275 = arith.constant dense<0.000000e+00> : vector<8xf32>
    %655 = vector.multi_reduction <add>, %654, %cst_275 [1] : vector<8x32xf32> to vector<8xf32>
    %656 = vector.shape_cast %655 : vector<8xf32> to vector<8x1xf32>
    %cst_276 = arith.constant 3.200000e+01 : f32
    %657 = vector.broadcast %cst_276 : f32 to vector<8x1xf32>
    %658 = arith.divf %656, %657 : vector<8x1xf32>
    %659 = vector.broadcast %651 : vector<8x1xf32> to vector<8x32xf32>
    %660 = arith.subf %647, %659 : vector<8x32xf32>
    %cst_277 = arith.constant 9.99999974E-6 : f32
    %661 = vector.broadcast %cst_277 : f32 to vector<8x1xf32>
    %662 = arith.addf %658, %661 : vector<8x1xf32>
    %663 = math.rsqrt %662 : vector<8x1xf32>
    %664 = vector.broadcast %663 : vector<8x1xf32> to vector<8x32xf32>
    %665 = arith.mulf %660, %664 : vector<8x32xf32>
    %c0_278 = arith.constant 0 : index
    %c0_279 = arith.constant 0 : index
    %666 = vector.load %arg18[%c0_278, %c0_279] : memref<1x32xf32, #tpu.memory_space<vmem>>, vector<1x32xf32>
    %667 = vector.broadcast %666 : vector<1x32xf32> to vector<8x32xf32>
    %668 = arith.mulf %665, %667 : vector<8x32xf32>
    %c0_280 = arith.constant 0 : index
    %c0_281 = arith.constant 0 : index
    %669 = vector.load %arg17[%c0_280, %c0_281] : memref<1x32xf32, #tpu.memory_space<vmem>>, vector<1x32xf32>
    %670 = vector.broadcast %669 : vector<1x32xf32> to vector<8x32xf32>
    %671 = arith.addf %668, %670 : vector<8x32xf32>
    %672 = arith.truncf %671 : vector<8x32xf32> to vector<8x32xbf16>
    %c0_282 = arith.constant 0 : index
    %c0_283 = arith.constant 0 : index
    %673 = vector.load %arg41[%c0_282, %c0_283] : memref<32x96xbf16, #tpu.memory_space<vmem>>, vector<32x96xbf16>
    %cst_284 = arith.constant dense<0.000000e+00> : vector<8x96xf32>
    %674 = tpu.matmul %672, %673, %cst_284 {dimension_numbers = #tpu.dot_dimension_numbers<[1], [0], [0], [1], [0, 0, 1, 1], [], []>} : vector<8x32xbf16>, vector<32x96xbf16>, vector<8x96xf32> -> vector<8x96xf32>
    %c0_285 = arith.constant 0 : index
    %c0_286 = arith.constant 0 : index
    %675 = vector.load %arg39[%c0_285, %c0_286] : memref<1x96xf32, #tpu.memory_space<vmem>>, vector<1x96xf32>
    %676 = vector.broadcast %675 : vector<1x96xf32> to vector<8x96xf32>
    %677 = arith.addf %674, %676 : vector<8x96xf32>
    %678 = vector.extract_strided_slice %677 {offsets = [0, 0], sizes = [8, 32], strides = [1, 1]} : vector<8x96xf32> to vector<8x32xf32>
    %679 = vector.extract_strided_slice %677 {offsets = [0, 32], sizes = [8, 32], strides = [1, 1]} : vector<8x96xf32> to vector<8x32xf32>
    %680 = vector.extract_strided_slice %677 {offsets = [0, 64], sizes = [8, 32], strides = [1, 1]} : vector<8x96xf32> to vector<8x32xf32>
    %681 = vector.extract_strided_slice %678 {offsets = [0, 0], sizes = [8, 8], strides = [1, 1]} : vector<8x32xf32> to vector<8x8xf32>
    %682 = arith.truncf %681 : vector<8x8xf32> to vector<8x8xbf16>
    %683 = vector.extract_strided_slice %679 {offsets = [0, 0], sizes = [8, 8], strides = [1, 1]} : vector<8x32xf32> to vector<8x8xf32>
    %684 = arith.truncf %683 : vector<8x8xf32> to vector<8x8xbf16>
    %685 = vector.extract_strided_slice %680 {offsets = [0, 0], sizes = [8, 8], strides = [1, 1]} : vector<8x32xf32> to vector<8x8xf32>
    %686 = arith.truncf %685 : vector<8x8xf32> to vector<8x8xbf16>
    %cst_287 = arith.constant dense<0.000000e+00> : vector<8x8xf32>
    %687 = tpu.matmul %682, %684, %cst_287 {dimension_numbers = #tpu.dot_dimension_numbers<[1], [1], [0], [0], [0, 0, 1, 0], [], []>} : vector<8x8xbf16>, vector<8x8xbf16>, vector<8x8xf32> -> vector<8x8xf32>
    %cst_288 = arith.constant 0.353553385 : f32
    %688 = vector.broadcast %cst_288 : f32 to vector<8x8xf32>
    %689 = arith.mulf %687, %688 : vector<8x8xf32>
    %690 = tpu.iota {dimensions = array<i32: 0>} : vector<8x8xi32>
    %691 = tpu.iota {dimensions = array<i32: 1>} : vector<8x8xi32>
    %692 = arith.cmpi sle, %691, %690 : vector<8x8xi32>
    %cst_289 = arith.constant -1.000000e+30 : f32
    %693 = vector.broadcast %cst_289 : f32 to vector<8x8xf32>
    %694 = arith.select %692, %689, %693 : vector<8x8xi1>, vector<8x8xf32>
    %cst_290 = arith.constant dense<0xFF800000> : vector<8xf32>
    %695 = vector.multi_reduction <maximumf>, %694, %cst_290 [1] : vector<8x8xf32> to vector<8xf32>
    %696 = vector.shape_cast %695 : vector<8xf32> to vector<8x1xf32>
    %697 = vector.broadcast %696 : vector<8x1xf32> to vector<8x8xf32>
    %698 = arith.subf %694, %697 : vector<8x8xf32>
    %699 = math.exp %698 : vector<8x8xf32>
    %cst_291 = arith.constant dense<0.000000e+00> : vector<8xf32>
    %700 = vector.multi_reduction <add>, %699, %cst_291 [1] : vector<8x8xf32> to vector<8xf32>
    %701 = vector.shape_cast %700 : vector<8xf32> to vector<8x1xf32>
    %702 = vector.broadcast %701 : vector<8x1xf32> to vector<8x8xf32>
    %703 = arith.divf %699, %702 : vector<8x8xf32>
    %704 = arith.truncf %703 : vector<8x8xf32> to vector<8x8xbf16>
    %cst_292 = arith.constant dense<0.000000e+00> : vector<8x8xf32>
    %705 = tpu.matmul %704, %686, %cst_292 {dimension_numbers = #tpu.dot_dimension_numbers<[1], [0], [0], [1], [0, 0, 1, 1], [], []>} : vector<8x8xbf16>, vector<8x8xbf16>, vector<8x8xf32> -> vector<8x8xf32>
    %c0_293 = arith.constant 0 : index
    %c0_294 = arith.constant 0 : index
    %706 = vector.load %arg72[%c0_293, %c0_294] : memref<8x32xf32, #tpu.memory_space<vmem>>, vector<8x8xf32>
    tpu.vector_store %arg72[%c0_293, %c0_294], %705 {strides = array<i32>} : memref<8x32xf32, #tpu.memory_space<vmem>>, vector<8x8xf32>,
    %707 = vector.extract_strided_slice %678 {offsets = [0, 8], sizes = [8, 8], strides = [1, 1]} : vector<8x32xf32> to vector<8x8xf32>
    %708 = arith.truncf %707 : vector<8x8xf32> to vector<8x8xbf16>
    %709 = vector.extract_strided_slice %679 {offsets = [0, 8], sizes = [8, 8], strides = [1, 1]} : vector<8x32xf32> to vector<8x8xf32>
    %710 = arith.truncf %709 : vector<8x8xf32> to vector<8x8xbf16>
    %711 = vector.extract_strided_slice %680 {offsets = [0, 8], sizes = [8, 8], strides = [1, 1]} : vector<8x32xf32> to vector<8x8xf32>
    %712 = arith.truncf %711 : vector<8x8xf32> to vector<8x8xbf16>
    %cst_295 = arith.constant dense<0.000000e+00> : vector<8x8xf32>
    %713 = tpu.matmul %708, %710, %cst_295 {dimension_numbers = #tpu.dot_dimension_numbers<[1], [1], [0], [0], [0, 0, 1, 0], [], []>} : vector<8x8xbf16>, vector<8x8xbf16>, vector<8x8xf32> -> vector<8x8xf32>
    %cst_296 = arith.constant 0.353553385 : f32
    %714 = vector.broadcast %cst_296 : f32 to vector<8x8xf32>
    %715 = arith.mulf %713, %714 : vector<8x8xf32>
    %716 = tpu.iota {dimensions = array<i32: 0>} : vector<8x8xi32>
    %717 = tpu.iota {dimensions = array<i32: 1>} : vector<8x8xi32>
    %718 = arith.cmpi sle, %717, %716 : vector<8x8xi32>
    %cst_297 = arith.constant -1.000000e+30 : f32
    %719 = vector.broadcast %cst_297 : f32 to vector<8x8xf32>
    %720 = arith.select %718, %715, %719 : vector<8x8xi1>, vector<8x8xf32>
    %cst_298 = arith.constant dense<0xFF800000> : vector<8xf32>
    %721 = vector.multi_reduction <maximumf>, %720, %cst_298 [1] : vector<8x8xf32> to vector<8xf32>
    %722 = vector.shape_cast %721 : vector<8xf32> to vector<8x1xf32>
    %723 = vector.broadcast %722 : vector<8x1xf32> to vector<8x8xf32>
    %724 = arith.subf %720, %723 : vector<8x8xf32>
    %725 = math.exp %724 : vector<8x8xf32>
    %cst_299 = arith.constant dense<0.000000e+00> : vector<8xf32>
    %726 = vector.multi_reduction <add>, %725, %cst_299 [1] : vector<8x8xf32> to vector<8xf32>
    %727 = vector.shape_cast %726 : vector<8xf32> to vector<8x1xf32>
    %728 = vector.broadcast %727 : vector<8x1xf32> to vector<8x8xf32>
    %729 = arith.divf %725, %728 : vector<8x8xf32>
    %730 = arith.truncf %729 : vector<8x8xf32> to vector<8x8xbf16>
    %cst_300 = arith.constant dense<0.000000e+00> : vector<8x8xf32>
    %731 = tpu.matmul %730, %712, %cst_300 {dimension_numbers = #tpu.dot_dimension_numbers<[1], [0], [0], [1], [0, 0, 1, 1], [], []>} : vector<8x8xbf16>, vector<8x8xbf16>, vector<8x8xf32> -> vector<8x8xf32>
    %c0_301 = arith.constant 0 : index
    %c8_302 = arith.constant 8 : index
    %732 = vector.load %arg72[%c0_301, %c8_302] : memref<8x32xf32, #tpu.memory_space<vmem>>, vector<8x8xf32>
    tpu.vector_store %arg72[%c0_301, %c8_302], %731 {strides = array<i32>} : memref<8x32xf32, #tpu.memory_space<vmem>>, vector<8x8xf32>,
    %733 = vector.extract_strided_slice %678 {offsets = [0, 16], sizes = [8, 8], strides = [1, 1]} : vector<8x32xf32> to vector<8x8xf32>
    %734 = arith.truncf %733 : vector<8x8xf32> to vector<8x8xbf16>
    %735 = vector.extract_strided_slice %679 {offsets = [0, 16], sizes = [8, 8], strides = [1, 1]} : vector<8x32xf32> to vector<8x8xf32>
    %736 = arith.truncf %735 : vector<8x8xf32> to vector<8x8xbf16>
    %737 = vector.extract_strided_slice %680 {offsets = [0, 16], sizes = [8, 8], strides = [1, 1]} : vector<8x32xf32> to vector<8x8xf32>
    %738 = arith.truncf %737 : vector<8x8xf32> to vector<8x8xbf16>
    %cst_303 = arith.constant dense<0.000000e+00> : vector<8x8xf32>
    %739 = tpu.matmul %734, %736, %cst_303 {dimension_numbers = #tpu.dot_dimension_numbers<[1], [1], [0], [0], [0, 0, 1, 0], [], []>} : vector<8x8xbf16>, vector<8x8xbf16>, vector<8x8xf32> -> vector<8x8xf32>
    %cst_304 = arith.constant 0.353553385 : f32
    %740 = vector.broadcast %cst_304 : f32 to vector<8x8xf32>
    %741 = arith.mulf %739, %740 : vector<8x8xf32>
    %742 = tpu.iota {dimensions = array<i32: 0>} : vector<8x8xi32>
    %743 = tpu.iota {dimensions = array<i32: 1>} : vector<8x8xi32>
    %744 = arith.cmpi sle, %743, %742 : vector<8x8xi32>
    %cst_305 = arith.constant -1.000000e+30 : f32
    %745 = vector.broadcast %cst_305 : f32 to vector<8x8xf32>
    %746 = arith.select %744, %741, %745 : vector<8x8xi1>, vector<8x8xf32>
    %cst_306 = arith.constant dense<0xFF800000> : vector<8xf32>
    %747 = vector.multi_reduction <maximumf>, %746, %cst_306 [1] : vector<8x8xf32> to vector<8xf32>
    %748 = vector.shape_cast %747 : vector<8xf32> to vector<8x1xf32>
    %749 = vector.broadcast %748 : vector<8x1xf32> to vector<8x8xf32>
    %750 = arith.subf %746, %749 : vector<8x8xf32>
    %751 = math.exp %750 : vector<8x8xf32>
    %cst_307 = arith.constant dense<0.000000e+00> : vector<8xf32>
    %752 = vector.multi_reduction <add>, %751, %cst_307 [1] : vector<8x8xf32> to vector<8xf32>
    %753 = vector.shape_cast %752 : vector<8xf32> to vector<8x1xf32>
    %754 = vector.broadcast %753 : vector<8x1xf32> to vector<8x8xf32>
    %755 = arith.divf %751, %754 : vector<8x8xf32>
    %756 = arith.truncf %755 : vector<8x8xf32> to vector<8x8xbf16>
    %cst_308 = arith.constant dense<0.000000e+00> : vector<8x8xf32>
    %757 = tpu.matmul %756, %738, %cst_308 {dimension_numbers = #tpu.dot_dimension_numbers<[1], [0], [0], [1], [0, 0, 1, 1], [], []>} : vector<8x8xbf16>, vector<8x8xbf16>, vector<8x8xf32> -> vector<8x8xf32>
    %c0_309 = arith.constant 0 : index
    %c16_310 = arith.constant 16 : index
    %758 = vector.load %arg72[%c0_309, %c16_310] : memref<8x32xf32, #tpu.memory_space<vmem>>, vector<8x8xf32>
    tpu.vector_store %arg72[%c0_309, %c16_310], %757 {strides = array<i32>} : memref<8x32xf32, #tpu.memory_space<vmem>>, vector<8x8xf32>,
    %759 = vector.extract_strided_slice %678 {offsets = [0, 24], sizes = [8, 8], strides = [1, 1]} : vector<8x32xf32> to vector<8x8xf32>
    %760 = arith.truncf %759 : vector<8x8xf32> to vector<8x8xbf16>
    %761 = vector.extract_strided_slice %679 {offsets = [0, 24], sizes = [8, 8], strides = [1, 1]} : vector<8x32xf32> to vector<8x8xf32>
    %762 = arith.truncf %761 : vector<8x8xf32> to vector<8x8xbf16>
    %763 = vector.extract_strided_slice %680 {offsets = [0, 24], sizes = [8, 8], strides = [1, 1]} : vector<8x32xf32> to vector<8x8xf32>
    %764 = arith.truncf %763 : vector<8x8xf32> to vector<8x8xbf16>
    %cst_311 = arith.constant dense<0.000000e+00> : vector<8x8xf32>
    %765 = tpu.matmul %760, %762, %cst_311 {dimension_numbers = #tpu.dot_dimension_numbers<[1], [1], [0], [0], [0, 0, 1, 0], [], []>} : vector<8x8xbf16>, vector<8x8xbf16>, vector<8x8xf32> -> vector<8x8xf32>
    %cst_312 = arith.constant 0.353553385 : f32
    %766 = vector.broadcast %cst_312 : f32 to vector<8x8xf32>
    %767 = arith.mulf %765, %766 : vector<8x8xf32>
    %768 = tpu.iota {dimensions = array<i32: 0>} : vector<8x8xi32>
    %769 = tpu.iota {dimensions = array<i32: 1>} : vector<8x8xi32>
    %770 = arith.cmpi sle, %769, %768 : vector<8x8xi32>
    %cst_313 = arith.constant -1.000000e+30 : f32
    %771 = vector.broadcast %cst_313 : f32 to vector<8x8xf32>
    %772 = arith.select %770, %767, %771 : vector<8x8xi1>, vector<8x8xf32>
    %cst_314 = arith.constant dense<0xFF800000> : vector<8xf32>
    %773 = vector.multi_reduction <maximumf>, %772, %cst_314 [1] : vector<8x8xf32> to vector<8xf32>
    %774 = vector.shape_cast %773 : vector<8xf32> to vector<8x1xf32>
    %775 = vector.broadcast %774 : vector<8x1xf32> to vector<8x8xf32>
    %776 = arith.subf %772, %775 : vector<8x8xf32>
    %777 = math.exp %776 : vector<8x8xf32>
    %cst_315 = arith.constant dense<0.000000e+00> : vector<8xf32>
    %778 = vector.multi_reduction <add>, %777, %cst_315 [1] : vector<8x8xf32> to vector<8xf32>
    %779 = vector.shape_cast %778 : vector<8xf32> to vector<8x1xf32>
    %780 = vector.broadcast %779 : vector<8x1xf32> to vector<8x8xf32>
    %781 = arith.divf %777, %780 : vector<8x8xf32>
    %782 = arith.truncf %781 : vector<8x8xf32> to vector<8x8xbf16>
    %cst_316 = arith.constant dense<0.000000e+00> : vector<8x8xf32>
    %783 = tpu.matmul %782, %764, %cst_316 {dimension_numbers = #tpu.dot_dimension_numbers<[1], [0], [0], [1], [0, 0, 1, 1], [], []>} : vector<8x8xbf16>, vector<8x8xbf16>, vector<8x8xf32> -> vector<8x8xf32>
    %c0_317 = arith.constant 0 : index
    %c24_318 = arith.constant 24 : index
    %784 = vector.load %arg72[%c0_317, %c24_318] : memref<8x32xf32, #tpu.memory_space<vmem>>, vector<8x8xf32>
    tpu.vector_store %arg72[%c0_317, %c24_318], %783 {strides = array<i32>} : memref<8x32xf32, #tpu.memory_space<vmem>>, vector<8x8xf32>,
    %c0_319 = arith.constant 0 : index
    %c0_320 = arith.constant 0 : index
    %785 = vector.load %arg72[%c0_319, %c0_320] : memref<8x32xf32, #tpu.memory_space<vmem>>, vector<8x32xf32>
    %786 = arith.truncf %785 : vector<8x32xf32> to vector<8x32xbf16>
    %c0_321 = arith.constant 0 : index
    %c0_322 = arith.constant 0 : index
    %787 = vector.load %arg42[%c0_321, %c0_322] : memref<32x32xbf16, #tpu.memory_space<vmem>>, vector<32x32xbf16>
    %cst_323 = arith.constant dense<0.000000e+00> : vector<8x32xf32>
    %788 = tpu.matmul %786, %787, %cst_323 {dimension_numbers = #tpu.dot_dimension_numbers<[1], [0], [0], [1], [0, 0, 1, 1], [], []>} : vector<8x32xbf16>, vector<32x32xbf16>, vector<8x32xf32> -> vector<8x32xf32>
    %c0_324 = arith.constant 0 : index
    %c0_325 = arith.constant 0 : index
    %789 = vector.load %arg40[%c0_324, %c0_325] : memref<1x32xf32, #tpu.memory_space<vmem>>, vector<1x32xf32>
    %790 = vector.broadcast %789 : vector<1x32xf32> to vector<8x32xf32>
    %791 = arith.addf %788, %790 : vector<8x32xf32>
    %792 = arith.addf %671, %791 : vector<8x32xf32>
    %cst_326 = arith.constant dense<0.000000e+00> : vector<8xf32>
    %793 = vector.multi_reduction <add>, %792, %cst_326 [1] : vector<8x32xf32> to vector<8xf32>
    %794 = vector.shape_cast %793 : vector<8xf32> to vector<8x1xf32>
    %cst_327 = arith.constant 3.200000e+01 : f32
    %795 = vector.broadcast %cst_327 : f32 to vector<8x1xf32>
    %796 = arith.divf %794, %795 : vector<8x1xf32>
    %797 = vector.broadcast %796 : vector<8x1xf32> to vector<8x32xf32>
    %798 = arith.subf %792, %797 : vector<8x32xf32>
    %799 = arith.mulf %798, %798 : vector<8x32xf32>
    %cst_328 = arith.constant dense<0.000000e+00> : vector<8xf32>
    %800 = vector.multi_reduction <add>, %799, %cst_328 [1] : vector<8x32xf32> to vector<8xf32>
    %801 = vector.shape_cast %800 : vector<8xf32> to vector<8x1xf32>
    %cst_329 = arith.constant 3.200000e+01 : f32
    %802 = vector.broadcast %cst_329 : f32 to vector<8x1xf32>
    %803 = arith.divf %801, %802 : vector<8x1xf32>
    %804 = vector.broadcast %796 : vector<8x1xf32> to vector<8x32xf32>
    %805 = arith.subf %792, %804 : vector<8x32xf32>
    %cst_330 = arith.constant 9.99999974E-6 : f32
    %806 = vector.broadcast %cst_330 : f32 to vector<8x1xf32>
    %807 = arith.addf %803, %806 : vector<8x1xf32>
    %808 = math.rsqrt %807 : vector<8x1xf32>
    %809 = vector.broadcast %808 : vector<8x1xf32> to vector<8x32xf32>
    %810 = arith.mulf %805, %809 : vector<8x32xf32>
    %c0_331 = arith.constant 0 : index
    %c0_332 = arith.constant 0 : index
    %811 = vector.load %arg34[%c0_331, %c0_332] : memref<1x32xf32, #tpu.memory_space<vmem>>, vector<1x32xf32>
    %812 = vector.broadcast %811 : vector<1x32xf32> to vector<8x32xf32>
    %813 = arith.mulf %810, %812 : vector<8x32xf32>
    %c0_333 = arith.constant 0 : index
    %c0_334 = arith.constant 0 : index
    %814 = vector.load %arg33[%c0_333, %c0_334] : memref<1x32xf32, #tpu.memory_space<vmem>>, vector<1x32xf32>
    %815 = vector.broadcast %814 : vector<1x32xf32> to vector<8x32xf32>
    %816 = arith.addf %813, %815 : vector<8x32xf32>
    %817 = arith.truncf %816 : vector<8x32xf32> to vector<8x32xbf16>
    %c0_335 = arith.constant 0 : index
    %c0_336 = arith.constant 0 : index
    %818 = vector.load %arg28[%c0_335, %c0_336] : memref<32x32xbf16, #tpu.memory_space<vmem>>, vector<32x32xbf16>
    %cst_337 = arith.constant dense<0.000000e+00> : vector<8x32xf32>
    %819 = tpu.matmul %817, %818, %cst_337 {dimension_numbers = #tpu.dot_dimension_numbers<[1], [0], [0], [1], [0, 0, 1, 1], [], []>} : vector<8x32xbf16>, vector<32x32xbf16>, vector<8x32xf32> -> vector<8x32xf32>
    %c0_338 = arith.constant 0 : index
    %c0_339 = arith.constant 0 : index
    %820 = vector.load %arg25[%c0_338, %c0_339] : memref<1x32xf32, #tpu.memory_space<vmem>>, vector<1x32xf32>
    %821 = vector.broadcast %820 : vector<1x32xf32> to vector<8x32xf32>
    %822 = arith.addf %819, %821 : vector<8x32xf32>
    %823 = arith.truncf %342 : vector<8x32xf32> to vector<8x32xbf16>
    %c0_340 = arith.constant 0 : index
    %c0_341 = arith.constant 0 : index
    %824 = vector.load %arg26[%c0_340, %c0_341] : memref<32x64xbf16, #tpu.memory_space<vmem>>, vector<32x64xbf16>
    %cst_342 = arith.constant dense<0.000000e+00> : vector<8x64xf32>
    %825 = tpu.matmul %823, %824, %cst_342 {dimension_numbers = #tpu.dot_dimension_numbers<[1], [0], [0], [1], [0, 0, 1, 1], [], []>} : vector<8x32xbf16>, vector<32x64xbf16>, vector<8x64xf32> -> vector<8x64xf32>
    %c0_343 = arith.constant 0 : index
    %c0_344 = arith.constant 0 : index
    %826 = vector.load %arg23[%c0_343, %c0_344] : memref<1x64xf32, #tpu.memory_space<vmem>>, vector<1x64xf32>
    %827 = vector.broadcast %826 : vector<1x64xf32> to vector<8x64xf32>
    %828 = arith.addf %825, %827 : vector<8x64xf32>
    %829 = vector.extract_strided_slice %828 {offsets = [0, 0], sizes = [8, 32], strides = [1, 1]} : vector<8x64xf32> to vector<8x32xf32>
    %830 = vector.extract_strided_slice %828 {offsets = [0, 32], sizes = [8, 32], strides = [1, 1]} : vector<8x64xf32> to vector<8x32xf32>
    %831 = vector.extract_strided_slice %822 {offsets = [0, 0], sizes = [8, 8], strides = [1, 1]} : vector<8x32xf32> to vector<8x8xf32>
    %832 = arith.truncf %831 : vector<8x8xf32> to vector<8x8xbf16>
    %833 = vector.extract_strided_slice %829 {offsets = [0, 0], sizes = [8, 8], strides = [1, 1]} : vector<8x32xf32> to vector<8x8xf32>
    %834 = arith.truncf %833 : vector<8x8xf32> to vector<8x8xbf16>
    %835 = vector.extract_strided_slice %830 {offsets = [0, 0], sizes = [8, 8], strides = [1, 1]} : vector<8x32xf32> to vector<8x8xf32>
    %836 = arith.truncf %835 : vector<8x8xf32> to vector<8x8xbf16>
    %cst_345 = arith.constant dense<0.000000e+00> : vector<8x8xf32>
    %837 = tpu.matmul %832, %834, %cst_345 {dimension_numbers = #tpu.dot_dimension_numbers<[1], [1], [0], [0], [0, 0, 1, 0], [], []>} : vector<8x8xbf16>, vector<8x8xbf16>, vector<8x8xf32> -> vector<8x8xf32>
    %cst_346 = arith.constant 0.353553385 : f32
    %838 = vector.broadcast %cst_346 : f32 to vector<8x8xf32>
    %839 = arith.mulf %837, %838 : vector<8x8xf32>
    %cst_347 = arith.constant dense<0xFF800000> : vector<8xf32>
    %840 = vector.multi_reduction <maximumf>, %839, %cst_347 [1] : vector<8x8xf32> to vector<8xf32>
    %841 = vector.shape_cast %840 : vector<8xf32> to vector<8x1xf32>
    %842 = vector.broadcast %841 : vector<8x1xf32> to vector<8x8xf32>
    %843 = arith.subf %839, %842 : vector<8x8xf32>
    %844 = math.exp %843 : vector<8x8xf32>
    %cst_348 = arith.constant dense<0.000000e+00> : vector<8xf32>
    %845 = vector.multi_reduction <add>, %844, %cst_348 [1] : vector<8x8xf32> to vector<8xf32>
    %846 = vector.shape_cast %845 : vector<8xf32> to vector<8x1xf32>
    %847 = vector.broadcast %846 : vector<8x1xf32> to vector<8x8xf32>
    %848 = arith.divf %844, %847 : vector<8x8xf32>
    %849 = arith.truncf %848 : vector<8x8xf32> to vector<8x8xbf16>
    %cst_349 = arith.constant dense<0.000000e+00> : vector<8x8xf32>
    %850 = tpu.matmul %849, %836, %cst_349 {dimension_numbers = #tpu.dot_dimension_numbers<[1], [0], [0], [1], [0, 0, 1, 1], [], []>} : vector<8x8xbf16>, vector<8x8xbf16>, vector<8x8xf32> -> vector<8x8xf32>
    %c0_350 = arith.constant 0 : index
    %c0_351 = arith.constant 0 : index
    %851 = vector.load %arg72[%c0_350, %c0_351] : memref<8x32xf32, #tpu.memory_space<vmem>>, vector<8x8xf32>
    tpu.vector_store %arg72[%c0_350, %c0_351], %850 {strides = array<i32>} : memref<8x32xf32, #tpu.memory_space<vmem>>, vector<8x8xf32>,
    %852 = vector.extract_strided_slice %822 {offsets = [0, 8], sizes = [8, 8], strides = [1, 1]} : vector<8x32xf32> to vector<8x8xf32>
    %853 = arith.truncf %852 : vector<8x8xf32> to vector<8x8xbf16>
    %854 = vector.extract_strided_slice %829 {offsets = [0, 8], sizes = [8, 8], strides = [1, 1]} : vector<8x32xf32> to vector<8x8xf32>
    %855 = arith.truncf %854 : vector<8x8xf32> to vector<8x8xbf16>
    %856 = vector.extract_strided_slice %830 {offsets = [0, 8], sizes = [8, 8], strides = [1, 1]} : vector<8x32xf32> to vector<8x8xf32>
    %857 = arith.truncf %856 : vector<8x8xf32> to vector<8x8xbf16>
    %cst_352 = arith.constant dense<0.000000e+00> : vector<8x8xf32>
    %858 = tpu.matmul %853, %855, %cst_352 {dimension_numbers = #tpu.dot_dimension_numbers<[1], [1], [0], [0], [0, 0, 1, 0], [], []>} : vector<8x8xbf16>, vector<8x8xbf16>, vector<8x8xf32> -> vector<8x8xf32>
    %cst_353 = arith.constant 0.353553385 : f32
    %859 = vector.broadcast %cst_353 : f32 to vector<8x8xf32>
    %860 = arith.mulf %858, %859 : vector<8x8xf32>
    %cst_354 = arith.constant dense<0xFF800000> : vector<8xf32>
    %861 = vector.multi_reduction <maximumf>, %860, %cst_354 [1] : vector<8x8xf32> to vector<8xf32>
    %862 = vector.shape_cast %861 : vector<8xf32> to vector<8x1xf32>
    %863 = vector.broadcast %862 : vector<8x1xf32> to vector<8x8xf32>
    %864 = arith.subf %860, %863 : vector<8x8xf32>
    %865 = math.exp %864 : vector<8x8xf32>
    %cst_355 = arith.constant dense<0.000000e+00> : vector<8xf32>
    %866 = vector.multi_reduction <add>, %865, %cst_355 [1] : vector<8x8xf32> to vector<8xf32>
    %867 = vector.shape_cast %866 : vector<8xf32> to vector<8x1xf32>
    %868 = vector.broadcast %867 : vector<8x1xf32> to vector<8x8xf32>
    %869 = arith.divf %865, %868 : vector<8x8xf32>
    %870 = arith.truncf %869 : vector<8x8xf32> to vector<8x8xbf16>
    %cst_356 = arith.constant dense<0.000000e+00> : vector<8x8xf32>
    %871 = tpu.matmul %870, %857, %cst_356 {dimension_numbers = #tpu.dot_dimension_numbers<[1], [0], [0], [1], [0, 0, 1, 1], [], []>} : vector<8x8xbf16>, vector<8x8xbf16>, vector<8x8xf32> -> vector<8x8xf32>
    %c0_357 = arith.constant 0 : index
    %c8_358 = arith.constant 8 : index
    %872 = vector.load %arg72[%c0_357, %c8_358] : memref<8x32xf32, #tpu.memory_space<vmem>>, vector<8x8xf32>
    tpu.vector_store %arg72[%c0_357, %c8_358], %871 {strides = array<i32>} : memref<8x32xf32, #tpu.memory_space<vmem>>, vector<8x8xf32>,
    %873 = vector.extract_strided_slice %822 {offsets = [0, 16], sizes = [8, 8], strides = [1, 1]} : vector<8x32xf32> to vector<8x8xf32>
    %874 = arith.truncf %873 : vector<8x8xf32> to vector<8x8xbf16>
    %875 = vector.extract_strided_slice %829 {offsets = [0, 16], sizes = [8, 8], strides = [1, 1]} : vector<8x32xf32> to vector<8x8xf32>
    %876 = arith.truncf %875 : vector<8x8xf32> to vector<8x8xbf16>
    %877 = vector.extract_strided_slice %830 {offsets = [0, 16], sizes = [8, 8], strides = [1, 1]} : vector<8x32xf32> to vector<8x8xf32>
    %878 = arith.truncf %877 : vector<8x8xf32> to vector<8x8xbf16>
    %cst_359 = arith.constant dense<0.000000e+00> : vector<8x8xf32>
    %879 = tpu.matmul %874, %876, %cst_359 {dimension_numbers = #tpu.dot_dimension_numbers<[1], [1], [0], [0], [0, 0, 1, 0], [], []>} : vector<8x8xbf16>, vector<8x8xbf16>, vector<8x8xf32> -> vector<8x8xf32>
    %cst_360 = arith.constant 0.353553385 : f32
    %880 = vector.broadcast %cst_360 : f32 to vector<8x8xf32>
    %881 = arith.mulf %879, %880 : vector<8x8xf32>
    %cst_361 = arith.constant dense<0xFF800000> : vector<8xf32>
    %882 = vector.multi_reduction <maximumf>, %881, %cst_361 [1] : vector<8x8xf32> to vector<8xf32>
    %883 = vector.shape_cast %882 : vector<8xf32> to vector<8x1xf32>
    %884 = vector.broadcast %883 : vector<8x1xf32> to vector<8x8xf32>
    %885 = arith.subf %881, %884 : vector<8x8xf32>
    %886 = math.exp %885 : vector<8x8xf32>
    %cst_362 = arith.constant dense<0.000000e+00> : vector<8xf32>
    %887 = vector.multi_reduction <add>, %886, %cst_362 [1] : vector<8x8xf32> to vector<8xf32>
    %888 = vector.shape_cast %887 : vector<8xf32> to vector<8x1xf32>
    %889 = vector.broadcast %888 : vector<8x1xf32> to vector<8x8xf32>
    %890 = arith.divf %886, %889 : vector<8x8xf32>
    %891 = arith.truncf %890 : vector<8x8xf32> to vector<8x8xbf16>
    %cst_363 = arith.constant dense<0.000000e+00> : vector<8x8xf32>
    %892 = tpu.matmul %891, %878, %cst_363 {dimension_numbers = #tpu.dot_dimension_numbers<[1], [0], [0], [1], [0, 0, 1, 1], [], []>} : vector<8x8xbf16>, vector<8x8xbf16>, vector<8x8xf32> -> vector<8x8xf32>
    %c0_364 = arith.constant 0 : index
    %c16_365 = arith.constant 16 : index
    %893 = vector.load %arg72[%c0_364, %c16_365] : memref<8x32xf32, #tpu.memory_space<vmem>>, vector<8x8xf32>
    tpu.vector_store %arg72[%c0_364, %c16_365], %892 {strides = array<i32>} : memref<8x32xf32, #tpu.memory_space<vmem>>, vector<8x8xf32>,
    %894 = vector.extract_strided_slice %822 {offsets = [0, 24], sizes = [8, 8], strides = [1, 1]} : vector<8x32xf32> to vector<8x8xf32>
    %895 = arith.truncf %894 : vector<8x8xf32> to vector<8x8xbf16>
    %896 = vector.extract_strided_slice %829 {offsets = [0, 24], sizes = [8, 8], strides = [1, 1]} : vector<8x32xf32> to vector<8x8xf32>
    %897 = arith.truncf %896 : vector<8x8xf32> to vector<8x8xbf16>
    %898 = vector.extract_strided_slice %830 {offsets = [0, 24], sizes = [8, 8], strides = [1, 1]} : vector<8x32xf32> to vector<8x8xf32>
    %899 = arith.truncf %898 : vector<8x8xf32> to vector<8x8xbf16>
    %cst_366 = arith.constant dense<0.000000e+00> : vector<8x8xf32>
    %900 = tpu.matmul %895, %897, %cst_366 {dimension_numbers = #tpu.dot_dimension_numbers<[1], [1], [0], [0], [0, 0, 1, 0], [], []>} : vector<8x8xbf16>, vector<8x8xbf16>, vector<8x8xf32> -> vector<8x8xf32>
    %cst_367 = arith.constant 0.353553385 : f32
    %901 = vector.broadcast %cst_367 : f32 to vector<8x8xf32>
    %902 = arith.mulf %900, %901 : vector<8x8xf32>
    %cst_368 = arith.constant dense<0xFF800000> : vector<8xf32>
    %903 = vector.multi_reduction <maximumf>, %902, %cst_368 [1] : vector<8x8xf32> to vector<8xf32>
    %904 = vector.shape_cast %903 : vector<8xf32> to vector<8x1xf32>
    %905 = vector.broadcast %904 : vector<8x1xf32> to vector<8x8xf32>
    %906 = arith.subf %902, %905 : vector<8x8xf32>
    %907 = math.exp %906 : vector<8x8xf32>
    %cst_369 = arith.constant dense<0.000000e+00> : vector<8xf32>
    %908 = vector.multi_reduction <add>, %907, %cst_369 [1] : vector<8x8xf32> to vector<8xf32>
    %909 = vector.shape_cast %908 : vector<8xf32> to vector<8x1xf32>
    %910 = vector.broadcast %909 : vector<8x1xf32> to vector<8x8xf32>
    %911 = arith.divf %907, %910 : vector<8x8xf32>
    %912 = arith.truncf %911 : vector<8x8xf32> to vector<8x8xbf16>
    %cst_370 = arith.constant dense<0.000000e+00> : vector<8x8xf32>
    %913 = tpu.matmul %912, %899, %cst_370 {dimension_numbers = #tpu.dot_dimension_numbers<[1], [0], [0], [1], [0, 0, 1, 1], [], []>} : vector<8x8xbf16>, vector<8x8xbf16>, vector<8x8xf32> -> vector<8x8xf32>
    %c0_371 = arith.constant 0 : index
    %c24_372 = arith.constant 24 : index
    %914 = vector.load %arg72[%c0_371, %c24_372] : memref<8x32xf32, #tpu.memory_space<vmem>>, vector<8x8xf32>
    tpu.vector_store %arg72[%c0_371, %c24_372], %913 {strides = array<i32>} : memref<8x32xf32, #tpu.memory_space<vmem>>, vector<8x8xf32>,
    %c0_373 = arith.constant 0 : index
    %c0_374 = arith.constant 0 : index
    %915 = vector.load %arg72[%c0_373, %c0_374] : memref<8x32xf32, #tpu.memory_space<vmem>>, vector<8x32xf32>
    %916 = arith.truncf %915 : vector<8x32xf32> to vector<8x32xbf16>
    %c0_375 = arith.constant 0 : index
    %c0_376 = arith.constant 0 : index
    %917 = vector.load %arg27[%c0_375, %c0_376] : memref<32x32xbf16, #tpu.memory_space<vmem>>, vector<32x32xbf16>
    %cst_377 = arith.constant dense<0.000000e+00> : vector<8x32xf32>
    %918 = tpu.matmul %916, %917, %cst_377 {dimension_numbers = #tpu.dot_dimension_numbers<[1], [0], [0], [1], [0, 0, 1, 1], [], []>} : vector<8x32xbf16>, vector<32x32xbf16>, vector<8x32xf32> -> vector<8x32xf32>
    %c0_378 = arith.constant 0 : index
    %c0_379 = arith.constant 0 : index
    %919 = vector.load %arg24[%c0_378, %c0_379] : memref<1x32xf32, #tpu.memory_space<vmem>>, vector<1x32xf32>
    %920 = vector.broadcast %919 : vector<1x32xf32> to vector<8x32xf32>
    %921 = arith.addf %918, %920 : vector<8x32xf32>
    %922 = arith.addf %816, %921 : vector<8x32xf32>
    %cst_380 = arith.constant dense<0.000000e+00> : vector<8xf32>
    %923 = vector.multi_reduction <add>, %922, %cst_380 [1] : vector<8x32xf32> to vector<8xf32>
    %924 = vector.shape_cast %923 : vector<8xf32> to vector<8x1xf32>
    %cst_381 = arith.constant 3.200000e+01 : f32
    %925 = vector.broadcast %cst_381 : f32 to vector<8x1xf32>
    %926 = arith.divf %924, %925 : vector<8x1xf32>
    %927 = vector.broadcast %926 : vector<8x1xf32> to vector<8x32xf32>
    %928 = arith.subf %922, %927 : vector<8x32xf32>
    %929 = arith.mulf %928, %928 : vector<8x32xf32>
    %cst_382 = arith.constant dense<0.000000e+00> : vector<8xf32>
    %930 = vector.multi_reduction <add>, %929, %cst_382 [1] : vector<8x32xf32> to vector<8xf32>
    %931 = vector.shape_cast %930 : vector<8xf32> to vector<8x1xf32>
    %cst_383 = arith.constant 3.200000e+01 : f32
    %932 = vector.broadcast %cst_383 : f32 to vector<8x1xf32>
    %933 = arith.divf %931, %932 : vector<8x1xf32>
    %934 = vector.broadcast %926 : vector<8x1xf32> to vector<8x32xf32>
    %935 = arith.subf %922, %934 : vector<8x32xf32>
    %cst_384 = arith.constant 9.99999974E-6 : f32
    %936 = vector.broadcast %cst_384 : f32 to vector<8x1xf32>
    %937 = arith.addf %933, %936 : vector<8x1xf32>
    %938 = math.rsqrt %937 : vector<8x1xf32>
    %939 = vector.broadcast %938 : vector<8x1xf32> to vector<8x32xf32>
    %940 = arith.mulf %935, %939 : vector<8x32xf32>
    %c0_385 = arith.constant 0 : index
    %c0_386 = arith.constant 0 : index
    %941 = vector.load %arg36[%c0_385, %c0_386] : memref<1x32xf32, #tpu.memory_space<vmem>>, vector<1x32xf32>
    %942 = vector.broadcast %941 : vector<1x32xf32> to vector<8x32xf32>
    %943 = arith.mulf %940, %942 : vector<8x32xf32>
    %c0_387 = arith.constant 0 : index
    %c0_388 = arith.constant 0 : index
    %944 = vector.load %arg35[%c0_387, %c0_388] : memref<1x32xf32, #tpu.memory_space<vmem>>, vector<1x32xf32>
    %945 = vector.broadcast %944 : vector<1x32xf32> to vector<8x32xf32>
    %946 = arith.addf %943, %945 : vector<8x32xf32>
    %947 = arith.truncf %946 : vector<8x32xf32> to vector<8x32xbf16>
    %c0_389 = arith.constant 0 : index
    %c0_390 = arith.constant 0 : index
    %948 = vector.load %arg31[%c0_389, %c0_390] : memref<32x64xbf16, #tpu.memory_space<vmem>>, vector<32x64xbf16>
    %cst_391 = arith.constant dense<0.000000e+00> : vector<8x64xf32>
    %949 = tpu.matmul %947, %948, %cst_391 {dimension_numbers = #tpu.dot_dimension_numbers<[1], [0], [0], [1], [0, 0, 1, 1], [], []>} : vector<8x32xbf16>, vector<32x64xbf16>, vector<8x64xf32> -> vector<8x64xf32>
    %c0_392 = arith.constant 0 : index
    %c0_393 = arith.constant 0 : index
    %950 = vector.load %arg29[%c0_392, %c0_393] : memref<1x64xf32, #tpu.memory_space<vmem>>, vector<1x64xf32>
    %951 = vector.broadcast %950 : vector<1x64xf32> to vector<8x64xf32>
    %952 = arith.addf %949, %951 : vector<8x64xf32>
    %cst_394 = arith.constant 0.000000e+00 : f32
    %953 = vector.broadcast %cst_394 : f32 to vector<8x64xf32>
    %954 = arith.maximumf %952, %953 : vector<8x64xf32>
    %955 = arith.truncf %954 : vector<8x64xf32> to vector<8x64xbf16>
    %c0_395 = arith.constant 0 : index
    %c0_396 = arith.constant 0 : index
    %956 = vector.load %arg32[%c0_395, %c0_396] : memref<64x32xbf16, #tpu.memory_space<vmem>>, vector<64x32xbf16>
    %cst_397 = arith.constant dense<0.000000e+00> : vector<8x32xf32>
    %957 = tpu.matmul %955, %956, %cst_397 {dimension_numbers = #tpu.dot_dimension_numbers<[1], [0], [0], [1], [0, 0, 1, 1], [], []>} : vector<8x64xbf16>, vector<64x32xbf16>, vector<8x32xf32> -> vector<8x32xf32>
    %c0_398 = arith.constant 0 : index
    %c0_399 = arith.constant 0 : index
    %958 = vector.load %arg30[%c0_398, %c0_399] : memref<1x32xf32, #tpu.memory_space<vmem>>, vector<1x32xf32>
    %959 = vector.broadcast %958 : vector<1x32xf32> to vector<8x32xf32>
    %960 = arith.addf %957, %959 : vector<8x32xf32>
    %961 = arith.addf %946, %960 : vector<8x32xf32>
    %cst_400 = arith.constant dense<0.000000e+00> : vector<8xf32>
    %962 = vector.multi_reduction <add>, %961, %cst_400 [1] : vector<8x32xf32> to vector<8xf32>
    %963 = vector.shape_cast %962 : vector<8xf32> to vector<8x1xf32>
    %cst_401 = arith.constant 3.200000e+01 : f32
    %964 = vector.broadcast %cst_401 : f32 to vector<8x1xf32>
    %965 = arith.divf %963, %964 : vector<8x1xf32>
    %966 = vector.broadcast %965 : vector<8x1xf32> to vector<8x32xf32>
    %967 = arith.subf %961, %966 : vector<8x32xf32>
    %968 = arith.mulf %967, %967 : vector<8x32xf32>
    %cst_402 = arith.constant dense<0.000000e+00> : vector<8xf32>
    %969 = vector.multi_reduction <add>, %968, %cst_402 [1] : vector<8x32xf32> to vector<8xf32>
    %970 = vector.shape_cast %969 : vector<8xf32> to vector<8x1xf32>
    %cst_403 = arith.constant 3.200000e+01 : f32
    %971 = vector.broadcast %cst_403 : f32 to vector<8x1xf32>
    %972 = arith.divf %970, %971 : vector<8x1xf32>
    %973 = vector.broadcast %965 : vector<8x1xf32> to vector<8x32xf32>
    %974 = arith.subf %961, %973 : vector<8x32xf32>
    %cst_404 = arith.constant 9.99999974E-6 : f32
    %975 = vector.broadcast %cst_404 : f32 to vector<8x1xf32>
    %976 = arith.addf %972, %975 : vector<8x1xf32>
    %977 = math.rsqrt %976 : vector<8x1xf32>
    %978 = vector.broadcast %977 : vector<8x1xf32> to vector<8x32xf32>
    %979 = arith.mulf %974, %978 : vector<8x32xf32>
    %c0_405 = arith.constant 0 : index
    %c0_406 = arith.constant 0 : index
    %980 = vector.load %arg38[%c0_405, %c0_406] : memref<1x32xf32, #tpu.memory_space<vmem>>, vector<1x32xf32>
    %981 = vector.broadcast %980 : vector<1x32xf32> to vector<8x32xf32>
    %982 = arith.mulf %979, %981 : vector<8x32xf32>
    %c0_407 = arith.constant 0 : index
    %c0_408 = arith.constant 0 : index
    %983 = vector.load %arg37[%c0_407, %c0_408] : memref<1x32xf32, #tpu.memory_space<vmem>>, vector<1x32xf32>
    %984 = vector.broadcast %983 : vector<1x32xf32> to vector<8x32xf32>
    %985 = arith.addf %982, %984 : vector<8x32xf32>
    %986 = arith.truncf %985 : vector<8x32xf32> to vector<8x32xbf16>
    %c0_409 = arith.constant 0 : index
    %c0_410 = arith.constant 0 : index
    %987 = vector.load %arg70[%c0_409, %c0_410] : memref<32x128xbf16, #tpu.memory_space<vmem>>, vector<32x128xbf16>
    %cst_411 = arith.constant dense<0.000000e+00> : vector<8x128xf32>
    %988 = tpu.matmul %986, %987, %cst_411 {dimension_numbers = #tpu.dot_dimension_numbers<[1], [0], [0], [1], [0, 0, 1, 1], [], []>} : vector<8x32xbf16>, vector<32x128xbf16>, vector<8x128xf32> -> vector<8x128xf32>
    %c0_412 = arith.constant 0 : index
    %c0_413 = arith.constant 0 : index
    %989 = vector.load %arg69[%c0_412, %c0_413] : memref<1x128xf32, #tpu.memory_space<vmem>>, vector<1x128xf32>
    %990 = vector.broadcast %989 : vector<1x128xf32> to vector<8x128xf32>
    %991 = arith.addf %988, %990 : vector<8x128xf32>
    %c0_414 = arith.constant 0 : index
    %c0_415 = arith.constant 0 : index
    %c0_416 = arith.constant 0 : index
    %992 = vector.load %arg71[%c0_414, %c0_415, %c0_416] : memref<1x8x128xf32, #tpu.memory_space<vmem>>, vector<1x8x128xf32>
    %993 = vector.shape_cast %992 : vector<1x8x128xf32> to vector<8x128xf32>
    %994 = vector.shape_cast %991 : vector<8x128xf32> to vector<1x8x128xf32>
    tpu.vector_store %arg71[%c0_414, %c0_415, %c0_416], %994 {strides = array<i32>} : memref<1x8x128xf32, #tpu.memory_space<vmem>>, vector<1x8x128xf32>,
    return
  }
  func.func @transform_0(%arg0: i32) -> (i32, i32, i32) {
    %c0_i32 = arith.constant 0 : i32
    %c0_i32_0 = arith.constant 0 : i32
    %c0_i32_1 = arith.constant 0 : i32
    return %arg0, %c0_i32, %c0_i32_0 : i32, i32, i32
  }
  func.func @transform_1(%arg0: i32) -> (i32, i32, i32) {
    %c0_i32 = arith.constant 0 : i32
    %c0_i32_0 = arith.constant 0 : i32
    %c0_i32_1 = arith.constant 0 : i32
    return %arg0, %c0_i32, %c0_i32_0 : i32, i32, i32
  }
  func.func @transform_2(%arg0: i32) -> (i32, i32) {
    %c0_i32 = arith.constant 0 : i32
    %c0_i32_0 = arith.constant 0 : i32
    %c0_i32_1 = arith.constant 0 : i32
    return %c0_i32, %c0_i32_0 : i32, i32
  }
  func.func @transform_3(%arg0: i32) -> (i32, i32) {
    %c0_i32 = arith.constant 0 : i32
    %c0_i32_0 = arith.constant 0 : i32
    %c0_i32_1 = arith.constant 0 : i32
    return %c0_i32, %c0_i32_0 : i32, i32
  }
  func.func @transform_4(%arg0: i32) -> (i32, i32) {
    %c0_i32 = arith.constant 0 : i32
    %c0_i32_0 = arith.constant 0 : i32
    %c0_i32_1 = arith.constant 0 : i32
    return %c0_i32, %c0_i32_0 : i32, i32
  }
  func.func @transform_5(%arg0: i32) -> (i32, i32) {
    %c0_i32 = arith.constant 0 : i32
    %c0_i32_0 = arith.constant 0 : i32
    %c0_i32_1 = arith.constant 0 : i32
    return %c0_i32, %c0_i32_0 : i32, i32
  }
  func.func @transform_6(%arg0: i32) -> (i32, i32) {
    %c0_i32 = arith.constant 0 : i32
    %c0_i32_0 = arith.constant 0 : i32
    %c0_i32_1 = arith.constant 0 : i32
    return %c0_i32, %c0_i32_0 : i32, i32
  }
  func.func @transform_7(%arg0: i32) -> (i32, i32) {
    %c0_i32 = arith.constant 0 : i32
    %c0_i32_0 = arith.constant 0 : i32
    %c0_i32_1 = arith.constant 0 : i32
    return %c0_i32, %c0_i32_0 : i32, i32
  }
  func.func @transform_8(%arg0: i32) -> (i32, i32) {
    %c0_i32 = arith.constant 0 : i32
    %c0_i32_0 = arith.constant 0 : i32
    %c0_i32_1 = arith.constant 0 : i32
    return %c0_i32, %c0_i32_0 : i32, i32
  }
  func.func @transform_9(%arg0: i32) -> (i32, i32) {
    %c0_i32 = arith.constant 0 : i32
    %c0_i32_0 = arith.constant 0 : i32
    %c0_i32_1 = arith.constant 0 : i32
    return %c0_i32, %c0_i32_0 : i32, i32
  }
  func.func @transform_10(%arg0: i32) -> (i32, i32) {
    %c0_i32 = arith.constant 0 : i32
    %c0_i32_0 = arith.constant 0 : i32
    %c0_i32_1 = arith.constant 0 : i32
    return %c0_i32, %c0_i32_0 : i32, i32
  }
  func.func @transform_11(%arg0: i32) -> (i32, i32) {
    %c0_i32 = arith.constant 0 : i32
    %c0_i32_0 = arith.constant 0 : i32
    %c0_i32_1 = arith.constant 0 : i32
    return %c0_i32, %c0_i32_0 : i32, i32
  }
  func.func @transform_12(%arg0: i32) -> (i32, i32) {
    %c0_i32 = arith.constant 0 : i32
    %c0_i32_0 = arith.constant 0 : i32
    %c0_i32_1 = arith.constant 0 : i32
    return %c0_i32, %c0_i32_0 : i32, i32
  }
  func.func @transform_13(%arg0: i32) -> (i32, i32) {
    %c0_i32 = arith.constant 0 : i32
    %c0_i32_0 = arith.constant 0 : i32
    %c0_i32_1 = arith.constant 0 : i32
    return %c0_i32, %c0_i32_0 : i32, i32
  }
  func.func @transform_14(%arg0: i32) -> (i32, i32) {
    %c0_i32 = arith.constant 0 : i32
    %c0_i32_0 = arith.constant 0 : i32
    %c0_i32_1 = arith.constant 0 : i32
    return %c0_i32, %c0_i32_0 : i32, i32
  }
  func.func @transform_15(%arg0: i32) -> (i32, i32) {
    %c0_i32 = arith.constant 0 : i32
    %c0_i32_0 = arith.constant 0 : i32
    %c0_i32_1 = arith.constant 0 : i32
    return %c0_i32, %c0_i32_0 : i32, i32
  }
  func.func @transform_16(%arg0: i32) -> (i32, i32) {
    %c0_i32 = arith.constant 0 : i32
    %c0_i32_0 = arith.constant 0 : i32
    %c0_i32_1 = arith.constant 0 : i32
    return %c0_i32, %c0_i32_0 : i32, i32
  }
  func.func @transform_17(%arg0: i32) -> (i32, i32) {
    %c0_i32 = arith.constant 0 : i32
    %c0_i32_0 = arith.constant 0 : i32
    %c0_i32_1 = arith.constant 0 : i32
    return %c0_i32, %c0_i32_0 : i32, i32
  }
  func.func @transform_18(%arg0: i32) -> (i32, i32) {
    %c0_i32 = arith.constant 0 : i32
    %c0_i32_0 = arith.constant 0 : i32
    %c0_i32_1 = arith.constant 0 : i32
    return %c0_i32, %c0_i32_0 : i32, i32
  }
  func.func @transform_19(%arg0: i32) -> (i32, i32) {
    %c0_i32 = arith.constant 0 : i32
    %c0_i32_0 = arith.constant 0 : i32
    %c0_i32_1 = arith.constant 0 : i32
    return %c0_i32, %c0_i32_0 : i32, i32
  }
  func.func @transform_20(%arg0: i32) -> (i32, i32) {
    %c0_i32 = arith.constant 0 : i32
    %c0_i32_0 = arith.constant 0 : i32
    %c0_i32_1 = arith.constant 0 : i32
    return %c0_i32, %c0_i32_0 : i32, i32
  }
  func.func @transform_21(%arg0: i32) -> (i32, i32) {
    %c0_i32 = arith.constant 0 : i32
    %c0_i32_0 = arith.constant 0 : i32
    %c0_i32_1 = arith.constant 0 : i32
    return %c0_i32, %c0_i32_0 : i32, i32
  }
  func.func @transform_22(%arg0: i32) -> (i32, i32) {
    %c0_i32 = arith.constant 0 : i32
    %c0_i32_0 = arith.constant 0 : i32
    %c0_i32_1 = arith.constant 0 : i32
    return %c0_i32, %c0_i32_0 : i32, i32
  }
  func.func @transform_23(%arg0: i32) -> (i32, i32) {
    %c0_i32 = arith.constant 0 : i32
    %c0_i32_0 = arith.constant 0 : i32
    %c0_i32_1 = arith.constant 0 : i32
    return %c0_i32, %c0_i32_0 : i32, i32
  }
  func.func @transform_24(%arg0: i32) -> (i32, i32) {
    %c0_i32 = arith.constant 0 : i32
    %c0_i32_0 = arith.constant 0 : i32
    %c0_i32_1 = arith.constant 0 : i32
    return %c0_i32, %c0_i32_0 : i32, i32
  }
  func.func @transform_25(%arg0: i32) -> (i32, i32) {
    %c0_i32 = arith.constant 0 : i32
    %c0_i32_0 = arith.constant 0 : i32
    %c0_i32_1 = arith.constant 0 : i32
    return %c0_i32, %c0_i32_0 : i32, i32
  }
  func.func @transform_26(%arg0: i32) -> (i32, i32) {
    %c0_i32 = arith.constant 0 : i32
    %c0_i32_0 = arith.constant 0 : i32
    %c0_i32_1 = arith.constant 0 : i32
    return %c0_i32, %c0_i32_0 : i32, i32
  }
  func.func @transform_27(%arg0: i32) -> (i32, i32) {
    %c0_i32 = arith.constant 0 : i32
    %c0_i32_0 = arith.constant 0 : i32
    %c0_i32_1 = arith.constant 0 : i32
    return %c0_i32, %c0_i32_0 : i32, i32
  }
  func.func @transform_28(%arg0: i32) -> (i32, i32) {
    %c0_i32 = arith.constant 0 : i32
    %c0_i32_0 = arith.constant 0 : i32
    %c0_i32_1 = arith.constant 0 : i32
    return %c0_i32, %c0_i32_0 : i32, i32
  }
  func.func @transform_29(%arg0: i32) -> (i32, i32) {
    %c0_i32 = arith.constant 0 : i32
    %c0_i32_0 = arith.constant 0 : i32
    %c0_i32_1 = arith.constant 0 : i32
    return %c0_i32, %c0_i32_0 : i32, i32
  }
  func.func @transform_30(%arg0: i32) -> (i32, i32) {
    %c0_i32 = arith.constant 0 : i32
    %c0_i32_0 = arith.constant 0 : i32
    %c0_i32_1 = arith.constant 0 : i32
    return %c0_i32, %c0_i32_0 : i32, i32
  }
  func.func @transform_31(%arg0: i32) -> (i32, i32) {
    %c0_i32 = arith.constant 0 : i32
    %c0_i32_0 = arith.constant 0 : i32
    %c0_i32_1 = arith.constant 0 : i32
    return %c0_i32, %c0_i32_0 : i32, i32
  }
  func.func @transform_32(%arg0: i32) -> (i32, i32) {
    %c0_i32 = arith.constant 0 : i32
    %c0_i32_0 = arith.constant 0 : i32
    %c0_i32_1 = arith.constant 0 : i32
    return %c0_i32, %c0_i32_0 : i32, i32
  }
  func.func @transform_33(%arg0: i32) -> (i32, i32) {
    %c0_i32 = arith.constant 0 : i32
    %c0_i32_0 = arith.constant 0 : i32
    %c0_i32_1 = arith.constant 0 : i32
    return %c0_i32, %c0_i32_0 : i32, i32
  }
  func.func @transform_34(%arg0: i32) -> (i32, i32) {
    %c0_i32 = arith.constant 0 : i32
    %c0_i32_0 = arith.constant 0 : i32
    %c0_i32_1 = arith.constant 0 : i32
    return %c0_i32, %c0_i32_0 : i32, i32
  }
  func.func @transform_35(%arg0: i32) -> (i32, i32) {
    %c0_i32 = arith.constant 0 : i32
    %c0_i32_0 = arith.constant 0 : i32
    %c0_i32_1 = arith.constant 0 : i32
    return %c0_i32, %c0_i32_0 : i32, i32
  }
  func.func @transform_36(%arg0: i32) -> (i32, i32) {
    %c0_i32 = arith.constant 0 : i32
    %c0_i32_0 = arith.constant 0 : i32
    %c0_i32_1 = arith.constant 0 : i32
    return %c0_i32, %c0_i32_0 : i32, i32
  }
  func.func @transform_37(%arg0: i32) -> (i32, i32) {
    %c0_i32 = arith.constant 0 : i32
    %c0_i32_0 = arith.constant 0 : i32
    %c0_i32_1 = arith.constant 0 : i32
    return %c0_i32, %c0_i32_0 : i32, i32
  }
  func.func @transform_38(%arg0: i32) -> (i32, i32) {
    %c0_i32 = arith.constant 0 : i32
    %c0_i32_0 = arith.constant 0 : i32
    %c0_i32_1 = arith.constant 0 : i32
    return %c0_i32, %c0_i32_0 : i32, i32
  }
  func.func @transform_39(%arg0: i32) -> (i32, i32) {
    %c0_i32 = arith.constant 0 : i32
    %c0_i32_0 = arith.constant 0 : i32
    %c0_i32_1 = arith.constant 0 : i32
    return %c0_i32, %c0_i32_0 : i32, i32
  }
  func.func @transform_40(%arg0: i32) -> (i32, i32) {
    %c0_i32 = arith.constant 0 : i32
    %c0_i32_0 = arith.constant 0 : i32
    %c0_i32_1 = arith.constant 0 : i32
    return %c0_i32, %c0_i32_0 : i32, i32
  }
  func.func @transform_41(%arg0: i32) -> (i32, i32) {
    %c0_i32 = arith.constant 0 : i32
    %c0_i32_0 = arith.constant 0 : i32
    %c0_i32_1 = arith.constant 0 : i32
    return %c0_i32, %c0_i32_0 : i32, i32
  }
  func.func @transform_42(%arg0: i32) -> (i32, i32) {
    %c0_i32 = arith.constant 0 : i32
    %c0_i32_0 = arith.constant 0 : i32
    %c0_i32_1 = arith.constant 0 : i32
    return %c0_i32, %c0_i32_0 : i32, i32
  }
  func.func @transform_43(%arg0: i32) -> (i32, i32) {
    %c0_i32 = arith.constant 0 : i32
    %c0_i32_0 = arith.constant 0 : i32
    %c0_i32_1 = arith.constant 0 : i32
    return %c0_i32, %c0_i32_0 : i32, i32
  }
  func.func @transform_44(%arg0: i32) -> (i32, i32) {
    %c0_i32 = arith.constant 0 : i32
    %c0_i32_0 = arith.constant 0 : i32
    %c0_i32_1 = arith.constant 0 : i32
    return %c0_i32, %c0_i32_0 : i32, i32
  }
  func.func @transform_45(%arg0: i32) -> (i32, i32) {
    %c0_i32 = arith.constant 0 : i32
    %c0_i32_0 = arith.constant 0 : i32
    %c0_i32_1 = arith.constant 0 : i32
    return %c0_i32, %c0_i32_0 : i32, i32
  }
  func.func @transform_46(%arg0: i32) -> (i32, i32) {
    %c0_i32 = arith.constant 0 : i32
    %c0_i32_0 = arith.constant 0 : i32
    %c0_i32_1 = arith.constant 0 : i32
    return %c0_i32, %c0_i32_0 : i32, i32
  }
  func.func @transform_47(%arg0: i32) -> (i32, i32) {
    %c0_i32 = arith.constant 0 : i32
    %c0_i32_0 = arith.constant 0 : i32
    %c0_i32_1 = arith.constant 0 : i32
    return %c0_i32, %c0_i32_0 : i32, i32
  }
  func.func @transform_48(%arg0: i32) -> (i32, i32) {
    %c0_i32 = arith.constant 0 : i32
    %c0_i32_0 = arith.constant 0 : i32
    %c0_i32_1 = arith.constant 0 : i32
    return %c0_i32, %c0_i32_0 : i32, i32
  }
  func.func @transform_49(%arg0: i32) -> (i32, i32) {
    %c0_i32 = arith.constant 0 : i32
    %c0_i32_0 = arith.constant 0 : i32
    %c0_i32_1 = arith.constant 0 : i32
    return %c0_i32, %c0_i32_0 : i32, i32
  }
  func.func @transform_50(%arg0: i32) -> (i32, i32) {
    %c0_i32 = arith.constant 0 : i32
    %c0_i32_0 = arith.constant 0 : i32
    %c0_i32_1 = arith.constant 0 : i32
    return %c0_i32, %c0_i32_0 : i32, i32
  }
  func.func @transform_51(%arg0: i32) -> (i32, i32) {
    %c0_i32 = arith.constant 0 : i32
    %c0_i32_0 = arith.constant 0 : i32
    %c0_i32_1 = arith.constant 0 : i32
    return %c0_i32, %c0_i32_0 : i32, i32
  }
  func.func @transform_52(%arg0: i32) -> (i32, i32) {
    %c0_i32 = arith.constant 0 : i32
    %c0_i32_0 = arith.constant 0 : i32
    %c0_i32_1 = arith.constant 0 : i32
    return %c0_i32, %c0_i32_0 : i32, i32
  }
  func.func @transform_53(%arg0: i32) -> (i32, i32) {
    %c0_i32 = arith.constant 0 : i32
    %c0_i32_0 = arith.constant 0 : i32
    %c0_i32_1 = arith.constant 0 : i32
    return %c0_i32, %c0_i32_0 : i32, i32
  }
  func.func @transform_54(%arg0: i32) -> (i32, i32) {
    %c0_i32 = arith.constant 0 : i32
    %c0_i32_0 = arith.constant 0 : i32
    %c0_i32_1 = arith.constant 0 : i32
    return %c0_i32, %c0_i32_0 : i32, i32
  }
  func.func @transform_55(%arg0: i32) -> (i32, i32) {
    %c0_i32 = arith.constant 0 : i32
    %c0_i32_0 = arith.constant 0 : i32
    %c0_i32_1 = arith.constant 0 : i32
    return %c0_i32, %c0_i32_0 : i32, i32
  }
  func.func @transform_56(%arg0: i32) -> (i32, i32) {
    %c0_i32 = arith.constant 0 : i32
    %c0_i32_0 = arith.constant 0 : i32
    %c0_i32_1 = arith.constant 0 : i32
    return %c0_i32, %c0_i32_0 : i32, i32
  }
  func.func @transform_57(%arg0: i32) -> (i32, i32) {
    %c0_i32 = arith.constant 0 : i32
    %c0_i32_0 = arith.constant 0 : i32
    %c0_i32_1 = arith.constant 0 : i32
    return %c0_i32, %c0_i32_0 : i32, i32
  }
  func.func @transform_58(%arg0: i32) -> (i32, i32) {
    %c0_i32 = arith.constant 0 : i32
    %c0_i32_0 = arith.constant 0 : i32
    %c0_i32_1 = arith.constant 0 : i32
    return %c0_i32, %c0_i32_0 : i32, i32
  }
  func.func @transform_59(%arg0: i32) -> (i32, i32) {
    %c0_i32 = arith.constant 0 : i32
    %c0_i32_0 = arith.constant 0 : i32
    %c0_i32_1 = arith.constant 0 : i32
    return %c0_i32, %c0_i32_0 : i32, i32
  }
  func.func @transform_60(%arg0: i32) -> (i32, i32) {
    %c0_i32 = arith.constant 0 : i32
    %c0_i32_0 = arith.constant 0 : i32
    %c0_i32_1 = arith.constant 0 : i32
    return %c0_i32, %c0_i32_0 : i32, i32
  }
  func.func @transform_61(%arg0: i32) -> (i32, i32) {
    %c0_i32 = arith.constant 0 : i32
    %c0_i32_0 = arith.constant 0 : i32
    %c0_i32_1 = arith.constant 0 : i32
    return %c0_i32, %c0_i32_0 : i32, i32
  }
  func.func @transform_62(%arg0: i32) -> (i32, i32) {
    %c0_i32 = arith.constant 0 : i32
    %c0_i32_0 = arith.constant 0 : i32
    %c0_i32_1 = arith.constant 0 : i32
    return %c0_i32, %c0_i32_0 : i32, i32
  }
  func.func @transform_63(%arg0: i32) -> (i32, i32) {
    %c0_i32 = arith.constant 0 : i32
    %c0_i32_0 = arith.constant 0 : i32
    %c0_i32_1 = arith.constant 0 : i32
    return %c0_i32, %c0_i32_0 : i32, i32
  }
  func.func @transform_64(%arg0: i32) -> (i32, i32) {
    %c0_i32 = arith.constant 0 : i32
    %c0_i32_0 = arith.constant 0 : i32
    %c0_i32_1 = arith.constant 0 : i32
    return %c0_i32, %c0_i32_0 : i32, i32
  }
  func.func @transform_65(%arg0: i32) -> (i32, i32) {
    %c0_i32 = arith.constant 0 : i32
    %c0_i32_0 = arith.constant 0 : i32
    %c0_i32_1 = arith.constant 0 : i32
    return %c0_i32, %c0_i32_0 : i32, i32
  }
  func.func @transform_66(%arg0: i32) -> (i32, i32) {
    %c0_i32 = arith.constant 0 : i32
    %c0_i32_0 = arith.constant 0 : i32
    %c0_i32_1 = arith.constant 0 : i32
    return %c0_i32, %c0_i32_0 : i32, i32
  }
  func.func @transform_67(%arg0: i32) -> (i32, i32) {
    %c0_i32 = arith.constant 0 : i32
    %c0_i32_0 = arith.constant 0 : i32
    %c0_i32_1 = arith.constant 0 : i32
    return %c0_i32, %c0_i32_0 : i32, i32
  }
  func.func @transform_68(%arg0: i32) -> (i32, i32) {
    %c0_i32 = arith.constant 0 : i32
    %c0_i32_0 = arith.constant 0 : i32
    %c0_i32_1 = arith.constant 0 : i32
    return %c0_i32, %c0_i32_0 : i32, i32
  }
  func.func @transform_69(%arg0: i32) -> (i32, i32) {
    %c0_i32 = arith.constant 0 : i32
    %c0_i32_0 = arith.constant 0 : i32
    %c0_i32_1 = arith.constant 0 : i32
    return %c0_i32, %c0_i32_0 : i32, i32
  }
  func.func @transform_70(%arg0: i32) -> (i32, i32, i32) {
    %c0_i32 = arith.constant 0 : i32
    %c0_i32_0 = arith.constant 0 : i32
    %c0_i32_1 = arith.constant 0 : i32
    return %arg0, %c0_i32, %c0_i32_0 : i32, i32, i32
  }
}

</mosaic_0001>

<bundles_post_ra>
// kernel: transformer_forward.1
= control target key start
LH: loop header
LB: loop body
LE: loop exit
PB: predicated region body
PF: predicated region fallthrough
CT: control target
= control target key end

     0   :  { %s10303_s6 = smov 1   ;;  %s10304_s10 = smov 2   ;;  %s11913_s0 = inlined_call_operand.smem [shape: u32[71], index: -1, kind: input, shape index: {}] }
   0x1   :  { %s10430_s5 = sld [smem:[%s11913_s0]]   ;;  %s10305_s14 = smov 3  }
   0x2   :  { %s10435_s9 = sld [smem:[%s11913_s0 + %s10303_s6]]   ;;  %s10306_s18 = smov 4  }
   0x3   :  { %s10440_s13 = sld [smem:[%s11913_s0 + %s10304_s10]]   ;;  %s10307_s22 = smov 5  }
   0x4   :  { %s10445_s17 = sld [smem:[%s11913_s0 + %s10305_s14]]   ;;  %s10308_s26 = smov 6  }
   0x5   :  { %s10450_s21 = sld [smem:[%s11913_s0 + %s10306_s18]]   ;;  %s10309_s30 = smov 7  }
   0x6   :  { %s10455_s25 = sld [smem:[%s11913_s0 + %s10307_s22]]   ;;  %s10310_s4 = smov 8  }
   0x7   :  { %11989 = sst [smem:[#allocation68_spill]] %s10430_s5  ;;  %s10311_s10 = smov 9  }
   0x8   :  { %11990 = sst [smem:[#allocation69_spill]] %s10435_s9  ;;  %s10312_s15 = smov 10  }
   0x9   :  { %11991 = sst [smem:[#allocation70_spill]] %s10440_s13  ;;  %s10313_s20 = smov 11  }
   0xa   :  { %11992 = sst [smem:[#allocation71_spill]] %s10445_s17  ;;  %s10315_s1 = smov 13  }
   0xb   :  { %11993 = sst [smem:[#allocation72_spill]] %s10450_s21  ;;  %s10316_s7 = smov 14  }
   0xc   :  { %11994 = sst [smem:[#allocation73_spill]] %s10455_s25  ;;  %s10318_s22 = smov 16  }
   0xd   :  { %s10460_s29 = sld [smem:[%s11913_s0 + %s10308_s26]]   ;;  %s10314_s26 = smov 12  }
   0xe   :  { %s10465_s3 = sld [smem:[%s11913_s0 + %s10309_s30]]   ;;  %s10319_s28 = smov 17  }
   0xf   :  { %s10470_s8 = sld [smem:[%s11913_s0 + %s10310_s4]]  }
  0x10   :  { %s10475_s14 = sld [smem:[%s11913_s0 + %s10311_s10]]  }
  0x11   :  { %s10480_s19 = sld [smem:[%s11913_s0 + %s10312_s15]]   ;;  %s10317_s15 = smov 15  }
  0x12   :  { %s10485_s24 = sld [smem:[%s11913_s0 + %s10313_s20]]  }
  0x13   :  { %11995 = sst [smem:[#allocation74_spill]] %s10460_s29 }
  0x14   :  { %11996 = sst [smem:[#allocation75_spill]] %s10465_s3 }
  0x15   :  { %11997 = sst [smem:[#allocation76_spill]] %s10470_s8 }
  0x16   :  { %11998 = sst [smem:[#allocation77_spill]] %s10475_s14 }
  0x17   :  { %11999 = sst [smem:[#allocation78_spill]] %s10480_s19 }
  0x18   :  { %12000 = sst [smem:[#allocation79_spill]] %s10485_s24 }
  0x19   :  { %s10490_s30 = sld [smem:[%s11913_s0 + %s10314_s26]]  }
  0x1a   :  { %s10495_s6 = sld [smem:[%s11913_s0 + %s10315_s1]]  }
  0x1b   :  { %s10500_s12 = sld [smem:[%s11913_s0 + %s10316_s7]]   ;;  %s10320_s7 = smov 18  }
  0x1c   :  { %s10505_s20 = sld [smem:[%s11913_s0 + %s10317_s15]]   ;;  %s10321_s15 = smov 19  }
  0x1d   :  { %s10510_s27 = sld [smem:[%s11913_s0 + %s10318_s22]]   ;;  %s10322_s22 = smov 20  }
  0x1e   :  { %s10515_s4 = sld [smem:[%s11913_s0 + %s10319_s28]]   ;;  %s10323_s28 = smov 21  }
  0x1f   :  { %12001 = sst [smem:[#allocation80_spill]] %s10490_s30 }
  0x20   :  { %12002 = sst [smem:[#allocation81_spill]] %s10495_s6 }
  0x21   :  { %12003 = sst [smem:[#allocation82_spill]] %s10500_s12 }
  0x22   :  { %12004 = sst [smem:[#allocation83_spill]] %s10505_s20 }
  0x23   :  { %12005 = sst [smem:[#allocation84_spill]] %s10510_s27 }
  0x24   :  { %12006 = sst [smem:[#allocation85_spill]] %s10515_s4 }
  0x25   :  { %s10520_s12 = sld [smem:[%s11913_s0 + %s10320_s7]]   ;;  %s10324_s7 = smov 22  }
  0x26   :  { %s10525_s20 = sld [smem:[%s11913_s0 + %s10321_s15]]   ;;  %s10325_s15 = smov 23  }
  0x27   :  { %s10530_s27 = sld [smem:[%s11913_s0 + %s10322_s22]]   ;;  %s10326_s22 = smov 24  }
  0x28   :  { %s10535_s4 = sld [smem:[%s11913_s0 + %s10323_s28]]   ;;  %s10327_s28 = smov 25  }
  0x29   :  { %s10540_s24 = sld [smem:[%s11913_s0 + %s10324_s7]]   ;;  %s10328_s7 = smov 26  }
  0x2a   :  { %s10545_s19 = sld [smem:[%s11913_s0 + %s10325_s15]]   ;;  %s10329_s15 = smov 27  }
  0x2b   :  { %12007 = sst [smem:[#allocation86_spill]] %s10520_s12 }
  0x2c   :  { %12008 = sst [smem:[#allocation87_spill]] %s10525_s20 }
  0x2d   :  { %12009 = sst [smem:[#allocation88_spill]] %s10530_s27 }
  0x2e   :  { %12010 = sst [smem:[#allocation89_spill]] %s10535_s4 }
  0x2f   :  { %12011 = sst [smem:[#allocation90_spill]] %s10540_s24 }
  0x30   :  { %12012 = sst [smem:[#allocation91_spill]] %s10545_s19 }
  0x31   :  { %s10550_s17 = sld [smem:[%s11913_s0 + %s10326_s22]]   ;;  %s10330_s22 = smov 28  }
  0x32   :  { %s10555_s29 = sld [smem:[%s11913_s0 + %s10327_s28]]   ;;  %s10331_s28 = smov 29  }
  0x33   :  { %s10560_s24 = sld [smem:[%s11913_s0 + %s10328_s7]]   ;;  %s10332_s7 = smov 30  }
  0x34   :  { %s10565_s19 = sld [smem:[%s11913_s0 + %s10329_s15]]   ;;  %s10333_s15 = smov 31  }
  0x37   :  { %12013 = sst [smem:[#allocation92_spill]] %s10550_s17 }
  0x38   :  { %12014 = sst [smem:[#allocation93_spill]] %s10555_s29 }
  0x39   :  { %12015 = sst [smem:[#allocation94_spill]] %s10560_s24 }
  0x3a   :  { %12016 = sst [smem:[#allocation95_spill]] %s10565_s19 }
  0x3b   :  { %s10570_s17 = sld [smem:[%s11913_s0 + %s10330_s22]]   ;;  %s10334_s22 = smov 32  }
  0x3c   :  { %s10575_s29 = sld [smem:[%s11913_s0 + %s10331_s28]]   ;;  %s10335_s28 = smov 33  }
  0x3d   :  { %s10580_s24 = sld [smem:[%s11913_s0 + %s10332_s7]]   ;;  %s10336_s7 = smov 34  }
  0x3e   :  { %s10585_s19 = sld [smem:[%s11913_s0 + %s10333_s15]]   ;;  %s10337_s15 = smov 35  }
  0x3f   :  { %s10590_s13 = sld [smem:[%s11913_s0 + %s10334_s22]]   ;;  %s10338_s22 = smov 36  }
  0x40   :  { %s10595_s30 = sld [smem:[%s11913_s0 + %s10335_s28]]   ;;  %s10339_s28 = smov 37  }
  0x41   :  { %12017 = sst [smem:[#allocation96_spill]] %s10570_s17 }
  0x42   :  { %12018 = sst [smem:[#allocation97_spill]] %s10575_s29 }
  0x43   :  { %12019 = sst [smem:[#allocation98_spill]] %s10580_s24 }
  0x44   :  { %12020 = sst [smem:[#allocation99_spill]] %s10585_s19 }
  0x45   :  { %12021 = sst [smem:[#allocation100_spill]] %s10590_s13 }
  0x46   :  { %12022 = sst [smem:[#allocation101_spill]] %s10595_s30 }
  0x47   :  { %s10600_s24 = sld [smem:[%s11913_s0 + %s10336_s7]]   ;;  %s10340_s7 = smov 38  }
  0x48   :  { %s10605_s19 = sld [smem:[%s11913_s0 + %s10337_s15]]   ;;  %s10341_s15 = smov 39  }
  0x49   :  { %s10610_s6 = sld [smem:[%s11913_s0 + %s10338_s22]]   ;;  %s10342_s22 = smov 40  }
  0x4a   :  { %s10615_s3 = sld [smem:[%s11913_s0 + %s10339_s28]]   ;;  %s10343_s28 = smov 41  }
  0x4b   :  { %s10620_s25 = sld [smem:[%s11913_s0 + %s10340_s7]]   ;;  %s10344_s7 = smov 42  }
  0x4c   :  { %s10625_s20 = sld [smem:[%s11913_s0 + %s10341_s15]]   ;;  %s10345_s15 = smov 43  }
  0x4d   :  { %s10630_s4 = sld [smem:[%s11913_s0 + %s10342_s22]]   ;;  %s10346_s22 = smov 44  }
  0x4e   :  { %12023 = sst [smem:[#allocation102_spill]] %s10605_s19 }
  0x4f   :  { %12024 = sst [smem:[#allocation103_spill]] %s10610_s6 }
  0x50   :  { %12025 = sst [smem:[#allocation104_spill]] %s10615_s3 }
  0x51   :  { %s10635_s12 = sld [smem:[%s11913_s0 + %s10343_s28]]   ;;  %s10347_s28 = smov 45  }
  0x52   :  { %12026 = sst [smem:[#allocation105_spill]] %s10625_s20 }
  0x53   :  { %12027 = sst [smem:[#allocation106_spill]] %s10630_s4 }
  0x54   :  { %s10640_s27 = sld [smem:[%s11913_s0 + %s10344_s7]]   ;;  %s10348_s7 = smov 46  }
  0x55   :  { %s10645_s9 = sld [smem:[%s11913_s0 + %s10345_s15]]   ;;  %s10349_s15 = smov 47  }
  0x56   :  { %s10650_s4 = sld [smem:[%s11913_s0 + %s10346_s22]]   ;;  %s10350_s22 = smov 48  }
  0x57   :  { %12028 = sst [smem:[#allocation107_spill]] %s10635_s12 }
  0x58   :  { %s10655_s12 = sld [smem:[%s11913_s0 + %s10347_s28]]   ;;  %s10351_s28 = smov 49  }
  0x59   :  { %s10665_s5 = sld [smem:[%s11913_s0 + %s10349_s15]]   ;;  %s10353_s15 = smov 51  }
  0x5a   :  { %12029 = sst [smem:[#allocation108_spill]] %s10640_s27 }
  0x5b   :  { %12030 = sst [smem:[#allocation109_spill]] %s10645_s9 }
  0x5c   :  { %12031 = sst [smem:[#allocation110_spill]] %s10650_s4 }
  0x5d   :  { %s10660_s27 = sld [smem:[%s11913_s0 + %s10348_s7]]   ;;  %s10352_s7 = smov 50  }
  0x5e   :  { %12032 = sst [smem:[#allocation111_spill]] %s10655_s12 }
  0x5f   :  { %12034 = sst [smem:[#allocation113_spill]] %s10665_s5 }
  0x60   :  { %s10670_s4 = sld [smem:[%s11913_s0 + %s10350_s22]]   ;;  %s10354_s22 = smov 52  }
  0x61   :  { %s10675_s12 = sld [smem:[%s11913_s0 + %s10351_s28]]   ;;  %s10355_s28 = smov 53  }
  0x62   :  { %s10685_s20 = sld [smem:[%s11913_s0 + %s10353_s15]]   ;;  %s10357_s15 = smov 55  }
  0x63   :  { %12033 = sst [smem:[#allocation112_spill]] %s10660_s27 }
  0x64   :  { %s10680_s27 = sld [smem:[%s11913_s0 + %s10352_s7]]   ;;  %s10356_s7 = smov 54  }
  0x65   :  { %s10695_s3 = sld [smem:[%s11913_s0 + %s10355_s28]]   ;;  %s10359_s28 = smov 57  }
  0x66   :  { %12035 = sst [smem:[#allocation114_spill]] %s10670_s4 }
  0x67   :  { %12036 = sst [smem:[#allocation115_spill]] %s10675_s12 }
  0x68   :  { %s10690_s4 = sld [smem:[%s11913_s0 + %s10354_s22]]   ;;  %s10358_s22 = smov 56  }
  0x69   :  { %s10705_s19 = sld [smem:[%s11913_s0 + %s10357_s15]]   ;;  %s10361_s15 = smov 59  }
  0x6a   :  { %12037 = sst [smem:[#allocation116_spill]] %s10680_s27 }
  0x6b   :  { %12039 = sst [smem:[#allocation118_spill]] %s10695_s3 }
  0x6c   :  { %s10700_s27 = sld [smem:[%s11913_s0 + %s10356_s7]]   ;;  %s10360_s7 = smov 58  }
  0x6d   :  { %s10715_s3 = sld [smem:[%s11913_s0 + %s10359_s28]]   ;;  %s10363_s28 = smov 61  }
  0x6e   :  { %12038 = sst [smem:[#allocation117_spill]] %s10690_s4 }
  0x6f   :  { %s10710_s4 = sld [smem:[%s11913_s0 + %s10358_s22]]   ;;  %s10362_s22 = smov 60  }
  0x70   :  { %s10725_s30 = sld [smem:[%s11913_s0 + %s10361_s15]]   ;;  %s10365_s15 = smov 63  }
  0x71   :  { %s10745_s29 = sld [smem:[%s11913_s0 + %s10365_s15]]   ;;  %s10369_s15 = smov 67  }
  0x72   :  { %12040 = sst [smem:[#allocation119_spill]] %s10700_s27 }
  0x73   :  { %12042 = sst [smem:[#allocation121_spill]] %s10715_s3 }
  0x74   :  { %s10720_s27 = sld [smem:[%s11913_s0 + %s10360_s7]]   ;;  %s10364_s7 = smov 62  }
  0x75   :  { %12041 = sst [smem:[#allocation120_spill]] %s10710_s4 }
  0x76   :  { %s10730_s4 = sld [smem:[%s11913_s0 + %s10362_s22]]   ;;  %s10366_s22 = smov 64  }
  0x77   :  { %s10735_s3 = sld [smem:[%s11913_s0 + %s10363_s28]]   ;;  %s10367_s28 = smov 65  }
  0x78   :  { %s10755_s14 = sld [smem:[%s11913_s0 + %s10367_s28]]   ;;  %s10371_s28 = smov 69  }
  0x79   :  { %s10765_s21 = sld [smem:[%s11913_s0 + %s10369_s15]]  }
  0x7a   :  { %12043 = sst [smem:[#allocation122_spill]] %s10720_s27 }
  0x7b   :  { %s10740_s27 = sld [smem:[%s11913_s0 + %s10364_s7]]   ;;  %s10368_s7 = smov 66  }
  0x7c   :  { %12044 = sst [smem:[#allocation123_spill]] %s10730_s4 }
  0x7d   :  { %12045 = sst [smem:[#allocation124_spill]] %s10735_s3 }
  0x7e   :  { %s10750_s4 = sld [smem:[%s11913_s0 + %s10366_s22]]   ;;  %s10370_s22 = smov 68  }
  0x7f   :  { %12048 = sst [smem:[#allocation127_spill]] %s10755_s14 }
  0x80   :  { %s10775_s14 = sld [smem:[%s11913_s0 + %s10371_s28]]  }
  0x81   :  { %12046 = sst [smem:[#allocation125_spill]] %s10740_s27 }
  0x82   :  { %s10760_s27 = sld [smem:[%s11913_s0 + %s10368_s7]]   ;;  %s10372_s7 = smov 70  }
  0x84   :  { %12047 = sst [smem:[#allocation126_spill]] %s10750_s4 }
  0x85   :  { %s10770_s4 = sld [smem:[%s11913_s0 + %s10370_s22]]  }
  0x88   :  { %12049 = sst [smem:[#allocation128_spill]] %s10760_s27 }
  0x89   :  { %s10780_s27 = sld [smem:[%s11913_s0 + %s10372_s7]]  }
  0x8b   :  { %12050 = sst [smem:[#allocation129_spill]] %s10770_s4 }
  0x8c   :  { %146 = vsyncpa [#allocation4], 0 }
  0x8d   :  { %147 = vsyncpa [#allocation7], 0 }
  0x8e   :  { %148 = vsyncpa [#allocation10], 0 }
  0x8f   :  { %149 = vsyncpa [#allocation13], 0 }
  0x90   :  { %150 = vsyncpa [#allocation16], 0 }
  0x91   :  { %151 = vsyncpa [#allocation19], 0 }
  0x92   :  { %152 = vsyncpa [#allocation22], 0 }
  0x93   :  { %153 = vsyncpa [#allocation25], 0 }
  0x94   :  { %154 = vsyncpa [#allocation28], 0 }
  0x95   :  { %155 = vsyncpa [#allocation31], 0 }
  0x96   :  { %156 = vsyncpa [#allocation34], 0 }
  0x97   :  { %157 = vsyncpa [#allocation37], 0 }
  0x98   :  { %158 = vsyncpa [#allocation40], 0 }
  0x99   :  { %159 = vsyncpa [#allocation43], 0 }
  0x9a   :  { %160 = vsyncpa [#allocation46], 0 }
  0x9b   :  { %161 = vsyncpa [#allocation49], 0 }
  0x9c   :  { %162 = vsyncpa [#allocation5], 0 }
  0x9d   :  { %164 = vsyncpa [#allocation5 + $0x1], 0  ;;  %s10782_s0 = smov 0   ;;  %s10784_s15 = smov 0  }
  0x9e   :  { %s10786_s16 = smov 0   ;;  %s10788_s18 = smov 0  }
  0x9f LB: > { %12051 = sst [smem:[#allocation130_spill]] %s10289_s0  ;;  %s10803_s22 = sadd.s32 4294967295, %s10301_s18   ;;  %s10301_s18 = sphi %s10788_s18, %s12180_s18   ;;  %s10297_s16 = sphi %s10786_s16, %s12182_s16   ;;  %s10293_s15 = sphi %s10784_s15, %s12184_s15   ;;  %s10289_s0 = sphi %s10782_s0, %s12183_s0  }
  0xa0   : > { %12052 = sst [smem:[#allocation131_spill]] %s10297_s16  ;;  %s7804_s23 = sadd.s32 4294967294, %s10301_s18  }
  0xa1   : > { %12053 = sst [smem:[#allocation132_spill]] %s10301_s18  ;;  %s10807_s26 = sadd.s32 1, %s10301_s18  }
  0xa2   : > { %12054 = sst [smem:[#allocation133_spill]] %s10807_s26  ;;  %s1657_s28 = sadd.s32 1, %s10297_s16 }
  0xa3   : > { %s1654_s1 = ssub.s32 %s10301_s18, %s10807_s26  ;;  %p1667_p0 = scmp.ne.s32.totalorder %s10297_s16, %s10293_s15 }
  0xa4   : > { %p1655_p1 = scmp.eq.s32.totalorder %s1654_s1, 0  ;;  %p1668_p2 = scmp.eq.s32.totalorder %s10803_s22, 1 }
  0xa5   : > { %p1673_p3 = scmp.ne.s32.totalorder %s10293_s15, %s10289_s0  ;;  %p1674_p4 = scmp.eq.s32.totalorder %s7804_s23, 1 }
  0xa6   : > { %s10818_s2 = scalar_select %p1655_p1, %s10297_s16, %s1657_s28  }
  0xa7   : > { %p10820_p5 = por %p1668_p2, %p1667_p0  ;;  %p10824_p6 = por %p1674_p4, %p1673_p3 }
  0xa8   : > { %12055 = sst [smem:[#allocation134_spill]] %s10818_s2  ;;  %p7805_p7 = scmp.ge.s32.totalorder %s10301_s18, 1 }
  0xa9   : > { %s12056_s7 = scalar_select %p10820_p5, 1, 0 }
  0xaa   : > { %s12057_s10 = scalar_select %p10824_p6, 1, 0 }
  0xab   : > { %p1681_p8 = scmp.lt.s32.totalorder %s10301_s18, 3  ;;  %p11942_p9 = scmp.eq.s32.totalorder %s10803_s22, 0 }
  0xac   : > { %12058 = sst [smem:[#allocation135_spill]] %s12057_s10  ;;  %s10373_s1 = smov [#allocation6]  }
  0xad   : > { %p10831_p10 = pnand %p7805_p7, %p1681_p8  ;;  %s1720_s23 = sshll.u32 %s10373_s1, 4  ;;  %s1721_s23 = int_to_ptr.vmem [resolvable:$true] %s1720_s23 }
  0xae   : > { %s10374_s28 = smov [#allocation9]   ;;  %s10375_s26 = smov [#allocation12]  }
  0xaf   : > { %s12059_s11 = scalar_select %p10831_p10, 1, 0 }
  0xb0   : > { %p8904_p11 = pneg %p10831_p10  ;;  %s1796_s2 = sshll.u32 %s10374_s28, 4  ;;  %s1797_s2 = int_to_ptr.vmem [resolvable:$true] %s1796_s2 }
  0xb1   : > { %s1824_s10 = sshll.u32 %s10375_s26, 4  ;;  %s9408_s1 = scalar_lea.vmem %s1721_s23, 16  ;;  %s10843_s10 = int_to_ptr.vmem [resolvable:$true] %s1824_s10 }
  0xb2   : > { %p10839_p12 = pnand %p11942_p9, %p8904_p11  ;;  %p9409_p0 = scmp.ne.s32.totalorder %s1721_s23, %s9408_s1 }
  0xb3   : > { %s9415_s28 = scalar_lea.vmem %s1721_s23, 32  ;;  %p9416_p3 = scmp.lt.s32.totalorder %s1721_s23, %s1721_s23 }
  0xb4   : > { %p10847_p13 = pneg %p10839_p12  ;;  %p9417_p4 = scmp.lt.s32.totalorder %s9415_s28, %s9408_s1 }
  0xb6   : > { %p9411_p1 = pnand %p9409_p0, %p10847_p13  ;;  %p9418_p7 = por %p9417_p4, %p9416_p3 }
  0xb8   : > { %p9412_p2 = pneg %p9411_p1 }
  0xba   : > { %p9419_p8 = pnand %p9418_p7, %p9412_p2 }
  0xbc   : > { %9422 = shalt.err (!%p9419_p8)
}
  0xbd   : > { %s12062_s8 = sld [smem:[#allocation76_spill]]  ;;  %s9434_s26 = scalar_lea.vmem %s1797_s2, 16 }
  0xbe   : > { %p9435_p11 = scmp.ne.s32.totalorder %s1797_s2, %s9434_s26  ;;  %s9441_s18 = scalar_lea.vmem %s1797_s2, 32 }
  0xbf   : > { %p9442_p5 = scmp.lt.s32.totalorder %s1797_s2, %s1797_s2  ;;  %p9443_p0 = scmp.lt.s32.totalorder %s9441_s18, %s9434_s26 }
  0xc0   : > { %p9437_p9 = pnand %p9435_p11, %p10847_p13 }
  0xc1   : > { %p9444_p1 = por %p9443_p0, %p9442_p5 }
  0xc2   : > { %p9438_p6 = pneg %p9437_p9 }
  0xc3   : > { %8910 = dma.hbm_to_vmem [thread:$0]  (!%p10839_p12), %s12062_s8, 16, %s1721_s23, [#allocation7]  }
  0xc4   : > { %p9445_p10 = pnand %p9444_p1, %p9438_p6 }
  0xc6   : > { %9448 = shalt.err (!%p9445_p10)
}
  0xc7   : > { %s12063_s17 = sld [smem:[#allocation96_spill]]  ;;  %s9460_s23 = scalar_lea.vmem %s10843_s10, 16 }
  0xc8   : > { %p9461_p2 = scmp.ne.s32.totalorder %s10843_s10, %s9460_s23  ;;  %s9467_s1 = scalar_lea.vmem %s10843_s10, 32 }
  0xc9   : > { %p9468_p4 = scmp.lt.s32.totalorder %s10843_s10, %s10843_s10  ;;  %p9469_p5 = scmp.lt.s32.totalorder %s9467_s1, %s9460_s23 }
  0xca   : > { %p9463_p3 = pnand %p9461_p2, %p10847_p13 }
  0xcb   : > { %p9470_p6 = por %p9469_p5, %p9468_p4 }
  0xcc   : > { %p9464_p9 = pneg %p9463_p3 }
  0xcd   : > { %8916 = dma.hbm_to_vmem [thread:$0]  (!%p10839_p12), %s12063_s17, 16, %s1797_s2, [#allocation10]  }
  0xce   : > { %p9471_p10 = pnand %p9470_p6, %p9464_p9 }
  0xd0   : > { %9474 = shalt.err (!%p9471_p10)
}
  0xd1   : > { %s12064_s13 = sld [smem:[#allocation100_spill]]  ;;  %s10376_s18 = smov [#allocation15]  }
  0xd2   : > { %s1846_s2 = sshll.u32 %s10376_s18, 4  ;;  %s10377_s28 = smov [#allocation18]   ;;  %s1847_s2 = int_to_ptr.vmem [resolvable:$true] %s1846_s2 }
  0xd3   : > { %s1868_s26 = sshll.u32 %s10377_s28, 4  ;;  %s9486_s8 = scalar_lea.vmem %s1847_s2, 16  ;;  %s1869_s26 = int_to_ptr.vmem [resolvable:$true] %s1868_s26 }
  0xd4   : > { %p9487_p7 = scmp.ne.s32.totalorder %s1847_s2, %s9486_s8  ;;  %s9493_s23 = scalar_lea.vmem %s1847_s2, 32 }
  0xd5   : > { %p9494_p0 = scmp.lt.s32.totalorder %s1847_s2, %s1847_s2  ;;  %p9495_p1 = scmp.lt.s32.totalorder %s9493_s23, %s9486_s8 }
  0xd6   : > { %p9489_p8 = pnand %p9487_p7, %p10847_p13 }
  0xd7   : > { %8922 = dma.hbm_to_vmem [thread:$0]  (!%p10839_p12), %s12064_s13, 16, %s10843_s10, [#allocation13]  }
  0xd8   : > { %p9490_p11 = pneg %p9489_p8  ;;  %p9496_p2 = por %p9495_p1, %p9494_p0 }
  0xda   : > { %p9497_p3 = pnand %p9496_p2, %p9490_p11 }
  0xdc   : > { %9500 = shalt.err (!%p9497_p3)
}
  0xdd   : > { %8928 = dma.hbm_to_vmem [thread:$0]  (!%p10839_p12), %s10600_s24, 16, %s1847_s2, [#allocation16]  }
  0xde   : > { %s9512_s10 = scalar_lea.vmem %s1869_s26, 16  ;;  %s9519_s1 = scalar_lea.vmem %s1869_s26, 32 }
  0xdf   : > { %p9513_p9 = scmp.ne.s32.totalorder %s1869_s26, %s9512_s10  ;;  %p9520_p6 = scmp.lt.s32.totalorder %s1869_s26, %s1869_s26 }
  0xe0   : > { %p9521_p10 = scmp.lt.s32.totalorder %s9519_s1, %s9512_s10 }
  0xe1   : > { %p9515_p4 = pnand %p9513_p9, %p10847_p13 }
  0xe2   : > { %p9522_p7 = por %p9521_p10, %p9520_p6 }
  0xe3   : > { %p9516_p5 = pneg %p9515_p4 }
  0xe5   : > { %p9523_p8 = pnand %p9522_p7, %p9516_p5 }
  0xe7   : > { %9526 = shalt.err (!%p9523_p8)
}
  0xe8   : > { %s12065_s6 = sld [smem:[#allocation103_spill]]  ;;  %s10378_s8 = smov [#allocation21]  }
  0xe9   : > { %s1890_s18 = sshll.u32 %s10378_s8, 4  ;;  %s10379_s2 = smov [#allocation24]   ;;  %s1891_s18 = int_to_ptr.vmem [resolvable:$true] %s1890_s18 }
  0xea   : > { %s1921_s28 = sshll.u32 %s10379_s2, 4  ;;  %s9538_s23 = scalar_lea.vmem %s1891_s18, 16  ;;  %s1922_s28 = int_to_ptr.vmem [resolvable:$true] %s1921_s28 }
  0xeb   : > { %p9539_p11 = scmp.ne.s32.totalorder %s1891_s18, %s9538_s23  ;;  %s9545_s13 = scalar_lea.vmem %s1891_s18, 32 }
  0xec   : > { %p9546_p2 = scmp.lt.s32.totalorder %s1891_s18, %s1891_s18  ;;  %p9547_p3 = scmp.lt.s32.totalorder %s9545_s13, %s9538_s23 }
  0xed   : > { %p9541_p0 = pnand %p9539_p11, %p10847_p13 }
  0xee   : > { %8934 = dma.hbm_to_vmem [thread:$0]  (!%p10839_p12), %s12065_s6, 16, %s1869_s26, [#allocation19]  }
  0xef   : > { %p9542_p1 = pneg %p9541_p0  ;;  %p9548_p9 = por %p9547_p3, %p9546_p2 }
  0xf1   : > { %p9549_p4 = pnand %p9548_p9, %p9542_p1 }
  0xf3   : > { %9552 = shalt.err (!%p9549_p4)
}
  0xf4   : > { %8940 = dma.hbm_to_vmem [thread:$0]  (!%p10839_p12), %s10620_s25, 16, %s1891_s18, [#allocation22]  }
  0xf5   : > { %s9564_s26 = scalar_lea.vmem %s1922_s28, 16  ;;  %s9571_s10 = scalar_lea.vmem %s1922_s28, 32 }
  0xf6   : > { %p9565_p5 = scmp.ne.s32.totalorder %s1922_s28, %s9564_s26  ;;  %p9572_p7 = scmp.lt.s32.totalorder %s1922_s28, %s1922_s28 }
  0xf7   : > { %p9573_p8 = scmp.lt.s32.totalorder %s9571_s10, %s9564_s26 }
  0xf8   : > { %p9567_p6 = pnand %p9565_p5, %p10847_p13 }
  0xf9   : > { %p9574_p11 = por %p9573_p8, %p9572_p7 }
  0xfa   : > { %p9568_p10 = pneg %p9567_p6 }
  0xfc   : > { %p9575_p0 = pnand %p9574_p11, %p9568_p10 }
  0xfe   : > { %9578 = shalt.err (!%p9575_p0)
}
  0xff   : > { %s12066_s9 = sld [smem:[#allocation109_spill]]  ;;  %s10380_s13 = smov [#allocation27]  }
 0x100   : > { %s1949_s1 = sshll.u32 %s10380_s13, 4  ;;  %s10381_s8 = smov [#allocation30]   ;;  %s1950_s1 = int_to_ptr.vmem [resolvable:$true] %s1949_s1 }
 0x101   : > { %s1971_s18 = sshll.u32 %s10381_s8, 4  ;;  %s9590_s2 = scalar_lea.vmem %s1950_s1, 16  ;;  %s1972_s18 = int_to_ptr.vmem [resolvable:$true] %s1971_s18 }
 0x102   : > { %p9591_p1 = scmp.ne.s32.totalorder %s1950_s1, %s9590_s2  ;;  %s9597_s23 = scalar_lea.vmem %s1950_s1, 32 }
 0x103   : > { %p9598_p9 = scmp.lt.s32.totalorder %s1950_s1, %s1950_s1  ;;  %p9599_p4 = scmp.lt.s32.totalorder %s9597_s23, %s9590_s2 }
 0x104   : > { %p9593_p2 = pnand %p9591_p1, %p10847_p13 }
 0x105   : > { %8946 = dma.hbm_to_vmem [thread:$0]  (!%p10839_p12), %s12066_s9, 16, %s1922_s28, [#allocation25]  }
 0x106   : > { %p9594_p3 = pneg %p9593_p2  ;;  %p9600_p5 = por %p9599_p4, %p9598_p9 }
 0x108   : > { %p9601_p6 = pnand %p9600_p5, %p9594_p3 }
 0x10a   : > { %9604 = shalt.err (!%p9601_p6)
}
 0x10b   : > { %s12067_s5 = sld [smem:[#allocation113_spill]]  ;;  %s9616_s28 = scalar_lea.vmem %s1972_s18, 16 }
 0x10c   : > { %p9617_p10 = scmp.ne.s32.totalorder %s1972_s18, %s9616_s28  ;;  %s9623_s26 = scalar_lea.vmem %s1972_s18, 32 }
 0x10d   : > { %p9624_p11 = scmp.lt.s32.totalorder %s1972_s18, %s1972_s18  ;;  %p9625_p0 = scmp.lt.s32.totalorder %s9623_s26, %s9616_s28 }
 0x10e   : > { %p9619_p7 = pnand %p9617_p10, %p10847_p13 }
 0x10f   : > { %p9626_p1 = por %p9625_p0, %p9624_p11 }
 0x110   : > { %p9620_p8 = pneg %p9619_p7 }
 0x111   : > { %8952 = dma.hbm_to_vmem [thread:$0]  (!%p10839_p12), %s12067_s5, 16, %s1950_s1, [#allocation28]  }
 0x112   : > { %p9627_p2 = pnand %p9626_p1, %p9620_p8 }
 0x114   : > { %9630 = shalt.err (!%p9627_p2)
}
 0x115   : > { %s12068_s12 = sld [smem:[#allocation115_spill]]  ;;  %s10382_s10 = smov [#allocation33]  }
 0x116   : > { %s1993_s13 = sshll.u32 %s10382_s10, 4  ;;  %s10383_s1 = smov [#allocation36]   ;;  %s1994_s13 = int_to_ptr.vmem [resolvable:$true] %s1993_s13 }
 0x117   : > { %s2021_s8 = sshll.u32 %s10383_s1, 4  ;;  %s9642_s2 = scalar_lea.vmem %s1994_s13, 16  ;;  %s2022_s8 = int_to_ptr.vmem [resolvable:$true] %s2021_s8 }
 0x118   : > { %p9643_p3 = scmp.ne.s32.totalorder %s1994_s13, %s9642_s2  ;;  %s9649_s23 = scalar_lea.vmem %s1994_s13, 32 }
 0x119   : > { %p9650_p5 = scmp.lt.s32.totalorder %s1994_s13, %s1994_s13  ;;  %p9651_p6 = scmp.lt.s32.totalorder %s9649_s23, %s9642_s2 }
 0x11a   : > { %p9645_p9 = pnand %p9643_p3, %p10847_p13 }
 0x11b   : > { %8958 = dma.hbm_to_vmem [thread:$0]  (!%p10839_p12), %s12068_s12, 16, %s1972_s18, [#allocation31]  }
 0x11c   : > { %p9646_p4 = pneg %p9645_p9  ;;  %p9652_p10 = por %p9651_p6, %p9650_p5 }
 0x11e   : > { %p9653_p7 = pnand %p9652_p10, %p9646_p4 }
 0x120   : > { %9656 = shalt.err (!%p9653_p7)
}
 0x121   : > { %8964 = dma.hbm_to_vmem [thread:$0]  (!%p10839_p12), %s10685_s20, 16, %s1994_s13, [#allocation34]  }
 0x122   : > { %s9668_s18 = scalar_lea.vmem %s2022_s8, 16  ;;  %s9675_s28 = scalar_lea.vmem %s2022_s8, 32 }
 0x123   : > { %p9669_p8 = scmp.ne.s32.totalorder %s2022_s8, %s9668_s18  ;;  %p9676_p1 = scmp.lt.s32.totalorder %s2022_s8, %s2022_s8 }
 0x124   : > { %p9677_p2 = scmp.lt.s32.totalorder %s9675_s28, %s9668_s18 }
 0x125   : > { %p9671_p11 = pnand %p9669_p8, %p10847_p13 }
 0x126   : > { %p9678_p3 = por %p9677_p2, %p9676_p1 }
 0x127   : > { %p9672_p0 = pneg %p9671_p11 }
 0x129   : > { %p9679_p9 = pnand %p9678_p3, %p9672_p0 }
 0x12b   : > { %9682 = shalt.err (!%p9679_p9)
}
 0x12c   : > { %8970 = dma.hbm_to_vmem [thread:$0]  (!%p10839_p12), %s10705_s19, 16, %s2022_s8, [#allocation37]  }
 0x12d   : > { %s10384_s26 = smov [#allocation39]   ;;  %s10385_s13 = smov [#allocation42]  }
 0x12e   : > { %s2049_s10 = sshll.u32 %s10384_s26, 4  ;;  %s2071_s1 = sshll.u32 %s10385_s13, 4  ;;  %s2050_s10 = int_to_ptr.vmem [resolvable:$true] %s2049_s10  ;;  %s2072_s1 = int_to_ptr.vmem [resolvable:$true] %s2071_s1 }
 0x12f   : > { %s9694_s2 = scalar_lea.vmem %s2050_s10, 16  ;;  %s9701_s23 = scalar_lea.vmem %s2050_s10, 32 }
 0x130   : > { %p9695_p4 = scmp.ne.s32.totalorder %s2050_s10, %s9694_s2  ;;  %p9702_p10 = scmp.lt.s32.totalorder %s2050_s10, %s2050_s10 }
 0x131   : > { %p9703_p7 = scmp.lt.s32.totalorder %s9701_s23, %s9694_s2 }
 0x132   : > { %p9697_p5 = pnand %p9695_p4, %p10847_p13 }
 0x133   : > { %p9704_p8 = por %p9703_p7, %p9702_p10 }
 0x134   : > { %p9698_p6 = pneg %p9697_p5 }
 0x136   : > { %p9705_p11 = pnand %p9704_p8, %p9698_p6 }
 0x138   : > { %9708 = shalt.err (!%p9705_p11)
}
 0x139   : > { %8976 = dma.hbm_to_vmem [thread:$0]  (!%p10839_p12), %s10725_s30, 16, %s2050_s10, [#allocation40]  }
 0x13a   : > { %s9720_s8 = scalar_lea.vmem %s2072_s1, 16  ;;  %s9727_s18 = scalar_lea.vmem %s2072_s1, 32 }
 0x13b   : > { %p9721_p0 = scmp.ne.s32.totalorder %s2072_s1, %s9720_s8  ;;  %p9728_p3 = scmp.lt.s32.totalorder %s2072_s1, %s2072_s1 }
 0x13c   : > { %p9729_p9 = scmp.lt.s32.totalorder %s9727_s18, %s9720_s8 }
 0x13d   : > { %p9723_p1 = pnand %p9721_p0, %p10847_p13 }
 0x13e   : > { %p9730_p4 = por %p9729_p9, %p9728_p3 }
 0x13f   : > { %p9724_p2 = pneg %p9723_p1 }
 0x141   : > { %p9731_p5 = pnand %p9730_p4, %p9724_p2 }
 0x143   : > { %9734 = shalt.err (!%p9731_p5)
}
 0x144   : > { %s12069_s3 = sld [smem:[#allocation124_spill]]  ;;  %s10386_s28 = smov [#allocation45]  }
 0x145   : > { %s2093_s26 = sshll.u32 %s10386_s28, 4  ;;  %s10387_s10 = smov [#allocation3]   ;;  %s2094_s26 = int_to_ptr.vmem [resolvable:$true] %s2093_s26 }
 0x146   : > { %s1700_s13 = sshll.u32 %s10387_s10, 4  ;;  %s9746_s2 = scalar_lea.vmem %s2094_s26, 16  ;;  %s1701_s13 = int_to_ptr.vmem [resolvable:$true] %s1700_s13 }
 0x147   : > { %p9747_p6 = scmp.ne.s32.totalorder %s2094_s26, %s9746_s2  ;;  %s9753_s23 = scalar_lea.vmem %s2094_s26, 32 }
 0x148   : > { %p9754_p8 = scmp.lt.s32.totalorder %s2094_s26, %s2094_s26  ;;  %p9755_p11 = scmp.lt.s32.totalorder %s9753_s23, %s9746_s2 }
 0x149   : > { %p9749_p10 = pnand %p9747_p6, %p10847_p13 }
 0x14a   : > { %8982 = dma.hbm_to_vmem [thread:$0]  (!%p10839_p12), %s12069_s3, 16, %s2072_s1, [#allocation43]  }
 0x14b   : > { %p9750_p7 = pneg %p9749_p10  ;;  %p9756_p0 = por %p9755_p11, %p9754_p8 }
 0x14d   : > { %p9757_p1 = pnand %p9756_p0, %p9750_p7 }
 0x14f   : > { %9760 = shalt.err (!%p9757_p1)
}
 0x150   : > { %8988 = dma.hbm_to_vmem [thread:$0]  (!%p10839_p12), %s10745_s29, 16, %s2094_s26, [#allocation46]  }
 0x151   : > { %s9772_s1 = scalar_lea.vmem %s1701_s13, 16  ;;  %s9779_s8 = scalar_lea.vmem %s1701_s13, 32 }
 0x152   : > { %p9773_p2 = scmp.ne.s32.totalorder %s1701_s13, %s9772_s1  ;;  %p9780_p4 = scmp.lt.s32.totalorder %s1701_s13, %s1701_s13 }
 0x153   : > { %p9781_p5 = scmp.lt.s32.totalorder %s9779_s8, %s9772_s1 }
 0x154   : > { %p9775_p3 = pnand %p9773_p2, %p10847_p13 }
 0x155   : > { %p9782_p6 = por %p9781_p5, %p9780_p4 }
 0x156   : > { %p9776_p9 = pneg %p9775_p3 }
 0x158   : > { %p9783_p10 = pnand %p9782_p6, %p9776_p9 }
 0x15a   : > { %9786 = shalt.err (!%p9783_p10)
}
 0x15b   : > { %s12070_s18 = sld [smem:[#allocation72_spill]]  ;;  %s10388_s28 = smov [#allocation8]  }
 0x15c   : > { %s1731_s10 = sshll.u32 %s10388_s28, 4  ;;  %s10389_s26 = smov [#allocation11]   ;;  %s1732_s10 = int_to_ptr.vmem [resolvable:$true] %s1731_s10 }
 0x15d   : > { %s1807_s2 = sshll.u32 %s10389_s26, 4  ;;  %s9798_s23 = scalar_lea.vmem %s1732_s10, 16  ;;  %s1808_s2 = int_to_ptr.vmem [resolvable:$true] %s1807_s2 }
 0x15e   : > { %p9799_p7 = scmp.ne.s32.totalorder %s1732_s10, %s9798_s23  ;;  %s9805_s3 = scalar_lea.vmem %s1732_s10, 32 }
 0x15f   : > { %p9806_p0 = scmp.lt.s32.totalorder %s1732_s10, %s1732_s10  ;;  %p9807_p1 = scmp.lt.s32.totalorder %s9805_s3, %s9798_s23 }
 0x160   : > { %p9801_p8 = pnand %p9799_p7, %p10847_p13 }
 0x161   : > { %8907 = dma.hbm_to_vmem [thread:$0]  (!%p10839_p12), %s12070_s18, 16, %s1701_s13, [#allocation4]  }
 0x162   : > { %p9802_p11 = pneg %p9801_p8  ;;  %p9808_p2 = por %p9807_p1, %p9806_p0 }
 0x164   : > { %p9809_p3 = pnand %p9808_p2, %p9802_p11 }
 0x166   : > { %9812 = shalt.err (!%p9809_p3)
}
 0x167   : > { %s12071_s1 = sld [smem:[#allocation77_spill]]  ;;  %s9824_s13 = scalar_lea.vmem %s1808_s2, 16 }
 0x168   : > { %p9825_p9 = scmp.ne.s32.totalorder %s1808_s2, %s9824_s13  ;;  %s9831_s8 = scalar_lea.vmem %s1808_s2, 32 }
 0x169   : > { %p9832_p6 = scmp.lt.s32.totalorder %s1808_s2, %s1808_s2  ;;  %p9833_p10 = scmp.lt.s32.totalorder %s9831_s8, %s9824_s13 }
 0x16a   : > { %p9827_p4 = pnand %p9825_p9, %p10847_p13 }
 0x16b   : > { %p9834_p7 = por %p9833_p10, %p9832_p6 }
 0x16c   : > { %p9828_p5 = pneg %p9827_p4 }
 0x16d   : > { %8913 = dma.hbm_to_vmem [thread:$0]  (!%p10839_p12), %s12071_s1, 16, %s1732_s10, [#allocation7]  }
 0x16e   : > { %p9835_p8 = pnand %p9834_p7, %p9828_p5 }
 0x170   : > { %9838 = shalt.err (!%p9835_p8)
}
 0x171   : > { %s12072_s3 = sld [smem:[#allocation97_spill]]  ;;  %s10390_s18 = smov [#allocation14]  }
 0x172   : > { %s1835_s28 = sshll.u32 %s10390_s18, 4  ;;  %s10391_s10 = smov [#allocation17]   ;;  %s1836_s28 = int_to_ptr.vmem [resolvable:$true] %s1835_s28 }
 0x173   : > { %s1857_s26 = sshll.u32 %s10391_s10, 4  ;;  %s9850_s23 = scalar_lea.vmem %s1836_s28, 16  ;;  %s1858_s26 = int_to_ptr.vmem [resolvable:$true] %s1857_s26 }
 0x174   : > { %p9851_p11 = scmp.ne.s32.totalorder %s1836_s28, %s9850_s23  ;;  %s9857_s1 = scalar_lea.vmem %s1836_s28, 32 }
 0x175   : > { %p9858_p2 = scmp.lt.s32.totalorder %s1836_s28, %s1836_s28  ;;  %p9859_p3 = scmp.lt.s32.totalorder %s9857_s1, %s9850_s23 }
 0x176   : > { %p9853_p0 = pnand %p9851_p11, %p10847_p13 }
 0x177   : > { %8919 = dma.hbm_to_vmem [thread:$0]  (!%p10839_p12), %s12072_s3, 16, %s1808_s2, [#allocation10]  }
 0x178   : > { %p9854_p1 = pneg %p9853_p0  ;;  %p9860_p9 = por %p9859_p3, %p9858_p2 }
 0x17a   : > { %p9861_p4 = pnand %p9860_p9, %p9854_p1 }
 0x17c   : > { %9864 = shalt.err (!%p9861_p4)
}
 0x17d   : > { %s12073_s13 = sld [smem:[#allocation101_spill]]  ;;  %s9876_s2 = scalar_lea.vmem %s1858_s26, 16 }
 0x17e   : > { %p9877_p5 = scmp.ne.s32.totalorder %s1858_s26, %s9876_s2  ;;  %s9883_s8 = scalar_lea.vmem %s1858_s26, 32 }
 0x17f   : > { %p9884_p7 = scmp.lt.s32.totalorder %s1858_s26, %s1858_s26  ;;  %p9885_p8 = scmp.lt.s32.totalorder %s9883_s8, %s9876_s2 }
 0x180   : > { %p9879_p6 = pnand %p9877_p5, %p10847_p13 }
 0x181   : > { %p9886_p11 = por %p9885_p8, %p9884_p7 }
 0x182   : > { %p9880_p10 = pneg %p9879_p6 }
 0x183   : > { %8925 = dma.hbm_to_vmem [thread:$0]  (!%p10839_p12), %s12073_s13, 16, %s1836_s28, [#allocation13]  }
 0x184   : > { %p9887_p0 = pnand %p9886_p11, %p9880_p10 }
 0x186   : > { %9890 = shalt.err (!%p9887_p0)
}
 0x187   : > { %s12074_s3 = sld [smem:[#allocation102_spill]]  ;;  %s10392_s18 = smov [#allocation20]  }
 0x188   : > { %s1879_s10 = sshll.u32 %s10392_s18, 4  ;;  %s10393_s28 = smov [#allocation23]   ;;  %s1880_s10 = int_to_ptr.vmem [resolvable:$true] %s1879_s10 }
 0x189   : > { %s1901_s23 = sshll.u32 %s10393_s28, 4  ;;  %s9902_s1 = scalar_lea.vmem %s1880_s10, 16  ;;  %s1902_s23 = int_to_ptr.vmem [resolvable:$true] %s1901_s23 }
 0x18a   : > { %p9903_p1 = scmp.ne.s32.totalorder %s1880_s10, %s9902_s1  ;;  %s9909_s13 = scalar_lea.vmem %s1880_s10, 32 }
 0x18b   : > { %p9910_p9 = scmp.lt.s32.totalorder %s1880_s10, %s1880_s10  ;;  %p9911_p4 = scmp.lt.s32.totalorder %s9909_s13, %s9902_s1 }
 0x18c   : > { %p9905_p2 = pnand %p9903_p1, %p10847_p13 }
 0x18d   : > { %8931 = dma.hbm_to_vmem [thread:$0]  (!%p10839_p12), %s12074_s3, 16, %s1858_s26, [#allocation16]  }
 0x18e   : > { %p9906_p3 = pneg %p9905_p2  ;;  %p9912_p5 = por %p9911_p4, %p9910_p9 }
 0x190   : > { %p9913_p6 = pnand %p9912_p5, %p9906_p3 }
 0x192   : > { %9916 = shalt.err (!%p9913_p6)
}
 0x193   : > { %s12075_s2 = sld [smem:[#allocation104_spill]]  ;;  %s9928_s26 = scalar_lea.vmem %s1902_s23, 16 }
 0x194   : > { %p9929_p10 = scmp.ne.s32.totalorder %s1902_s23, %s9928_s26  ;;  %s9935_s8 = scalar_lea.vmem %s1902_s23, 32 }
 0x195   : > { %p9936_p11 = scmp.lt.s32.totalorder %s1902_s23, %s1902_s23  ;;  %p9937_p0 = scmp.lt.s32.totalorder %s9935_s8, %s9928_s26 }
 0x196   : > { %p9931_p7 = pnand %p9929_p10, %p10847_p13 }
 0x197   : > { %p9938_p1 = por %p9937_p0, %p9936_p11 }
 0x198   : > { %p9932_p8 = pneg %p9931_p7 }
 0x199   : > { %8937 = dma.hbm_to_vmem [thread:$0]  (!%p10839_p12), %s12075_s2, 16, %s1880_s10, [#allocation19]  }
 0x19a   : > { %p9939_p2 = pnand %p9938_p1, %p9932_p8 }
 0x19c   : > { %9942 = shalt.err (!%p9939_p2)
}
 0x19d   : > { %s12076_s3 = sld [smem:[#allocation105_spill]]  ;;  %s10394_s18 = smov [#allocation26]  }
 0x19e   : > { %s1932_s28 = sshll.u32 %s10394_s18, 4  ;;  %s10395_s10 = smov [#allocation29]   ;;  %s1933_s28 = int_to_ptr.vmem [resolvable:$true] %s1932_s28 }
 0x19f   : > { %s1960_s1 = sshll.u32 %s10395_s10, 4  ;;  %s9954_s13 = scalar_lea.vmem %s1933_s28, 16  ;;  %s1961_s1 = int_to_ptr.vmem [resolvable:$true] %s1960_s1 }
 0x1a0   : > { %p9955_p3 = scmp.ne.s32.totalorder %s1933_s28, %s9954_s13  ;;  %s9961_s2 = scalar_lea.vmem %s1933_s28, 32 }
 0x1a1   : > { %p9962_p5 = scmp.lt.s32.totalorder %s1933_s28, %s1933_s28  ;;  %p9963_p6 = scmp.lt.s32.totalorder %s9961_s2, %s9954_s13 }
 0x1a2   : > { %p9957_p9 = pnand %p9955_p3, %p10847_p13 }
 0x1a3   : > { %8943 = dma.hbm_to_vmem [thread:$0]  (!%p10839_p12), %s12076_s3, 16, %s1902_s23, [#allocation22]  }
 0x1a4   : > { %p9958_p4 = pneg %p9957_p9  ;;  %p9964_p10 = por %p9963_p6, %p9962_p5 }
 0x1a6   : > { %p9965_p7 = pnand %p9964_p10, %p9958_p4 }
 0x1a8   : > { %9968 = shalt.err (!%p9965_p7)
}
 0x1a9   : > { %s12077_s26 = sld [smem:[#allocation110_spill]]  ;;  %s9980_s23 = scalar_lea.vmem %s1961_s1, 16 }
 0x1aa   : > { %p9981_p8 = scmp.ne.s32.totalorder %s1961_s1, %s9980_s23  ;;  %s9987_s8 = scalar_lea.vmem %s1961_s1, 32 }
 0x1ab   : > { %p9988_p1 = scmp.lt.s32.totalorder %s1961_s1, %s1961_s1  ;;  %p9989_p2 = scmp.lt.s32.totalorder %s9987_s8, %s9980_s23 }
 0x1ac   : > { %p9983_p11 = pnand %p9981_p8, %p10847_p13 }
 0x1ad   : > { %p9990_p3 = por %p9989_p2, %p9988_p1 }
 0x1ae   : > { %p9984_p0 = pneg %p9983_p11 }
 0x1af   : > { %8949 = dma.hbm_to_vmem [thread:$0]  (!%p10839_p12), %s12077_s26, 16, %s1933_s28, [#allocation25]  }
 0x1b0   : > { %p9991_p9 = pnand %p9990_p3, %p9984_p0 }
 0x1b2   : > { %9994 = shalt.err (!%p9991_p9)
}
 0x1b3   : > { %s12078_s3 = sld [smem:[#allocation114_spill]]  ;;  %s10396_s18 = smov [#allocation32]  }
 0x1b4   : > { %s1982_s10 = sshll.u32 %s10396_s18, 4  ;;  %s10397_s28 = smov [#allocation35]   ;;  %s1983_s10 = int_to_ptr.vmem [resolvable:$true] %s1982_s10 }
 0x1b5   : > { %s2004_s13 = sshll.u32 %s10397_s28, 4  ;;  %s10006_s2 = scalar_lea.vmem %s1983_s10, 16  ;;  %s2005_s13 = int_to_ptr.vmem [resolvable:$true] %s2004_s13 }
 0x1b6   : > { %p10007_p4 = scmp.ne.s32.totalorder %s1983_s10, %s10006_s2  ;;  %s10013_s26 = scalar_lea.vmem %s1983_s10, 32 }
 0x1b7   : > { %p10014_p10 = scmp.lt.s32.totalorder %s1983_s10, %s1983_s10  ;;  %p10015_p7 = scmp.lt.s32.totalorder %s10013_s26, %s10006_s2 }
 0x1b8   : > { %p10009_p5 = pnand %p10007_p4, %p10847_p13 }
 0x1b9   : > { %8955 = dma.hbm_to_vmem [thread:$0]  (!%p10839_p12), %s12078_s3, 16, %s1961_s1, [#allocation28]  }
 0x1ba   : > { %p10010_p6 = pneg %p10009_p5  ;;  %p10016_p8 = por %p10015_p7, %p10014_p10 }
 0x1bc   : > { %p10017_p11 = pnand %p10016_p8, %p10010_p6 }
 0x1be   : > { %10020 = shalt.err (!%p10017_p11)
}
 0x1bf   : > { %s12079_s23 = sld [smem:[#allocation116_spill]]  ;;  %s10032_s1 = scalar_lea.vmem %s2005_s13, 16 }
 0x1c0   : > { %p10033_p0 = scmp.ne.s32.totalorder %s2005_s13, %s10032_s1  ;;  %s10039_s8 = scalar_lea.vmem %s2005_s13, 32 }
 0x1c1   : > { %p10040_p3 = scmp.lt.s32.totalorder %s2005_s13, %s2005_s13  ;;  %p10041_p9 = scmp.lt.s32.totalorder %s10039_s8, %s10032_s1 }
 0x1c2   : > { %p10035_p1 = pnand %p10033_p0, %p10847_p13 }
 0x1c3   : > { %p10042_p4 = por %p10041_p9, %p10040_p3 }
 0x1c4   : > { %p10036_p2 = pneg %p10035_p1 }
 0x1c5   : > { %8961 = dma.hbm_to_vmem [thread:$0]  (!%p10839_p12), %s12079_s23, 16, %s1983_s10, [#allocation31]  }
 0x1c6   : > { %p10043_p5 = pnand %p10042_p4, %p10036_p2 }
 0x1c8   : > { %10046 = shalt.err (!%p10043_p5)
}
 0x1c9   : > { %s12080_s3 = sld [smem:[#allocation117_spill]]  ;;  %s10398_s18 = smov [#allocation38]  }
 0x1ca   : > { %s2032_s28 = sshll.u32 %s10398_s18, 4  ;;  %s10399_s10 = smov [#allocation41]   ;;  %s2033_s28 = int_to_ptr.vmem [resolvable:$true] %s2032_s28 }
 0x1cb   : > { %s2060_s2 = sshll.u32 %s10399_s10, 4  ;;  %s10058_s26 = scalar_lea.vmem %s2033_s28, 16  ;;  %s2061_s2 = int_to_ptr.vmem [resolvable:$true] %s2060_s2 }
 0x1cc   : > { %p10059_p6 = scmp.ne.s32.totalorder %s2033_s28, %s10058_s26  ;;  %s10065_s23 = scalar_lea.vmem %s2033_s28, 32 }
 0x1cd   : > { %p10066_p8 = scmp.lt.s32.totalorder %s2033_s28, %s2033_s28  ;;  %p10067_p11 = scmp.lt.s32.totalorder %s10065_s23, %s10058_s26 }
 0x1ce   : > { %p10061_p10 = pnand %p10059_p6, %p10847_p13 }
 0x1cf   : > { %8967 = dma.hbm_to_vmem [thread:$0]  (!%p10839_p12), %s12080_s3, 16, %s2005_s13, [#allocation34]  }
 0x1d0   : > { %p10062_p7 = pneg %p10061_p10  ;;  %p10068_p0 = por %p10067_p11, %p10066_p8 }
 0x1d2   : > { %p10069_p1 = pnand %p10068_p0, %p10062_p7 }
 0x1d4   : > { %10072 = shalt.err (!%p10069_p1)
}
 0x1d5   : > { %s12081_s1 = sld [smem:[#allocation120_spill]]  ;;  %s10084_s13 = scalar_lea.vmem %s2061_s2, 16 }
 0x1d6   : > { %p10085_p2 = scmp.ne.s32.totalorder %s2061_s2, %s10084_s13  ;;  %s10091_s8 = scalar_lea.vmem %s2061_s2, 32 }
 0x1d7   : > { %p10092_p4 = scmp.lt.s32.totalorder %s2061_s2, %s2061_s2  ;;  %p10093_p5 = scmp.lt.s32.totalorder %s10091_s8, %s10084_s13 }
 0x1d8   : > { %p10087_p3 = pnand %p10085_p2, %p10847_p13 }
 0x1d9   : > { %p10094_p6 = por %p10093_p5, %p10092_p4 }
 0x1da   : > { %p10088_p9 = pneg %p10087_p3 }
 0x1db   : > { %8973 = dma.hbm_to_vmem [thread:$0]  (!%p10839_p12), %s12081_s1, 16, %s2033_s28, [#allocation37]  }
 0x1dc   : > { %p10095_p10 = pnand %p10094_p6, %p10088_p9 }
 0x1de   : > { %10098 = shalt.err (!%p10095_p10)
}
 0x1df   : > { %s12082_s3 = sld [smem:[#allocation123_spill]]  ;;  %s10400_s18 = smov [#allocation44]  }
 0x1e0   : > { %s2082_s10 = sshll.u32 %s10400_s18, 4  ;;  %s10401_s28 = smov [#allocation47]   ;;  %s2083_s10 = int_to_ptr.vmem [resolvable:$true] %s2082_s10 }
 0x1e1   : > { %s2104_s26 = sshll.u32 %s10401_s28, 4  ;;  %s10110_s23 = scalar_lea.vmem %s2083_s10, 16  ;;  %s2105_s26 = int_to_ptr.vmem [resolvable:$true] %s2104_s26 }
 0x1e2   : > { %p10111_p7 = scmp.ne.s32.totalorder %s2083_s10, %s10110_s23  ;;  %s10117_s1 = scalar_lea.vmem %s2083_s10, 32 }
 0x1e3   : > { %p10118_p0 = scmp.lt.s32.totalorder %s2083_s10, %s2083_s10  ;;  %p10119_p1 = scmp.lt.s32.totalorder %s10117_s1, %s10110_s23 }
 0x1e4   : > { %p10113_p8 = pnand %p10111_p7, %p10847_p13 }
 0x1e5   : > { %8979 = dma.hbm_to_vmem [thread:$0]  (!%p10839_p12), %s12082_s3, 16, %s2061_s2, [#allocation40]  }
 0x1e6   : > { %p10114_p11 = pneg %p10113_p8  ;;  %p10120_p2 = por %p10119_p1, %p10118_p0 }
 0x1e8   : > { %p10121_p3 = pnand %p10120_p2, %p10114_p11 }
 0x1ea   : > { %10124 = shalt.err (!%p10121_p3)
}
 0x1eb   : > { %s12083_s13 = sld [smem:[#allocation125_spill]]  ;;  %s10136_s2 = scalar_lea.vmem %s2105_s26, 16 }
 0x1ec   : > { %p10137_p9 = scmp.ne.s32.totalorder %s2105_s26, %s10136_s2  ;;  %s10143_s8 = scalar_lea.vmem %s2105_s26, 32 }
 0x1ed   : > { %p10144_p6 = scmp.lt.s32.totalorder %s2105_s26, %s2105_s26  ;;  %p10145_p10 = scmp.lt.s32.totalorder %s10143_s8, %s10136_s2 }
 0x1ee   : > { %p10139_p4 = pnand %p10137_p9, %p10847_p13 }
 0x1ef   : > { %p10146_p7 = por %p10145_p10, %p10144_p6 }
 0x1f0   : > { %p10140_p5 = pneg %p10139_p4 }
 0x1f1   : > { %8985 = dma.hbm_to_vmem [thread:$0]  (!%p10839_p12), %s12083_s13, 16, %s2083_s10, [#allocation43]  }
 0x1f2   : > { %p10147_p8 = pnand %p10146_p7, %p10140_p5 }
 0x1f4   : > { %10150 = shalt.err (!%p10147_p8)
}
 0x1f5   : > { %s12084_s3 = sld [smem:[#allocation126_spill]]  ;;  %s10402_s18 = smov [#allocation48]  }
 0x1f6   : > { %s2124_s28 = sshll.u32 %s10402_s18, 4  ;;  %s2125_s28 = int_to_ptr.vmem [resolvable:$true] %s2124_s28 }
 0x1f7   : > { %s10162_s10 = scalar_lea.vmem %s2125_s28, 16  ;;  %s10169_s23 = scalar_lea.vmem %s2125_s28, 32 }
 0x1f8   : > { %p10163_p11 = scmp.ne.s32.totalorder %s2125_s28, %s10162_s10  ;;  %p10170_p2 = scmp.lt.s32.totalorder %s2125_s28, %s2125_s28 }
 0x1f9   : > { %p10171_p3 = scmp.lt.s32.totalorder %s10169_s23, %s10162_s10 }
 0x1fa   : > { %p10165_p0 = pnand %p10163_p11, %p10847_p13 }
 0x1fb   : > { %8991 = dma.hbm_to_vmem [thread:$0]  (!%p10839_p12), %s12084_s3, 16, %s2105_s26, [#allocation46]  }
 0x1fc   : > { %p10166_p1 = pneg %p10165_p0  ;;  %p10172_p9 = por %p10171_p3, %p10170_p2 }
 0x1fe   : > { %p10173_p4 = pnand %p10172_p9, %p10166_p1 }
 0x200   : > { %10176 = shalt.err (!%p10173_p4)
}
 0x201   : > { %s12085_s4 = sld [smem:[#allocation129_spill]]  ;;  %p12086_p5 = scmp.ne.s32.totalorder %s12059_s11, 0 }
 0x202   : > { %p12087_p6 = scmp.eq.s32.totalorder (!%p12086_p5), %s10803_s22, 0 }
 0x203   : > { %2154 = sbr.rel (%p12086_p5) target bundleno = 14160 (0x3750), region = 300 }
 0x207   : > { %8994 = dma.hbm_to_vmem [thread:$0]  (!%p10839_p12), %s12085_s4, 16, %s2125_s28, [#allocation49]  }
 0x208   : > { %10220 = dma.done.wait (%p12087_p6), [#allocation4], 16   ;;  %p12088_p10 = pmov %p12087_p6 }
 0x209   : > { %p12089_p13 = pmov %p12087_p6 }
 0x20a   : > { %10222 = vsyncadd (%p12088_p10), [#allocation4], 4294967280 }
 0x20b   : > { %10224 = dma.done.wait (%p12089_p13), [#allocation7], 32   ;;  %p12090_p7 = pmov %p12087_p6 }
 0x20c   : > { %p12091_p8 = pmov %p12087_p6 }
 0x20d   : > { %10226 = vsyncadd (%p12090_p7), [#allocation7], 4294967264 }
 0x20e   : > { %10228 = dma.done.wait (%p12091_p8), [#allocation10], 32   ;;  %p12092_p12 = pmov %p12087_p6 }
 0x20f   : > { %p12093_p11 = pmov %p12087_p6 }
 0x210   : > { %10230 = vsyncadd (%p12092_p12), [#allocation10], 4294967264 }
 0x211   : > { %10232 = dma.done.wait (%p12093_p11), [#allocation13], 32   ;;  %p12094_p0 = pmov %p12087_p6 }
 0x213   : > { %10234 = vsyncadd (%p12094_p0), [#allocation13], 4294967264  ;;  %p12095_p1 = pmov %p12094_p0 }
 0x214   : > { %p12096_p2 = pmov %p12094_p0 }
 0x215   : > { %10236 = dma.done.wait (%p12095_p1), [#allocation16], 32  }
 0x216   : > { %10238 = vsyncadd (%p12096_p2), [#allocation16], 4294967264  ;;  %p12097_p3 = pmov %p12094_p0 }
 0x217   : > { %p12098_p9 = pmov %p12094_p0 }
 0x218   : > { %10240 = dma.done.wait (%p12097_p3), [#allocation19], 32  }
 0x219   : > { %10242 = vsyncadd (%p12098_p9), [#allocation19], 4294967264  ;;  %p12099_p4 = pmov %p12094_p0 }
 0x21a   : > { %p12100_p5 = pmov %p12094_p0 }
 0x21b   : > { %10244 = dma.done.wait (%p12099_p4), [#allocation22], 32  }
 0x21c   : > { %10246 = vsyncadd (%p12100_p5), [#allocation22], 4294967264  ;;  %p12101_p6 = pmov %p12094_p0 }
 0x21d   : > { %p12102_p10 = pmov %p12094_p0 }
 0x21e   : > { %10248 = dma.done.wait (%p12101_p6), [#allocation25], 32  }
 0x21f   : > { %10250 = vsyncadd (%p12102_p10), [#allocation25], 4294967264  ;;  %p12103_p13 = pmov %p12094_p0 }
 0x220   : > { %p12104_p7 = pmov %p12094_p0 }
 0x221   : > { %10252 = dma.done.wait (%p12103_p13), [#allocation28], 32  }
 0x222   : > { %10254 = vsyncadd (%p12104_p7), [#allocation28], 4294967264  ;;  %p12105_p8 = pmov %p12094_p0 }
 0x223   : > { %p12106_p12 = pmov %p12094_p0 }
 0x224   : > { %10256 = dma.done.wait (%p12105_p8), [#allocation31], 32  }
 0x225   : > { %10258 = vsyncadd (%p12106_p12), [#allocation31], 4294967264  ;;  %p12107_p11 = pmov %p12094_p0 }
 0x227   : > { %10260 = dma.done.wait (%p12107_p11), [#allocation34], 32  }
 0x228   : > { %10262 = vsyncadd (%p12094_p0), [#allocation34], 4294967264  ;;  %p12108_p1 = pmov %p12094_p0 }
 0x229   : > { %p12109_p2 = pmov %p12094_p0 }
 0x22a   : > { %10264 = dma.done.wait (%p12108_p1), [#allocation37], 32  }
 0x22b   : > { %10266 = vsyncadd (%p12109_p2), [#allocation37], 4294967264  ;;  %p12110_p3 = pmov %p12094_p0 }
 0x22c   : > { %p12111_p9 = pmov %p12094_p0 }
 0x22d   : > { %10268 = dma.done.wait (%p12110_p3), [#allocation40], 32  }
 0x22e   : > { %10270 = vsyncadd (%p12111_p9), [#allocation40], 4294967264  ;;  %p12112_p4 = pmov %p12094_p0 }
 0x22f   : > { %p12113_p5 = pmov %p12094_p0 }
 0x230   : > { %10272 = dma.done.wait (%p12112_p4), [#allocation43], 32  }
 0x231   : > { %10274 = vsyncadd (%p12113_p5), [#allocation43], 4294967264  ;;  %p12114_p6 = pmov %p12094_p0 }
 0x232   : > { %p12115_p10 = pmov %p12094_p0 }
 0x233   : > { %10276 = dma.done.wait (%p12114_p6), [#allocation46], 32  }
 0x234   : > { %10278 = vsyncadd (%p12115_p10), [#allocation46], 4294967264  ;;  %p12116_p13 = pmov %p12094_p0 }
 0x235   : > { %p12117_p7 = pmov %p12094_p0 }
 0x236   : > { %10280 = dma.done.wait (%p12116_p13), [#allocation49], 16  }
 0x237   : > { %10282 = vsyncadd (%p12117_p7), [#allocation49], 4294967280  ;;  %s12118_s0 = sld [smem:[#allocation68_spill]]  ;;  %p2431_p8 = scmp.lt.s32.totalorder %s10803_s22, 1  ;;  %v10403_v0 = vmov 0   ;;  %v10404_v1 = vmov 0.0   ;;  %v2441_v11 = vlaneseq }
 0x238   : > { %s12119_s16 = sld [smem:[#allocation108_spill]]  ;;  %9210 = vset.pattern.permute.xlu0 %v10403_v0  ;;  %8254 = vmatprep.subr.bf16.mxu0 %v10404_v1  ;;  %vm10405_vm0 = vmmov 0   ;;  %v10406_v14 = vmov 1.0|1.0   ;;  %v2554_v18 = vld [vmem:[%s10765_s21] sm:$0xff]  ;;  %vm2580_vm3 = vcmask 261120  }
 0x239   : > { %s11076_s26 = scalar_select %p2431_p8, %s10803_s22, 1  ;;  %8274 = vmatprep.subr.bf16.mxu1 %v10404_v1  ;;  %8270 = vmatprep.mubr.msk.bf16.mxu0 %vm10405_vm0, %v10404_v1  ;;  %v11104_v12 = vand.u32 127, %v2441_v11  ;;  %v7881_v25 = vld [vmem:[#allocation33] ss:$0 sm:$0xff]  ;;  %vm2628_vm4 = vcmask 64512   ;;  %vm2693_vm5 = vcmask 1043456  }
 0x23a   : > { %8278 = vmatprep.mubr.msk.bf16.mxu1 %vm10405_vm0, %v10404_v1  ;;  %s12121_s2 = sld [smem:[#allocation118_spill]]  ;;  %s11972_s8 = smov 96   ;;  %vm2853_vm6 = vcmask 130112   ;;  %vm2970_vm7 = vcmask 195712   ;;  %vm3087_vm8 = vcmask 261312   ;;  %vm3296_vm9 = vcmask 523264  }
 0x23b   : > { %s11946_s1 = sshll.u32 %s11076_s26, 3  ;;  %s11947_s3 = smov 64  }
 0x23c   : > { %s11968_s18 = smov 120   ;;  %s11970_s28 = smov 80  }
 0x23d   : > { %s2434_s13 = scalar_lea.vmem %s12118_s0, %s11946_s1  ;;  %s11966_s10 = smov 112  }
 0x23e   : > { %s12120_s11 = smov %s12119_s16  ;;  %v2440_v2 = vld [vmem:[%s2434_s13] sm:$0xff]  ;;  %v9211_v3 = vld [vmem:[%s12119_s16 + $0x38] sm:$0xff]   ;;  %s11961_s23 = smov 72  }
 0x23f   : > { %2444 = vperm.xlu0 %9210, %v2440_v2   ;;  %8255 = vmatpush3.bf16.msra.mxu0 %v9211_v3  ;;  %v9212_v4 = vld [vmem:[%s12120_s11 + $0x30] sm:$0xff]   ;;  %v9213_v5 = vld [vmem:[%s12120_s11 + $0x28] sm:$0xff]   ;;  %v9214_v6 = vld [vmem:[%s12120_s11 + $0x20] sm:$0xff]   ;;  %s11974_s0 = smov 88   ;;  %s11964_s16 = smov 104  }
 0x240   : > { %8256 = vmatprep.subr.bf16.mxu0 %v10404_v1  ;;  %v9215_v7 = vld [vmem:[%s12120_s11 + $0x18] sm:$0xff]   ;;  %v9216_v8 = vld [vmem:[%s12120_s11 + $0x10] sm:$0xff]   ;;  %v9217_v9 = vld [vmem:[%s12120_s11 + $0x8] sm:$0xff]   ;;  %s11953_s13 = smov 56   ;;  %s11951_s1 = smov 40  }
 0x241   : > { %v9218_v10 = vld [vmem:[%s12120_s11] sm:$0xff]   ;;  %v9219_v15 = vld [vmem:[%s12121_s2 + $0x8] sm:$0xff]   ;;  %s12135_s4 = sld [smem:[#allocation69_spill]]  ;;  %s12137_s6 = sshll.u32 %s11076_s26, 3 }
 0x242   : > { %8275 = vmatpush3.bf16.msra.mxu1 %v9219_v15  ;;  %v9220_v16 = vld [vmem:[%s12121_s2] sm:$0xff]   ;;  %s12133_s2 = smov 16   ;;  %s12136_s5 = sld [smem:[#allocation121_spill]] }
 0x243   : > { %8257 = vmatpush3.bf16.msra.mxu0 %v9212_v4  ;;  %8276 = vmatprep.subr.bf16.mxu1 %v10404_v1  ;;  %s12142_s26 = smov 96   ;;  %s12151_s12 = sld [smem:[#allocation73_spill]] }
 0x244   : > { %8258 = vmatprep.subr.bf16.mxu0 %v10404_v1  ;;  %s12155_s17 = sld [smem:[#allocation70_spill]]  ;;  %p12175_p11 = scmp.ne.s32.totalorder %s12056_s7, 0 }
 0x246   : > { %8277 = vmatpush3.bf16.msra.mxu1 %v9220_v16 }
 0x247   : > { %8259 = vmatpush3.bf16.msra.mxu0 %v9213_v5  ;;  %8282 = vmatprep.subr.bf16.mxu1 %v10404_v1  ;;  %s2438_s9 = scalar_lea.vmem %s12135_s4, %s12137_s6  ;;  %s12140_s6 = sld [smem:[#allocation86_spill]] }
 0x248   : > { %8260 = vmatprep.subr.bf16.mxu0 %v10404_v1  ;;  %s12141_s4 = smov 88  }
 0x24b   : > { %8261 = vmatpush3.bf16.msra.mxu0 %v9214_v6 }
 0x24c   : > { %8262 = vmatprep.subr.bf16.mxu0 %v10404_v1 }
 0x24f   : > { %8263 = vmatpush3.bf16.msra.mxu0 %v9215_v7 }
 0x250   : > { %8264 = vmatprep.subr.bf16.mxu0 %v10404_v1 }
 0x253   : > { %8265 = vmatpush3.bf16.msra.mxu0 %v9216_v8 }
 0x254   : > { %8266 = vmatprep.subr.bf16.mxu0 %v10404_v1 }
 0x257   : > { %8267 = vmatpush3.bf16.msra.mxu0 %v9217_v9 }
 0x258   : > { %8268 = vmatprep.subr.bf16.mxu0 %v10404_v1 }
 0x25b   : > { %8269 = vmatpush3.bf16.msra.mxu0 %v9218_v10 }
 0x25c   : > { %8300 = vmatprep.subr.bf16.mxu0 %v10404_v1 }
 0x2ba   : > { %v2445_v13 = vpop.permute.xlu0 %2444 }
 0x2bb   : > { %vm2446_vm1 = vcmp.eq.s32.totalorder %v11104_v12, %v2445_v13 }
 0x2bc   : > { %vm7879_vm2 = vmpackc.low %vm2446_vm1, %vm2446_vm1 }
 0x2bd   : > { %8271 = vmatmul.mubr.msk.bf16.vlgmr.msra.gmra.mxu0 %vm7879_vm2, %v10406_v14 }
 0x2be   : > { %8302 = vmatprep.mubr.msk.bf16.mxu0 %vm10405_vm0, %v10404_v1 }
 0x37d   : > { %v2547_v17 = vpop.f32.mrf.mxu0 }
 0x37e   : > { %v2553_v19 = vmul.f32 5.656854, %v2547_v17 }
 0x37f   : > { %v8272_v20 = vpop.f32.mrf.mxu0 }
 0x380   : > { %v11115_v21 = vadd.f32 %v2554_v18, %v2553_v19 }
 0x381   : > { %v2550_v22 = vpop.f32.mrf.mxu0 }
 0x382   : > { %v2556_v23 = vpack.c.bf16 %v11115_v21, %v11115_v21 }
 0x383   : > { %v8273_v24 = vpop.f32.mrf.mxu0 }
 0x384   : > { %8279 = vmatmul.mubr.msk.bf16.vlgmr.msra.gmra.mxu1 %vm2580_vm3, %v2556_v23 }
 0x385   : > { %8284 = vmatprep.mubr.msk.bf16.mxu1 %vm10405_vm0, %v10404_v1 }
 0x444   : > { %v2618_v26 = vpop.f32.mrf.mxu1 }
 0x445   : > { %v2619_v27 = vadd.f32 %v7881_v25, %v2618_v26 }
 0x446   : > { %v8280_v28 = vpop.f32.mrf.mxu1 }
 0x447   : > { %v11122_v29 = vpack.c.bf16 %v2619_v27, %v2619_v27 }
 0x448   : > { %v2621_v30 = vpop.f32.mrf.mxu1 }
 0x449   : > { %2626 = vrot.lane.b32.xlu0 %v11122_v29, %s11972_s8 }
 0x44a   : > { %v8281_v31 = vpop.f32.mrf.mxu1 }
 0x44d   : > { %2688 = vrot.lane.b32.xlu0 %v11122_v29, %s11947_s3  ;;  %s11949_s3 = smov 48  }
 0x451   : > { %2738 = vrot.lane.b32.xlu0 %v11122_v29, %s11968_s18 }
 0x455   : > { %2857 = vrot.lane.b32.xlu0 %v11122_v29, %s11970_s28 }
 0x459   : > { %2855 = vrot.lane.b32.xlu0 %v11122_v29, %s11966_s10 }
 0x45d   : > { %2974 = vrot.lane.b32.xlu0 %v11122_v29, %s11961_s23  ;;  %s12125_s23 = sld [smem:[#allocation127_spill]] }
 0x4bb   : > { %v2627_v32 = vpop.permute.xlu0 %2626 }
 0x4bc   : > { %v2633_v33 = vsel %vm2628_vm4, %v2627_v32, 0 }
 0x4bd   : > { %8283 = vmatpush3.bf16.xpose.msra.mxu1 %v2633_v33 }
 0x4be   : > { %8288 = vmatprep.subr.bf16.mxu1 %v10404_v1 }
 0x4bf   : > { %v2689_v34 = vpop.permute.xlu0 %2688 }
 0x4c0   : > { %v2695_v35 = vsel %vm2693_vm5, %v2689_v34, 0 }
 0x4c3   : > { %v2739_v49 = vpop.permute.xlu0 %2738 }
 0x4c4   : > { %8285 = vmatmul.mubr.msk.bf16.vlgmr.msra.gmra.mxu1 %vm2628_vm4, %v11122_v29 }
 0x4c5   : > { %8289 = vmatpush3.bf16.msra.mxu1 %v2695_v35  ;;  %8290 = vmatprep.mubr.msk.bf16.mxu1 %vm10405_vm0, %v10404_v1 }
 0x4c6   : > { %8294 = vmatprep.subr.bf16.mxu1 %v10404_v1 }
 0x4c7   : > { %v2858_v54 = vpop.permute.xlu0 %2857 }
 0x4c8   : > { %v2863_v56 = vsel %vm2628_vm4, %v2858_v54, 0 }
 0x4cb   : > { %v2856_v55 = vpop.permute.xlu0 %2855 }
 0x4cf   : > { %v2975_v57 = vpop.permute.xlu0 %2974 }
 0x4d0   : > { %v2980_v58 = vsel %vm2628_vm4, %v2975_v57, 0 }
 0x584   : > { %v2669_v36 = vpop.f32.mrf.mxu1 }
 0x585   : > { %v2675_v37 = vmul.f32 0.35355338, %v2669_v36 }
 0x586   : > { %v8286_v38 = vpop.f32.mrf.mxu1 }
 0x587   : > { %v2676_v39 = vsel %vm2628_vm4, %v2675_v37, -inf }
 0x588   : > { %2677 = vmax.xlane.f32.xlu1 %v2676_v39  ;;  %v2672_v40 = vpop.f32.mrf.mxu1 }
 0x58a   : > { %v8287_v41 = vpop.f32.mrf.mxu1 }
 0x611   : > { %v2678_v42 = vpop.xlane.xlu1 %2677 }
 0x612   : > { %v2679_v43 = vsub.f32 %v2675_v37, %v2678_v42 }
 0x614   : > { %v2680_v44 = vmul.f32 1.442695, %v2679_v43 }
 0x616   : > { %9281 = vpow2.f32 %v2680_v44 }
 0x623   : > { %v9282_v45 = vpop.eup %9281 }
 0x624   : > { %v2682_v46 = vsel %vm2628_vm4, %v9282_v45, 0.0 }
 0x625   : > { %2683 = vadd.xlane.f32.xlu1 %v2682_v46 }
 0x636   : > { %2740 = vrot.lane.b32.xlu1 %v11122_v29, %s11974_s0 }
 0x63a   : > { %2972 = vrot.lane.b32.xlu1 %v11122_v29, %s11964_s16 }
 0x6ae   : > { %v2684_v47 = vpop.xlane.xlu1 %2683 }
 0x6af   : > { %9283 = vrcp.f32 %v2684_v47 }
 0x6b2   : > { %v2741_v51 = vpop.permute.xlu1 %2740 }
 0x6b3   : > { %v2746_v53 = vsel %vm2628_vm4, %v2741_v51, 0 }
 0x6b6   : > { %v2973_v59 = vpop.permute.xlu1 %2972 }
 0x6bc   : > { %v9284_v48 = vpop.eup %9283 }
 0x6bd   : > { %v2686_v50 = vmul.f32 %v9284_v48, %v9282_v45 }
 0x6bf   : > { %v2687_v52 = vpack.c.bf16 %v2686_v50, %v2686_v50 }
 0x6c1   : > { %8291 = vmatmul.mubr.msk.bf16.vlgmr.msra.gmra.mxu1 %vm2628_vm4, %v2687_v52 }
 0x6c2   : > { %8295 = vmatpush3.bf16.xpose.msra.mxu1 %v2746_v53  ;;  %8296 = vmatprep.mubr.msk.bf16.mxu1 %vm10405_vm0, %v10404_v1 }
 0x6c3   : > { %8306 = vmatprep.subr.bf16.mxu1 %v10404_v1 }
 0x6c9   : > { %8297 = vmatmul.mubr.msk.bf16.vlgmr.msra.gmra.mxu1 %vm2628_vm4, %v2739_v49 }
 0x6ca   : > { %8307 = vmatpush3.bf16.xpose.msra.mxu1 %v2863_v56  ;;  %8308 = vmatprep.mubr.msk.bf16.mxu1 %vm10405_vm0, %v10404_v1 }
 0x6cb   : > { %8318 = vmatprep.subr.bf16.mxu1 %v10404_v1 }
 0x6d1   : > { %8309 = vmatmul.mubr.msk.bf16.vlgmr.msra.gmra.mxu1 %vm2628_vm4, %v2856_v55 }
 0x6d2   : > { %8319 = vmatpush3.bf16.xpose.msra.mxu1 %v2980_v58  ;;  %8320 = vmatprep.mubr.msk.bf16.mxu1 %vm10405_vm0, %v10404_v1 }
 0x6d3   : > { %8330 = vmatprep.subr.bf16.mxu1 %v10404_v1 }
 0x6d9   : > { %8321 = vmatmul.mubr.msk.bf16.vlgmr.msra.gmra.mxu1 %vm2628_vm4, %v2973_v59 }
 0x6da   : > { %8334 = vmatprep.mubr.msk.bf16.mxu1 %vm10405_vm0, %v10404_v1 }
 0x781   : > { %v2731_v60 = vpop.f32.mrf.mxu1 }
 0x782   : > { %2737 = vst.msk [vmem:[#allocation2] sm:$0xff] %vm2628_vm4, %v2731_v60 }
 0x783   : > { %v8292_v61 = vpop.f32.mrf.mxu1 }
 0x785   : > { %v2734_v62 = vpop.f32.mrf.mxu1 }
 0x787   : > { %v8293_v63 = vpop.f32.mrf.mxu1 }
 0x789   : > { %v2782_v0 = vpop.f32.mrf.mxu1 }
 0x78a   : > { %v2788_v2 = vmul.f32 0.35355338, %v2782_v0 }
 0x78b   : > { %v8298_v3 = vpop.f32.mrf.mxu1 }
 0x78c   : > { %v2789_v4 = vsel %vm2628_vm4, %v2788_v2, -inf }
 0x78d   : > { %2790 = vmax.xlane.f32.xlu0 %v2789_v4  ;;  %v2785_v5 = vpop.f32.mrf.mxu1 }
 0x78f   : > { %v8299_v6 = vpop.f32.mrf.mxu1 }
 0x791   : > { %v2899_v7 = vpop.f32.mrf.mxu1 }
 0x792   : > { %v2905_v8 = vmul.f32 0.35355338, %v2899_v7 }
 0x793   : > { %v8310_v9 = vpop.f32.mrf.mxu1 }
 0x794   : > { %v2906_v10 = vsel %vm2628_vm4, %v2905_v8, -inf }
 0x795   : > { %2907 = vmax.xlane.f32.xlu1 %v2906_v10  ;;  %v2902_v13 = vpop.f32.mrf.mxu1 }
 0x797   : > { %v8311_v15 = vpop.f32.mrf.mxu1 }
 0x798   : > { %v7893_v15 = vld [vmem:[#allocation35] ss:$0 sm:$0xff] }
 0x799   : > { %v3016_v16 = vpop.f32.mrf.mxu1 }
 0x79a   : > { %v3022_v17 = vmul.f32 0.35355338, %v3016_v16 }
 0x79b   : > { %v8322_v18 = vpop.f32.mrf.mxu1 }
 0x79c   : > { %v3023_v19 = vsel %vm2628_vm4, %v3022_v17, -inf }
 0x79d   : > { %3024 = vmax.xlane.f32.xlu0 %v3023_v19  ;;  %v3019_v20 = vpop.f32.mrf.mxu1 }
 0x79f   : > { %v8323_v22 = vpop.f32.mrf.mxu1 }
 0x7a6   : > { %2801 = vrot.lane.b32.xlu1 %v11122_v29, %s11953_s13  ;;  %s11959_s13 = smov 16  }
 0x816   : > { %v2791_v23 = vpop.xlane.xlu0 %2790 }
 0x817   : > { %v2792_v24 = vsub.f32 %v2788_v2, %v2791_v23 }
 0x819   : > { %v2793_v25 = vmul.f32 1.442695, %v2792_v24 }
 0x81b   : > { %9285 = vpow2.f32 %v2793_v25 }
 0x81e   : > { %v2908_v26 = vpop.xlane.xlu1 %2907 }
 0x81f   : > { %v2909_v27 = vsub.f32 %v2905_v8, %v2908_v26 }
 0x821   : > { %v2910_v28 = vmul.f32 1.442695, %v2909_v27 }
 0x822   : > { %v2802_v30 = vpop.permute.xlu1 %2801 }
 0x823   : > { %9287 = vpow2.f32 %v2910_v28  ;;  %v2807_v31 = vsel %vm2693_vm5, %v2802_v30, 0 }
 0x824   : > { %8301 = vmatpush3.bf16.msra.mxu0 %v2807_v31 }
 0x825   : > { %8312 = vmatprep.subr.bf16.mxu0 %v10404_v1 }
 0x826   : > { %v3025_v32 = vpop.xlane.xlu0 %3024 }
 0x827   : > { %v3026_v33 = vsub.f32 %v3022_v17, %v3025_v32 }
 0x828   : > { %v9286_v34 = vpop.eup %9285 }
 0x829   : > { %v3027_v35 = vmul.f32 1.442695, %v3026_v33  ;;  %v2795_v36 = vsel %vm2628_vm4, %v9286_v34, 0.0 }
 0x82a   : > { %2796 = vadd.xlane.f32.xlu0 %v2795_v36 }
 0x82b   : > { %9289 = vpow2.f32 %v3027_v35 }
 0x830   : > { %v9288_v37 = vpop.eup %9287 }
 0x831   : > { %v2912_v38 = vsel %vm2628_vm4, %v9288_v37, 0.0 }
 0x832   : > { %2913 = vadd.xlane.f32.xlu1 %v2912_v38 }
 0x838   : > { %v9290_v39 = vpop.eup %9289 }
 0x839   : > { %v3029_v40 = vsel %vm2628_vm4, %v9290_v39, 0.0 }
 0x83a   : > { %3030 = vadd.xlane.f32.xlu0 %v3029_v40 }
 0x843   : > { %3035 = vrot.lane.b32.xlu1 %v11122_v29, %s11951_s1  ;;  %s11955_s1 = smov 8  }
 0x850   : > { %2918 = vrot.lane.b32.xlu0 %v11122_v29, %s11949_s3  ;;  %s12122_s3 = sld [smem:[#allocation119_spill]] }
 0x856   : > { %v9221_v59 = vld [vmem:[%s12122_s3 + $0x8] sm:$0xff]   ;;  %v9222_v61 = vld [vmem:[%s12122_s3] sm:$0xff]   ;;  %s12134_s3 = smov 24  }
 0x857   : > { %8331 = vmatpush3.bf16.msra.mxu1 %v9221_v59 }
 0x858   : > { %8332 = vmatprep.subr.bf16.mxu1 %v10404_v1 }
 0x85b   : > { %8333 = vmatpush3.bf16.msra.mxu1 %v9222_v61 }
 0x85c   : > { %8346 = vmatprep.subr.bf16.mxu1 %v10404_v1 }
 0x8b3   : > { %v2797_v41 = vpop.xlane.xlu0 %2796 }
 0x8b4   : > { %9291 = vrcp.f32 %v2797_v41 }
 0x8bb   : > { %v2914_v42 = vpop.xlane.xlu1 %2913 }
 0x8bc   : > { %9293 = vrcp.f32 %v2914_v42 }
 0x8bf   : > { %v3036_v50 = vpop.permute.xlu1 %3035 }
 0x8c0   : > { %v3041_v52 = vsel %vm2693_vm5, %v3036_v50, 0 }
 0x8c1   : > { %v9292_v43 = vpop.eup %9291 }
 0x8c2   : > { %v2799_v44 = vmul.f32 %v9292_v43, %v9286_v34 }
 0x8c3   : > { %v3031_v45 = vpop.xlane.xlu0 %3030 }
 0x8c4   : > { %9295 = vrcp.f32 %v3031_v45  ;;  %v2800_v46 = vpack.c.bf16 %v2799_v44, %v2799_v44  ;;  %v7899_v45 = vld [vmem:[#allocation24] ss:$0 sm:$0xff] }
 0x8c6   : > { %8303 = vmatmul.mubr.msk.bf16.vlgmr.msra.gmra.mxu0 %vm2628_vm4, %v2800_v46 }
 0x8c7   : > { %v2919_v47 = vpop.permute.xlu0 %2918  ;;  %8314 = vmatprep.mubr.msk.bf16.mxu0 %vm10405_vm0, %v10404_v1 }
 0x8c8   : > { %v2924_v48 = vsel %vm2693_vm5, %v2919_v47, 0 }
 0x8c9   : > { %v9294_v49 = vpop.eup %9293  ;;  %8313 = vmatpush3.bf16.msra.mxu0 %v2924_v48 }
 0x8ca   : > { %8324 = vmatprep.subr.bf16.mxu0 %v10404_v1  ;;  %v2916_v29 = vmul.f32 %v9294_v49, %v9288_v37  ;;  %v7897_v37 = vld [vmem:[#allocation29] ss:$0 sm:$0xff] }
 0x8cc   : > { %v2917_v51 = vpack.c.bf16 %v2916_v29, %v2916_v29 }
 0x8ce   : > { %8315 = vmatmul.mubr.msk.bf16.vlgmr.msra.gmra.mxu0 %vm2628_vm4, %v2917_v51 }
 0x8cf   : > { %8325 = vmatpush3.bf16.msra.mxu0 %v3041_v52  ;;  %8326 = vmatprep.mubr.msk.bf16.mxu0 %vm10405_vm0, %v10404_v1  ;;  %v7903_v52 = vld [vmem:[#allocation26] ss:$0 sm:$0xff] }
 0x8d0   : > { %8338 = vmatprep.subr.bf16.mxu0 %v10404_v1 }
 0x8d1   : > { %v9296_v53 = vpop.eup %9295 }
 0x8d2   : > { %v3033_v54 = vmul.f32 %v9296_v53, %v9290_v39  ;;  %v7898_v39 = vld [vmem:[#allocation27] ss:$0 sm:$0xff] }
 0x8d4   : > { %v3034_v55 = vpack.c.bf16 %v3033_v54, %v3033_v54 }
 0x8d6   : > { %8327 = vmatmul.mubr.msk.bf16.vlgmr.msra.gmra.mxu0 %vm2628_vm4, %v3034_v55 }
 0x8d7   : > { %8342 = vmatprep.mubr.msk.bf16.mxu0 %vm10405_vm0, %v10404_v1 }
 0x986   : > { %v2843_v56 = vpop.f32.mrf.mxu0 }
 0x987   : > { %2850 = vrot.lane.b32.xlu1 %v2843_v56, %s11955_s1  ;;  %s11957_s1 = smov 24  }
 0x988   : > { %v8304_v57 = vpop.f32.mrf.mxu0 }
 0x98a   : > { %v2846_v58 = vpop.f32.mrf.mxu0 }
 0x98c   : > { %v8305_v60 = vpop.f32.mrf.mxu0 }
 0x98e   : > { %v2960_v62 = vpop.f32.mrf.mxu0 }
 0x98f   : > { %2967 = vrot.lane.b32.xlu0 %v2960_v62, %s11959_s13  ;;  %s12124_s13 = sld [smem:[#allocation112_spill]] }
 0x990   : > { %v8316_v63 = vpop.f32.mrf.mxu0 }
 0x992   : > { %v2963_v0 = vpop.f32.mrf.mxu0 }
 0x994   : > { %v8317_v2 = vpop.f32.mrf.mxu0 }
 0x995   : > { %v9226_v32 = vld [vmem:[%s12124_s13 + $0x10] sm:$0xff]   ;;  %v9227_v43 = vld [vmem:[%s12124_s13 + $0x8] sm:$0xff]   ;;  %v9228_v44 = vld [vmem:[%s12124_s13] sm:$0xff]  }
 0x996   : > { %v3077_v3 = vpop.f32.mrf.mxu0  ;;  %v9229_v2 = vld [vmem:[%s12125_s23 + $0x8] sm:$0xff]  }
 0x997   : > { %3084 = vrot.lane.b32.xlu1 %v3077_v3, %s11957_s1  ;;  %s12123_s1 = sld [smem:[#allocation111_spill]]  ;;  %v9230_v3 = vld [vmem:[%s12125_s23] sm:$0xff]  }
 0x998   : > { %v8328_v4 = vpop.f32.mrf.mxu0 }
 0x99a   : > { %v3080_v5 = vpop.f32.mrf.mxu0 }
 0x99c   : > { %v8329_v6 = vpop.f32.mrf.mxu0 }
 0x99d   : > { %v9223_v30 = vld [vmem:[%s12123_s1 + $0x8] sm:$0xff]   ;;  %v9224_v31 = vld [vmem:[%s12123_s1] sm:$0xff]   ;;  %s12126_s1 = smov 72  }
 0x99e   : > { %8339 = vmatpush3.bf16.msra.mxu0 %v9223_v30 }
 0x99f   : > { %8340 = vmatprep.subr.bf16.mxu0 %v10404_v1 }
 0x9a2   : > { %8341 = vmatpush3.bf16.msra.mxu0 %v9224_v31 }
 0x9a3   : > { %8358 = vmatprep.subr.bf16.mxu0 %v10404_v1 }
 0x9f9   : > { %v2851_v7 = vpop.permute.xlu1 %2850 }
 0x9fa   : > { %2854 = vst.msk [vmem:[#allocation2] sm:$0xff] %vm2853_vm6, %v2851_v7 }
 0xa01   : > { %v2968_v8 = vpop.permute.xlu0 %2967 }
 0xa02   : > { %2971 = vst.msk [vmem:[#allocation2] sm:$0xff] %vm2970_vm7, %v2968_v8  ;;  %v7909_v8 = vld [vmem:[#allocation32] ss:$0 sm:$0xff] }
 0xa09   : > { %v3085_v9 = vpop.permute.xlu1 %3084 }
 0xa0a   : > { %3088 = vst.msk [vmem:[#allocation2] sm:$0xff] %vm3087_vm8, %v3085_v9 }
 0xa11   : > { %v3089_v10 = vld [vmem:[#allocation2] sm:$0xff] }
 0xa12   : > { %v3090_v13 = vpack.c.bf16 %v3089_v10, %v3089_v10  ;;  %v7910_v10 = vld [vmem:[#allocation30] ss:$0 sm:$0xff] }
 0xa14   : > { %8335 = vmatmul.mubr.msk.bf16.vlgmr.msra.gmra.mxu1 %vm2580_vm3, %v3090_v13 }
 0xa15   : > { %8354 = vmatprep.mubr.msk.bf16.mxu1 %vm10405_vm0, %v10404_v1 }
 0xad4   : > { %v3151_v16 = vpop.f32.mrf.mxu1 }
 0xad5   : > { %v3152_v17 = vadd.f32 %v7893_v15, %v3151_v16 }
 0xad6   : > { %v8336_v18 = vpop.f32.mrf.mxu1 }
 0xad7   : > { %v3157_v19 = vadd.f32 %v3152_v17, %v11115_v21  ;;  %v9225_v21 = vld [vmem:[%s12124_s13 + $0x18] sm:$0xff]   ;;  %s12154_s13 = sld [smem:[#allocation80_spill]] }
 0xad8   : > { %v3154_v20 = vpop.f32.mrf.mxu1  ;;  %8347 = vmatpush3.bf16.msra.mxu1 %v9225_v21  ;;  %v7911_v17 = vld [vmem:[#allocation45] ss:$0 sm:$0xff] }
 0xad9   : > { %v3158_v22 = vsel %vm2580_vm3, %v3157_v19, 0.0  ;;  %8348 = vmatprep.subr.bf16.mxu1 %v10404_v1 }
 0xada   : > { %3159 = vadd.xlane.f32.xlu0 %v3158_v22  ;;  %v8337_v23 = vpop.f32.mrf.mxu1 }
 0xadc   : > { %8349 = vmatpush3.bf16.msra.mxu1 %v9226_v32 }
 0xadd   : > { %8350 = vmatprep.subr.bf16.mxu1 %v10404_v1 }
 0xae0   : > { %8351 = vmatpush3.bf16.msra.mxu1 %v9227_v43 }
 0xae1   : > { %8352 = vmatprep.subr.bf16.mxu1 %v10404_v1 }
 0xae4   : > { %8353 = vmatpush3.bf16.msra.mxu1 %v9228_v44 }
 0xae5   : > { %8372 = vmatprep.subr.bf16.mxu1 %v10404_v1 }
 0xb63   : > { %v3160_v24 = vpop.xlane.xlu0 %3159 }
 0xb64   : > { %v3162_v25 = vmul.f32 0.03125, %v3160_v24 }
 0xb66   : > { %v3163_v26 = vsub.f32 %v3157_v19, %v3162_v25 }
 0xb68   : > { %v3164_v27 = vmul.f32 %v3163_v26, %v3163_v26 }
 0xb6a   : > { %v3165_v28 = vsel %vm2580_vm3, %v3164_v27, 0.0 }
 0xb6b   : > { %3166 = vadd.xlane.f32.xlu1 %v3165_v28 }
 0xbf4   : > { %v3167_v33 = vpop.xlane.xlu1 %3166 }
 0xbf5   : > { %v3168_v34 = vmul.f32 0.03125, %v3167_v33 }
 0xbf7   : > { %v3169_v35 = vadd.f32 1e-05, %v3168_v34 }
 0xbf9   : > { %9297 = vrsqrt.f32 %v3169_v35 }
 0xc06   : > { %v9298_v36 = vpop.eup %9297 }
 0xc07   : > { %v3171_v38 = vmul.f32 %v9298_v36, %v3163_v26 }
 0xc09   : > { %v3179_v40 = vmul.f32 %v7897_v37, %v3171_v38 }
 0xc0b   : > { %v3187_v41 = vadd.f32 %v7898_v39, %v3179_v40 }
 0xc0d   : > { %v3188_v42 = vpack.c.bf16 %v3187_v41, %v3187_v41 }
 0xc0f   : > { %8343 = vmatmul.mubr.msk.bf16.vlgmr.msra.gmra.mxu0 %vm2580_vm3, %v3188_v42 }
 0xc10   : > { %8362 = vmatprep.mubr.msk.bf16.mxu0 %vm10405_vm0, %v10404_v1  ;;  %8359 = vmatpush3.bf16.msra.mxu0 %v9229_v2 }
 0xc11   : > { %8360 = vmatprep.subr.bf16.mxu0 %v10404_v1 }
 0xc14   : > { %8361 = vmatpush3.bf16.msra.mxu0 %v9230_v3 }
 0xc15   : > { %8366 = vmatprep.subr.bf16.mxu0 %v10404_v1 }
 0xccf   : > { %v3249_v46 = vpop.f32.mrf.mxu0 }
 0xcd0   : > { %v3250_v47 = vadd.f32 %v7899_v45, %v3249_v46 }
 0xcd1   : > { %v8344_v48 = vpop.f32.mrf.mxu0 }
 0xcd2   : > { %v3255_v49 = vmax.f32 %v3250_v47, 0.0 }
 0xcd3   : > { %v3252_v29 = vpop.f32.mrf.mxu0 }
 0xcd4   : > { %v3256_v50 = vpack.c.bf16 %v3255_v49, %v3255_v49 }
 0xcd5   : > { %v8345_v51 = vpop.f32.mrf.mxu0 }
 0xcd6   : > { %8355 = vmatmul.mubr.msk.bf16.vlgmr.msra.gmra.mxu1 %vm3296_vm9, %v3256_v50 }
 0xcd7   : > { %8374 = vmatprep.mubr.msk.bf16.mxu1 %vm10405_vm0, %v10404_v1 }
 0xd96   : > { %v3334_v53 = vpop.f32.mrf.mxu1 }
 0xd97   : > { %v3335_v54 = vadd.f32 %v7903_v52, %v3334_v53 }
 0xd98   : > { %v8356_v55 = vpop.f32.mrf.mxu1 }
 0xd99   : > { %v3340_v56 = vadd.f32 %v3335_v54, %v3187_v41 }
 0xd9a   : > { %v3337_v57 = vpop.f32.mrf.mxu1 }
 0xd9b   : > { %v3341_v58 = vsel %vm2580_vm3, %v3340_v56, 0.0 }
 0xd9c   : > { %3342 = vadd.xlane.f32.xlu0 %v3341_v58  ;;  %v8357_v59 = vpop.f32.mrf.mxu1 }
 0xe25   : > { %v3343_v60 = vpop.xlane.xlu0 %3342 }
 0xe26   : > { %v3344_v61 = vmul.f32 0.03125, %v3343_v60 }
 0xe28   : > { %v3345_v62 = vsub.f32 %v3340_v56, %v3344_v61 }
 0xe2a   : > { %v3346_v63 = vmul.f32 %v3345_v62, %v3345_v62 }
 0xe2c   : > { %v3347_v0 = vsel %vm2580_vm3, %v3346_v63, 0.0 }
 0xe2d   : > { %3348 = vadd.xlane.f32.xlu0 %v3347_v0 }
 0xeb6   : > { %v3349_v4 = vpop.xlane.xlu0 %3348 }
 0xeb7   : > { %v3350_v5 = vmul.f32 0.03125, %v3349_v4 }
 0xeb9   : > { %v3351_v6 = vadd.f32 1e-05, %v3350_v5 }
 0xebb   : > { %9299 = vrsqrt.f32 %v3351_v6 }
 0xec8   : > { %v9300_v7 = vpop.eup %9299 }
 0xec9   : > { %v3353_v9 = vmul.f32 %v9300_v7, %v3345_v62 }
 0xecb   : > { %v3361_v13 = vmul.f32 %v7909_v8, %v3353_v9 }
 0xecd   : > { %v11236_v15 = vadd.f32 %v7910_v10, %v3361_v13 }
 0xecf   : > { %v3370_v16 = vpack.c.bf16 %v11236_v15, %v11236_v15 }
 0xed1   : > { %8363 = vmatmul.mubr.msk.bf16.vlgmr.msra.gmra.mxu0 %vm2580_vm3, %v3370_v16 }
 0xed2   : > { %8368 = vmatprep.mubr.msk.bf16.mxu0 %vm10405_vm0, %v10404_v1 }
 0xf91   : > { %v3431_v18 = vpop.f32.mrf.mxu0 }
 0xf92   : > { %v3432_v19 = vadd.f32 %v7911_v17, %v3431_v18 }
 0xf93   : > { %v8364_v20 = vpop.f32.mrf.mxu0 }
 0xf94   : > { %v11243_v22 = vpack.c.bf16 %v3432_v19, %v3432_v19 }
 0xf95   : > { %v3434_v23 = vpop.f32.mrf.mxu0 }
 0xf96   : > { %3551 = vrot.lane.b32.xlu0 %v11243_v22, %s11974_s0  ;;  %3439 = vrot.lane.b32.xlu1 %v11243_v22, %s11972_s8  ;;  %s12131_s8 = sld [smem:[#allocation128_spill]]  ;;  %s12132_s0 = smov 8  }
 0xf97   : > { %v8365_v24 = vpop.f32.mrf.mxu0 }
 0xf9a   : > { %3665 = vrot.lane.b32.xlu0 %v11243_v22, %s11966_s10  ;;  %3549 = vrot.lane.b32.xlu1 %v11243_v22, %s11968_s18  ;;  %s12128_s10 = smov 64   ;;  %s12129_s18 = smov 40  }
 0xf9e   : > { %3781 = vrot.lane.b32.xlu0 %v11243_v22, %s11964_s16  ;;  %3667 = vrot.lane.b32.xlu1 %v11243_v22, %s11970_s28  ;;  %s12127_s16 = smov 56   ;;  %s12130_s28 = smov 48  }
 0xfa2   : > { %3783 = vrot.lane.b32.xlu1 %v11243_v22, %s12126_s1 }
0x1008   : > { %v3440_v25 = vpop.permute.xlu1 %3439  ;;  %v3552_v27 = vpop.permute.xlu0 %3551 }
0x1009   : > { %v3445_v26 = vsel %vm2628_vm4, %v3440_v25, 0  ;;  %v3557_v30 = vsel %vm2628_vm4, %v3552_v27, 0 }
0x100a   : > { %8367 = vmatpush3.bf16.xpose.msra.mxu0 %v3445_v26 }
0x100b   : > { %8378 = vmatprep.subr.bf16.mxu0 %v10404_v1 }
0x100c   : > { %v3550_v28 = vpop.permute.xlu1 %3549  ;;  %v3666_v33 = vpop.permute.xlu0 %3665 }
0x1010   : > { %v3668_v31 = vpop.permute.xlu1 %3667  ;;  %v3782_v35 = vpop.permute.xlu0 %3781 }
0x1011   : > { %8369 = vmatmul.mubr.msk.bf16.vlgmr.msra.gmra.mxu0 %vm2628_vm4, %v11243_v22  ;;  %v3673_v21 = vsel %vm2628_vm4, %v3668_v31, 0 }
0x1012   : > { %8379 = vmatpush3.bf16.xpose.msra.mxu0 %v3557_v30  ;;  %8380 = vmatprep.mubr.msk.bf16.mxu0 %vm10405_vm0, %v10404_v1 }
0x1013   : > { %8390 = vmatprep.subr.bf16.mxu0 %v10404_v1 }
0x1014   : > { %v3784_v32 = vpop.permute.xlu1 %3783 }
0x1015   : > { %v3789_v34 = vsel %vm2628_vm4, %v3784_v32, 0 }
0x1019   : > { %8381 = vmatmul.mubr.msk.bf16.vlgmr.msra.gmra.mxu0 %vm2628_vm4, %v3550_v28 }
0x101a   : > { %8391 = vmatpush3.bf16.xpose.msra.mxu0 %v3673_v21  ;;  %8392 = vmatprep.mubr.msk.bf16.mxu0 %vm10405_vm0, %v10404_v1 }
0x101b   : > { %8402 = vmatprep.subr.bf16.mxu0 %v10404_v1 }
0x1021   : > { %8393 = vmatmul.mubr.msk.bf16.vlgmr.msra.gmra.mxu0 %vm2628_vm4, %v3666_v33 }
0x1022   : > { %8403 = vmatpush3.bf16.xpose.msra.mxu0 %v3789_v34  ;;  %8404 = vmatprep.mubr.msk.bf16.mxu0 %vm10405_vm0, %v10404_v1 }
0x1023   : > { %8414 = vmatprep.subr.bf16.mxu0 %v10404_v1 }
0x1029   : > { %8405 = vmatmul.mubr.msk.bf16.vlgmr.msra.gmra.mxu0 %vm2628_vm4, %v3782_v35 }
0x102a   : > { %8418 = vmatprep.mubr.msk.bf16.mxu0 %vm10405_vm0, %v10404_v1 }
0x10d1   : > { %v3481_v36 = vpop.f32.mrf.mxu0 }
0x10d2   : > { %v3487_v37 = vmul.f32 0.35355338, %v3481_v36 }
0x10d3   : > { %v8370_v38 = vpop.f32.mrf.mxu0 }
0x10d4   : > { %v3488_v39 = vsel %vm2628_vm4, %v3487_v37, -inf }
0x10d5   : > { %3489 = vmax.xlane.f32.xlu1 %v3488_v39  ;;  %v3484_v40 = vpop.f32.mrf.mxu0 }
0x10d7   : > { %v8371_v41 = vpop.f32.mrf.mxu0 }
0x10d9   : > { %v3593_v42 = vpop.f32.mrf.mxu0 }
0x10da   : > { %v3599_v43 = vmul.f32 0.35355338, %v3593_v42 }
0x10db   : > { %v8382_v44 = vpop.f32.mrf.mxu0 }
0x10dc   : > { %v3600_v45 = vsel %vm2628_vm4, %v3599_v43, -inf }
0x10dd   : > { %3601 = vmax.xlane.f32.xlu0 %v3600_v45  ;;  %v3596_v46 = vpop.f32.mrf.mxu0 }
0x10df   : > { %v8383_v47 = vpop.f32.mrf.mxu0 }
0x10e1   : > { %v3709_v48 = vpop.f32.mrf.mxu0 }
0x10e2   : > { %v3715_v49 = vmul.f32 0.35355338, %v3709_v48 }
0x10e3   : > { %v8394_v29 = vpop.f32.mrf.mxu0 }
0x10e4   : > { %v3716_v50 = vsel %vm2628_vm4, %v3715_v49, -inf }
0x10e5   : > { %3717 = vmax.xlane.f32.xlu0 %v3716_v50  ;;  %v3712_v51 = vpop.f32.mrf.mxu0 }
0x10e7   : > { %v8395_v52 = vpop.f32.mrf.mxu0 }
0x10e8   : > { %v9231_v52 = vld [vmem:[%s12131_s8 + $0x8] sm:$0xff]  }
0x10e9   : > { %v3825_v53 = vpop.f32.mrf.mxu0  ;;  %8415 = vmatpush3.bf16.msra.mxu0 %v9231_v52 }
0x10ea   : > { %v3831_v54 = vmul.f32 0.35355338, %v3825_v53  ;;  %8416 = vmatprep.subr.bf16.mxu0 %v10404_v1 }
0x10eb   : > { %v8406_v55 = vpop.f32.mrf.mxu0 }
0x10ec   : > { %v3832_v56 = vsel %vm2628_vm4, %v3831_v54, -inf }
0x10ed   : > { %3833 = vmax.xlane.f32.xlu1 %v3832_v56  ;;  %v3828_v57 = vpop.f32.mrf.mxu0 }
0x10ef   : > { %v8407_v58 = vpop.f32.mrf.mxu0 }
0x115e   : > { %v3490_v59 = vpop.xlane.xlu1 %3489 }
0x115f   : > { %v3491_v60 = vsub.f32 %v3487_v37, %v3490_v59 }
0x1161   : > { %v3492_v61 = vmul.f32 1.442695, %v3491_v60 }
0x1163   : > { %9301 = vpow2.f32 %v3492_v61 }
0x1166   : > { %v3602_v62 = vpop.xlane.xlu0 %3601 }
0x1167   : > { %v3603_v63 = vsub.f32 %v3599_v43, %v3602_v62 }
0x1169   : > { %v3604_v0 = vmul.f32 1.442695, %v3603_v63 }
0x116b   : > { %9303 = vpow2.f32 %v3604_v0 }
0x116e   : > { %v3718_v2 = vpop.xlane.xlu0 %3717 }
0x116f   : > { %v3719_v3 = vsub.f32 %v3715_v49, %v3718_v2 }
0x1170   : > { %v9302_v4 = vpop.eup %9301 }
0x1171   : > { %v3720_v5 = vmul.f32 1.442695, %v3719_v3  ;;  %v3494_v6 = vsel %vm2628_vm4, %v9302_v4, 0.0 }
0x1172   : > { %3495 = vadd.xlane.f32.xlu0 %v3494_v6 }
0x1173   : > { %9305 = vpow2.f32 %v3720_v5 }
0x1176   : > { %v3834_v13 = vpop.xlane.xlu1 %3833 }
0x1177   : > { %v3835_v16 = vsub.f32 %v3831_v54, %v3834_v13  ;;  %v9232_v54 = vld [vmem:[%s12131_s8] sm:$0xff]   ;;  %s12138_s8 = sld [smem:[#allocation122_spill]] }
0x1178   : > { %v9304_v7 = vpop.eup %9303  ;;  %8417 = vmatpush3.bf16.msra.mxu0 %v9232_v54 }
0x1179   : > { %v3606_v8 = vsel %vm2628_vm4, %v9304_v7, 0.0  ;;  %v3836_v17 = vmul.f32 1.442695, %v3835_v16  ;;  %8430 = vmatprep.subr.bf16.mxu0 %v10404_v1  ;;  %v4176_v16 = vld [vmem:[%s2438_s9] sm:$0xff]  ;;  %s12139_s9 = sld [smem:[#allocation88_spill]] }
0x117a   : > { %3607 = vadd.xlane.f32.xlu1 %v3606_v8 }
0x117b   : > { %9307 = vpow2.f32 %v3836_v17 }
0x117f   : > { %v9248_v54 = vld [vmem:[%s12139_s9] sm:$0xff]  }
0x1180   : > { %v9306_v9 = vpop.eup %9305 }
0x1181   : > { %v3722_v10 = vsel %vm2628_vm4, %v9306_v9, 0.0 }
0x1182   : > { %3723 = vadd.xlane.f32.xlu0 %v3722_v10 }
0x1188   : > { %v9308_v18 = vpop.eup %9307 }
0x1189   : > { %v3838_v19 = vsel %vm2628_vm4, %v9308_v18, 0.0 }
0x118b   : > { %3612 = vrot.lane.b32.xlu1 %v11243_v22, %s12127_s16 }
0x1198   : > { %3500 = vrot.lane.b32.xlu0 %v11243_v22, %s12128_s10 }
0x119c   : > { %3844 = vrot.lane.b32.xlu0 %v11243_v22, %s12129_s18 }
0x11af   : > { %3839 = vadd.xlane.f32.xlu1 %v3838_v19 }
0x11c0   : > { %3728 = vrot.lane.b32.xlu1 %v11243_v22, %s12130_s28 }
0x11fb   : > { %v3496_v20 = vpop.xlane.xlu0 %3495 }
0x11fc   : > { %9309 = vrcp.f32 %v3496_v20 }
0x1203   : > { %v3608_v23 = vpop.xlane.xlu1 %3607 }
0x1204   : > { %9311 = vrcp.f32 %v3608_v23 }
0x1207   : > { %v3613_v30 = vpop.permute.xlu1 %3612 }
0x1208   : > { %v3618_v32 = vsel %vm2693_vm5, %v3613_v30, 0 }
0x1209   : > { %v9310_v24 = vpop.eup %9309 }
0x120a   : > { %v3498_v26 = vmul.f32 %v9310_v24, %v9302_v4  ;;  %v7923_v4 = vld [vmem:[#allocation47] ss:$0 sm:$0xff] }
0x120b   : > { %v3724_v25 = vpop.xlane.xlu0 %3723  ;;  %v9234_v24 = vld [vmem:[%s12136_s5] sm:$0xff]  }
0x120c   : > { %v3499_v31 = vpack.c.bf16 %v3498_v26, %v3498_v26  ;;  %9313 = vrcp.f32 %v3724_v25  ;;  %v9243_v25 = vld [vmem:[%s12138_s8 + $0x18] sm:$0xff]   ;;  %v9244_v26 = vld [vmem:[%s12138_s8 + $0x10] sm:$0xff]  }
0x120f   : > { %v3501_v27 = vpop.permute.xlu0 %3500 }
0x1210   : > { %v3506_v28 = vsel %vm2693_vm5, %v3501_v27, 0 }
0x1211   : > { %8373 = vmatpush3.bf16.msra.mxu1 %v3506_v28  ;;  %v9312_v21 = vpop.eup %9311 }
0x1212   : > { %8384 = vmatprep.subr.bf16.mxu1 %v10404_v1  ;;  %v3610_v22 = vmul.f32 %v9312_v21, %v9304_v7  ;;  %v7927_v21 = vld [vmem:[#allocation41] ss:$0 sm:$0xff] }
0x1213   : > { %v3845_v39 = vpop.permute.xlu0 %3844 }
0x1214   : > { %8375 = vmatmul.mubr.msk.bf16.vlgmr.msra.gmra.mxu1 %vm2628_vm4, %v3499_v31  ;;  %v3611_v33 = vpack.c.bf16 %v3610_v22, %v3610_v22  ;;  %v3850_v41 = vsel %vm2693_vm5, %v3845_v39, 0  ;;  %v7928_v22 = vld [vmem:[#allocation39] ss:$0 sm:$0xff]  ;;  %v9238_v39 = vld [vmem:[%s12120_s11 + $0x20] sm:$0xff]  }
0x1215   : > { %8385 = vmatpush3.bf16.msra.mxu1 %v3618_v32  ;;  %8386 = vmatprep.mubr.msk.bf16.mxu1 %vm10405_vm0, %v10404_v1 }
0x1216   : > { %8396 = vmatprep.subr.bf16.mxu1 %v10404_v1 }
0x1219   : > { %v9314_v34 = vpop.eup %9313 }
0x121a   : > { %v3726_v36 = vmul.f32 %v9314_v34, %v9306_v9 }
0x121c   : > { %8387 = vmatmul.mubr.msk.bf16.vlgmr.msra.gmra.mxu1 %vm2628_vm4, %v3611_v33  ;;  %v3727_v40 = vpack.c.bf16 %v3726_v36, %v3726_v36 }
0x121d   : > { %8398 = vmatprep.mubr.msk.bf16.mxu1 %vm10405_vm0, %v10404_v1 }
0x1238   : > { %v3840_v35 = vpop.xlane.xlu1 %3839 }
0x1239   : > { %9315 = vrcp.f32 %v3840_v35  ;;  %v9235_v35 = vld [vmem:[%s12120_s11 + $0x38] sm:$0xff]  }
0x123c   : > { %v3729_v37 = vpop.permute.xlu1 %3728 }
0x123d   : > { %v3734_v38 = vsel %vm2693_vm5, %v3729_v37, 0  ;;  %v9236_v37 = vld [vmem:[%s12120_s11 + $0x30] sm:$0xff]  }
0x123e   : > { %8397 = vmatpush3.bf16.msra.mxu1 %v3734_v38  ;;  %v9237_v38 = vld [vmem:[%s12120_s11 + $0x28] sm:$0xff]  }
0x123f   : > { %8408 = vmatprep.subr.bf16.mxu1 %v10404_v1 }
0x1241   : > { %8399 = vmatmul.mubr.msk.bf16.vlgmr.msra.gmra.mxu1 %vm2628_vm4, %v3727_v40  ;;  %v9239_v40 = vld [vmem:[%s12120_s11 + $0x18] sm:$0xff]  }
0x1242   : > { %8409 = vmatpush3.bf16.msra.mxu1 %v3850_v41  ;;  %8410 = vmatprep.mubr.msk.bf16.mxu1 %vm10405_vm0, %v10404_v1  ;;  %v9240_v41 = vld [vmem:[%s12120_s11 + $0x10] sm:$0xff]  }
0x1243   : > { %8422 = vmatprep.subr.bf16.mxu1 %v10404_v1 }
0x1246   : > { %v9316_v42 = vpop.eup %9315 }
0x1247   : > { %v3842_v43 = vmul.f32 %v9316_v42, %v9308_v18  ;;  %v9241_v42 = vld [vmem:[%s12120_s11 + $0x8] sm:$0xff]  }
0x1249   : > { %v3843_v44 = vpack.c.bf16 %v3842_v43, %v3842_v43 }
0x124b   : > { %8411 = vmatmul.mubr.msk.bf16.vlgmr.msra.gmra.mxu1 %vm2628_vm4, %v3843_v44  ;;  %v9242_v44 = vld [vmem:[%s12120_s11] sm:$0xff]   ;;  %s12149_s11 = sld [smem:[#allocation89_spill]] }
0x124c   : > { %8426 = vmatprep.mubr.msk.bf16.mxu1 %vm10405_vm0, %v10404_v1 }
0x12d4   : > { %v3542_v45 = vpop.f32.mrf.mxu1 }
0x12d5   : > { %3548 = vst.msk [vmem:[#allocation2] sm:$0xff] %vm2628_vm4, %v3542_v45  ;;  %v9245_v45 = vld [vmem:[%s12138_s8 + $0x8] sm:$0xff]  }
0x12d6   : > { %v8376_v46 = vpop.f32.mrf.mxu1 }
0x12d7   : > { %v9246_v46 = vld [vmem:[%s12138_s8] sm:$0xff]   ;;  %s12144_s8 = smov 120  }
0x12d8   : > { %v3545_v47 = vpop.f32.mrf.mxu1 }
0x12d9   : > { %v7929_v47 = vld [vmem:[#allocation36] ss:$0 sm:$0xff] }
0x12da   : > { %v8377_v48 = vpop.f32.mrf.mxu1 }
0x12dc   : > { %v3654_v49 = vpop.f32.mrf.mxu1 }
0x12dd   : > { %3661 = vrot.lane.b32.xlu1 %v3654_v49, %s12132_s0 }
0x12de   : > { %v8388_v29 = vpop.f32.mrf.mxu1 }
0x12e0   : > { %v3657_v50 = vpop.f32.mrf.mxu1 }
0x12e2   : > { %v8389_v51 = vpop.f32.mrf.mxu1 }
0x1301   : > { %v3770_v53 = vpop.f32.mrf.mxu1 }
0x1302   : > { %3777 = vrot.lane.b32.xlu0 %v3770_v53, %s12133_s2 }
0x1303   : > { %v8400_v55 = vpop.f32.mrf.mxu1 }
0x1305   : > { %v3773_v56 = vpop.f32.mrf.mxu1 }
0x1306   : > { %v4288_v56 = vld [vmem:[%s10765_s21] sm:$0xff] }
0x1307   : > { %v8401_v57 = vpop.f32.mrf.mxu1 }
0x130b   : > { %v3886_v58 = vpop.f32.mrf.mxu1 }
0x130c   : > { %3893 = vrot.lane.b32.xlu1 %v3886_v58, %s12134_s3 }
0x130d   : > { %v8412_v59 = vpop.f32.mrf.mxu1 }
0x130f   : > { %v3889_v60 = vpop.f32.mrf.mxu1 }
0x1311   : > { %v8413_v61 = vpop.f32.mrf.mxu1 }
0x134f   : > { %v3662_v62 = vpop.permute.xlu1 %3661 }
0x1350   : > { %3664 = vst.msk [vmem:[#allocation2] sm:$0xff] %vm2853_vm6, %v3662_v62 }
0x1374   : > { %v3778_v63 = vpop.permute.xlu0 %3777 }
0x1375   : > { %3780 = vst.msk [vmem:[#allocation2] sm:$0xff] %vm2970_vm7, %v3778_v63 }
0x137e   : > { %v3894_v0 = vpop.permute.xlu1 %3893 }
0x137f   : > { %3896 = vst.msk [vmem:[#allocation2] sm:$0xff] %vm3087_vm8, %v3894_v0 }
0x1386   : > { %v3897_v2 = vld [vmem:[#allocation2] sm:$0xff] }
0x1387   : > { %v3898_v3 = vpack.c.bf16 %v3897_v2, %v3897_v2 }
0x1389   : > { %8419 = vmatmul.mubr.msk.bf16.vlgmr.msra.gmra.mxu0 %vm2580_vm3, %v3898_v3 }
0x138a   : > { %8438 = vmatprep.mubr.msk.bf16.mxu0 %vm10405_vm0, %v10404_v1  ;;  %8431 = vmatpush3.bf16.msra.mxu0 %v9243_v25 }
0x138b   : > { %8432 = vmatprep.subr.bf16.mxu0 %v10404_v1 }
0x138e   : > { %8433 = vmatpush3.bf16.msra.mxu0 %v9244_v26 }
0x138f   : > { %8434 = vmatprep.subr.bf16.mxu0 %v10404_v1 }
0x1392   : > { %8435 = vmatpush3.bf16.msra.mxu0 %v9245_v45 }
0x1393   : > { %8436 = vmatprep.subr.bf16.mxu0 %v10404_v1 }
0x1396   : > { %8437 = vmatpush3.bf16.msra.mxu0 %v9246_v46 }
0x1397   : > { %8462 = vmatprep.subr.bf16.mxu0 %v10404_v1 }
0x1449   : > { %v3959_v5 = vpop.f32.mrf.mxu0 }
0x144a   : > { %v3960_v6 = vadd.f32 %v7923_v4, %v3959_v5  ;;  %v7951_v4 = vld [vmem:[%s12140_s6] ss:$0 sm:$0xff]  ;;  %s12145_s6 = smov 112  }
0x144b   : > { %v8420_v7 = vpop.f32.mrf.mxu0 }
0x144c   : > { %v3965_v8 = vadd.f32 %v3960_v6, %v11236_v15  ;;  %v9233_v15 = vld [vmem:[%s12136_s5 + $0x8] sm:$0xff]   ;;  %s12143_s5 = smov 80  }
0x144d   : > { %v3962_v9 = vpop.f32.mrf.mxu0  ;;  %8423 = vmatpush3.bf16.msra.mxu1 %v9233_v15 }
0x144e   : > { %v3966_v10 = vsel %vm2580_vm3, %v3965_v8, 0.0  ;;  %8424 = vmatprep.subr.bf16.mxu1 %v10404_v1 }
0x144f   : > { %3967 = vadd.xlane.f32.xlu0 %v3966_v10  ;;  %v8421_v13 = vpop.f32.mrf.mxu0 }
0x1451   : > { %8425 = vmatpush3.bf16.msra.mxu1 %v9234_v24 }
0x1452   : > { %8442 = vmatprep.subr.bf16.mxu1 %v10404_v1 }
0x1465   : > { %4178 = vperm.xlu0 %9210, %v4176_v16  }
0x14d8   : > { %v3968_v17 = vpop.xlane.xlu0 %3967 }
0x14d9   : > { %v3969_v18 = vmul.f32 0.03125, %v3968_v17 }
0x14db   : > { %v3970_v19 = vsub.f32 %v3965_v8, %v3969_v18 }
0x14dd   : > { %v3971_v20 = vmul.f32 %v3970_v19, %v3970_v19 }
0x14df   : > { %v3972_v23 = vsel %vm2580_vm3, %v3971_v20, 0.0 }
0x14e0   : > { %3973 = vadd.xlane.f32.xlu1 %v3972_v23  ;;  %v4179_v43 = vpop.permute.xlu0 %4178 }
0x14e1   : > { %vm4180_vm10 = vcmp.eq.s32.totalorder %v11104_v12, %v4179_v43 }
0x14e2   : > { %vm7949_vm11 = vmpackc.low %vm4180_vm10, %vm4180_vm10 }
0x1569   : > { %v3974_v27 = vpop.xlane.xlu1 %3973 }
0x156a   : > { %v3975_v28 = vmul.f32 0.03125, %v3974_v27  ;;  %v4409_v27 = vshrl.u32 %v2441_v11, 7 }
0x156c   : > { %v3976_v30 = vadd.f32 1e-05, %v3975_v28  ;;  %vm11432_vm12 = vcmp.le.s32.totalorder %v11104_v12, %v4409_v27 }
0x156e   : > { %9317 = vrsqrt.f32 %v3976_v30 }
0x157b   : > { %v9318_v31 = vpop.eup %9317 }
0x157c   : > { %v3978_v32 = vmul.f32 %v9318_v31, %v3970_v19 }
0x157e   : > { %v3986_v33 = vmul.f32 %v7927_v21, %v3978_v32 }
0x1580   : > { %v11344_v34 = vadd.f32 %v7928_v22, %v3986_v33 }
0x1582   : > { %v3995_v36 = vpack.c.bf16 %v11344_v34, %v11344_v34 }
0x1584   : > { %8427 = vmatmul.mubr.msk.bf16.vlgmr.msra.gmra.mxu1 %vm2580_vm3, %v3995_v36 }
0x1585   : > { %8443 = vmatpush3.bf16.msra.mxu1 %v9235_v35  ;;  %8458 = vmatprep.mubr.msk.bf16.mxu1 %vm10405_vm0, %v10404_v1 }
0x1586   : > { %8444 = vmatprep.subr.bf16.mxu1 %v10404_v1 }
0x1589   : > { %8445 = vmatpush3.bf16.msra.mxu1 %v9236_v37 }
0x158a   : > { %8446 = vmatprep.subr.bf16.mxu1 %v10404_v1 }
0x158d   : > { %8447 = vmatpush3.bf16.msra.mxu1 %v9237_v38 }
0x158e   : > { %8448 = vmatprep.subr.bf16.mxu1 %v10404_v1 }
0x1591   : > { %8449 = vmatpush3.bf16.msra.mxu1 %v9238_v39 }
0x1592   : > { %8450 = vmatprep.subr.bf16.mxu1 %v10404_v1 }
0x1595   : > { %8451 = vmatpush3.bf16.msra.mxu1 %v9239_v40 }
0x1596   : > { %8452 = vmatprep.subr.bf16.mxu1 %v10404_v1 }
0x1599   : > { %8453 = vmatpush3.bf16.msra.mxu1 %v9240_v41 }
0x159a   : > { %8454 = vmatprep.subr.bf16.mxu1 %v10404_v1 }
0x159d   : > { %8455 = vmatpush3.bf16.msra.mxu1 %v9241_v42 }
0x159e   : > { %8456 = vmatprep.subr.bf16.mxu1 %v10404_v1 }
0x15a1   : > { %8457 = vmatpush3.bf16.msra.mxu1 %v9242_v44 }
0x15a2   : > { %8482 = vmatprep.subr.bf16.mxu1 %v10404_v1 }
0x15a4   : > { %8459 = vmatmul.mubr.msk.bf16.vlgmr.msra.gmra.mxu1 %vm7949_vm11, %v10406_v14  ;;  %v9247_v14 = vld [vmem:[%s12139_s9 + $0x8] sm:$0xff]   ;;  %s12146_s9 = smov 104  }
0x15a5   : > { %8484 = vmatprep.mubr.msk.bf16.mxu1 %vm10405_vm0, %v10404_v1 }
0x1644   : > { %v4056_v48 = vpop.f32.mrf.mxu1 }
0x1645   : > { %v4057_v49 = vadd.f32 %v7929_v47, %v4056_v48 }
0x1646   : > { %v8428_v29 = vpop.f32.mrf.mxu1 }
0x1647   : > { %v4062_v50 = vmax.f32 %v4057_v49, 0.0 }
0x1648   : > { %v4059_v51 = vpop.f32.mrf.mxu1 }
0x1649   : > { %v4063_v52 = vpack.c.bf16 %v4062_v50, %v4062_v50 }
0x164a   : > { %v8429_v53 = vpop.f32.mrf.mxu1 }
0x164b   : > { %8439 = vmatmul.mubr.msk.bf16.vlgmr.msra.gmra.mxu0 %vm3296_vm9, %v4063_v52 }
0x164c   : > { %8463 = vmatpush3.bf16.msra.mxu0 %v9247_v14  ;;  %8466 = vmatprep.mubr.msk.bf16.mxu0 %vm10405_vm0, %v10404_v1 }
0x164d   : > { %8464 = vmatprep.subr.bf16.mxu0 %v10404_v1 }
0x1650   : > { %8465 = vmatpush3.bf16.msra.mxu0 %v9248_v54 }
0x1651   : > { %8470 = vmatprep.subr.bf16.mxu0 %v10404_v1 }
0x1664   : > { %v4281_v55 = vpop.f32.mrf.mxu1 }
0x1665   : > { %v4287_v57 = vmul.f32 5.656854, %v4281_v55 }
0x1666   : > { %v8460_v58 = vpop.f32.mrf.mxu1 }
0x1667   : > { %v11383_v59 = vadd.f32 %v4288_v56, %v4287_v57 }
0x1668   : > { %v4284_v60 = vpop.f32.mrf.mxu1 }
0x1669   : > { %v4290_v61 = vpack.c.bf16 %v11383_v59, %v11383_v59 }
0x166a   : > { %v8461_v62 = vpop.f32.mrf.mxu1 }
0x166b   : > { %8467 = vmatmul.mubr.msk.bf16.vlgmr.msra.gmra.mxu0 %vm2580_vm3, %v4290_v61 }
0x166c   : > { %8472 = vmatprep.mubr.msk.bf16.mxu0 %vm10405_vm0, %v10404_v1 }
0x170b   : > { %v11390_v63 = vpop.f32.mrf.mxu0 }
0x170d   : > { %v8440_v0 = vpop.f32.mrf.mxu0 }
0x170f   : > { %v4143_v2 = vpop.f32.mrf.mxu0 }
0x1711   : > { %v8441_v3 = vpop.f32.mrf.mxu0 }
0x172b   : > { %v4351_v5 = vpop.f32.mrf.mxu0 }
0x172c   : > { %v4352_v6 = vadd.f32 %v7951_v4, %v4351_v5 }
0x172d   : > { %v8468_v7 = vpop.f32.mrf.mxu0 }
0x172e   : > { %v11393_v8 = vpack.c.bf16 %v4352_v6, %v4352_v6 }
0x172f   : > { %v4354_v9 = vpop.f32.mrf.mxu0 }
0x1730   : > { %4475 = vrot.lane.b32.xlu0 %v11393_v8, %s12141_s4  ;;  %4359 = vrot.lane.b32.xlu1 %v11393_v8, %s12142_s26 }
0x1731   : > { %v8469_v10 = vpop.f32.mrf.mxu0 }
0x1734   : > { %4592 = vrot.lane.b32.xlu0 %v11393_v8, %s12143_s5  ;;  %4473 = vrot.lane.b32.xlu1 %v11393_v8, %s12144_s8 }
0x1738   : > { %4709 = vrot.lane.b32.xlu0 %v11393_v8, %s12126_s1  ;;  %4590 = vrot.lane.b32.xlu1 %v11393_v8, %s12145_s6 }
0x173c   : > { %4707 = vrot.lane.b32.xlu1 %v11393_v8, %s12146_s9 }
0x17a2   : > { %v4476_v13 = vpop.permute.xlu0 %4475  ;;  %v4360_v16 = vpop.permute.xlu1 %4359 }
0x17a3   : > { %v4481_v17 = vsel %vm2628_vm4, %v4476_v13, 0  ;;  %v4365_v18 = vsel %vm2628_vm4, %v4360_v16, 0 }
0x17a4   : > { %8471 = vmatpush3.bf16.xpose.msra.mxu0 %v4365_v18  ;;  %8483 = vmatpush3.bf16.xpose.msra.mxu1 %v4481_v17 }
0x17a5   : > { %8494 = vmatprep.subr.bf16.mxu1 %v10404_v1  ;;  %8476 = vmatprep.subr.bf16.mxu0 %v10404_v1 }
0x17a6   : > { %v4593_v19 = vpop.permute.xlu0 %4592  ;;  %v4474_v20 = vpop.permute.xlu1 %4473 }
0x17a7   : > { %v4598_v23 = vsel %vm2628_vm4, %v4593_v19, 0 }
0x17aa   : > { %v4710_v15 = vpop.permute.xlu0 %4709  ;;  %v4591_v24 = vpop.permute.xlu1 %4590 }
0x17ab   : > { %8473 = vmatmul.mubr.msk.bf16.vlgmr.msra.gmra.mxu0 %vm2628_vm4, %v11393_v8  ;;  %8485 = vmatmul.mubr.msk.bf16.vlgmr.msra.gmra.mxu1 %vm2628_vm4, %v4474_v20  ;;  %v4715_v25 = vsel %vm2628_vm4, %v4710_v15, 0 }
0x17ac   : > { %8495 = vmatpush3.bf16.xpose.msra.mxu1 %v4598_v23  ;;  %8496 = vmatprep.mubr.msk.bf16.mxu1 %vm10405_vm0, %v10404_v1 }
0x17ad   : > { %8506 = vmatprep.subr.bf16.mxu1 %v10404_v1  ;;  %8478 = vmatprep.mubr.msk.bf16.mxu0 %vm10405_vm0, %v10404_v1 }
0x17ae   : > { %v4708_v26 = vpop.permute.xlu1 %4707 }
0x17b3   : > { %8497 = vmatmul.mubr.msk.bf16.vlgmr.msra.gmra.mxu1 %vm2628_vm4, %v4591_v24 }
0x17b4   : > { %8507 = vmatpush3.bf16.xpose.msra.mxu1 %v4715_v25  ;;  %8508 = vmatprep.mubr.msk.bf16.mxu1 %vm10405_vm0, %v10404_v1 }
0x17b5   : > { %8518 = vmatprep.subr.bf16.mxu1 %v10404_v1 }
0x17bb   : > { %8509 = vmatmul.mubr.msk.bf16.vlgmr.msra.gmra.mxu1 %vm2628_vm4, %v4708_v26 }
0x17bc   : > { %8522 = vmatprep.mubr.msk.bf16.mxu1 %vm10405_vm0, %v10404_v1 }
0x186b   : > { %v4401_v30 = vpop.f32.mrf.mxu0  ;;  %v4517_v31 = vpop.f32.mrf.mxu1 }
0x186c   : > { %v4407_v21 = vmul.f32 0.35355338, %v4401_v30  ;;  %v4523_v32 = vmul.f32 0.35355338, %v4517_v31 }
0x186d   : > { %v8474_v22 = vpop.f32.mrf.mxu0  ;;  %v8486_v33 = vpop.f32.mrf.mxu1 }
0x186e   : > { %v4524_v35 = vsel %vm11432_vm12, %v4523_v32, -1e+30  ;;  %v4411_v36 = vsel %vm11432_vm12, %v4407_v21, -1e+30 }
0x186f   : > { %v4404_v37 = vpop.f32.mrf.mxu0  ;;  %v4520_v38 = vpop.f32.mrf.mxu1  ;;  %v4525_v11 = vsel %vm2628_vm4, %v4524_v35, -inf  ;;  %v4412_v12 = vsel %vm2628_vm4, %v4411_v36, -inf }
0x1870   : > { %4526 = vmax.xlane.f32.xlu1 %v4525_v11  ;;  %4413 = vmax.xlane.f32.xlu0 %v4412_v12 }
0x1871   : > { %v8475_v39 = vpop.f32.mrf.mxu0  ;;  %v8487_v40 = vpop.f32.mrf.mxu1 }
0x1873   : > { %v4634_v41 = vpop.f32.mrf.mxu1 }
0x1874   : > { %v4640_v42 = vmul.f32 0.35355338, %v4634_v41 }
0x1875   : > { %v8498_v43 = vpop.f32.mrf.mxu1 }
0x1876   : > { %v4641_v44 = vsel %vm11432_vm12, %v4640_v42, -1e+30 }
0x1877   : > { %v4637_v45 = vpop.f32.mrf.mxu1  ;;  %v4642_v46 = vsel %vm2628_vm4, %v4641_v44, -inf }
0x1878   : > { %4643 = vmax.xlane.f32.xlu0 %v4642_v46 }
0x1879   : > { %v8499_v47 = vpop.f32.mrf.mxu1 }
0x187b   : > { %v4751_v48 = vpop.f32.mrf.mxu1 }
0x187c   : > { %v4757_v49 = vmul.f32 0.35355338, %v4751_v48  ;;  %v9249_v48 = vld [vmem:[%s12149_s11 + $0x8] sm:$0xff]  }
0x187d   : > { %v8510_v29 = vpop.f32.mrf.mxu1  ;;  %8519 = vmatpush3.bf16.msra.mxu1 %v9249_v48 }
0x187e   : > { %v4758_v50 = vsel %vm11432_vm12, %v4757_v49, -1e+30  ;;  %v9250_v49 = vld [vmem:[%s12149_s11] sm:$0xff]   ;;  %8520 = vmatprep.subr.bf16.mxu1 %v10404_v1  ;;  %s12150_s11 = sld [smem:[#allocation87_spill]] }
0x187f   : > { %v4754_v51 = vpop.f32.mrf.mxu1  ;;  %v4759_v14 = vsel %vm2628_vm4, %v4758_v50, -inf }
0x1880   : > { %4760 = vmax.xlane.f32.xlu0 %v4759_v14 }
0x1881   : > { %v8511_v52 = vpop.f32.mrf.mxu1  ;;  %8521 = vmatpush3.bf16.msra.mxu1 %v9250_v49 }
0x1882   : > { %8534 = vmatprep.subr.bf16.mxu1 %v10404_v1 }
0x18f9   : > { %v4527_v53 = vpop.xlane.xlu1 %4526  ;;  %v4414_v54 = vpop.xlane.xlu0 %4413 }
0x18fa   : > { %v4528_v55 = vsub.f32 %v4524_v35, %v4527_v53  ;;  %v4415_v56 = vsub.f32 %v4411_v36, %v4414_v54 }
0x18fc   : > { %v4529_v57 = vmul.f32 1.442695, %v4528_v55  ;;  %v4416_v58 = vmul.f32 1.442695, %v4415_v56  ;;  %v7933_v56 = vld [vmem:[#allocation38] ss:$0 sm:$0xff] }
0x18fe   : > { %9319 = vpow2.f32 %v4529_v57  ;;  %v4141_v57 = vadd.f32 %v7933_v56, %v11390_v63 }
0x18ff   : > { %9321 = vpow2.f32 %v4416_v58 }
0x1900   : > { %v4146_v58 = vadd.f32 %v4141_v57, %v11344_v34 }
0x1901   : > { %v4644_v60 = vpop.xlane.xlu0 %4643 }
0x1902   : > { %v4645_v9 = vsub.f32 %v4641_v44, %v4644_v60  ;;  %v4147_v60 = vsel %vm2580_vm3, %v4146_v58, 0.0 }
0x1904   : > { %v4646_v10 = vmul.f32 1.442695, %v4645_v9 }
0x1909   : > { %v4761_v61 = vpop.xlane.xlu0 %4760 }
0x190a   : > { %v4762_v62 = vsub.f32 %v4758_v50, %v4761_v61 }
0x190b   : > { %v9320_v0 = vpop.eup %9319 }
0x190c   : > { %v9322_v2 = vpop.eup %9321  ;;  %v4763_v3 = vmul.f32 1.442695, %v4762_v62  ;;  %v4531_v4 = vsel %vm2628_vm4, %v9320_v0, 0.0 }
0x190d   : > { %4532 = vadd.xlane.f32.xlu0 %v4531_v4  ;;  %v4418_v5 = vsel %vm2628_vm4, %v9322_v2, 0.0  ;;  %v7963_v4 = vld [vmem:[%s12150_s11] ss:$0 sm:$0xff]  ;;  %s12152_s11 = sld [smem:[#allocation75_spill]] }
0x190e   : > { %9323 = vpow2.f32 %v4763_v3  ;;  %4419 = vadd.xlane.f32.xlu1 %v4418_v5 }
0x190f   : > { %9325 = vpow2.f32 %v4646_v10 }
0x191b   : > { %v9324_v6 = vpop.eup %9323 }
0x191c   : > { %v4765_v7 = vsel %vm2628_vm4, %v9324_v6, 0.0  ;;  %v9326_v13 = vpop.eup %9325 }
0x191d   : > { %4766 = vadd.xlane.f32.xlu0 %v4765_v7  ;;  %v4648_v16 = vsel %vm2628_vm4, %v9326_v13, 0.0 }
0x191f   : > { %4424 = vrot.lane.b32.xlu1 %v11393_v8, %s12128_s10 }
0x1933   : > { %4537 = vrot.lane.b32.xlu0 %v11393_v8, %s12127_s16 }
0x1943   : > { %4649 = vadd.xlane.f32.xlu1 %v4648_v16 }
0x1954   : > { %4654 = vrot.lane.b32.xlu1 %v11393_v8, %s12130_s28 }
0x1958   : > { %4771 = vrot.lane.b32.xlu1 %v11393_v8, %s12129_s18 }
0x1996   : > { %v4533_v18 = vpop.xlane.xlu0 %4532 }
0x1997   : > { %v4420_v17 = vpop.xlane.xlu1 %4419 }
0x1998   : > { %9327 = vrcp.f32 %v4420_v17 }
0x1999   : > { %9329 = vrcp.f32 %v4533_v18 }
0x199b   : > { %v4425_v19 = vpop.permute.xlu1 %4424 }
0x199c   : > { %v4430_v20 = vsel %vm2693_vm5, %v4425_v19, 0 }
0x199d   : > { %8477 = vmatpush3.bf16.msra.mxu0 %v4430_v20  ;;  %v9251_v20 = vld [vmem:[%s12151_s12 + $0x8] sm:$0xff]  }
0x199e   : > { %8488 = vmatprep.subr.bf16.mxu0 %v10404_v1 }
0x19a5   : > { %v9328_v23 = vpop.eup %9327 }
0x19a6   : > { %v4767_v15 = vpop.xlane.xlu0 %4766  ;;  %v4422_v24 = vmul.f32 %v9328_v23, %v9322_v2  ;;  %v9330_v26 = vpop.eup %9329  ;;  %v9252_v23 = vld [vmem:[%s12151_s12] sm:$0xff]   ;;  %s12153_s12 = sld [smem:[#allocation81_spill]] }
0x19a7   : > { %v4535_v30 = vmul.f32 %v9330_v26, %v9320_v0 }
0x19a8   : > { %v4423_v25 = vpack.c.bf16 %v4422_v24, %v4422_v24 }
0x19a9   : > { %v4536_v31 = vpack.c.bf16 %v4535_v30, %v4535_v30 }
0x19aa   : > { %8479 = vmatmul.mubr.msk.bf16.vlgmr.msra.gmra.mxu0 %vm2628_vm4, %v4423_v25  ;;  %v4538_v27 = vpop.permute.xlu0 %4537 }
0x19ab   : > { %v4543_v8 = vsel %vm2693_vm5, %v4538_v27, 0  ;;  %8490 = vmatprep.mubr.msk.bf16.mxu0 %vm10405_vm0, %v10404_v1 }
0x19ac   : > { %8489 = vmatpush3.bf16.msra.mxu0 %v4543_v8 }
0x19ad   : > { %8500 = vmatprep.subr.bf16.mxu0 %v10404_v1 }
0x19b2   : > { %8491 = vmatmul.mubr.msk.bf16.vlgmr.msra.gmra.mxu0 %vm2628_vm4, %v4536_v31 }
0x19b3   : > { %8502 = vmatprep.mubr.msk.bf16.mxu0 %vm10405_vm0, %v10404_v1 }
0x19cc   : > { %v4650_v21 = vpop.xlane.xlu1 %4649 }
0x19cd   : > { %9331 = vrcp.f32 %v4650_v21  ;;  %v7939_v21 = vld [vmem:[#allocation44] ss:$0 sm:$0xff] }
0x19ce   : > { %9333 = vrcp.f32 %v4767_v15 }
0x19d0   : > { %v4655_v32 = vpop.permute.xlu1 %4654 }
0x19d1   : > { %v4660_v22 = vsel %vm2693_vm5, %v4655_v32, 0 }
0x19d2   : > { %8501 = vmatpush3.bf16.msra.mxu0 %v4660_v22  ;;  %v7940_v22 = vld [vmem:[#allocation42] ss:$0 sm:$0xff] }
0x19d3   : > { %8512 = vmatprep.subr.bf16.mxu0 %v10404_v1 }
0x19d4   : > { %v4772_v36 = vpop.permute.xlu1 %4771 }
0x19d5   : > { %v4777_v11 = vsel %vm2693_vm5, %v4772_v36, 0 }
0x19da   : > { %v9332_v33 = vpop.eup %9331 }
0x19db   : > { %v4652_v35 = vmul.f32 %v9332_v33, %v9326_v13  ;;  %v9334_v38 = vpop.eup %9333 }
0x19dc   : > { %v4769_v12 = vmul.f32 %v9334_v38, %v9324_v6  ;;  %v9254_v38 = vld [vmem:[%s12152_s11] sm:$0xff]  }
0x19dd   : > { %v4653_v37 = vpack.c.bf16 %v4652_v35, %v4652_v35 }
0x19de   : > { %v4770_v39 = vpack.c.bf16 %v4769_v12, %v4769_v12 }
0x19df   : > { %8503 = vmatmul.mubr.msk.bf16.vlgmr.msra.gmra.mxu0 %vm2628_vm4, %v4653_v37  ;;  %v9253_v37 = vld [vmem:[%s12152_s11 + $0x8] sm:$0xff]   ;;  %s12159_s11 = sld [smem:[#allocation79_spill]] }
0x19e0   : > { %8513 = vmatpush3.bf16.msra.mxu0 %v4777_v11  ;;  %8514 = vmatprep.mubr.msk.bf16.mxu0 %vm10405_vm0, %v10404_v1 }
0x19e1   : > { %8526 = vmatprep.subr.bf16.mxu0 %v10404_v1 }
0x19e7   : > { %8515 = vmatmul.mubr.msk.bf16.vlgmr.msra.gmra.mxu0 %vm2628_vm4, %v4770_v39 }
0x19e8   : > { %8530 = vmatprep.mubr.msk.bf16.mxu0 %vm10405_vm0, %v10404_v1  ;;  %8527 = vmatpush3.bf16.msra.mxu0 %v9253_v37 }
0x19e9   : > { %8528 = vmatprep.subr.bf16.mxu0 %v10404_v1 }
0x19ec   : > { %8529 = vmatpush3.bf16.msra.mxu0 %v9254_v38 }
0x19ed   : > { %8542 = vmatprep.subr.bf16.mxu0 %v10404_v1 }
0x1a6a   : > { %v4466_v40 = vpop.f32.mrf.mxu0 }
0x1a6b   : > { %4472 = vst.msk [vmem:[#allocation2] sm:$0xff] %vm2628_vm4, %v4466_v40 }
0x1a6c   : > { %v8480_v41 = vpop.f32.mrf.mxu0 }
0x1a6d   : > { %v7967_v41 = vld [vmem:[%s12153_s12] ss:$0 sm:$0xff]  ;;  %s12157_s12 = sld [smem:[#allocation71_spill]] }
0x1a6e   : > { %v4469_v42 = vpop.f32.mrf.mxu0 }
0x1a70   : > { %v8481_v43 = vpop.f32.mrf.mxu0 }
0x1a71   : > { %v7968_v43 = vld [vmem:[%s12154_s13] ss:$0 sm:$0xff]  ;;  %s12158_s13 = sld [smem:[#allocation78_spill]] }
0x1a72   : > { %v4579_v44 = vpop.f32.mrf.mxu0 }
0x1a73   : > { %4586 = vrot.lane.b32.xlu0 %v4579_v44, %s12132_s0 }
0x1a74   : > { %v8492_v45 = vpop.f32.mrf.mxu0 }
0x1a76   : > { %v4582_v46 = vpop.f32.mrf.mxu0 }
0x1a78   : > { %v8493_v47 = vpop.f32.mrf.mxu0 }
0x1a79   : > { %v7973_v47 = vld [vmem:[%s12155_s17] ss:$0 sm:$0xff]  ;;  %s12156_s17 = sld [smem:[#allocation74_spill]] }
0x1a9f   : > { %v4696_v29 = vpop.f32.mrf.mxu0 }
0x1aa0   : > { %4703 = vrot.lane.b32.xlu1 %v4696_v29, %s12133_s2 }
0x1aa1   : > { %v8504_v50 = vpop.f32.mrf.mxu0 }
0x1aa3   : > { %v4699_v51 = vpop.f32.mrf.mxu0 }
0x1aa5   : > { %v8505_v14 = vpop.f32.mrf.mxu0 }
0x1aa7   : > { %v4813_v52 = vpop.f32.mrf.mxu0 }
0x1aa8   : > { %4820 = vrot.lane.b32.xlu0 %v4813_v52, %s12134_s3 }
0x1aa9   : > { %v8516_v53 = vpop.f32.mrf.mxu0 }
0x1aaa   : > { %v7969_v53 = vld [vmem:[#allocation3] ss:$0 sm:$0xff] }
0x1aab   : > { %v4816_v54 = vpop.f32.mrf.mxu0 }
0x1aad   : > { %v8517_v55 = vpop.f32.mrf.mxu0 }
0x1ac4   : > { %4148 = vadd.xlane.f32.xlu1 %v4147_v60 }
0x1ae5   : > { %v4587_v61 = vpop.permute.xlu0 %4586 }
0x1ae6   : > { %4589 = vst.msk [vmem:[#allocation2] sm:$0xff] %vm2853_vm6, %v4587_v61 }
0x1b12   : > { %v4704_v62 = vpop.permute.xlu1 %4703 }
0x1b13   : > { %4706 = vst.msk [vmem:[#allocation2] sm:$0xff] %vm2970_vm7, %v4704_v62 }
0x1b1a   : > { %v4821_v0 = vpop.permute.xlu0 %4820 }
0x1b1b   : > { %4823 = vst.msk [vmem:[#allocation2] sm:$0xff] %vm3087_vm8, %v4821_v0 }
0x1b22   : > { %v4824_v2 = vld [vmem:[#allocation2] sm:$0xff] }
0x1b23   : > { %v4825_v3 = vpack.c.bf16 %v4824_v2, %v4824_v2 }
0x1b25   : > { %8523 = vmatmul.mubr.msk.bf16.vlgmr.msra.gmra.mxu1 %vm2580_vm3, %v4825_v3 }
0x1b26   : > { %8538 = vmatprep.mubr.msk.bf16.mxu1 %vm10405_vm0, %v10404_v1  ;;  %8535 = vmatpush3.bf16.msra.mxu1 %v9251_v20 }
0x1b27   : > { %8536 = vmatprep.subr.bf16.mxu1 %v10404_v1 }
0x1b2a   : > { %8537 = vmatpush3.bf16.msra.mxu1 %v9252_v23 }
0x1b2b   : > { %8548 = vmatprep.subr.bf16.mxu1 %v10404_v1 }
0x1b4d   : > { %v4149_v34 = vpop.xlane.xlu1 %4148 }
0x1b4e   : > { %v4150_v63 = vmul.f32 0.03125, %v4149_v34 }
0x1b50   : > { %v4151_v6 = vsub.f32 %v4146_v58, %v4150_v63 }
0x1b52   : > { %v4152_v17 = vmul.f32 %v4151_v6, %v4151_v6 }
0x1b54   : > { %v4153_v19 = vsel %vm2580_vm3, %v4152_v17, 0.0 }
0x1be5   : > { %v4886_v5 = vpop.f32.mrf.mxu1 }
0x1be6   : > { %v4887_v7 = vadd.f32 %v7963_v4, %v4886_v5 }
0x1be7   : > { %v8524_v9 = vpop.f32.mrf.mxu1 }
0x1be8   : > { %v4892_v10 = vadd.f32 %v4887_v7, %v11383_v59 }
0x1be9   : > { %v4889_v13 = vpop.f32.mrf.mxu1 }
0x1bea   : > { %v4893_v16 = vsel %vm2580_vm3, %v4892_v10, 0.0 }
0x1beb   : > { %4894 = vadd.xlane.f32.xlu0 %v4893_v16  ;;  %v8525_v18 = vpop.f32.mrf.mxu1 }
0x1bef   : > { %4154 = vadd.xlane.f32.xlu0 %v4153_v19 }
0x1c74   : > { %v4895_v15 = vpop.xlane.xlu0 %4894 }
0x1c75   : > { %v4896_v24 = vmul.f32 0.03125, %v4895_v15 }
0x1c77   : > { %v4897_v59 = vsub.f32 %v4892_v10, %v4896_v24 }
0x1c78   : > { %v4155_v25 = vpop.xlane.xlu0 %4154 }
0x1c79   : > { %v4156_v26 = vmul.f32 0.03125, %v4155_v25  ;;  %v4898_v27 = vmul.f32 %v4897_v59, %v4897_v59 }
0x1c7b   : > { %v4157_v8 = vadd.f32 1e-05, %v4156_v26  ;;  %v4899_v30 = vsel %vm2580_vm3, %v4898_v27, 0.0 }
0x1c7c   : > { %4900 = vadd.xlane.f32.xlu1 %v4899_v30 }
0x1c7d   : > { %9335 = vrsqrt.f32 %v4157_v8 }
0x1c8a   : > { %v9336_v31 = vpop.eup %9335 }
0x1c8b   : > { %v4159_v32 = vmul.f32 %v9336_v31, %v4151_v6 }
0x1c8d   : > { %v4167_v33 = vmul.f32 %v7939_v21, %v4159_v32 }
0x1c8f   : > { %v4175_v35 = vadd.f32 %v7940_v22, %v4167_v33 }
0x1c91   : > { %v11506_v36 = vpack.c.bf16 %v4175_v35, %v4175_v35 }
0x1c93   : > { %8539 = vmatmul.mubr.msk.bf16.vlgmr.msra.gmra.mxu1 %vm2580_vm3, %v11506_v36 }
0x1c94   : > { %8550 = vmatprep.mubr.msk.bf16.mxu1 %vm10405_vm0, %v10404_v1 }
0x1d05   : > { %v4901_v11 = vpop.xlane.xlu1 %4900 }
0x1d06   : > { %v4902_v12 = vmul.f32 0.03125, %v4901_v11 }
0x1d08   : > { %v4903_v39 = vadd.f32 1e-05, %v4902_v12 }
0x1d0a   : > { %9337 = vrsqrt.f32 %v4903_v39 }
0x1d17   : > { %v9338_v40 = vpop.eup %9337 }
0x1d18   : > { %v4905_v42 = vmul.f32 %v9338_v40, %v4897_v59 }
0x1d1a   : > { %v4913_v44 = vmul.f32 %v7967_v41, %v4905_v42 }
0x1d1c   : > { %v11518_v45 = vadd.f32 %v7968_v43, %v4913_v44 }
0x1d1e   : > { %v4922_v46 = vpack.c.bf16 %v11518_v45, %v11518_v45 }
0x1d20   : > { %8531 = vmatmul.mubr.msk.bf16.vlgmr.msra.gmra.mxu0 %vm2580_vm3, %v4922_v46 }
0x1d21   : > { %8544 = vmatprep.mubr.msk.bf16.mxu0 %vm10405_vm0, %v10404_v1 }
0x1d53   : > { %v5050_v48 = vpop.f32.mrf.mxu1 }
0x1d54   : > { %v5051_v49 = vadd.f32 %v7973_v47, %v5050_v48 }
0x1d55   : > { %v8540_v29 = vpop.f32.mrf.mxu1 }
0x1d56   : > { %v11526_v50 = vpack.c.bf16 %v5051_v49, %v5051_v49 }
0x1d57   : > { %v5053_v51 = vpop.f32.mrf.mxu1 }
0x1d58   : > { %5170 = vrot.lane.b32.xlu0 %v11526_v50, %s12144_s8  ;;  %v5062_v14 = vsel %vm2628_vm4, %v11526_v50, 0 }
0x1d59   : > { %v8541_v52 = vpop.f32.mrf.mxu1  ;;  %8543 = vmatpush3.bf16.xpose.msra.mxu0 %v5062_v14 }
0x1d5a   : > { %8554 = vmatprep.subr.bf16.mxu0 %v10404_v1 }
0x1dca   : > { %v5171_v57 = vpop.permute.xlu0 %5170 }
0x1dcb   : > { %v5176_v61 = vsel %vm2628_vm4, %v5171_v57, 0 }
0x1de0   : > { %v4983_v54 = vpop.f32.mrf.mxu0 }
0x1de1   : > { %v4984_v55 = vadd.f32 %v7969_v53, %v4983_v54 }
0x1de2   : > { %v8532_v56 = vpop.f32.mrf.mxu0 }
0x1de3   : > { %v5056_v58 = vpack.c.bf16 %v4984_v55, %v4984_v55 }
0x1de4   : > { %v4986_v60 = vpop.f32.mrf.mxu0 }
0x1de5   : > { %5284 = vrot.lane.b32.xlu0 %v5056_v58, %s12145_s6  ;;  %5168 = vrot.lane.b32.xlu1 %v5056_v58, %s12144_s8 }
0x1de6   : > { %8545 = vmatmul.mubr.msk.bf16.vlgmr.msra.gmra.mxu0 %vm2628_vm4, %v5056_v58  ;;  %v8533_v62 = vpop.f32.mrf.mxu0 }
0x1de7   : > { %8555 = vmatpush3.bf16.xpose.msra.mxu0 %v5176_v61  ;;  %8556 = vmatprep.mubr.msk.bf16.mxu0 %vm10405_vm0, %v10404_v1 }
0x1de8   : > { %8566 = vmatprep.subr.bf16.mxu0 %v10404_v1 }
0x1de9   : > { %5400 = vrot.lane.b32.xlu0 %v5056_v58, %s12146_s9  ;;  %5286 = vrot.lane.b32.xlu1 %v11526_v50, %s12145_s6 }
0x1ded   : > { %5402 = vrot.lane.b32.xlu1 %v11526_v50, %s12146_s9 }
0x1e57   : > { %v5169_v0 = vpop.permute.xlu1 %5168  ;;  %v5285_v63 = vpop.permute.xlu0 %5284 }
0x1e58   : > { %8557 = vmatmul.mubr.msk.bf16.vlgmr.msra.gmra.mxu0 %vm2628_vm4, %v5169_v0 }
0x1e59   : > { %8568 = vmatprep.mubr.msk.bf16.mxu0 %vm10405_vm0, %v10404_v1 }
0x1e5b   : > { %v5287_v2 = vpop.permute.xlu1 %5286  ;;  %v5401_v5 = vpop.permute.xlu0 %5400 }
0x1e5c   : > { %v5292_v3 = vsel %vm2628_vm4, %v5287_v2, 0 }
0x1e5d   : > { %8567 = vmatpush3.bf16.xpose.msra.mxu0 %v5292_v3 }
0x1e5e   : > { %8578 = vmatprep.subr.bf16.mxu0 %v10404_v1 }
0x1e5f   : > { %v5403_v34 = vpop.permute.xlu1 %5402 }
0x1e60   : > { %v5408_v4 = vsel %vm2628_vm4, %v5403_v34, 0 }
0x1e64   : > { %8569 = vmatmul.mubr.msk.bf16.vlgmr.msra.gmra.mxu0 %vm2628_vm4, %v5285_v63 }
0x1e65   : > { %8579 = vmatpush3.bf16.xpose.msra.mxu0 %v5408_v4  ;;  %8580 = vmatprep.mubr.msk.bf16.mxu0 %vm10405_vm0, %v10404_v1 }
0x1e66   : > { %8590 = vmatprep.subr.bf16.mxu0 %v10404_v1 }
0x1e6c   : > { %8581 = vmatmul.mubr.msk.bf16.vlgmr.msra.gmra.mxu0 %vm2628_vm4, %v5401_v5 }
0x1e6d   : > { %8594 = vmatprep.mubr.msk.bf16.mxu0 %vm10405_vm0, %v10404_v1 }
0x1ea6   : > { %v5098_v6 = vpop.f32.mrf.mxu0 }
0x1ea7   : > { %v5104_v7 = vmul.f32 0.35355338, %v5098_v6 }
0x1ea8   : > { %v8546_v9 = vpop.f32.mrf.mxu0 }
0x1ea9   : > { %v5105_v10 = vsel %vm2628_vm4, %v5104_v7, -inf }
0x1eaa   : > { %5106 = vmax.xlane.f32.xlu1 %v5105_v10  ;;  %v5101_v13 = vpop.f32.mrf.mxu0 }
0x1eac   : > { %v8547_v16 = vpop.f32.mrf.mxu0 }
0x1f18   : > { %v5212_v17 = vpop.f32.mrf.mxu0 }
0x1f19   : > { %v5218_v18 = vmul.f32 0.35355338, %v5212_v17 }
0x1f1a   : > { %v8558_v19 = vpop.f32.mrf.mxu0 }
0x1f1b   : > { %v5219_v20 = vsel %vm2628_vm4, %v5218_v18, -inf }
0x1f1c   : > { %5220 = vmax.xlane.f32.xlu0 %v5219_v20  ;;  %v5215_v23 = vpop.f32.mrf.mxu0 }
0x1f1e   : > { %v8559_v15 = vpop.f32.mrf.mxu0 }
0x1f24   : > { %v5328_v24 = vpop.f32.mrf.mxu0 }
0x1f25   : > { %v5334_v59 = vmul.f32 0.35355338, %v5328_v24 }
0x1f26   : > { %v8570_v25 = vpop.f32.mrf.mxu0 }
0x1f27   : > { %v5335_v26 = vsel %vm2628_vm4, %v5334_v59, -inf }
0x1f28   : > { %5336 = vmax.xlane.f32.xlu0 %v5335_v26  ;;  %v5331_v27 = vpop.f32.mrf.mxu0 }
0x1f29   : > { %v9255_v27 = vld [vmem:[%s12156_s17 + $0x8] sm:$0xff]  }
0x1f2a   : > { %v8571_v8 = vpop.f32.mrf.mxu0  ;;  %8591 = vmatpush3.bf16.msra.mxu0 %v9255_v27 }
0x1f2b   : > { %8592 = vmatprep.subr.bf16.mxu0 %v10404_v1 }
0x1f2c   : > { %v5444_v30 = vpop.f32.mrf.mxu0 }
0x1f2d   : > { %v5450_v31 = vmul.f32 0.35355338, %v5444_v30  ;;  %v9256_v30 = vld [vmem:[%s12156_s17] sm:$0xff]   ;;  %s12161_s17 = sld [smem:[#allocation82_spill]] }
0x1f2e   : > { %v8582_v21 = vpop.f32.mrf.mxu0  ;;  %8593 = vmatpush3.bf16.msra.mxu0 %v9256_v30 }
0x1f2f   : > { %v5451_v32 = vsel %vm2628_vm4, %v5450_v31, -inf  ;;  %8606 = vmatprep.subr.bf16.mxu0 %v10404_v1 }
0x1f30   : > { %5452 = vmax.xlane.f32.xlu1 %v5451_v32  ;;  %v5447_v22 = vpop.f32.mrf.mxu0 }
0x1f32   : > { %v8583_v33 = vpop.f32.mrf.mxu0 }
0x1f33   : > { %v5107_v35 = vpop.xlane.xlu1 %5106 }
0x1f34   : > { %v5108_v37 = vsub.f32 %v5104_v7, %v5107_v35 }
0x1f36   : > { %v5109_v38 = vmul.f32 1.442695, %v5108_v37 }
0x1f38   : > { %9339 = vpow2.f32 %v5109_v38 }
0x1f45   : > { %v9340_v11 = vpop.eup %9339 }
0x1f46   : > { %v5111_v12 = vsel %vm2628_vm4, %v9340_v11, 0.0 }
0x1f47   : > { %5112 = vadd.xlane.f32.xlu0 %v5111_v12 }
0x1fa5   : > { %v5221_v39 = vpop.xlane.xlu0 %5220 }
0x1fa6   : > { %v5222_v40 = vsub.f32 %v5218_v18, %v5221_v39 }
0x1fa8   : > { %v5223_v41 = vmul.f32 1.442695, %v5222_v40 }
0x1faa   : > { %9341 = vpow2.f32 %v5223_v41  ;;  %v7985_v41 = vld [vmem:[%s12157_s12] ss:$0 sm:$0xff]  ;;  %s12160_s12 = sld [smem:[#allocation83_spill]] }
0x1fb1   : > { %v5337_v42 = vpop.xlane.xlu0 %5336 }
0x1fb2   : > { %v5338_v43 = vsub.f32 %v5334_v59, %v5337_v42 }
0x1fb4   : > { %v5339_v44 = vmul.f32 1.442695, %v5338_v43 }
0x1fb6   : > { %9343 = vpow2.f32 %v5339_v44 }
0x1fb7   : > { %v9342_v46 = vpop.eup %9341 }
0x1fb8   : > { %v5225_v47 = vsel %vm2628_vm4, %v9342_v46, 0.0 }
0x1fb9   : > { %5226 = vadd.xlane.f32.xlu1 %v5225_v47  ;;  %v5453_v29 = vpop.xlane.xlu1 %5452 }
0x1fba   : > { %v5454_v51 = vsub.f32 %v5450_v31, %v5453_v29 }
0x1fbc   : > { %v5455_v14 = vmul.f32 1.442695, %v5454_v51 }
0x1fbe   : > { %9345 = vpow2.f32 %v5455_v14 }
0x1fc3   : > { %v9344_v48 = vpop.eup %9343 }
0x1fc4   : > { %v5341_v49 = vsel %vm2628_vm4, %v9344_v48, 0.0 }
0x1fc5   : > { %5342 = vadd.xlane.f32.xlu0 %v5341_v49 }
0x1fca   : > { %5231 = vrot.lane.b32.xlu1 %v11526_v50, %s12141_s4 }
0x1fcb   : > { %v9346_v52 = vpop.eup %9345 }
0x1fcc   : > { %v5457_v53 = vsel %vm2628_vm4, %v9346_v52, 0.0 }
0x1fd0   : > { %v5113_v54 = vpop.xlane.xlu0 %5112 }
0x1fd1   : > { %9347 = vrcp.f32 %v5113_v54  ;;  %v9257_v54 = vld [vmem:[%s12158_s13 + $0x8] sm:$0xff]  }
0x1fdb   : > { %5118 = vrot.lane.b32.xlu0 %v11526_v50, %s12142_s26 }
0x1fde   : > { %v9348_v56 = vpop.eup %9347 }
0x1fdf   : > { %5463 = vrot.lane.b32.xlu0 %v11526_v50, %s12126_s1  ;;  %v5115_v58 = vmul.f32 %v9348_v56, %v9340_v11  ;;  %v9260_v56 = vld [vmem:[%s12159_s11 + $0x10] sm:$0xff]  }
0x1fe1   : > { %v5116_v0 = vpack.c.bf16 %v5115_v58, %v5115_v58 }
0x1fee   : > { %5458 = vadd.xlane.f32.xlu1 %v5457_v53 }
0x1fff   : > { %5347 = vrot.lane.b32.xlu1 %v11526_v50, %s12143_s5 }
0x2042   : > { %v5227_v55 = vpop.xlane.xlu1 %5226 }
0x2043   : > { %9349 = vrcp.f32 %v5227_v55  ;;  %v9258_v55 = vld [vmem:[%s12158_s13] sm:$0xff]  }
0x2046   : > { %v5232_v62 = vpop.permute.xlu1 %5231 }
0x2047   : > { %v5237_v3 = vsel %vm2693_vm5, %v5232_v62, 0  ;;  %v7989_v62 = vld [vmem:[%s12160_s12] ss:$0 sm:$0xff]  ;;  %s12163_s12 = sld [smem:[#allocation85_spill]] }
0x204e   : > { %v5343_v57 = vpop.xlane.xlu0 %5342 }
0x204f   : > { %9351 = vrcp.f32 %v5343_v57 }
0x2050   : > { %v9350_v2 = vpop.eup %9349 }
0x2051   : > { %v5229_v50 = vmul.f32 %v9350_v2, %v9342_v46  ;;  %v7990_v2 = vld [vmem:[%s12161_s17] ss:$0 sm:$0xff]  ;;  %s12162_s17 = sld [smem:[#allocation106_spill]] }
0x2052   : > { %v5119_v60 = vpop.permute.xlu0 %5118 }
0x2053   : > { %v5124_v61 = vsel %vm2693_vm5, %v5119_v60, 0  ;;  %v5230_v34 = vpack.c.bf16 %v5229_v50, %v5229_v50 }
0x2054   : > { %8549 = vmatpush3.bf16.msra.mxu1 %v5124_v61 }
0x2055   : > { %8560 = vmatprep.subr.bf16.mxu1 %v10404_v1 }
0x2056   : > { %v5464_v9 = vpop.permute.xlu0 %5463 }
0x2057   : > { %8551 = vmatmul.mubr.msk.bf16.vlgmr.msra.gmra.mxu1 %vm2628_vm4, %v5116_v0  ;;  %v5469_v13 = vsel %vm2693_vm5, %v5464_v9, 0 }
0x2058   : > { %8561 = vmatpush3.bf16.msra.mxu1 %v5237_v3  ;;  %8562 = vmatprep.mubr.msk.bf16.mxu1 %vm10405_vm0, %v10404_v1 }
0x2059   : > { %8572 = vmatprep.subr.bf16.mxu1 %v10404_v1 }
0x205c   : > { %v9352_v63 = vpop.eup %9351 }
0x205d   : > { %v5345_v5 = vmul.f32 %v9352_v63, %v9344_v48  ;;  %v9261_v63 = vld [vmem:[%s12159_s11 + $0x8] sm:$0xff]  }
0x205f   : > { %8563 = vmatmul.mubr.msk.bf16.vlgmr.msra.gmra.mxu1 %vm2628_vm4, %v5230_v34  ;;  %v5346_v10 = vpack.c.bf16 %v5345_v5, %v5345_v5  ;;  %v7991_v5 = vld [vmem:[#allocation6] ss:$0 sm:$0xff] }
0x2060   : > { %8574 = vmatprep.mubr.msk.bf16.mxu1 %vm10405_vm0, %v10404_v1 }
0x2077   : > { %v5459_v4 = vpop.xlane.xlu1 %5458 }
0x2078   : > { %9353 = vrcp.f32 %v5459_v4  ;;  %v9262_v4 = vld [vmem:[%s12159_s11] sm:$0xff]  }
0x207b   : > { %v5348_v6 = vpop.permute.xlu1 %5347 }
0x207c   : > { %v5353_v7 = vsel %vm2693_vm5, %v5348_v6, 0 }
0x207d   : > { %8573 = vmatpush3.bf16.msra.mxu1 %v5353_v7 }
0x207e   : > { %8584 = vmatprep.subr.bf16.mxu1 %v10404_v1 }
0x2080   : > { %8575 = vmatmul.mubr.msk.bf16.vlgmr.msra.gmra.mxu1 %vm2628_vm4, %v5346_v10 }
0x2081   : > { %8585 = vmatpush3.bf16.msra.mxu1 %v5469_v13  ;;  %8586 = vmatprep.mubr.msk.bf16.mxu1 %vm10405_vm0, %v10404_v1 }
0x2082   : > { %8598 = vmatprep.subr.bf16.mxu1 %v10404_v1 }
0x2085   : > { %v9354_v16 = vpop.eup %9353 }
0x2086   : > { %v5461_v17 = vmul.f32 %v9354_v16, %v9346_v52 }
0x2088   : > { %v5462_v18 = vpack.c.bf16 %v5461_v17, %v5461_v17 }
0x208a   : > { %8587 = vmatmul.mubr.msk.bf16.vlgmr.msra.gmra.mxu1 %vm2628_vm4, %v5462_v18  ;;  %v7995_v18 = vld [vmem:[#allocation8] ss:$0 sm:$0xff] }
0x208b   : > { %8602 = vmatprep.mubr.msk.bf16.mxu1 %vm10405_vm0, %v10404_v1  ;;  %8599 = vmatpush3.bf16.msra.mxu1 %v9257_v54 }
0x208c   : > { %8600 = vmatprep.subr.bf16.mxu1 %v10404_v1 }
0x208f   : > { %8601 = vmatpush3.bf16.msra.mxu1 %v9258_v55 }
0x2090   : > { %8618 = vmatprep.subr.bf16.mxu1 %v10404_v1 }
0x2117   : > { %v5160_v19 = vpop.f32.mrf.mxu1 }
0x2118   : > { %5166 = vst.msk [vmem:[#allocation2] sm:$0xff] %vm2628_vm4, %v5160_v19 }
0x2119   : > { %v8552_v20 = vpop.f32.mrf.mxu1 }
0x211b   : > { %v5163_v23 = vpop.f32.mrf.mxu1 }
0x211d   : > { %v8553_v15 = vpop.f32.mrf.mxu1 }
0x211f   : > { %v5273_v24 = vpop.f32.mrf.mxu1 }
0x2120   : > { %5280 = vrot.lane.b32.xlu1 %v5273_v24, %s12132_s0 }
0x2121   : > { %v8564_v59 = vpop.f32.mrf.mxu1 }
0x2123   : > { %v5276_v25 = vpop.f32.mrf.mxu1 }
0x2125   : > { %v8565_v26 = vpop.f32.mrf.mxu1 }
0x2140   : > { %v5389_v8 = vpop.f32.mrf.mxu1 }
0x2141   : > { %5396 = vrot.lane.b32.xlu0 %v5389_v8, %s12133_s2 }
0x2142   : > { %v8576_v31 = vpop.f32.mrf.mxu1 }
0x2144   : > { %v5392_v21 = vpop.f32.mrf.mxu1 }
0x2145   : > { %v9263_v21 = vld [vmem:[%s12162_s17 + $0x8] sm:$0xff]  }
0x2146   : > { %v8577_v32 = vpop.f32.mrf.mxu1 }
0x2147   : > { %v9264_v32 = vld [vmem:[%s12162_s17] sm:$0xff]  }
0x214a   : > { %v5505_v22 = vpop.f32.mrf.mxu1 }
0x214b   : > { %5512 = vrot.lane.b32.xlu1 %v5505_v22, %s12134_s3 }
0x214c   : > { %v8588_v33 = vpop.f32.mrf.mxu1 }
0x214e   : > { %v5508_v35 = vpop.f32.mrf.mxu1 }
0x2150   : > { %v8589_v37 = vpop.f32.mrf.mxu1 }
0x2192   : > { %v5281_v38 = vpop.permute.xlu1 %5280 }
0x2193   : > { %5283 = vst.msk [vmem:[#allocation2] sm:$0xff] %vm2853_vm6, %v5281_v38  ;;  %v8001_v38 = vld [vmem:[%s12163_s12] ss:$0 sm:$0xff]  ;;  %s12170_s12 = sld [smem:[#allocation92_spill]] }
0x21b3   : > { %v5397_v11 = vpop.permute.xlu0 %5396 }
0x21b4   : > { %5399 = vst.msk [vmem:[#allocation2] sm:$0xff] %vm2970_vm7, %v5397_v11 }
0x21bd   : > { %v5513_v12 = vpop.permute.xlu1 %5512 }
0x21be   : > { %5515 = vst.msk [vmem:[#allocation2] sm:$0xff] %vm3087_vm8, %v5513_v12 }
0x21c5   : > { %v5516_v39 = vld [vmem:[#allocation2] sm:$0xff] }
0x21c6   : > { %v5517_v40 = vpack.c.bf16 %v5516_v39, %v5516_v39 }
0x21c8   : > { %8595 = vmatmul.mubr.msk.bf16.vlgmr.msra.gmra.mxu0 %vm2580_vm3, %v5517_v40 }
0x21c9   : > { %8614 = vmatprep.mubr.msk.bf16.mxu0 %vm10405_vm0, %v10404_v1 }
0x2288   : > { %v5578_v42 = vpop.f32.mrf.mxu0 }
0x2289   : > { %v5579_v43 = vadd.f32 %v7985_v41, %v5578_v42  ;;  %v8003_v42 = vld [vmem:[#allocation21] ss:$0 sm:$0xff] }
0x228a   : > { %v8596_v44 = vpop.f32.mrf.mxu0 }
0x228b   : > { %v5584_v46 = vadd.f32 %v5579_v43, %v11518_v45  ;;  %v9259_v45 = vld [vmem:[%s12159_s11 + $0x18] sm:$0xff]   ;;  %s12164_s11 = sld [smem:[#allocation84_spill]] }
0x228c   : > { %v5581_v47 = vpop.f32.mrf.mxu0  ;;  %8607 = vmatpush3.bf16.msra.mxu0 %v9259_v45 }
0x228d   : > { %v5585_v48 = vsel %vm2580_vm3, %v5584_v46, 0.0  ;;  %8608 = vmatprep.subr.bf16.mxu0 %v10404_v1 }
0x228e   : > { %5586 = vadd.xlane.f32.xlu0 %v5585_v48  ;;  %v8597_v49 = vpop.f32.mrf.mxu0 }
0x2290   : > { %8609 = vmatpush3.bf16.msra.mxu0 %v9260_v56 }
0x2291   : > { %8610 = vmatprep.subr.bf16.mxu0 %v10404_v1  ;;  %v8002_v12 = vld [vmem:[%s12164_s11] ss:$0 sm:$0xff]  ;;  %s12169_s11 = sld [smem:[#allocation95_spill]] }
0x2294   : > { %8611 = vmatpush3.bf16.msra.mxu0 %v9261_v63 }
0x2295   : > { %8612 = vmatprep.subr.bf16.mxu0 %v10404_v1 }
0x2298   : > { %8613 = vmatpush3.bf16.msra.mxu0 %v9262_v4 }
0x2299   : > { %8632 = vmatprep.subr.bf16.mxu0 %v10404_v1 }
0x2317   : > { %v5587_v29 = vpop.xlane.xlu0 %5586 }
0x2318   : > { %v5588_v51 = vmul.f32 0.03125, %v5587_v29 }
0x231a   : > { %v5589_v14 = vsub.f32 %v5584_v46, %v5588_v51 }
0x231c   : > { %v5590_v52 = vmul.f32 %v5589_v14, %v5589_v14 }
0x231e   : > { %v5591_v53 = vsel %vm2580_vm3, %v5590_v52, 0.0 }
0x231f   : > { %5592 = vadd.xlane.f32.xlu1 %v5591_v53 }
0x23a8   : > { %v5593_v57 = vpop.xlane.xlu1 %5592 }
0x23a9   : > { %v5594_v58 = vmul.f32 0.03125, %v5593_v57 }
0x23ab   : > { %v5595_v60 = vadd.f32 1e-05, %v5594_v58 }
0x23ad   : > { %9355 = vrsqrt.f32 %v5595_v60 }
0x23ba   : > { %v9356_v61 = vpop.eup %9355 }
0x23bb   : > { %v5597_v0 = vmul.f32 %v9356_v61, %v5589_v14 }
0x23bd   : > { %v5605_v3 = vmul.f32 %v7989_v62, %v5597_v0 }
0x23bf   : > { %v5613_v50 = vadd.f32 %v7990_v2, %v5605_v3 }
0x23c1   : > { %v5614_v34 = vpack.c.bf16 %v5613_v50, %v5613_v50 }
0x23c3   : > { %8603 = vmatmul.mubr.msk.bf16.vlgmr.msra.gmra.mxu1 %vm2580_vm3, %v5614_v34 }
0x23c4   : > { %8622 = vmatprep.mubr.msk.bf16.mxu1 %vm10405_vm0, %v10404_v1  ;;  %8619 = vmatpush3.bf16.msra.mxu1 %v9263_v21 }
0x23c5   : > { %8620 = vmatprep.subr.bf16.mxu1 %v10404_v1 }
0x23c8   : > { %8621 = vmatpush3.bf16.msra.mxu1 %v9264_v32 }
0x23c9   : > { %8626 = vmatprep.subr.bf16.mxu1 %v10404_v1 }
0x2483   : > { %v5675_v6 = vpop.f32.mrf.mxu1 }
0x2484   : > { %v5676_v7 = vadd.f32 %v7991_v5, %v5675_v6 }
0x2485   : > { %v8604_v9 = vpop.f32.mrf.mxu1 }
0x2486   : > { %v5681_v10 = vmax.f32 %v5676_v7, 0.0 }
0x2487   : > { %v5678_v13 = vpop.f32.mrf.mxu1 }
0x2488   : > { %v5682_v16 = vpack.c.bf16 %v5681_v10, %v5681_v10 }
0x2489   : > { %v8605_v17 = vpop.f32.mrf.mxu1 }
0x248a   : > { %8615 = vmatmul.mubr.msk.bf16.vlgmr.msra.gmra.mxu0 %vm3296_vm9, %v5682_v16 }
0x248b   : > { %8634 = vmatprep.mubr.msk.bf16.mxu0 %vm10405_vm0, %v10404_v1 }
0x254a   : > { %v5759_v19 = vpop.f32.mrf.mxu0 }
0x254b   : > { %v5760_v20 = vadd.f32 %v7995_v18, %v5759_v19 }
0x254c   : > { %v8616_v23 = vpop.f32.mrf.mxu0 }
0x254d   : > { %v5765_v15 = vadd.f32 %v5760_v20, %v5613_v50 }
0x254e   : > { %v5762_v24 = vpop.f32.mrf.mxu0 }
0x254f   : > { %v5766_v59 = vsel %vm2580_vm3, %v5765_v15, 0.0 }
0x2550   : > { %5767 = vadd.xlane.f32.xlu0 %v5766_v59  ;;  %v8617_v25 = vpop.f32.mrf.mxu0 }
0x25d9   : > { %v5768_v26 = vpop.xlane.xlu0 %5767 }
0x25da   : > { %v5769_v27 = vmul.f32 0.03125, %v5768_v26 }
0x25dc   : > { %v5770_v8 = vsub.f32 %v5765_v15, %v5769_v27 }
0x25de   : > { %v5771_v30 = vmul.f32 %v5770_v8, %v5770_v8 }
0x25e0   : > { %v5772_v31 = vsel %vm2580_vm3, %v5771_v30, 0.0 }
0x25e1   : > { %5773 = vadd.xlane.f32.xlu0 %v5772_v31 }
0x266a   : > { %v5774_v22 = vpop.xlane.xlu0 %5773 }
0x266b   : > { %v5775_v33 = vmul.f32 0.03125, %v5774_v22 }
0x266d   : > { %v5776_v35 = vadd.f32 1e-05, %v5775_v33 }
0x266f   : > { %9357 = vrsqrt.f32 %v5776_v35 }
0x267c   : > { %v9358_v37 = vpop.eup %9357 }
0x267d   : > { %v5778_v11 = vmul.f32 %v9358_v37, %v5770_v8 }
0x267f   : > { %v5786_v39 = vmul.f32 %v8001_v38, %v5778_v11 }
0x2681   : > { %v11640_v40 = vadd.f32 %v8002_v12, %v5786_v39 }
0x2683   : > { %v5795_v41 = vpack.c.bf16 %v11640_v40, %v11640_v40 }
0x2685   : > { %8623 = vmatmul.mubr.msk.bf16.vlgmr.msra.gmra.mxu1 %vm2580_vm3, %v5795_v41 }
0x2686   : > { %8628 = vmatprep.mubr.msk.bf16.mxu1 %vm10405_vm0, %v10404_v1 }
0x2745   : > { %v5856_v43 = vpop.f32.mrf.mxu1 }
0x2746   : > { %v5857_v44 = vadd.f32 %v8003_v42, %v5856_v43 }
0x2747   : > { %v8624_v46 = vpop.f32.mrf.mxu1 }
0x2748   : > { %v11647_v47 = vpack.c.bf16 %v5857_v44, %v5857_v44 }
0x2749   : > { %v5859_v48 = vpop.f32.mrf.mxu1 }
0x274a   : > { %5977 = vrot.lane.b32.xlu0 %v11647_v47, %s12141_s4  ;;  %5864 = vrot.lane.b32.xlu1 %v11647_v47, %s12142_s26 }
0x274b   : > { %v8625_v49 = vpop.f32.mrf.mxu1 }
0x274e   : > { %6092 = vrot.lane.b32.xlu0 %v11647_v47, %s12145_s6  ;;  %5975 = vrot.lane.b32.xlu1 %v11647_v47, %s12144_s8 }
0x2752   : > { %6209 = vrot.lane.b32.xlu0 %v11647_v47, %s12146_s9  ;;  %6094 = vrot.lane.b32.xlu1 %v11647_v47, %s12143_s5 }
0x2756   : > { %6211 = vrot.lane.b32.xlu1 %v11647_v47, %s12126_s1 }
0x27bc   : > { %v5865_v29 = vpop.permute.xlu1 %5864  ;;  %v5978_v14 = vpop.permute.xlu0 %5977 }
0x27bd   : > { %v5870_v51 = vsel %vm2628_vm4, %v5865_v29, 0  ;;  %v5983_v53 = vsel %vm2628_vm4, %v5978_v14, 0 }
0x27be   : > { %8627 = vmatpush3.bf16.xpose.msra.mxu1 %v5870_v51 }
0x27bf   : > { %8638 = vmatprep.subr.bf16.mxu1 %v10404_v1 }
0x27c0   : > { %v5976_v52 = vpop.permute.xlu1 %5975  ;;  %v6093_v56 = vpop.permute.xlu0 %6092 }
0x27c4   : > { %v6095_v54 = vpop.permute.xlu1 %6094  ;;  %v6210_v58 = vpop.permute.xlu0 %6209 }
0x27c5   : > { %8629 = vmatmul.mubr.msk.bf16.vlgmr.msra.gmra.mxu1 %vm2628_vm4, %v11647_v47  ;;  %v6100_v55 = vsel %vm2628_vm4, %v6095_v54, 0 }
0x27c6   : > { %8639 = vmatpush3.bf16.xpose.msra.mxu1 %v5983_v53  ;;  %8640 = vmatprep.mubr.msk.bf16.mxu1 %vm10405_vm0, %v10404_v1 }
0x27c7   : > { %8650 = vmatprep.subr.bf16.mxu1 %v10404_v1 }
0x27c8   : > { %v6212_v45 = vpop.permute.xlu1 %6211 }
0x27c9   : > { %v6217_v57 = vsel %vm2628_vm4, %v6212_v45, 0 }
0x27cd   : > { %8641 = vmatmul.mubr.msk.bf16.vlgmr.msra.gmra.mxu1 %vm2628_vm4, %v5976_v52 }
0x27ce   : > { %8651 = vmatpush3.bf16.xpose.msra.mxu1 %v6100_v55  ;;  %8652 = vmatprep.mubr.msk.bf16.mxu1 %vm10405_vm0, %v10404_v1 }
0x27cf   : > { %8662 = vmatprep.subr.bf16.mxu1 %v10404_v1 }
0x27d5   : > { %8653 = vmatmul.mubr.msk.bf16.vlgmr.msra.gmra.mxu1 %vm2628_vm4, %v6093_v56 }
0x27d6   : > { %8663 = vmatpush3.bf16.xpose.msra.mxu1 %v6217_v57  ;;  %8664 = vmatprep.mubr.msk.bf16.mxu1 %vm10405_vm0, %v10404_v1 }
0x27d7   : > { %8674 = vmatprep.subr.bf16.mxu1 %v10404_v1 }
0x27dd   : > { %8665 = vmatmul.mubr.msk.bf16.vlgmr.msra.gmra.mxu1 %vm2628_vm4, %v6210_v58 }
0x27de   : > { %8678 = vmatprep.mubr.msk.bf16.mxu1 %vm10405_vm0, %v10404_v1 }
0x2885   : > { %v5906_v60 = vpop.f32.mrf.mxu1 }
0x2886   : > { %v5912_v61 = vmul.f32 0.35355338, %v5906_v60 }
0x2887   : > { %v8630_v62 = vpop.f32.mrf.mxu1 }
0x2888   : > { %v5913_v0 = vsel %vm11432_vm12, %v5912_v61, -1e+30 }
0x2889   : > { %v5909_v2 = vpop.f32.mrf.mxu1  ;;  %v5914_v3 = vsel %vm2628_vm4, %v5913_v0, -inf }
0x288a   : > { %5915 = vmax.xlane.f32.xlu1 %v5914_v3 }
0x288b   : > { %v8631_v50 = vpop.f32.mrf.mxu1 }
0x288d   : > { %v6019_v34 = vpop.f32.mrf.mxu1 }
0x288e   : > { %v6025_v63 = vmul.f32 0.35355338, %v6019_v34 }
0x288f   : > { %v8642_v4 = vpop.f32.mrf.mxu1 }
0x2890   : > { %v6026_v5 = vsel %vm11432_vm12, %v6025_v63, -1e+30 }
0x2891   : > { %v6022_v6 = vpop.f32.mrf.mxu1  ;;  %v6027_v7 = vsel %vm2628_vm4, %v6026_v5, -inf }
0x2892   : > { %6028 = vmax.xlane.f32.xlu0 %v6027_v7 }
0x2893   : > { %v8643_v9 = vpop.f32.mrf.mxu1 }
0x2895   : > { %v6136_v10 = vpop.f32.mrf.mxu1 }
0x2896   : > { %v6142_v13 = vmul.f32 0.35355338, %v6136_v10 }
0x2897   : > { %v8654_v16 = vpop.f32.mrf.mxu1 }
0x2898   : > { %v6143_v17 = vsel %vm11432_vm12, %v6142_v13, -1e+30 }
0x2899   : > { %v6139_v18 = vpop.f32.mrf.mxu1  ;;  %v6144_v19 = vsel %vm2628_vm4, %v6143_v17, -inf }
0x289a   : > { %6145 = vmax.xlane.f32.xlu0 %v6144_v19 }
0x289b   : > { %v8655_v20 = vpop.f32.mrf.mxu1 }
0x289d   : > { %v6253_v23 = vpop.f32.mrf.mxu1 }
0x289e   : > { %v6259_v15 = vmul.f32 0.35355338, %v6253_v23 }
0x289f   : > { %v8666_v24 = vpop.f32.mrf.mxu1 }
0x28a0   : > { %v6260_v59 = vsel %vm11432_vm12, %v6259_v15, -1e+30 }
0x28a1   : > { %v6256_v25 = vpop.f32.mrf.mxu1  ;;  %v6261_v26 = vsel %vm2628_vm4, %v6260_v59, -inf }
0x28a2   : > { %6262 = vmax.xlane.f32.xlu1 %v6261_v26 }
0x28a3   : > { %v8667_v27 = vpop.f32.mrf.mxu1 }
0x2913   : > { %v5916_v8 = vpop.xlane.xlu1 %5915 }
0x2914   : > { %v5917_v30 = vsub.f32 %v5913_v0, %v5916_v8 }
0x2916   : > { %v5918_v31 = vmul.f32 1.442695, %v5917_v30 }
0x2918   : > { %9359 = vpow2.f32 %v5918_v31 }
0x291b   : > { %v6029_v21 = vpop.xlane.xlu0 %6028 }
0x291c   : > { %v6030_v32 = vsub.f32 %v6026_v5, %v6029_v21 }
0x291e   : > { %v6031_v22 = vmul.f32 1.442695, %v6030_v32 }
0x2920   : > { %9361 = vpow2.f32 %v6031_v22 }
0x2923   : > { %v6146_v33 = vpop.xlane.xlu0 %6145 }
0x2924   : > { %v6147_v35 = vsub.f32 %v6143_v17, %v6146_v33 }
0x2925   : > { %v9360_v37 = vpop.eup %9359 }
0x2926   : > { %v6148_v38 = vmul.f32 1.442695, %v6147_v35  ;;  %v5920_v28 = vsel %vm2628_vm4, %v9360_v37, 0.0 }
0x2927   : > { %5921 = vadd.xlane.f32.xlu0 %v5920_v28 }
0x2928   : > { %9363 = vpow2.f32 %v6148_v38 }
0x292b   : > { %v6263_v42 = vpop.xlane.xlu1 %6262 }
0x292c   : > { %v6264_v43 = vsub.f32 %v6260_v59, %v6263_v42 }
0x292d   : > { %v9362_v11 = vpop.eup %9361 }
0x292e   : > { %v6033_v12 = vsel %vm2628_vm4, %v9362_v11, 0.0  ;;  %v6265_v44 = vmul.f32 1.442695, %v6264_v43 }
0x292f   : > { %6034 = vadd.xlane.f32.xlu1 %v6033_v12 }
0x2930   : > { %9365 = vpow2.f32 %v6265_v44 }
0x2935   : > { %v9364_v39 = vpop.eup %9363 }
0x2936   : > { %v6150_v41 = vsel %vm2628_vm4, %v9364_v39, 0.0 }
0x2937   : > { %6151 = vadd.xlane.f32.xlu0 %v6150_v41 }
0x293d   : > { %v9366_v46 = vpop.eup %9365 }
0x293e   : > { %v6267_v48 = vsel %vm2628_vm4, %v9366_v46, 0.0 }
0x2940   : > { %6039 = vrot.lane.b32.xlu1 %v11647_v47, %s12127_s16  ;;  %s12168_s16 = sld [smem:[#allocation90_spill]] }
0x294d   : > { %5926 = vrot.lane.b32.xlu0 %v11647_v47, %s12128_s10  ;;  %s12167_s10 = sld [smem:[#allocation93_spill]] }
0x2951   : > { %6273 = vrot.lane.b32.xlu0 %v11647_v47, %s12129_s18  ;;  %s12165_s18 = sld [smem:[#allocation107_spill]] }
0x2953   : > { %v9267_v22 = vld [vmem:[%s12167_s10 + $0x8] sm:$0xff]   ;;  %v9268_v35 = vld [vmem:[%s12167_s10] sm:$0xff]  }
0x2957   : > { %v9265_v19 = vld [vmem:[%s12165_s18 + $0x8] sm:$0xff]  }
0x2958   : > { %8675 = vmatpush3.bf16.msra.mxu1 %v9265_v19 }
0x2959   : > { %8676 = vmatprep.subr.bf16.mxu1 %v10404_v1 }
0x2964   : > { %6268 = vadd.xlane.f32.xlu1 %v6267_v48  ;;  %v8025_v48 = vld [vmem:[%s12168_s16] ss:$0 sm:$0xff] }
0x2975   : > { %6156 = vrot.lane.b32.xlu1 %v11647_v47, %s12130_s28  ;;  %s12166_s28 = smov %s12165_s18 }
0x2976   : > { %v9266_v23 = vld [vmem:[%s12166_s28] sm:$0xff]  }
0x2977   : > { %8677 = vmatpush3.bf16.msra.mxu1 %v9266_v23 }
0x2978   : > { %8690 = vmatprep.subr.bf16.mxu1 %v10404_v1 }
0x29b0   : > { %v5922_v49 = vpop.xlane.xlu0 %5921 }
0x29b1   : > { %9367 = vrcp.f32 %v5922_v49 }
0x29b8   : > { %v6035_v29 = vpop.xlane.xlu1 %6034 }
0x29b9   : > { %9369 = vrcp.f32 %v6035_v29 }
0x29bc   : > { %v6040_v55 = vpop.permute.xlu1 %6039 }
0x29bd   : > { %v6045_v57 = vsel %vm2693_vm5, %v6040_v55, 0  ;;  %v9270_v55 = vld [vmem:[%s12169_s11] sm:$0xff]  }
0x29be   : > { %v9368_v51 = vpop.eup %9367 }
0x29bf   : > { %v5924_v52 = vmul.f32 %v9368_v51, %v9360_v37  ;;  %v8015_v37 = vld [vmem:[#allocation23] ss:$0 sm:$0xff] }
0x29c0   : > { %v6152_v14 = vpop.xlane.xlu0 %6151 }
0x29c1   : > { %v5925_v45 = vpack.c.bf16 %v5924_v52, %v5924_v52  ;;  %9371 = vrcp.f32 %v6152_v14 }
0x29c4   : > { %v5927_v53 = vpop.permute.xlu0 %5926 }
0x29c5   : > { %v5932_v54 = vsel %vm2693_vm5, %v5927_v53, 0 }
0x29c6   : > { %8633 = vmatpush3.bf16.msra.mxu0 %v5932_v54  ;;  %v9370_v56 = vpop.eup %9369  ;;  %v9269_v54 = vld [vmem:[%s12169_s11 + $0x8] sm:$0xff]  }
0x29c7   : > { %8644 = vmatprep.subr.bf16.mxu0 %v10404_v1  ;;  %v6037_v47 = vmul.f32 %v9370_v56, %v9362_v11 }
0x29c8   : > { %v6274_v3 = vpop.permute.xlu0 %6273 }
0x29c9   : > { %8635 = vmatmul.mubr.msk.bf16.vlgmr.msra.gmra.mxu0 %vm2628_vm4, %v5925_v45  ;;  %v6038_v58 = vpack.c.bf16 %v6037_v47, %v6037_v47  ;;  %v6279_v34 = vsel %vm2693_vm5, %v6274_v3, 0 }
0x29ca   : > { %8645 = vmatpush3.bf16.msra.mxu0 %v6045_v57  ;;  %8646 = vmatprep.mubr.msk.bf16.mxu0 %vm10405_vm0, %v10404_v1 }
0x29cb   : > { %8656 = vmatprep.subr.bf16.mxu0 %v10404_v1 }
0x29ce   : > { %v9372_v60 = vpop.eup %9371 }
0x29cf   : > { %v6154_v62 = vmul.f32 %v9372_v60, %v9364_v39 }
0x29d1   : > { %8647 = vmatmul.mubr.msk.bf16.vlgmr.msra.gmra.mxu0 %vm2628_vm4, %v6038_v58  ;;  %v6155_v50 = vpack.c.bf16 %v6154_v62, %v6154_v62  ;;  %v8019_v58 = vld [vmem:[#allocation14] ss:$0 sm:$0xff] }
0x29d2   : > { %8658 = vmatprep.mubr.msk.bf16.mxu0 %vm10405_vm0, %v10404_v1 }
0x29ed   : > { %v6269_v61 = vpop.xlane.xlu1 %6268 }
0x29ee   : > { %9373 = vrcp.f32 %v6269_v61  ;;  %v8020_v61 = vld [vmem:[#allocation12] ss:$0 sm:$0xff] }
0x29f1   : > { %v6157_v0 = vpop.permute.xlu1 %6156 }
0x29f2   : > { %v6162_v2 = vsel %vm2693_vm5, %v6157_v0, 0 }
0x29f3   : > { %8657 = vmatpush3.bf16.msra.mxu0 %v6162_v2 }
0x29f4   : > { %8668 = vmatprep.subr.bf16.mxu0 %v10404_v1 }
0x29f6   : > { %8659 = vmatmul.mubr.msk.bf16.vlgmr.msra.gmra.mxu0 %vm2628_vm4, %v6155_v50  ;;  %v8021_v50 = vld [vmem:[%s12170_s12] ss:$0 sm:$0xff] }
0x29f7   : > { %8669 = vmatpush3.bf16.msra.mxu0 %v6279_v34  ;;  %8670 = vmatprep.mubr.msk.bf16.mxu0 %vm10405_vm0, %v10404_v1 }
0x29f8   : > { %8682 = vmatprep.subr.bf16.mxu0 %v10404_v1 }
0x29fb   : > { %v9374_v63 = vpop.eup %9373 }
0x29fc   : > { %v6271_v4 = vmul.f32 %v9374_v63, %v9366_v46 }
0x29fe   : > { %v6272_v5 = vpack.c.bf16 %v6271_v4, %v6271_v4 }
0x2a00   : > { %8671 = vmatmul.mubr.msk.bf16.vlgmr.msra.gmra.mxu0 %vm2628_vm4, %v6272_v5 }
0x2a01   : > { %8686 = vmatprep.mubr.msk.bf16.mxu0 %vm10405_vm0, %v10404_v1  ;;  %8683 = vmatpush3.bf16.msra.mxu0 %v9269_v54 }
0x2a02   : > { %8684 = vmatprep.subr.bf16.mxu0 %v10404_v1 }
0x2a05   : > { %8685 = vmatpush3.bf16.msra.mxu0 %v9270_v55 }
0x2a06   : > { %8698 = vmatprep.subr.bf16.mxu0 %v10404_v1 }
0x2a89   : > { %v5968_v6 = vpop.f32.mrf.mxu0 }
0x2a8a   : > { %5974 = vst.msk [vmem:[#allocation2] sm:$0xff] %vm2628_vm4, %v5968_v6 }
0x2a8b   : > { %v8636_v7 = vpop.f32.mrf.mxu0 }
0x2a8d   : > { %v5971_v9 = vpop.f32.mrf.mxu0 }
0x2a8f   : > { %v8637_v10 = vpop.f32.mrf.mxu0 }
0x2a91   : > { %v6081_v13 = vpop.f32.mrf.mxu0 }
0x2a92   : > { %6088 = vrot.lane.b32.xlu1 %v6081_v13, %s12132_s0 }
0x2a93   : > { %v8648_v16 = vpop.f32.mrf.mxu0 }
0x2a95   : > { %v6084_v17 = vpop.f32.mrf.mxu0 }
0x2a97   : > { %v8649_v18 = vpop.f32.mrf.mxu0 }
0x2ab6   : > { %v6198_v20 = vpop.f32.mrf.mxu0 }
0x2ab7   : > { %6205 = vrot.lane.b32.xlu0 %v6198_v20, %s12133_s2 }
0x2ab8   : > { %v8660_v15 = vpop.f32.mrf.mxu0 }
0x2aba   : > { %v6201_v24 = vpop.f32.mrf.mxu0 }
0x2abc   : > { %v8661_v59 = vpop.f32.mrf.mxu0 }
0x2ac0   : > { %v6315_v25 = vpop.f32.mrf.mxu0 }
0x2ac1   : > { %6322 = vrot.lane.b32.xlu1 %v6315_v25, %s12134_s3 }
0x2ac2   : > { %v8672_v26 = vpop.f32.mrf.mxu0 }
0x2ac4   : > { %v6318_v27 = vpop.f32.mrf.mxu0 }
0x2ac6   : > { %v8673_v8 = vpop.f32.mrf.mxu0 }
0x2b04   : > { %v6089_v30 = vpop.permute.xlu1 %6088 }
0x2b05   : > { %6091 = vst.msk [vmem:[#allocation2] sm:$0xff] %vm2853_vm6, %v6089_v30 }
0x2b29   : > { %v6206_v31 = vpop.permute.xlu0 %6205 }
0x2b2a   : > { %6208 = vst.msk [vmem:[#allocation2] sm:$0xff] %vm2970_vm7, %v6206_v31 }
0x2b33   : > { %v6323_v21 = vpop.permute.xlu1 %6322 }
0x2b34   : > { %6325 = vst.msk [vmem:[#allocation2] sm:$0xff] %vm3087_vm8, %v6323_v21 }
0x2b3b   : > { %v6326_v32 = vld [vmem:[#allocation2] sm:$0xff] }
0x2b3c   : > { %v6327_v33 = vpack.c.bf16 %v6326_v32, %v6326_v32 }
0x2b3e   : > { %8679 = vmatmul.mubr.msk.bf16.vlgmr.msra.gmra.mxu1 %vm2580_vm3, %v6327_v33 }
0x2b3f   : > { %8691 = vmatpush3.bf16.msra.mxu1 %v9267_v22  ;;  %8694 = vmatprep.mubr.msk.bf16.mxu1 %vm10405_vm0, %v10404_v1 }
0x2b40   : > { %8692 = vmatprep.subr.bf16.mxu1 %v10404_v1 }
0x2b43   : > { %8693 = vmatpush3.bf16.msra.mxu1 %v9268_v35 }
0x2b44   : > { %8704 = vmatprep.subr.bf16.mxu1 %v10404_v1 }
0x2b46   : > { %8695 = vmatmul.mubr.msk.bf16.vlgmr.msra.gmra.mxu1 %vm2580_vm3, %v11506_v36 }
0x2b47   : > { %8706 = vmatprep.mubr.msk.bf16.mxu1 %vm10405_vm0, %v10404_v1 }
0x2bfe   : > { %v6388_v38 = vpop.f32.mrf.mxu1 }
0x2bff   : > { %v6389_v28 = vadd.f32 %v8015_v37, %v6388_v38 }
0x2c00   : > { %v8680_v11 = vpop.f32.mrf.mxu1 }
0x2c01   : > { %v6394_v12 = vadd.f32 %v6389_v28, %v11640_v40 }
0x2c02   : > { %v6391_v39 = vpop.f32.mrf.mxu1 }
0x2c03   : > { %v6395_v41 = vsel %vm2580_vm3, %v6394_v12, 0.0 }
0x2c04   : > { %6396 = vadd.xlane.f32.xlu0 %v6395_v41  ;;  %v8681_v42 = vpop.f32.mrf.mxu1 }
0x2c06   : > { %v6548_v43 = vpop.f32.mrf.mxu1 }
0x2c07   : > { %v6549_v49 = vadd.f32 %v8025_v48, %v6548_v43 }
0x2c08   : > { %v8696_v44 = vpop.f32.mrf.mxu1 }
0x2c09   : > { %v11753_v29 = vpack.c.bf16 %v6549_v49, %v6549_v49 }
0x2c0a   : > { %v6551_v46 = vpop.f32.mrf.mxu1 }
0x2c0b   : > { %v6560_v3 = vsel %vm2628_vm4, %v11753_v29, 0 }
0x2c0c   : > { %v8697_v36 = vpop.f32.mrf.mxu1 }
0x2c1a   : > { %6668 = vrot.lane.b32.xlu0 %v11753_v29, %s12144_s8 }
0x2c1e   : > { %6784 = vrot.lane.b32.xlu0 %v11753_v29, %s12145_s6 }
0x2c22   : > { %6900 = vrot.lane.b32.xlu0 %v11753_v29, %s12146_s9 }
0x2c8d   : > { %v6397_v40 = vpop.xlane.xlu0 %6396 }
0x2c8e   : > { %v6398_v51 = vmul.f32 0.03125, %v6397_v40 }
0x2c90   : > { %v6399_v14 = vsub.f32 %v6394_v12, %v6398_v51 }
0x2c91   : > { %v6669_v4 = vpop.permute.xlu0 %6668 }
0x2c92   : > { %v6400_v52 = vmul.f32 %v6399_v14, %v6399_v14  ;;  %v6674_v9 = vsel %vm2628_vm4, %v6669_v4, 0 }
0x2c94   : > { %v6401_v53 = vsel %vm2580_vm3, %v6400_v52, 0.0 }
0x2c95   : > { %6402 = vadd.xlane.f32.xlu1 %v6401_v53  ;;  %v6785_v13 = vpop.permute.xlu0 %6784 }
0x2c96   : > { %v6790_v17 = vsel %vm2628_vm4, %v6785_v13, 0 }
0x2c99   : > { %v6901_v18 = vpop.permute.xlu0 %6900 }
0x2c9a   : > { %v6906_v20 = vsel %vm2628_vm4, %v6901_v18, 0 }
0x2d1e   : > { %v6403_v45 = vpop.xlane.xlu1 %6402 }
0x2d1f   : > { %v6404_v56 = vmul.f32 0.03125, %v6403_v45 }
0x2d21   : > { %v6405_v57 = vadd.f32 1e-05, %v6404_v56 }
0x2d23   : > { %9375 = vrsqrt.f32 %v6405_v57 }
0x2d30   : > { %v9376_v47 = vpop.eup %9375 }
0x2d31   : > { %v6407_v60 = vmul.f32 %v9376_v47, %v6399_v14 }
0x2d33   : > { %v6415_v62 = vmul.f32 %v8019_v58, %v6407_v60 }
0x2d35   : > { %v11766_v0 = vadd.f32 %v8020_v61, %v6415_v62 }
0x2d37   : > { %v6424_v2 = vpack.c.bf16 %v11766_v0, %v11766_v0 }
0x2d39   : > { %8687 = vmatmul.mubr.msk.bf16.vlgmr.msra.gmra.mxu0 %vm2580_vm3, %v6424_v2 }
0x2d3a   : > { %8699 = vmatpush3.bf16.xpose.msra.mxu0 %v6560_v3  ;;  %8700 = vmatprep.mubr.msk.bf16.mxu0 %vm10405_vm0, %v10404_v1 }
0x2d3b   : > { %8710 = vmatprep.subr.bf16.mxu0 %v10404_v1 }
0x2df9   : > { %v6485_v34 = vpop.f32.mrf.mxu0 }
0x2dfa   : > { %v6486_v63 = vadd.f32 %v8021_v50, %v6485_v34 }
0x2dfb   : > { %v8688_v5 = vpop.f32.mrf.mxu0 }
0x2dfc   : > { %v6554_v6 = vpack.c.bf16 %v6486_v63, %v6486_v63 }
0x2dfd   : > { %v6488_v7 = vpop.f32.mrf.mxu0 }
0x2dfe   : > { %6666 = vrot.lane.b32.xlu1 %v6554_v6, %s12144_s8  ;;  %8701 = vmatmul.mubr.msk.bf16.vlgmr.msra.gmra.mxu0 %vm2628_vm4, %v6554_v6  ;;  %s12174_s8 = sld [smem:[#allocation99_spill]] }
0x2dff   : > { %8711 = vmatpush3.bf16.xpose.msra.mxu0 %v6674_v9  ;;  %v8689_v10 = vpop.f32.mrf.mxu0  ;;  %8712 = vmatprep.mubr.msk.bf16.mxu0 %vm10405_vm0, %v10404_v1 }
0x2e00   : > { %8722 = vmatprep.subr.bf16.mxu0 %v10404_v1 }
0x2e02   : > { %6782 = vrot.lane.b32.xlu1 %v6554_v6, %s12145_s6 }
0x2e06   : > { %6898 = vrot.lane.b32.xlu1 %v6554_v6, %s12146_s9  ;;  %s8060_s9 = sshll.u32 %s10803_s22, 7  ;;  %s10421_s22 = smov [#allocation50]  }
0x2e07   : > { %s11876_s6 = scalar_lea.hbm %s10780_s27, %s8060_s9  ;;  %s10181_s12 = sshll.u32 %s10421_s22, 4  ;;  %s10182_s12 = int_to_ptr.vmem [resolvable:$false] %s10181_s12 }
0x2e70   : > { %v6667_v16 = vpop.permute.xlu1 %6666 }
0x2e71   : > { %8713 = vmatmul.mubr.msk.bf16.vlgmr.msra.gmra.mxu0 %vm2628_vm4, %v6667_v16 }
0x2e72   : > { %8723 = vmatpush3.bf16.xpose.msra.mxu0 %v6790_v17  ;;  %8724 = vmatprep.mubr.msk.bf16.mxu0 %vm10405_vm0, %v10404_v1 }
0x2e73   : > { %8734 = vmatprep.subr.bf16.mxu0 %v10404_v1 }
0x2e74   : > { %v6783_v19 = vpop.permute.xlu1 %6782 }
0x2e78   : > { %v6899_v23 = vpop.permute.xlu1 %6898 }
0x2e79   : > { %8725 = vmatmul.mubr.msk.bf16.vlgmr.msra.gmra.mxu0 %vm2628_vm4, %v6783_v19 }
0x2e7a   : > { %8735 = vmatpush3.bf16.xpose.msra.mxu0 %v6906_v20  ;;  %8736 = vmatprep.mubr.msk.bf16.mxu0 %vm10405_vm0, %v10404_v1 }
0x2e7b   : > { %8746 = vmatprep.subr.bf16.mxu0 %v10404_v1 }
0x2e81   : > { %8737 = vmatmul.mubr.msk.bf16.vlgmr.msra.gmra.mxu0 %vm2628_vm4, %v6899_v23 }
0x2e82   : > { %8750 = vmatprep.mubr.msk.bf16.mxu0 %vm10405_vm0, %v10404_v1 }
0x2ebe   : > { %v6596_v15 = vpop.f32.mrf.mxu0 }
0x2ebf   : > { %v6602_v24 = vmul.f32 0.35355338, %v6596_v15 }
0x2ec0   : > { %v8702_v59 = vpop.f32.mrf.mxu0 }
0x2ec1   : > { %v6603_v25 = vsel %vm2628_vm4, %v6602_v24, -inf }
0x2ec2   : > { %6604 = vmax.xlane.f32.xlu0 %v6603_v25  ;;  %v6599_v26 = vpop.f32.mrf.mxu0 }
0x2ec4   : > { %v8703_v27 = vpop.f32.mrf.mxu0 }
0x2f31   : > { %v6710_v8 = vpop.f32.mrf.mxu0 }
0x2f32   : > { %v6716_v30 = vmul.f32 0.35355338, %v6710_v8 }
0x2f33   : > { %v8714_v31 = vpop.f32.mrf.mxu0 }
0x2f34   : > { %v6717_v21 = vsel %vm2628_vm4, %v6716_v30, -inf }
0x2f35   : > { %6718 = vmax.xlane.f32.xlu1 %v6717_v21  ;;  %v6713_v32 = vpop.f32.mrf.mxu0 }
0x2f37   : > { %v8715_v22 = vpop.f32.mrf.mxu0 }
0x2f39   : > { %v6826_v33 = vpop.f32.mrf.mxu0 }
0x2f3a   : > { %v6832_v35 = vmul.f32 0.35355338, %v6826_v33 }
0x2f3b   : > { %v8726_v37 = vpop.f32.mrf.mxu0 }
0x2f3c   : > { %v6833_v38 = vsel %vm2628_vm4, %v6832_v35, -inf }
0x2f3d   : > { %6834 = vmax.xlane.f32.xlu0 %v6833_v38  ;;  %v6829_v28 = vpop.f32.mrf.mxu0 }
0x2f3f   : > { %v8727_v11 = vpop.f32.mrf.mxu0 }
0x2f41   : > { %v6942_v12 = vpop.f32.mrf.mxu0 }
0x2f42   : > { %v6948_v39 = vmul.f32 0.35355338, %v6942_v12 }
0x2f43   : > { %v8738_v41 = vpop.f32.mrf.mxu0 }
0x2f44   : > { %v6949_v42 = vsel %vm2628_vm4, %v6948_v39, -inf }
0x2f45   : > { %6950 = vmax.xlane.f32.xlu0 %v6949_v42  ;;  %v6945_v43 = vpop.f32.mrf.mxu0 }
0x2f47   : > { %v8739_v44 = vpop.f32.mrf.mxu0 }
0x2f4b   : > { %v6605_v46 = vpop.xlane.xlu0 %6604 }
0x2f4c   : > { %v6606_v36 = vsub.f32 %v6602_v24, %v6605_v46 }
0x2f4e   : > { %v6607_v48 = vmul.f32 1.442695, %v6606_v36 }
0x2f50   : > { %9377 = vpow2.f32 %v6607_v48 }
0x2f5d   : > { %v9378_v49 = vpop.eup %9377 }
0x2f5e   : > { %v6609_v40 = vsel %vm2628_vm4, %v9378_v49, 0.0 }
0x2f5f   : > { %6610 = vadd.xlane.f32.xlu1 %v6609_v40 }
0x2f70   : > { %6616 = vrot.lane.b32.xlu1 %v11753_v29, %s12142_s26 }
0x2fbe   : > { %v6719_v51 = vpop.xlane.xlu1 %6718 }
0x2fbf   : > { %v6720_v14 = vsub.f32 %v6716_v30, %v6719_v51 }
0x2fc1   : > { %v6721_v52 = vmul.f32 1.442695, %v6720_v14 }
0x2fc3   : > { %9379 = vpow2.f32 %v6721_v52 }
0x2fc6   : > { %v6835_v53 = vpop.xlane.xlu0 %6834 }
0x2fc7   : > { %v6836_v54 = vsub.f32 %v6832_v35, %v6835_v53 }
0x2fc9   : > { %v6837_v55 = vmul.f32 1.442695, %v6836_v54 }
0x2fcb   : > { %9381 = vpow2.f32 %v6837_v55 }
0x2fce   : > { %v6951_v45 = vpop.xlane.xlu0 %6950 }
0x2fcf   : > { %v6952_v56 = vsub.f32 %v6948_v39, %v6951_v45 }
0x2fd0   : > { %v9380_v57 = vpop.eup %9379 }
0x2fd1   : > { %v6953_v47 = vmul.f32 1.442695, %v6952_v56  ;;  %v6723_v58 = vsel %vm2628_vm4, %v9380_v57, 0.0 }
0x2fd2   : > { %6724 = vadd.xlane.f32.xlu0 %v6723_v58 }
0x2fd3   : > { %9383 = vpow2.f32 %v6953_v47 }
0x2fd8   : > { %v9382_v60 = vpop.eup %9381 }
0x2fd9   : > { %v6839_v61 = vsel %vm2628_vm4, %v9382_v60, 0.0 }
0x2fda   : > { %6840 = vadd.xlane.f32.xlu1 %v6839_v61 }
0x2fe0   : > { %v9384_v62 = vpop.eup %9383 }
0x2fe1   : > { %v6955_v2 = vsel %vm2628_vm4, %v9384_v62, 0.0 }
0x2fe2   : > { %6956 = vadd.xlane.f32.xlu0 %v6955_v2 }
0x2fe8   : > { %v6611_v3 = vpop.xlane.xlu1 %6610 }
0x2fe9   : > { %9385 = vrcp.f32 %v6611_v3  ;;  %v9276_v3 = vld [vmem:[%s12174_s8 + $0x10] sm:$0xff]  }
0x2feb   : > { %6845 = vrot.lane.b32.xlu1 %v11753_v29, %s12143_s5  ;;  %s12171_s5 = sld [smem:[#allocation94_spill]] }
0x2fec   : > { %v6617_v50 = vpop.permute.xlu1 %6616 }
0x2fed   : > { %v6622_v34 = vsel %vm2693_vm5, %v6617_v50, 0 }
0x2fee   : > { %8705 = vmatpush3.bf16.msra.mxu1 %v6622_v34 }
0x2fef   : > { %6961 = vrot.lane.b32.xlu1 %v11753_v29, %s12126_s1  ;;  %8716 = vmatprep.subr.bf16.mxu1 %v10404_v1  ;;  %s12172_s1 = sld [smem:[#allocation91_spill]] }
0x2ff1   : > { %v9271_v35 = vld [vmem:[%s12171_s5 + $0x8] sm:$0xff]   ;;  %v9272_v38 = vld [vmem:[%s12171_s5] sm:$0xff]  }
0x2ff2   : > { %8747 = vmatpush3.bf16.msra.mxu0 %v9271_v35 }
0x2ff3   : > { %8748 = vmatprep.subr.bf16.mxu0 %v10404_v1 }
0x2ff5   : > { %v8037_v51 = vld [vmem:[%s12172_s1] ss:$0 sm:$0xff]  ;;  %s10183_s1 = scalar_lea.vmem %s10182_s12, 256 }
0x2ff6   : > { %v9386_v63 = vpop.eup %9385  ;;  %8749 = vmatpush3.bf16.msra.mxu0 %v9272_v38 }
0x2ff7   : > { %v6613_v4 = vmul.f32 %v9386_v63, %v9378_v49  ;;  %8762 = vmatprep.subr.bf16.mxu0 %v10404_v1 }
0x2ff8   : > { %6729 = vrot.lane.b32.xlu0 %v11753_v29, %s12141_s4 }
0x2ff9   : > { %v6614_v5 = vpack.c.bf16 %v6613_v4, %v6613_v4 }
0x2ffb   : > { %8707 = vmatmul.mubr.msk.bf16.vlgmr.msra.gmra.mxu1 %vm2628_vm4, %v6614_v5  ;;  %v8041_v5 = vld [vmem:[#allocation17] ss:$0 sm:$0xff] }
0x2ffc   : > { %8718 = vmatprep.mubr.msk.bf16.mxu1 %vm10405_vm0, %v10404_v1 }
0x305b   : > { %v6725_v6 = vpop.xlane.xlu0 %6724 }
0x305c   : > { %9387 = vrcp.f32 %v6725_v6 }
0x3063   : > { %v6841_v7 = vpop.xlane.xlu1 %6840 }
0x3064   : > { %9389 = vrcp.f32 %v6841_v7  ;;  %v8042_v7 = vld [vmem:[#allocation15] ss:$0 sm:$0xff] }
0x3067   : > { %v6846_v18 = vpop.permute.xlu1 %6845 }
0x3068   : > { %v6851_v20 = vsel %vm2693_vm5, %v6846_v18, 0  ;;  %v8043_v18 = vld [vmem:[#allocation9] ss:$0 sm:$0xff] }
0x3069   : > { %v9388_v9 = vpop.eup %9387 }
0x306a   : > { %v6727_v13 = vmul.f32 %v9388_v9, %v9380_v57 }
0x306b   : > { %v6957_v10 = vpop.xlane.xlu0 %6956  ;;  %v6962_v15 = vpop.permute.xlu1 %6961 }
0x306c   : > { %9391 = vrcp.f32 %v6957_v10  ;;  %v6728_v29 = vpack.c.bf16 %v6727_v13, %v6727_v13  ;;  %v6967_v25 = vsel %vm2693_vm5, %v6962_v15, 0 }
0x306f   : > { %v6730_v16 = vpop.permute.xlu0 %6729 }
0x3070   : > { %v6735_v17 = vsel %vm2693_vm5, %v6730_v16, 0  ;;  %v9277_v16 = vld [vmem:[%s12174_s8 + $0x8] sm:$0xff]  }
0x3071   : > { %8717 = vmatpush3.bf16.msra.mxu1 %v6735_v17  ;;  %v9390_v19 = vpop.eup %9389  ;;  %v9278_v17 = vld [vmem:[%s12174_s8] sm:$0xff]  }
0x3072   : > { %8728 = vmatprep.subr.bf16.mxu1 %v10404_v1  ;;  %v6843_v23 = vmul.f32 %v9390_v19, %v9382_v60 }
0x3074   : > { %8719 = vmatmul.mubr.msk.bf16.vlgmr.msra.gmra.mxu1 %vm2628_vm4, %v6728_v29  ;;  %v6844_v24 = vpack.c.bf16 %v6843_v23, %v6843_v23 }
0x3075   : > { %8729 = vmatpush3.bf16.msra.mxu1 %v6851_v20  ;;  %8730 = vmatprep.mubr.msk.bf16.mxu1 %vm10405_vm0, %v10404_v1 }
0x3076   : > { %8740 = vmatprep.subr.bf16.mxu1 %v10404_v1 }
0x3079   : > { %v9392_v59 = vpop.eup %9391 }
0x307a   : > { %v6959_v26 = vmul.f32 %v9392_v59, %v9384_v62 }
0x307c   : > { %8731 = vmatmul.mubr.msk.bf16.vlgmr.msra.gmra.mxu1 %vm2628_vm4, %v6844_v24  ;;  %v6960_v27 = vpack.c.bf16 %v6959_v26, %v6959_v26 }
0x307d   : > { %8741 = vmatpush3.bf16.msra.mxu1 %v6967_v25  ;;  %8742 = vmatprep.mubr.msk.bf16.mxu1 %vm10405_vm0, %v10404_v1  ;;  %v8047_v25 = vld [vmem:[#allocation11] ss:$0 sm:$0xff] }
0x307e   : > { %8754 = vmatprep.subr.bf16.mxu1 %v10404_v1 }
0x3084   : > { %8743 = vmatmul.mubr.msk.bf16.vlgmr.msra.gmra.mxu1 %vm2628_vm4, %v6960_v27 }
0x3085   : > { %8758 = vmatprep.mubr.msk.bf16.mxu1 %vm10405_vm0, %v10404_v1 }
0x30bb   : > { %v6658_v8 = vpop.f32.mrf.mxu1 }
0x30bc   : > { %6664 = vst.msk [vmem:[#allocation2] sm:$0xff] %vm2628_vm4, %v6658_v8 }
0x30bd   : > { %v8708_v30 = vpop.f32.mrf.mxu1 }
0x30bf   : > { %v6661_v31 = vpop.f32.mrf.mxu1 }
0x30c1   : > { %v8709_v21 = vpop.f32.mrf.mxu1 }
0x3134   : > { %v6771_v32 = vpop.f32.mrf.mxu1 }
0x3135   : > { %6778 = vrot.lane.b32.xlu0 %v6771_v32, %s12132_s0 }
0x3136   : > { %v8720_v22 = vpop.f32.mrf.mxu1 }
0x3138   : > { %v6774_v33 = vpop.f32.mrf.mxu1 }
0x313a   : > { %v8721_v37 = vpop.f32.mrf.mxu1 }
0x313c   : > { %v6887_v28 = vpop.f32.mrf.mxu1 }
0x313d   : > { %6894 = vrot.lane.b32.xlu1 %v6887_v28, %s12133_s2  ;;  %s12173_s2 = sld [smem:[#allocation98_spill]]  ;;  %v9279_v28 = vld [vmem:[%s10775_s14 + $0x8] sm:$0xff]  }
0x313e   : > { %v8732_v11 = vpop.f32.mrf.mxu1 }
0x313f   : > { %v9280_v11 = vld [vmem:[%s10775_s14] sm:$0xff]  }
0x3140   : > { %v6890_v12 = vpop.f32.mrf.mxu1 }
0x3142   : > { %v8733_v39 = vpop.f32.mrf.mxu1 }
0x3143   : > { %v9273_v62 = vld [vmem:[%s12173_s2 + $0x8] sm:$0xff]   ;;  %v9274_v2 = vld [vmem:[%s12173_s2] sm:$0xff]  }
0x3144   : > { %v7003_v41 = vpop.f32.mrf.mxu1  ;;  %8755 = vmatpush3.bf16.msra.mxu1 %v9273_v62 }
0x3145   : > { %7010 = vrot.lane.b32.xlu0 %v7003_v41, %s12134_s3  ;;  %8756 = vmatprep.subr.bf16.mxu1 %v10404_v1  ;;  %s2428_s3 = sand.u32 1, %s10293_s15  }
0x3146   : > { %v8744_v42 = vpop.f32.mrf.mxu1  ;;  %s7868_s0 = sshll.u32 %s2428_s3, 3  ;;  %s7362_s18 = scalar_lea.sflag [#allocation5], %s2428_s3 }
0x3147   : > { %s2430_s4 = scalar_lea.vmem [#allocation50], %s7868_s0 }
0x3148   : > { %v7006_v43 = vpop.f32.mrf.mxu1  ;;  %8757 = vmatpush3.bf16.msra.mxu1 %v9274_v2  ;;  %s7375_s26 = sshll.u32 %s2430_s4, 4  ;;  %s11878_s26 = int_to_ptr.vmem [resolvable:$true] %s7375_s26 }
0x3149   : > { %8774 = vmatprep.subr.bf16.mxu1 %v10404_v1  ;;  %v8053_v43 = vld [vmem:[#allocation20] ss:$0 sm:$0xff]  ;;  %s10177_s16 = scalar_lea.vmem %s11878_s26, 128  ;;  %p10184_p2 = scmp.lt.s32.totalorder %s11878_s26, %s10182_s12 }
0x314a   : > { %v8745_v44 = vpop.f32.mrf.mxu1  ;;  %p10178_p12 = scmp.ne.s32.totalorder %s11878_s26, %s10177_s16  ;;  %p10185_p3 = scmp.lt.s32.totalorder %s10183_s1, %s10177_s16 }
0x314c   : > { %p10179_p0 = pnand %p10178_p12, %p12175_p11  ;;  %p10186_p9 = por %p10185_p3, %p10184_p2 }
0x314e   : > { %p10180_p1 = pneg %p10179_p0 }
0x3150   : > { %p10187_p4 = pnand %p10186_p9, %p10180_p1 }
0x31a7   : > { %v6779_v46 = vpop.permute.xlu0 %6778 }
0x31a8   : > { %6781 = vst.msk [vmem:[#allocation2] sm:$0xff] %vm2853_vm6, %v6779_v46  ;;  %v8054_v46 = vld [vmem:[#allocation18] ss:$0 sm:$0xff] }
0x31af   : > { %v6895_v36 = vpop.permute.xlu1 %6894 }
0x31b0   : > { %6897 = vst.msk [vmem:[#allocation2] sm:$0xff] %vm2970_vm7, %v6895_v36 }
0x31b7   : > { %v7011_v48 = vpop.permute.xlu0 %7010 }
0x31b8   : > { %7013 = vst.msk [vmem:[#allocation2] sm:$0xff] %vm3087_vm8, %v7011_v48 }
0x31bf   : > { %v7014_v49 = vld [vmem:[#allocation2] sm:$0xff] }
0x31c0   : > { %v7015_v40 = vpack.c.bf16 %v7014_v49, %v7014_v49 }
0x31c2   : > { %8751 = vmatmul.mubr.msk.bf16.vlgmr.msra.gmra.mxu0 %vm2580_vm3, %v7015_v40 }
0x31c3   : > { %8770 = vmatprep.mubr.msk.bf16.mxu0 %vm10405_vm0, %v10404_v1 }
0x3282   : > { %v7076_v14 = vpop.f32.mrf.mxu0 }
0x3283   : > { %v7077_v52 = vadd.f32 %v8037_v51, %v7076_v14 }
0x3284   : > { %v8752_v53 = vpop.f32.mrf.mxu0 }
0x3285   : > { %v7082_v54 = vadd.f32 %v7077_v52, %v11766_v0  ;;  %v9275_v0 = vld [vmem:[%s12174_s8 + $0x18] sm:$0xff]  }
0x3286   : > { %v7079_v55 = vpop.f32.mrf.mxu0  ;;  %8763 = vmatpush3.bf16.msra.mxu0 %v9275_v0 }
0x3287   : > { %v7083_v45 = vsel %vm2580_vm3, %v7082_v54, 0.0  ;;  %8764 = vmatprep.subr.bf16.mxu0 %v10404_v1 }
0x3288   : > { %7084 = vadd.xlane.f32.xlu1 %v7083_v45  ;;  %v8753_v56 = vpop.f32.mrf.mxu0 }
0x328a   : > { %8765 = vmatpush3.bf16.msra.mxu0 %v9276_v3 }
0x328b   : > { %8766 = vmatprep.subr.bf16.mxu0 %v10404_v1 }
0x328e   : > { %8767 = vmatpush3.bf16.msra.mxu0 %v9277_v16 }
0x328f   : > { %8768 = vmatprep.subr.bf16.mxu0 %v10404_v1 }
0x3292   : > { %8769 = vmatpush3.bf16.msra.mxu0 %v9278_v17 }
0x3311   : > { %v7085_v57 = vpop.xlane.xlu1 %7084 }
0x3312   : > { %v7086_v47 = vmul.f32 0.03125, %v7085_v57 }
0x3314   : > { %v7087_v58 = vsub.f32 %v7082_v54, %v7086_v47 }
0x3316   : > { %v7088_v60 = vmul.f32 %v7087_v58, %v7087_v58 }
0x3318   : > { %v7089_v61 = vsel %vm2580_vm3, %v7088_v60, 0.0 }
0x3319   : > { %7090 = vadd.xlane.f32.xlu0 %v7089_v61 }
0x33a2   : > { %v7091_v50 = vpop.xlane.xlu0 %7090 }
0x33a3   : > { %v7092_v34 = vmul.f32 0.03125, %v7091_v50 }
0x33a5   : > { %v7093_v63 = vadd.f32 1e-05, %v7092_v34 }
0x33a7   : > { %9393 = vrsqrt.f32 %v7093_v63 }
0x33b4   : > { %v9394_v4 = vpop.eup %9393 }
0x33b5   : > { %v7095_v6 = vmul.f32 %v9394_v4, %v7087_v58 }
0x33b7   : > { %v7103_v9 = vmul.f32 %v8041_v5, %v7095_v6 }
0x33b9   : > { %v7111_v10 = vadd.f32 %v8042_v7, %v7103_v9 }
0x33bb   : > { %v7112_v13 = vpack.c.bf16 %v7111_v10, %v7111_v10 }
0x33bd   : > { %8759 = vmatmul.mubr.msk.bf16.vlgmr.msra.gmra.mxu1 %vm2580_vm3, %v7112_v13 }
0x33be   : > { %8778 = vmatprep.mubr.msk.bf16.mxu1 %vm10405_vm0, %v10404_v1  ;;  %8775 = vmatpush3.bf16.msra.mxu1 %v9279_v28 }
0x33bf   : > { %8776 = vmatprep.subr.bf16.mxu1 %v10404_v1  ;;  %v8055_v1 = vld [vmem:[#allocation48] ss:$0 sm:$0xff] }
0x33c2   : > { %8777 = vmatpush3.bf16.msra.mxu1 %v9280_v11 }
0x347d   : > { %v7173_v29 = vpop.f32.mrf.mxu1 }
0x347e   : > { %v7174_v19 = vadd.f32 %v8043_v18, %v7173_v29 }
0x347f   : > { %v8760_v20 = vpop.f32.mrf.mxu1 }
0x3480   : > { %v7179_v23 = vmax.f32 %v7174_v19, 0.0 }
0x3481   : > { %v7176_v15 = vpop.f32.mrf.mxu1 }
0x3482   : > { %v7180_v24 = vpack.c.bf16 %v7179_v23, %v7179_v23 }
0x3483   : > { %v8761_v59 = vpop.f32.mrf.mxu1 }
0x3484   : > { %8771 = vmatmul.mubr.msk.bf16.vlgmr.msra.gmra.mxu0 %vm3296_vm9, %v7180_v24 }
0x3544   : > { %v7257_v26 = vpop.f32.mrf.mxu0 }
0x3545   : > { %v7258_v27 = vadd.f32 %v8047_v25, %v7257_v26 }
0x3546   : > { %v8772_v8 = vpop.f32.mrf.mxu0 }
0x3547   : > { %v7263_v30 = vadd.f32 %v7258_v27, %v7111_v10 }
0x3548   : > { %v7260_v31 = vpop.f32.mrf.mxu0 }
0x3549   : > { %v7264_v21 = vsel %vm2580_vm3, %v7263_v30, 0.0 }
0x354a   : > { %7265 = vadd.xlane.f32.xlu0 %v7264_v21  ;;  %v8773_v32 = vpop.f32.mrf.mxu0 }
0x35d3   : > { %v7266_v22 = vpop.xlane.xlu0 %7265 }
0x35d4   : > { %v7267_v33 = vmul.f32 0.03125, %v7266_v22 }
0x35d6   : > { %v7268_v35 = vsub.f32 %v7263_v30, %v7267_v33 }
0x35d8   : > { %v7269_v37 = vmul.f32 %v7268_v35, %v7268_v35 }
0x35da   : > { %v7270_v38 = vsel %vm2580_vm3, %v7269_v37, 0.0 }
0x35db   : > { %7271 = vadd.xlane.f32.xlu1 %v7270_v38 }
0x3664   : > { %v7272_v12 = vpop.xlane.xlu1 %7271 }
0x3665   : > { %v7273_v39 = vmul.f32 0.03125, %v7272_v12 }
0x3667   : > { %v7274_v41 = vadd.f32 1e-05, %v7273_v39 }
0x3669   : > { %9395 = vrsqrt.f32 %v7274_v41 }
0x3676   : > { %v9396_v42 = vpop.eup %9395 }
0x3677   : > { %v7276_v44 = vmul.f32 %v9396_v42, %v7268_v35 }
0x3679   : > { %v7284_v36 = vmul.f32 %v8053_v43, %v7276_v44 }
0x367b   : > { %v7292_v48 = vadd.f32 %v8054_v46, %v7284_v36 }
0x367d   : > { %v7293_v49 = vpack.c.bf16 %v7292_v48, %v7292_v48 }
0x367f   : > { %8779 = vmatmul.mubr.msk.bf16.vlgmr.msra.gmra.mxu1 %vm2580_vm3, %v7293_v49 }
0x373f   : > { %v7354_v40 = vpop.f32.mrf.mxu1 }
0x3740   : > { %v7355_v51 = vadd.f32 %v8055_v1, %v7354_v40 }
0x3741   : > { %v8780_v14 = vpop.f32.mrf.mxu1 }
0x3742   : > { %7360 = vst [vmem:[%s2430_s4] sm:$0xff] %v7355_v51 }
0x3743   : > { %v7357_v52 = vpop.f32.mrf.mxu1 }
0x3744   : > { %10190 = shalt.err (!%p10187_p4)
}
0x3745   : > { %s10191_s3 = scalar_lea.hbm %s11876_s6, 128  ;;  %s10195_s0 = scalar_lea.hbm %s10780_s27, 256 }
0x3746   : > { %p10192_p5 = scmp.ne.s32.totalorder %s11876_s6, %s10191_s3  ;;  %p10196_p13 = scmp.lt.s32.totalorder %s11876_s6, %s10780_s27 }
0x3747   : > { %p10197_p7 = scmp.lt.s32.totalorder %s10195_s0, %s10191_s3 }
0x3748   : > { %p10193_p6 = pnand %p10192_p5, %p12175_p11 }
0x3749   : > { %p10198_p8 = por %p10197_p7, %p10196_p13 }
0x374a   : > { %p10194_p10 = pneg %p10193_p6 }
0x374c   : > { %p10199_p12 = pnand %p10198_p8, %p10194_p10 }
0x374e   : > { %10202 = shalt.err (!%p10199_p12)
}
0x374f   : > { %8902 = dma.vmem_to_hbm [thread:$0]  (%p12175_p11), %s11878_s26, 128, %s11876_s6, %s7362_s18   ;;  %v8781_v53 = vpop.f32.mrf.mxu1 }
0x3750 PF: > { %s12176_s9 = sld [smem:[#allocation132_spill]] }
0x3751   : > { %s12177_s4 = sld [smem:[#allocation130_spill]] }
0x3752   : > { %s12178_s16 = sld [smem:[#allocation135_spill]] }
0x3756   : > { %p9059_p0 = scmp.ge.s32.totalorder %s12176_s9, 2 }
0x3757   : > { %s7387_s22 = sand.u32 1, %s12177_s4  }
0x3758   : > { %p12179_p1 = scmp.ne.s32.totalorder %s12178_s16, 0  ;;  %s7388_s12 = scalar_lea.sflag [#allocation5], %s7387_s22 }
0x375a   : > { %p8996_p2 = pnand %p9059_p0, %p12179_p1 }
0x375c   : > { %p8997_p3 = pneg %p8996_p2 }
0x375e   : > { %10284 = dma.done.wait (%p8997_p3), %s7388_s12, 128  }
0x375f   : > { %10286 = vsyncadd (%p8997_p3), %s7388_s12, 4294967168  ;;  %s12180_s18 = sld [smem:[#allocation133_spill]]  ;;  %s12183_s0 = smov %s10293_s15 }
0x3760   : > { %s12181_s1 = sld [smem:[#allocation131_spill]] }
0x3761   : > { %s12182_s16 = sld [smem:[#allocation134_spill]] }
0x3765   : > { %p167_p9 = scmp.ge.s32.totalorder %s12180_s18, 4  }
0x3766   : > { %s12184_s15 = smov %s12181_s1 }
0x3767   :  { %169 = sbr.rel (!%p167_p9) target bundleno = 159 (0x9f), region = 529 }
0x376c   :  { %7393 = vsyncpa [#allocation4], 1 }
0x376d   :  { %7395 = vsyncpa [#allocation4 + $0x1], 1 }
0x376e   :  { %7396 = vsyncpa [#allocation7], 1 }
0x376f   :  { %7397 = vsyncpa [#allocation10], 1 }
0x3770   :  { %7398 = vsyncpa [#allocation13], 1 }
0x3771   :  { %7399 = vsyncpa [#allocation16], 1 }
0x3772   :  { %7400 = vsyncpa [#allocation19], 1 }
0x3773   :  { %7401 = vsyncpa [#allocation22], 1 }
0x3774   :  { %7402 = vsyncpa [#allocation25], 1 }
0x3775   :  { %7403 = vsyncpa [#allocation28], 1 }
0x3776   :  { %7404 = vsyncpa [#allocation31], 1 }
0x3777   :  { %7405 = vsyncpa [#allocation34], 1 }
0x3778   :  { %7406 = vsyncpa [#allocation37], 1 }
0x3779   :  { %7407 = vsyncpa [#allocation40], 1 }
0x377a   :  { %7408 = vsyncpa [#allocation43], 1 }
0x377b   :  { %7409 = vsyncpa [#allocation46], 1 }
0x377c   :  { %7410 = vsyncpa [#allocation49], 1 }
0x377d   :  { %7411 = vsyncpa [#allocation5], 1 }
0x377e   :  { %7413 = vsyncpa [#allocation5 + $0x1], 1 }

</bundles_post_ra>
